<compile_context>
chip_gen: v7x
topology: tpu7x:2x2x1
jax: 0.10.0
libtpu: 0.0.40
codegen_flags: <defaults>
</compile_context>

<pallas_src>
import functools

import jax
import jax.numpy as jnp
from jax.experimental import pallas as pl


_EPS = 1e-5


# ---------------------------------------------------------------------------
# Kernel 1: Linear(200->100) + ConvTranspose2d(nz, Co, 4, 1, 0) on the 1x1
#           input (single matmul) + BatchNorm2d(train) + ReLU.
# Inputs (transposed orientation):
#   hT (200,B)  wl (100,200)  bl (100,1)  w1 (16*Co,100)  gamma/beta (Co,1)
# Output: (16, Co, B)   [spatial position p = kh*4+kw major]
# ---------------------------------------------------------------------------
def _head_kernel(hT_ref, wl_ref, bl_ref, w1_ref, gamma_ref, beta_ref, o_ref,
                 *, eps):
    # Linear: y = Wl @ h^T + b                                   (100, B)
    y = jnp.dot(wl_ref[...], hT_ref[...], preferred_element_type=jnp.float32)
    y = y + bl_ref[...]
    # ConvTranspose2d on a 1x1 input == one matmul:
    #   z[(p, co), b] = sum_ci w1[ci, co, kh, kw] * y[ci, b]     (16*Co, B)
    z = jnp.dot(w1_ref[...], y, preferred_element_type=jnp.float32)

    n_pos = o_ref.shape[0]                     # 16 spatial positions (4x4)
    co = o_ref.shape[1]
    batch = o_ref.shape[2]

    # BatchNorm2d (training mode, biased batch stats) per channel.
    tot = jnp.zeros((co, 1), jnp.float32)
    totsq = jnp.zeros((co, 1), jnp.float32)
    blocks = []
    for p in range(n_pos):                     # tile-aligned static slices
        blk = z[p * co:(p + 1) * co, :]        # (Co, B)
        blocks.append(blk)
        tot = tot + jnp.sum(blk, axis=1, keepdims=True)
        totsq = totsq + jnp.sum(blk * blk, axis=1, keepdims=True)
    inv_n = 1.0 / float(n_pos * batch)
    mean = tot * inv_n
    var = jnp.maximum(totsq * inv_n - mean * mean, 0.0)   # clamp cancellation
    scale = gamma_ref[...] * jax.lax.rsqrt(var + eps)     # (Co, 1)
    shift = beta_ref[...] - mean * scale
    for p in range(n_pos):
        o_ref[p] = jnp.maximum(blocks[p] * scale + shift, 0.0)


# ---------------------------------------------------------------------------
# Kernels 2-4: ConvTranspose2d(Ci, Co, 4, 2, 1, bias=False) in parity form
#              + BatchNorm2d(train) + ReLU (+ optional fused 1x1 conv + Tanh).
# Inputs:
#   x (4, 4*Ci, M) bf16   w (4, Co, 4*Ci) bf16   gamma/beta (Co,1) f32
#   [w5 (Cout, Co) f32 when fuse_tail]
# Output: (4, Co_out, M) f32,  M = B*H*W (half-resolution grid).
# ---------------------------------------------------------------------------
def _parity_convT_kernel(*refs, eps, fuse_tail):
    if fuse_tail:
        x_ref, w_ref, gamma_ref, beta_ref, w5_ref, o_ref = refs
    else:
        x_ref, w_ref, gamma_ref, beta_ref, o_ref = refs

    n_par = x_ref.shape[0]                     # 4 output-parity groups
    m = x_ref.shape[-1]                        # B * H * W
    co = w_ref.shape[1]

    zs = []
    tot = jnp.zeros((co, 1), jnp.float32)
    totsq = jnp.zeros((co, 1), jnp.float32)
    for g in range(n_par):
        # taps folded into the contraction: (Co, 4*Ci) @ (4*Ci, M), f32 acc.
        z = jnp.dot(w_ref[g], x_ref[g], preferred_element_type=jnp.float32)
        zs.append(z)
        tot = tot + jnp.sum(z, axis=1, keepdims=True)
        totsq = totsq + jnp.sum(z * z, axis=1, keepdims=True)

    # BatchNorm2d batch statistics over every output pixel (all 4 parities).
    inv_n = 1.0 / float(n_par * m)
    mean = tot * inv_n
    var = jnp.maximum(totsq * inv_n - mean * mean, 0.0)
    scale = gamma_ref[...] * jax.lax.rsqrt(var + eps)
    shift = beta_ref[...] - mean * scale

    for g in range(n_par):
        r = jnp.maximum(zs[g] * scale + shift, 0.0)
        if fuse_tail:
            # fused final 1x1 ConvTranspose2d (no bias) + Tanh
            r = jnp.tanh(jnp.dot(w5_ref[...], r,
                                 preferred_element_type=jnp.float32))
        o_ref[g] = r


# ---------------------------------------------------------------------------
# Wrapper glue: sub-pixel (parity) im2col for ConvTranspose2d(K=4, s=2, p=1).
# ---------------------------------------------------------------------------
def _parity_taps(x_cf, weight):
    """x_cf: (Ci, B, H, W) f32;  weight: (Ci, Co, 4, 4) PyTorch layout.

    Returns x_par (4, 4*Ci, B*H*W) and w_par (4, Co, 4*Ci) such that
        out[co, b, 2i+r, 2j+s] = (w_par[g] @ x_par[g])[co, (b, i, j)]
    with parity group g = 2*r + s.
    """
    ci, b, h, w = x_cf.shape
    xp = jnp.pad(x_cf, ((0, 0), (0, 0), (1, 1), (1, 1)))
    x_groups, w_groups = [], []
    for r in range(2):
        for s in range(2):
            xt, wt = [], []
            for d in range(2):
                for e in range(2):
                    kh = 3 - r - 2 * d
                    kw = 3 - s - 2 * e
                    xt.append(xp[:, :, r + d:r + d + h, s + e:s + e + w])
                    wt.append(weight[:, :, kh, kw])            # (Ci, Co)
            x_groups.append(
                jnp.concatenate(xt, axis=0).reshape(4 * ci, b * h * w))
            w_groups.append(jnp.concatenate(wt, axis=0).T)     # (Co, 4*Ci)
    return jnp.stack(x_groups, axis=0), jnp.stack(w_groups, axis=0)


def conv_transpose_s2_bn_relu(x_cf, weight, gamma, beta, *, w_1x1_tanh=None):
    """One single-step pallas_call: ConvT(4,2,1) + BN(train) + ReLU
    (+ optional fused 1x1 conv + Tanh).  Returns (Co_out, B, 2H, 2W)."""
    _, b, h, w = x_cf.shape
    co = weight.shape[1]
    m = b * h * w
    x_par, w_par = _parity_taps(x_cf, weight)
    # bf16 MXU operands, f32 accumulation, f32 epilogue.
    x_par = x_par.astype(jnp.bfloat16)
    w_par = w_par.astype(jnp.bfloat16)

    fuse_tail = w_1x1_tanh is not None
    out_co = w_1x1_tanh.shape[0] if fuse_tail else co
    args = [x_par, w_par, gamma[:, None], beta[:, None]]
    if fuse_tail:
        args.append(w_1x1_tanh)

    out = pl.pallas_call(
        functools.partial(_parity_convT_kernel, eps=_EPS, fuse_tail=fuse_tail),
        out_shape=jax.ShapeDtypeStruct((4, out_co, m), jnp.float32),
    )(*args)

    # Re-interleave the 4 parity groups -> (Co_out, B, 2H, 2W).
    o = out.reshape(2, 2, out_co, b, h, w)
    o = jnp.transpose(o, (2, 3, 4, 0, 5, 1)).reshape(out_co, b, 2 * h, 2 * w)
    return o


# ---------------------------------------------------------------------------
# Full Generator forward (matches the PyTorch module, BN in training mode).
# ---------------------------------------------------------------------------
def generator_forward(params, x, labels):
    b = labels.shape[0]

    # embedding lookup + concat  (tiny gather -> plain JAX glue)
    emb = params["embedding"][labels]                       # (B, 100)
    h = jnp.concatenate([x.reshape(b, -1), emb], axis=1)    # (B, 200)

    # --- kernel 1: Linear + ct1 (1x1 input) + BN + ReLU ---------------------
    w1 = params["ct1_w"]                                    # (nz, ngf*8, 4, 4)
    nz, ngf8, kk, _ = w1.shape
    # rows ordered (kh, kw, co) so per-channel slices inside the kernel are
    # contiguous and tile aligned.
    w1_mat = jnp.transpose(w1, (2, 3, 1, 0)).reshape(kk * kk * ngf8, nz)
    head = pl.pallas_call(
        functools.partial(_head_kernel, eps=_EPS),
        out_shape=jax.ShapeDtypeStruct((kk * kk, ngf8, b), jnp.float32),
    )(h.T, params["linear_w"], params["linear_b"][:, None], w1_mat,
      params["ct1_gamma"][:, None], params["ct1_beta"][:, None])
    # (p, c, b) -> channel-first (c, b, 4, 4)
    feat = jnp.transpose(head, (1, 2, 0)).reshape(ngf8, b, kk, kk)

    # --- kernels 2, 3: ConvT(4,2,1) + BN + ReLU -----------------------------
    feat = conv_transpose_s2_bn_relu(feat, params["ct2_w"],
                                     params["ct2_gamma"], params["ct2_beta"])
    feat = conv_transpose_s2_bn_relu(feat, params["ct3_w"],
                                     params["ct3_gamma"], params["ct3_beta"])

    # --- kernel 4: ConvT(4,2,1) + BN + ReLU + fused ct5(1x1) + Tanh ---------
    w5 = params["ct5_w"][:, :, 0, 0].T                      # (nc, ngf)
    img_cf = conv_transpose_s2_bn_relu(
        feat, params["ct4_w"], params["ct4_gamma"], params["ct4_beta"],
        w_1x1_tanh=w5)                                      # (nc, B, 32, 32)

    return jnp.transpose(img_cf, (1, 0, 2, 3))              # -> NCHW


# ---------------------------------------------------------------------------
# Deterministic parameter construction (PyTorch layouts, synthetic values).
# ---------------------------------------------------------------------------
def make_params(key, *, nc=3, nz=100, ngf=8, num_classes=10):
    ks = jax.random.split(key, 8)
    f32 = jnp.float32
    p = {
        "embedding": 0.05 * jax.random.normal(ks[0], (num_classes, nz), f32),
        # nn.Linear(200, 100): weight (out, in) = (100, 200), bias (100,)
        "linear_w":  0.05 * jax.random.normal(ks[1], (nz, 200), f32),
        "linear_b":  0.01 * jax.random.normal(ks[2], (nz,), f32),
        # ConvTranspose2d weights, PyTorch layout (Cin, Cout, K, K)
        "ct1_w": 0.05 * jax.random.normal(ks[3], (nz,      ngf * 8, 4, 4), f32),
        "ct2_w": 0.05 * jax.random.normal(ks[4], (ngf * 8, ngf * 4, 4, 4), f32),
        "ct3_w": 0.05 * jax.random.normal(ks[5], (ngf * 4, ngf * 2, 4, 4), f32),
        "ct4_w": 0.05 * jax.random.normal(ks[6], (ngf * 2, ngf,     4, 4), f32),
        "ct5_w": 0.05 * jax.random.normal(ks[7], (ngf,     nc,      1, 1), f32),
    }
    # BatchNorm2d default init: gamma = 1, beta = 0
    for name, c in (("ct1", ngf * 8), ("ct2", ngf * 4),
                    ("ct3", ngf * 2), ("ct4", ngf)):
        p[name + "_gamma"] = jnp.ones((c,), f32)
        p[name + "_beta"] = jnp.zeros((c,), f32)
    return p


if __name__ == "__main__":
    key = jax.random.PRNGKey(0)
    k_param, k_x, k_lbl = jax.random.split(key, 3)

    B, nz, ngf, nc = 2, 100, 8, 3
    params = make_params(k_param, nc=nc, nz=nz, ngf=ngf, num_classes=10)

    x = jax.random.normal(k_x, (B, nz, 1, 1), jnp.float32)       # latent noise
    labels = jax.random.randint(k_lbl, (B,), 0, 10, jnp.int32)   # class ids

    fwd = jax.jit(generator_forward)
    out = jax.block_until_ready(fwd(params, x, labels))

    assert out.shape == (B, nc, 32, 32), out.shape
    assert bool(jnp.all(jnp.isfinite(out)))
    print("KERNEL_OK")
</pallas_src>

<mosaic_0001>
module attributes {stable_mosaic.version = 11 : i64} {
  func.func @_head_kernel(%arg0: memref<200x2xf32, #tpu.memory_space<vmem>>, %arg1: memref<100x200xf32, #tpu.memory_space<vmem>>, %arg2: memref<100x1xf32, #tpu.memory_space<vmem>>, %arg3: memref<1024x100xf32, #tpu.memory_space<vmem>>, %arg4: memref<64x1xf32, #tpu.memory_space<vmem>>, %arg5: memref<64x1xf32, #tpu.memory_space<vmem>>, %arg6: memref<16x64x2xf32, #tpu.memory_space<vmem>>) attributes {dimension_semantics = [], scalar_prefetch = 0 : i64, scratch_operands = 0 : i64, tpu.core_type = #tpu.core_type<tc>} {
    %c0 = arith.constant 0 : index
    %c0_0 = arith.constant 0 : index
    %0 = vector.load %arg1[%c0, %c0_0] : memref<100x200xf32, #tpu.memory_space<vmem>>, vector<100x200xf32>
    %c0_1 = arith.constant 0 : index
    %c0_2 = arith.constant 0 : index
    %1 = vector.load %arg0[%c0_1, %c0_2] : memref<200x2xf32, #tpu.memory_space<vmem>>, vector<200x2xf32>
    %cst = arith.constant dense<0.000000e+00> : vector<100x2xf32>
    %2 = tpu.matmul %0, %1, %cst {dimension_numbers = #tpu.dot_dimension_numbers<[1], [0], [0], [1], [0, 0, 1, 1], [], []>} : vector<100x200xf32>, vector<200x2xf32>, vector<100x2xf32> -> vector<100x2xf32>
    %c0_3 = arith.constant 0 : index
    %c0_4 = arith.constant 0 : index
    %3 = vector.load %arg2[%c0_3, %c0_4] : memref<100x1xf32, #tpu.memory_space<vmem>>, vector<100x1xf32>
    %4 = vector.broadcast %3 : vector<100x1xf32> to vector<100x2xf32>
    %5 = arith.addf %2, %4 : vector<100x2xf32>
    %c0_5 = arith.constant 0 : index
    %c0_6 = arith.constant 0 : index
    %6 = vector.load %arg3[%c0_5, %c0_6] : memref<1024x100xf32, #tpu.memory_space<vmem>>, vector<1024x100xf32>
    %cst_7 = arith.constant dense<0.000000e+00> : vector<1024x2xf32>
    %7 = tpu.matmul %6, %5, %cst_7 {dimension_numbers = #tpu.dot_dimension_numbers<[1], [0], [0], [1], [0, 0, 1, 1], [], []>} : vector<1024x100xf32>, vector<100x2xf32>, vector<1024x2xf32> -> vector<1024x2xf32>
    %cst_8 = arith.constant 0.000000e+00 : f32
    %8 = vector.broadcast %cst_8 : f32 to vector<64x1xf32>
    %cst_9 = arith.constant 0.000000e+00 : f32
    %9 = vector.broadcast %cst_9 : f32 to vector<64x1xf32>
    %10 = vector.extract_strided_slice %7 {offsets = [0, 0], sizes = [64, 2], strides = [1, 1]} : vector<1024x2xf32> to vector<64x2xf32>
    %cst_10 = arith.constant dense<0.000000e+00> : vector<64xf32>
    %11 = vector.multi_reduction <add>, %10, %cst_10 [1] : vector<64x2xf32> to vector<64xf32>
    %12 = vector.shape_cast %11 : vector<64xf32> to vector<64x1xf32>
    %13 = arith.addf %8, %12 : vector<64x1xf32>
    %14 = arith.mulf %10, %10 : vector<64x2xf32>
    %cst_11 = arith.constant dense<0.000000e+00> : vector<64xf32>
    %15 = vector.multi_reduction <add>, %14, %cst_11 [1] : vector<64x2xf32> to vector<64xf32>
    %16 = vector.shape_cast %15 : vector<64xf32> to vector<64x1xf32>
    %17 = arith.addf %9, %16 : vector<64x1xf32>
    %18 = vector.extract_strided_slice %7 {offsets = [64, 0], sizes = [64, 2], strides = [1, 1]} : vector<1024x2xf32> to vector<64x2xf32>
    %cst_12 = arith.constant dense<0.000000e+00> : vector<64xf32>
    %19 = vector.multi_reduction <add>, %18, %cst_12 [1] : vector<64x2xf32> to vector<64xf32>
    %20 = vector.shape_cast %19 : vector<64xf32> to vector<64x1xf32>
    %21 = arith.addf %13, %20 : vector<64x1xf32>
    %22 = arith.mulf %18, %18 : vector<64x2xf32>
    %cst_13 = arith.constant dense<0.000000e+00> : vector<64xf32>
    %23 = vector.multi_reduction <add>, %22, %cst_13 [1] : vector<64x2xf32> to vector<64xf32>
    %24 = vector.shape_cast %23 : vector<64xf32> to vector<64x1xf32>
    %25 = arith.addf %17, %24 : vector<64x1xf32>
    %26 = vector.extract_strided_slice %7 {offsets = [128, 0], sizes = [64, 2], strides = [1, 1]} : vector<1024x2xf32> to vector<64x2xf32>
    %cst_14 = arith.constant dense<0.000000e+00> : vector<64xf32>
    %27 = vector.multi_reduction <add>, %26, %cst_14 [1] : vector<64x2xf32> to vector<64xf32>
    %28 = vector.shape_cast %27 : vector<64xf32> to vector<64x1xf32>
    %29 = arith.addf %21, %28 : vector<64x1xf32>
    %30 = arith.mulf %26, %26 : vector<64x2xf32>
    %cst_15 = arith.constant dense<0.000000e+00> : vector<64xf32>
    %31 = vector.multi_reduction <add>, %30, %cst_15 [1] : vector<64x2xf32> to vector<64xf32>
    %32 = vector.shape_cast %31 : vector<64xf32> to vector<64x1xf32>
    %33 = arith.addf %25, %32 : vector<64x1xf32>
    %34 = vector.extract_strided_slice %7 {offsets = [192, 0], sizes = [64, 2], strides = [1, 1]} : vector<1024x2xf32> to vector<64x2xf32>
    %cst_16 = arith.constant dense<0.000000e+00> : vector<64xf32>
    %35 = vector.multi_reduction <add>, %34, %cst_16 [1] : vector<64x2xf32> to vector<64xf32>
    %36 = vector.shape_cast %35 : vector<64xf32> to vector<64x1xf32>
    %37 = arith.addf %29, %36 : vector<64x1xf32>
    %38 = arith.mulf %34, %34 : vector<64x2xf32>
    %cst_17 = arith.constant dense<0.000000e+00> : vector<64xf32>
    %39 = vector.multi_reduction <add>, %38, %cst_17 [1] : vector<64x2xf32> to vector<64xf32>
    %40 = vector.shape_cast %39 : vector<64xf32> to vector<64x1xf32>
    %41 = arith.addf %33, %40 : vector<64x1xf32>
    %42 = vector.extract_strided_slice %7 {offsets = [256, 0], sizes = [64, 2], strides = [1, 1]} : vector<1024x2xf32> to vector<64x2xf32>
    %cst_18 = arith.constant dense<0.000000e+00> : vector<64xf32>
    %43 = vector.multi_reduction <add>, %42, %cst_18 [1] : vector<64x2xf32> to vector<64xf32>
    %44 = vector.shape_cast %43 : vector<64xf32> to vector<64x1xf32>
    %45 = arith.addf %37, %44 : vector<64x1xf32>
    %46 = arith.mulf %42, %42 : vector<64x2xf32>
    %cst_19 = arith.constant dense<0.000000e+00> : vector<64xf32>
    %47 = vector.multi_reduction <add>, %46, %cst_19 [1] : vector<64x2xf32> to vector<64xf32>
    %48 = vector.shape_cast %47 : vector<64xf32> to vector<64x1xf32>
    %49 = arith.addf %41, %48 : vector<64x1xf32>
    %50 = vector.extract_strided_slice %7 {offsets = [320, 0], sizes = [64, 2], strides = [1, 1]} : vector<1024x2xf32> to vector<64x2xf32>
    %cst_20 = arith.constant dense<0.000000e+00> : vector<64xf32>
    %51 = vector.multi_reduction <add>, %50, %cst_20 [1] : vector<64x2xf32> to vector<64xf32>
    %52 = vector.shape_cast %51 : vector<64xf32> to vector<64x1xf32>
    %53 = arith.addf %45, %52 : vector<64x1xf32>
    %54 = arith.mulf %50, %50 : vector<64x2xf32>
    %cst_21 = arith.constant dense<0.000000e+00> : vector<64xf32>
    %55 = vector.multi_reduction <add>, %54, %cst_21 [1] : vector<64x2xf32> to vector<64xf32>
    %56 = vector.shape_cast %55 : vector<64xf32> to vector<64x1xf32>
    %57 = arith.addf %49, %56 : vector<64x1xf32>
    %58 = vector.extract_strided_slice %7 {offsets = [384, 0], sizes = [64, 2], strides = [1, 1]} : vector<1024x2xf32> to vector<64x2xf32>
    %cst_22 = arith.constant dense<0.000000e+00> : vector<64xf32>
    %59 = vector.multi_reduction <add>, %58, %cst_22 [1] : vector<64x2xf32> to vector<64xf32>
    %60 = vector.shape_cast %59 : vector<64xf32> to vector<64x1xf32>
    %61 = arith.addf %53, %60 : vector<64x1xf32>
    %62 = arith.mulf %58, %58 : vector<64x2xf32>
    %cst_23 = arith.constant dense<0.000000e+00> : vector<64xf32>
    %63 = vector.multi_reduction <add>, %62, %cst_23 [1] : vector<64x2xf32> to vector<64xf32>
    %64 = vector.shape_cast %63 : vector<64xf32> to vector<64x1xf32>
    %65 = arith.addf %57, %64 : vector<64x1xf32>
    %66 = vector.extract_strided_slice %7 {offsets = [448, 0], sizes = [64, 2], strides = [1, 1]} : vector<1024x2xf32> to vector<64x2xf32>
    %cst_24 = arith.constant dense<0.000000e+00> : vector<64xf32>
    %67 = vector.multi_reduction <add>, %66, %cst_24 [1] : vector<64x2xf32> to vector<64xf32>
    %68 = vector.shape_cast %67 : vector<64xf32> to vector<64x1xf32>
    %69 = arith.addf %61, %68 : vector<64x1xf32>
    %70 = arith.mulf %66, %66 : vector<64x2xf32>
    %cst_25 = arith.constant dense<0.000000e+00> : vector<64xf32>
    %71 = vector.multi_reduction <add>, %70, %cst_25 [1] : vector<64x2xf32> to vector<64xf32>
    %72 = vector.shape_cast %71 : vector<64xf32> to vector<64x1xf32>
    %73 = arith.addf %65, %72 : vector<64x1xf32>
    %74 = vector.extract_strided_slice %7 {offsets = [512, 0], sizes = [64, 2], strides = [1, 1]} : vector<1024x2xf32> to vector<64x2xf32>
    %cst_26 = arith.constant dense<0.000000e+00> : vector<64xf32>
    %75 = vector.multi_reduction <add>, %74, %cst_26 [1] : vector<64x2xf32> to vector<64xf32>
    %76 = vector.shape_cast %75 : vector<64xf32> to vector<64x1xf32>
    %77 = arith.addf %69, %76 : vector<64x1xf32>
    %78 = arith.mulf %74, %74 : vector<64x2xf32>
    %cst_27 = arith.constant dense<0.000000e+00> : vector<64xf32>
    %79 = vector.multi_reduction <add>, %78, %cst_27 [1] : vector<64x2xf32> to vector<64xf32>
    %80 = vector.shape_cast %79 : vector<64xf32> to vector<64x1xf32>
    %81 = arith.addf %73, %80 : vector<64x1xf32>
    %82 = vector.extract_strided_slice %7 {offsets = [576, 0], sizes = [64, 2], strides = [1, 1]} : vector<1024x2xf32> to vector<64x2xf32>
    %cst_28 = arith.constant dense<0.000000e+00> : vector<64xf32>
    %83 = vector.multi_reduction <add>, %82, %cst_28 [1] : vector<64x2xf32> to vector<64xf32>
    %84 = vector.shape_cast %83 : vector<64xf32> to vector<64x1xf32>
    %85 = arith.addf %77, %84 : vector<64x1xf32>
    %86 = arith.mulf %82, %82 : vector<64x2xf32>
    %cst_29 = arith.constant dense<0.000000e+00> : vector<64xf32>
    %87 = vector.multi_reduction <add>, %86, %cst_29 [1] : vector<64x2xf32> to vector<64xf32>
    %88 = vector.shape_cast %87 : vector<64xf32> to vector<64x1xf32>
    %89 = arith.addf %81, %88 : vector<64x1xf32>
    %90 = vector.extract_strided_slice %7 {offsets = [640, 0], sizes = [64, 2], strides = [1, 1]} : vector<1024x2xf32> to vector<64x2xf32>
    %cst_30 = arith.constant dense<0.000000e+00> : vector<64xf32>
    %91 = vector.multi_reduction <add>, %90, %cst_30 [1] : vector<64x2xf32> to vector<64xf32>
    %92 = vector.shape_cast %91 : vector<64xf32> to vector<64x1xf32>
    %93 = arith.addf %85, %92 : vector<64x1xf32>
    %94 = arith.mulf %90, %90 : vector<64x2xf32>
    %cst_31 = arith.constant dense<0.000000e+00> : vector<64xf32>
    %95 = vector.multi_reduction <add>, %94, %cst_31 [1] : vector<64x2xf32> to vector<64xf32>
    %96 = vector.shape_cast %95 : vector<64xf32> to vector<64x1xf32>
    %97 = arith.addf %89, %96 : vector<64x1xf32>
    %98 = vector.extract_strided_slice %7 {offsets = [704, 0], sizes = [64, 2], strides = [1, 1]} : vector<1024x2xf32> to vector<64x2xf32>
    %cst_32 = arith.constant dense<0.000000e+00> : vector<64xf32>
    %99 = vector.multi_reduction <add>, %98, %cst_32 [1] : vector<64x2xf32> to vector<64xf32>
    %100 = vector.shape_cast %99 : vector<64xf32> to vector<64x1xf32>
    %101 = arith.addf %93, %100 : vector<64x1xf32>
    %102 = arith.mulf %98, %98 : vector<64x2xf32>
    %cst_33 = arith.constant dense<0.000000e+00> : vector<64xf32>
    %103 = vector.multi_reduction <add>, %102, %cst_33 [1] : vector<64x2xf32> to vector<64xf32>
    %104 = vector.shape_cast %103 : vector<64xf32> to vector<64x1xf32>
    %105 = arith.addf %97, %104 : vector<64x1xf32>
    %106 = vector.extract_strided_slice %7 {offsets = [768, 0], sizes = [64, 2], strides = [1, 1]} : vector<1024x2xf32> to vector<64x2xf32>
    %cst_34 = arith.constant dense<0.000000e+00> : vector<64xf32>
    %107 = vector.multi_reduction <add>, %106, %cst_34 [1] : vector<64x2xf32> to vector<64xf32>
    %108 = vector.shape_cast %107 : vector<64xf32> to vector<64x1xf32>
    %109 = arith.addf %101, %108 : vector<64x1xf32>
    %110 = arith.mulf %106, %106 : vector<64x2xf32>
    %cst_35 = arith.constant dense<0.000000e+00> : vector<64xf32>
    %111 = vector.multi_reduction <add>, %110, %cst_35 [1] : vector<64x2xf32> to vector<64xf32>
    %112 = vector.shape_cast %111 : vector<64xf32> to vector<64x1xf32>
    %113 = arith.addf %105, %112 : vector<64x1xf32>
    %114 = vector.extract_strided_slice %7 {offsets = [832, 0], sizes = [64, 2], strides = [1, 1]} : vector<1024x2xf32> to vector<64x2xf32>
    %cst_36 = arith.constant dense<0.000000e+00> : vector<64xf32>
    %115 = vector.multi_reduction <add>, %114, %cst_36 [1] : vector<64x2xf32> to vector<64xf32>
    %116 = vector.shape_cast %115 : vector<64xf32> to vector<64x1xf32>
    %117 = arith.addf %109, %116 : vector<64x1xf32>
    %118 = arith.mulf %114, %114 : vector<64x2xf32>
    %cst_37 = arith.constant dense<0.000000e+00> : vector<64xf32>
    %119 = vector.multi_reduction <add>, %118, %cst_37 [1] : vector<64x2xf32> to vector<64xf32>
    %120 = vector.shape_cast %119 : vector<64xf32> to vector<64x1xf32>
    %121 = arith.addf %113, %120 : vector<64x1xf32>
    %122 = vector.extract_strided_slice %7 {offsets = [896, 0], sizes = [64, 2], strides = [1, 1]} : vector<1024x2xf32> to vector<64x2xf32>
    %cst_38 = arith.constant dense<0.000000e+00> : vector<64xf32>
    %123 = vector.multi_reduction <add>, %122, %cst_38 [1] : vector<64x2xf32> to vector<64xf32>
    %124 = vector.shape_cast %123 : vector<64xf32> to vector<64x1xf32>
    %125 = arith.addf %117, %124 : vector<64x1xf32>
    %126 = arith.mulf %122, %122 : vector<64x2xf32>
    %cst_39 = arith.constant dense<0.000000e+00> : vector<64xf32>
    %127 = vector.multi_reduction <add>, %126, %cst_39 [1] : vector<64x2xf32> to vector<64xf32>
    %128 = vector.shape_cast %127 : vector<64xf32> to vector<64x1xf32>
    %129 = arith.addf %121, %128 : vector<64x1xf32>
    %130 = vector.extract_strided_slice %7 {offsets = [960, 0], sizes = [64, 2], strides = [1, 1]} : vector<1024x2xf32> to vector<64x2xf32>
    %cst_40 = arith.constant dense<0.000000e+00> : vector<64xf32>
    %131 = vector.multi_reduction <add>, %130, %cst_40 [1] : vector<64x2xf32> to vector<64xf32>
    %132 = vector.shape_cast %131 : vector<64xf32> to vector<64x1xf32>
    %133 = arith.addf %125, %132 : vector<64x1xf32>
    %134 = arith.mulf %130, %130 : vector<64x2xf32>
    %cst_41 = arith.constant dense<0.000000e+00> : vector<64xf32>
    %135 = vector.multi_reduction <add>, %134, %cst_41 [1] : vector<64x2xf32> to vector<64xf32>
    %136 = vector.shape_cast %135 : vector<64xf32> to vector<64x1xf32>
    %137 = arith.addf %129, %136 : vector<64x1xf32>
    %cst_42 = arith.constant 3.125000e-02 : f32
    %138 = vector.broadcast %cst_42 : f32 to vector<64x1xf32>
    %139 = arith.mulf %133, %138 : vector<64x1xf32>
    %cst_43 = arith.constant 3.125000e-02 : f32
    %140 = vector.broadcast %cst_43 : f32 to vector<64x1xf32>
    %141 = arith.mulf %137, %140 : vector<64x1xf32>
    %142 = arith.mulf %139, %139 : vector<64x1xf32>
    %143 = arith.subf %141, %142 : vector<64x1xf32>
    %cst_44 = arith.constant 0.000000e+00 : f32
    %144 = vector.broadcast %cst_44 : f32 to vector<64x1xf32>
    %145 = arith.maximumf %143, %144 : vector<64x1xf32>
    %c0_45 = arith.constant 0 : index
    %c0_46 = arith.constant 0 : index
    %146 = vector.load %arg4[%c0_45, %c0_46] : memref<64x1xf32, #tpu.memory_space<vmem>>, vector<64x1xf32>
    %cst_47 = arith.constant 9.99999974E-6 : f32
    %147 = vector.broadcast %cst_47 : f32 to vector<64x1xf32>
    %148 = arith.addf %145, %147 : vector<64x1xf32>
    %149 = math.rsqrt %148 : vector<64x1xf32>
    %150 = arith.mulf %146, %149 : vector<64x1xf32>
    %c0_48 = arith.constant 0 : index
    %c0_49 = arith.constant 0 : index
    %151 = vector.load %arg5[%c0_48, %c0_49] : memref<64x1xf32, #tpu.memory_space<vmem>>, vector<64x1xf32>
    %152 = arith.mulf %139, %150 : vector<64x1xf32>
    %153 = arith.subf %151, %152 : vector<64x1xf32>
    %154 = vector.broadcast %150 : vector<64x1xf32> to vector<64x2xf32>
    %155 = arith.mulf %10, %154 : vector<64x2xf32>
    %156 = vector.broadcast %153 : vector<64x1xf32> to vector<64x2xf32>
    %157 = arith.addf %155, %156 : vector<64x2xf32>
    %cst_50 = arith.constant 0.000000e+00 : f32
    %158 = vector.broadcast %cst_50 : f32 to vector<64x2xf32>
    %159 = arith.maximumf %157, %158 : vector<64x2xf32>
    %c0_51 = arith.constant 0 : index
    %c0_52 = arith.constant 0 : index
    %c0_53 = arith.constant 0 : index
    %160 = vector.load %arg6[%c0_51, %c0_52, %c0_53] : memref<16x64x2xf32, #tpu.memory_space<vmem>>, vector<1x64x2xf32>
    %161 = vector.shape_cast %160 : vector<1x64x2xf32> to vector<64x2xf32>
    %162 = vector.shape_cast %159 : vector<64x2xf32> to vector<1x64x2xf32>
    tpu.vector_store %arg6[%c0_51, %c0_52, %c0_53], %162 {strides = array<i32>} : memref<16x64x2xf32, #tpu.memory_space<vmem>>, vector<1x64x2xf32>,
    %163 = vector.broadcast %150 : vector<64x1xf32> to vector<64x2xf32>
    %164 = arith.mulf %18, %163 : vector<64x2xf32>
    %165 = vector.broadcast %153 : vector<64x1xf32> to vector<64x2xf32>
    %166 = arith.addf %164, %165 : vector<64x2xf32>
    %cst_54 = arith.constant 0.000000e+00 : f32
    %167 = vector.broadcast %cst_54 : f32 to vector<64x2xf32>
    %168 = arith.maximumf %166, %167 : vector<64x2xf32>
    %c1 = arith.constant 1 : index
    %c0_55 = arith.constant 0 : index
    %c0_56 = arith.constant 0 : index
    %169 = vector.load %arg6[%c1, %c0_55, %c0_56] : memref<16x64x2xf32, #tpu.memory_space<vmem>>, vector<1x64x2xf32>
    %170 = vector.shape_cast %169 : vector<1x64x2xf32> to vector<64x2xf32>
    %171 = vector.shape_cast %168 : vector<64x2xf32> to vector<1x64x2xf32>
    tpu.vector_store %arg6[%c1, %c0_55, %c0_56], %171 {strides = array<i32>} : memref<16x64x2xf32, #tpu.memory_space<vmem>>, vector<1x64x2xf32>,
    %172 = vector.broadcast %150 : vector<64x1xf32> to vector<64x2xf32>
    %173 = arith.mulf %26, %172 : vector<64x2xf32>
    %174 = vector.broadcast %153 : vector<64x1xf32> to vector<64x2xf32>
    %175 = arith.addf %173, %174 : vector<64x2xf32>
    %cst_57 = arith.constant 0.000000e+00 : f32
    %176 = vector.broadcast %cst_57 : f32 to vector<64x2xf32>
    %177 = arith.maximumf %175, %176 : vector<64x2xf32>
    %c2 = arith.constant 2 : index
    %c0_58 = arith.constant 0 : index
    %c0_59 = arith.constant 0 : index
    %178 = vector.load %arg6[%c2, %c0_58, %c0_59] : memref<16x64x2xf32, #tpu.memory_space<vmem>>, vector<1x64x2xf32>
    %179 = vector.shape_cast %178 : vector<1x64x2xf32> to vector<64x2xf32>
    %180 = vector.shape_cast %177 : vector<64x2xf32> to vector<1x64x2xf32>
    tpu.vector_store %arg6[%c2, %c0_58, %c0_59], %180 {strides = array<i32>} : memref<16x64x2xf32, #tpu.memory_space<vmem>>, vector<1x64x2xf32>,
    %181 = vector.broadcast %150 : vector<64x1xf32> to vector<64x2xf32>
    %182 = arith.mulf %34, %181 : vector<64x2xf32>
    %183 = vector.broadcast %153 : vector<64x1xf32> to vector<64x2xf32>
    %184 = arith.addf %182, %183 : vector<64x2xf32>
    %cst_60 = arith.constant 0.000000e+00 : f32
    %185 = vector.broadcast %cst_60 : f32 to vector<64x2xf32>
    %186 = arith.maximumf %184, %185 : vector<64x2xf32>
    %c3 = arith.constant 3 : index
    %c0_61 = arith.constant 0 : index
    %c0_62 = arith.constant 0 : index
    %187 = vector.load %arg6[%c3, %c0_61, %c0_62] : memref<16x64x2xf32, #tpu.memory_space<vmem>>, vector<1x64x2xf32>
    %188 = vector.shape_cast %187 : vector<1x64x2xf32> to vector<64x2xf32>
    %189 = vector.shape_cast %186 : vector<64x2xf32> to vector<1x64x2xf32>
    tpu.vector_store %arg6[%c3, %c0_61, %c0_62], %189 {strides = array<i32>} : memref<16x64x2xf32, #tpu.memory_space<vmem>>, vector<1x64x2xf32>,
    %190 = vector.broadcast %150 : vector<64x1xf32> to vector<64x2xf32>
    %191 = arith.mulf %42, %190 : vector<64x2xf32>
    %192 = vector.broadcast %153 : vector<64x1xf32> to vector<64x2xf32>
    %193 = arith.addf %191, %192 : vector<64x2xf32>
    %cst_63 = arith.constant 0.000000e+00 : f32
    %194 = vector.broadcast %cst_63 : f32 to vector<64x2xf32>
    %195 = arith.maximumf %193, %194 : vector<64x2xf32>
    %c4 = arith.constant 4 : index
    %c0_64 = arith.constant 0 : index
    %c0_65 = arith.constant 0 : index
    %196 = vector.load %arg6[%c4, %c0_64, %c0_65] : memref<16x64x2xf32, #tpu.memory_space<vmem>>, vector<1x64x2xf32>
    %197 = vector.shape_cast %196 : vector<1x64x2xf32> to vector<64x2xf32>
    %198 = vector.shape_cast %195 : vector<64x2xf32> to vector<1x64x2xf32>
    tpu.vector_store %arg6[%c4, %c0_64, %c0_65], %198 {strides = array<i32>} : memref<16x64x2xf32, #tpu.memory_space<vmem>>, vector<1x64x2xf32>,
    %199 = vector.broadcast %150 : vector<64x1xf32> to vector<64x2xf32>
    %200 = arith.mulf %50, %199 : vector<64x2xf32>
    %201 = vector.broadcast %153 : vector<64x1xf32> to vector<64x2xf32>
    %202 = arith.addf %200, %201 : vector<64x2xf32>
    %cst_66 = arith.constant 0.000000e+00 : f32
    %203 = vector.broadcast %cst_66 : f32 to vector<64x2xf32>
    %204 = arith.maximumf %202, %203 : vector<64x2xf32>
    %c5 = arith.constant 5 : index
    %c0_67 = arith.constant 0 : index
    %c0_68 = arith.constant 0 : index
    %205 = vector.load %arg6[%c5, %c0_67, %c0_68] : memref<16x64x2xf32, #tpu.memory_space<vmem>>, vector<1x64x2xf32>
    %206 = vector.shape_cast %205 : vector<1x64x2xf32> to vector<64x2xf32>
    %207 = vector.shape_cast %204 : vector<64x2xf32> to vector<1x64x2xf32>
    tpu.vector_store %arg6[%c5, %c0_67, %c0_68], %207 {strides = array<i32>} : memref<16x64x2xf32, #tpu.memory_space<vmem>>, vector<1x64x2xf32>,
    %208 = vector.broadcast %150 : vector<64x1xf32> to vector<64x2xf32>
    %209 = arith.mulf %58, %208 : vector<64x2xf32>
    %210 = vector.broadcast %153 : vector<64x1xf32> to vector<64x2xf32>
    %211 = arith.addf %209, %210 : vector<64x2xf32>
    %cst_69 = arith.constant 0.000000e+00 : f32
    %212 = vector.broadcast %cst_69 : f32 to vector<64x2xf32>
    %213 = arith.maximumf %211, %212 : vector<64x2xf32>
    %c6 = arith.constant 6 : index
    %c0_70 = arith.constant 0 : index
    %c0_71 = arith.constant 0 : index
    %214 = vector.load %arg6[%c6, %c0_70, %c0_71] : memref<16x64x2xf32, #tpu.memory_space<vmem>>, vector<1x64x2xf32>
    %215 = vector.shape_cast %214 : vector<1x64x2xf32> to vector<64x2xf32>
    %216 = vector.shape_cast %213 : vector<64x2xf32> to vector<1x64x2xf32>
    tpu.vector_store %arg6[%c6, %c0_70, %c0_71], %216 {strides = array<i32>} : memref<16x64x2xf32, #tpu.memory_space<vmem>>, vector<1x64x2xf32>,
    %217 = vector.broadcast %150 : vector<64x1xf32> to vector<64x2xf32>
    %218 = arith.mulf %66, %217 : vector<64x2xf32>
    %219 = vector.broadcast %153 : vector<64x1xf32> to vector<64x2xf32>
    %220 = arith.addf %218, %219 : vector<64x2xf32>
    %cst_72 = arith.constant 0.000000e+00 : f32
    %221 = vector.broadcast %cst_72 : f32 to vector<64x2xf32>
    %222 = arith.maximumf %220, %221 : vector<64x2xf32>
    %c7 = arith.constant 7 : index
    %c0_73 = arith.constant 0 : index
    %c0_74 = arith.constant 0 : index
    %223 = vector.load %arg6[%c7, %c0_73, %c0_74] : memref<16x64x2xf32, #tpu.memory_space<vmem>>, vector<1x64x2xf32>
    %224 = vector.shape_cast %223 : vector<1x64x2xf32> to vector<64x2xf32>
    %225 = vector.shape_cast %222 : vector<64x2xf32> to vector<1x64x2xf32>
    tpu.vector_store %arg6[%c7, %c0_73, %c0_74], %225 {strides = array<i32>} : memref<16x64x2xf32, #tpu.memory_space<vmem>>, vector<1x64x2xf32>,
    %226 = vector.broadcast %150 : vector<64x1xf32> to vector<64x2xf32>
    %227 = arith.mulf %74, %226 : vector<64x2xf32>
    %228 = vector.broadcast %153 : vector<64x1xf32> to vector<64x2xf32>
    %229 = arith.addf %227, %228 : vector<64x2xf32>
    %cst_75 = arith.constant 0.000000e+00 : f32
    %230 = vector.broadcast %cst_75 : f32 to vector<64x2xf32>
    %231 = arith.maximumf %229, %230 : vector<64x2xf32>
    %c8 = arith.constant 8 : index
    %c0_76 = arith.constant 0 : index
    %c0_77 = arith.constant 0 : index
    %232 = vector.load %arg6[%c8, %c0_76, %c0_77] : memref<16x64x2xf32, #tpu.memory_space<vmem>>, vector<1x64x2xf32>
    %233 = vector.shape_cast %232 : vector<1x64x2xf32> to vector<64x2xf32>
    %234 = vector.shape_cast %231 : vector<64x2xf32> to vector<1x64x2xf32>
    tpu.vector_store %arg6[%c8, %c0_76, %c0_77], %234 {strides = array<i32>} : memref<16x64x2xf32, #tpu.memory_space<vmem>>, vector<1x64x2xf32>,
    %235 = vector.broadcast %150 : vector<64x1xf32> to vector<64x2xf32>
    %236 = arith.mulf %82, %235 : vector<64x2xf32>
    %237 = vector.broadcast %153 : vector<64x1xf32> to vector<64x2xf32>
    %238 = arith.addf %236, %237 : vector<64x2xf32>
    %cst_78 = arith.constant 0.000000e+00 : f32
    %239 = vector.broadcast %cst_78 : f32 to vector<64x2xf32>
    %240 = arith.maximumf %238, %239 : vector<64x2xf32>
    %c9 = arith.constant 9 : index
    %c0_79 = arith.constant 0 : index
    %c0_80 = arith.constant 0 : index
    %241 = vector.load %arg6[%c9, %c0_79, %c0_80] : memref<16x64x2xf32, #tpu.memory_space<vmem>>, vector<1x64x2xf32>
    %242 = vector.shape_cast %241 : vector<1x64x2xf32> to vector<64x2xf32>
    %243 = vector.shape_cast %240 : vector<64x2xf32> to vector<1x64x2xf32>
    tpu.vector_store %arg6[%c9, %c0_79, %c0_80], %243 {strides = array<i32>} : memref<16x64x2xf32, #tpu.memory_space<vmem>>, vector<1x64x2xf32>,
    %244 = vector.broadcast %150 : vector<64x1xf32> to vector<64x2xf32>
    %245 = arith.mulf %90, %244 : vector<64x2xf32>
    %246 = vector.broadcast %153 : vector<64x1xf32> to vector<64x2xf32>
    %247 = arith.addf %245, %246 : vector<64x2xf32>
    %cst_81 = arith.constant 0.000000e+00 : f32
    %248 = vector.broadcast %cst_81 : f32 to vector<64x2xf32>
    %249 = arith.maximumf %247, %248 : vector<64x2xf32>
    %c10 = arith.constant 10 : index
    %c0_82 = arith.constant 0 : index
    %c0_83 = arith.constant 0 : index
    %250 = vector.load %arg6[%c10, %c0_82, %c0_83] : memref<16x64x2xf32, #tpu.memory_space<vmem>>, vector<1x64x2xf32>
    %251 = vector.shape_cast %250 : vector<1x64x2xf32> to vector<64x2xf32>
    %252 = vector.shape_cast %249 : vector<64x2xf32> to vector<1x64x2xf32>
    tpu.vector_store %arg6[%c10, %c0_82, %c0_83], %252 {strides = array<i32>} : memref<16x64x2xf32, #tpu.memory_space<vmem>>, vector<1x64x2xf32>,
    %253 = vector.broadcast %150 : vector<64x1xf32> to vector<64x2xf32>
    %254 = arith.mulf %98, %253 : vector<64x2xf32>
    %255 = vector.broadcast %153 : vector<64x1xf32> to vector<64x2xf32>
    %256 = arith.addf %254, %255 : vector<64x2xf32>
    %cst_84 = arith.constant 0.000000e+00 : f32
    %257 = vector.broadcast %cst_84 : f32 to vector<64x2xf32>
    %258 = arith.maximumf %256, %257 : vector<64x2xf32>
    %c11 = arith.constant 11 : index
    %c0_85 = arith.constant 0 : index
    %c0_86 = arith.constant 0 : index
    %259 = vector.load %arg6[%c11, %c0_85, %c0_86] : memref<16x64x2xf32, #tpu.memory_space<vmem>>, vector<1x64x2xf32>
    %260 = vector.shape_cast %259 : vector<1x64x2xf32> to vector<64x2xf32>
    %261 = vector.shape_cast %258 : vector<64x2xf32> to vector<1x64x2xf32>
    tpu.vector_store %arg6[%c11, %c0_85, %c0_86], %261 {strides = array<i32>} : memref<16x64x2xf32, #tpu.memory_space<vmem>>, vector<1x64x2xf32>,
    %262 = vector.broadcast %150 : vector<64x1xf32> to vector<64x2xf32>
    %263 = arith.mulf %106, %262 : vector<64x2xf32>
    %264 = vector.broadcast %153 : vector<64x1xf32> to vector<64x2xf32>
    %265 = arith.addf %263, %264 : vector<64x2xf32>
    %cst_87 = arith.constant 0.000000e+00 : f32
    %266 = vector.broadcast %cst_87 : f32 to vector<64x2xf32>
    %267 = arith.maximumf %265, %266 : vector<64x2xf32>
    %c12 = arith.constant 12 : index
    %c0_88 = arith.constant 0 : index
    %c0_89 = arith.constant 0 : index
    %268 = vector.load %arg6[%c12, %c0_88, %c0_89] : memref<16x64x2xf32, #tpu.memory_space<vmem>>, vector<1x64x2xf32>
    %269 = vector.shape_cast %268 : vector<1x64x2xf32> to vector<64x2xf32>
    %270 = vector.shape_cast %267 : vector<64x2xf32> to vector<1x64x2xf32>
    tpu.vector_store %arg6[%c12, %c0_88, %c0_89], %270 {strides = array<i32>} : memref<16x64x2xf32, #tpu.memory_space<vmem>>, vector<1x64x2xf32>,
    %271 = vector.broadcast %150 : vector<64x1xf32> to vector<64x2xf32>
    %272 = arith.mulf %114, %271 : vector<64x2xf32>
    %273 = vector.broadcast %153 : vector<64x1xf32> to vector<64x2xf32>
    %274 = arith.addf %272, %273 : vector<64x2xf32>
    %cst_90 = arith.constant 0.000000e+00 : f32
    %275 = vector.broadcast %cst_90 : f32 to vector<64x2xf32>
    %276 = arith.maximumf %274, %275 : vector<64x2xf32>
    %c13 = arith.constant 13 : index
    %c0_91 = arith.constant 0 : index
    %c0_92 = arith.constant 0 : index
    %277 = vector.load %arg6[%c13, %c0_91, %c0_92] : memref<16x64x2xf32, #tpu.memory_space<vmem>>, vector<1x64x2xf32>
    %278 = vector.shape_cast %277 : vector<1x64x2xf32> to vector<64x2xf32>
    %279 = vector.shape_cast %276 : vector<64x2xf32> to vector<1x64x2xf32>
    tpu.vector_store %arg6[%c13, %c0_91, %c0_92], %279 {strides = array<i32>} : memref<16x64x2xf32, #tpu.memory_space<vmem>>, vector<1x64x2xf32>,
    %280 = vector.broadcast %150 : vector<64x1xf32> to vector<64x2xf32>
    %281 = arith.mulf %122, %280 : vector<64x2xf32>
    %282 = vector.broadcast %153 : vector<64x1xf32> to vector<64x2xf32>
    %283 = arith.addf %281, %282 : vector<64x2xf32>
    %cst_93 = arith.constant 0.000000e+00 : f32
    %284 = vector.broadcast %cst_93 : f32 to vector<64x2xf32>
    %285 = arith.maximumf %283, %284 : vector<64x2xf32>
    %c14 = arith.constant 14 : index
    %c0_94 = arith.constant 0 : index
    %c0_95 = arith.constant 0 : index
    %286 = vector.load %arg6[%c14, %c0_94, %c0_95] : memref<16x64x2xf32, #tpu.memory_space<vmem>>, vector<1x64x2xf32>
    %287 = vector.shape_cast %286 : vector<1x64x2xf32> to vector<64x2xf32>
    %288 = vector.shape_cast %285 : vector<64x2xf32> to vector<1x64x2xf32>
    tpu.vector_store %arg6[%c14, %c0_94, %c0_95], %288 {strides = array<i32>} : memref<16x64x2xf32, #tpu.memory_space<vmem>>, vector<1x64x2xf32>,
    %289 = vector.broadcast %150 : vector<64x1xf32> to vector<64x2xf32>
    %290 = arith.mulf %130, %289 : vector<64x2xf32>
    %291 = vector.broadcast %153 : vector<64x1xf32> to vector<64x2xf32>
    %292 = arith.addf %290, %291 : vector<64x2xf32>
    %cst_96 = arith.constant 0.000000e+00 : f32
    %293 = vector.broadcast %cst_96 : f32 to vector<64x2xf32>
    %294 = arith.maximumf %292, %293 : vector<64x2xf32>
    %c15 = arith.constant 15 : index
    %c0_97 = arith.constant 0 : index
    %c0_98 = arith.constant 0 : index
    %295 = vector.load %arg6[%c15, %c0_97, %c0_98] : memref<16x64x2xf32, #tpu.memory_space<vmem>>, vector<1x64x2xf32>
    %296 = vector.shape_cast %295 : vector<1x64x2xf32> to vector<64x2xf32>
    %297 = vector.shape_cast %294 : vector<64x2xf32> to vector<1x64x2xf32>
    tpu.vector_store %arg6[%c15, %c0_97, %c0_98], %297 {strides = array<i32>} : memref<16x64x2xf32, #tpu.memory_space<vmem>>, vector<1x64x2xf32>,
    return
  }
}

module attributes {stable_mosaic.version = 11 : i64} {
  func.func @_parity_convT_kernel(%arg0: memref<4x256x32xbf16, #tpu.memory_space<vmem>>, %arg1: memref<4x32x256xbf16, #tpu.memory_space<vmem>>, %arg2: memref<32x1xf32, #tpu.memory_space<vmem>>, %arg3: memref<32x1xf32, #tpu.memory_space<vmem>>, %arg4: memref<4x32x32xf32, #tpu.memory_space<vmem>>) attributes {dimension_semantics = [], scalar_prefetch = 0 : i64, scratch_operands = 0 : i64, tpu.core_type = #tpu.core_type<tc>} {
    %cst = arith.constant 0.000000e+00 : f32
    %0 = vector.broadcast %cst : f32 to vector<32x1xf32>
    %cst_0 = arith.constant 0.000000e+00 : f32
    %1 = vector.broadcast %cst_0 : f32 to vector<32x1xf32>
    %c0 = arith.constant 0 : index
    %c0_1 = arith.constant 0 : index
    %c0_2 = arith.constant 0 : index
    %2 = vector.load %arg1[%c0, %c0_1, %c0_2] : memref<4x32x256xbf16, #tpu.memory_space<vmem>>, vector<1x32x256xbf16>
    %3 = vector.shape_cast %2 : vector<1x32x256xbf16> to vector<32x256xbf16>
    %c0_3 = arith.constant 0 : index
    %c0_4 = arith.constant 0 : index
    %c0_5 = arith.constant 0 : index
    %4 = vector.load %arg0[%c0_3, %c0_4, %c0_5] : memref<4x256x32xbf16, #tpu.memory_space<vmem>>, vector<1x256x32xbf16>
    %5 = vector.shape_cast %4 : vector<1x256x32xbf16> to vector<256x32xbf16>
    %cst_6 = arith.constant dense<0.000000e+00> : vector<32x32xf32>
    %6 = tpu.matmul %3, %5, %cst_6 {dimension_numbers = #tpu.dot_dimension_numbers<[1], [0], [0], [1], [0, 0, 1, 1], [], []>} : vector<32x256xbf16>, vector<256x32xbf16>, vector<32x32xf32> -> vector<32x32xf32>
    %cst_7 = arith.constant dense<0.000000e+00> : vector<32xf32>
    %7 = vector.multi_reduction <add>, %6, %cst_7 [1] : vector<32x32xf32> to vector<32xf32>
    %8 = vector.shape_cast %7 : vector<32xf32> to vector<32x1xf32>
    %9 = arith.addf %0, %8 : vector<32x1xf32>
    %10 = arith.mulf %6, %6 : vector<32x32xf32>
    %cst_8 = arith.constant dense<0.000000e+00> : vector<32xf32>
    %11 = vector.multi_reduction <add>, %10, %cst_8 [1] : vector<32x32xf32> to vector<32xf32>
    %12 = vector.shape_cast %11 : vector<32xf32> to vector<32x1xf32>
    %13 = arith.addf %1, %12 : vector<32x1xf32>
    %c1 = arith.constant 1 : index
    %c0_9 = arith.constant 0 : index
    %c0_10 = arith.constant 0 : index
    %14 = vector.load %arg1[%c1, %c0_9, %c0_10] : memref<4x32x256xbf16, #tpu.memory_space<vmem>>, vector<1x32x256xbf16>
    %15 = vector.shape_cast %14 : vector<1x32x256xbf16> to vector<32x256xbf16>
    %c1_11 = arith.constant 1 : index
    %c0_12 = arith.constant 0 : index
    %c0_13 = arith.constant 0 : index
    %16 = vector.load %arg0[%c1_11, %c0_12, %c0_13] : memref<4x256x32xbf16, #tpu.memory_space<vmem>>, vector<1x256x32xbf16>
    %17 = vector.shape_cast %16 : vector<1x256x32xbf16> to vector<256x32xbf16>
    %cst_14 = arith.constant dense<0.000000e+00> : vector<32x32xf32>
    %18 = tpu.matmul %15, %17, %cst_14 {dimension_numbers = #tpu.dot_dimension_numbers<[1], [0], [0], [1], [0, 0, 1, 1], [], []>} : vector<32x256xbf16>, vector<256x32xbf16>, vector<32x32xf32> -> vector<32x32xf32>
    %cst_15 = arith.constant dense<0.000000e+00> : vector<32xf32>
    %19 = vector.multi_reduction <add>, %18, %cst_15 [1] : vector<32x32xf32> to vector<32xf32>
    %20 = vector.shape_cast %19 : vector<32xf32> to vector<32x1xf32>
    %21 = arith.addf %9, %20 : vector<32x1xf32>
    %22 = arith.mulf %18, %18 : vector<32x32xf32>
    %cst_16 = arith.constant dense<0.000000e+00> : vector<32xf32>
    %23 = vector.multi_reduction <add>, %22, %cst_16 [1] : vector<32x32xf32> to vector<32xf32>
    %24 = vector.shape_cast %23 : vector<32xf32> to vector<32x1xf32>
    %25 = arith.addf %13, %24 : vector<32x1xf32>
    %c2 = arith.constant 2 : index
    %c0_17 = arith.constant 0 : index
    %c0_18 = arith.constant 0 : index
    %26 = vector.load %arg1[%c2, %c0_17, %c0_18] : memref<4x32x256xbf16, #tpu.memory_space<vmem>>, vector<1x32x256xbf16>
    %27 = vector.shape_cast %26 : vector<1x32x256xbf16> to vector<32x256xbf16>
    %c2_19 = arith.constant 2 : index
    %c0_20 = arith.constant 0 : index
    %c0_21 = arith.constant 0 : index
    %28 = vector.load %arg0[%c2_19, %c0_20, %c0_21] : memref<4x256x32xbf16, #tpu.memory_space<vmem>>, vector<1x256x32xbf16>
    %29 = vector.shape_cast %28 : vector<1x256x32xbf16> to vector<256x32xbf16>
    %cst_22 = arith.constant dense<0.000000e+00> : vector<32x32xf32>
    %30 = tpu.matmul %27, %29, %cst_22 {dimension_numbers = #tpu.dot_dimension_numbers<[1], [0], [0], [1], [0, 0, 1, 1], [], []>} : vector<32x256xbf16>, vector<256x32xbf16>, vector<32x32xf32> -> vector<32x32xf32>
    %cst_23 = arith.constant dense<0.000000e+00> : vector<32xf32>
    %31 = vector.multi_reduction <add>, %30, %cst_23 [1] : vector<32x32xf32> to vector<32xf32>
    %32 = vector.shape_cast %31 : vector<32xf32> to vector<32x1xf32>
    %33 = arith.addf %21, %32 : vector<32x1xf32>
    %34 = arith.mulf %30, %30 : vector<32x32xf32>
    %cst_24 = arith.constant dense<0.000000e+00> : vector<32xf32>
    %35 = vector.multi_reduction <add>, %34, %cst_24 [1] : vector<32x32xf32> to vector<32xf32>
    %36 = vector.shape_cast %35 : vector<32xf32> to vector<32x1xf32>
    %37 = arith.addf %25, %36 : vector<32x1xf32>
    %c3 = arith.constant 3 : index
    %c0_25 = arith.constant 0 : index
    %c0_26 = arith.constant 0 : index
    %38 = vector.load %arg1[%c3, %c0_25, %c0_26] : memref<4x32x256xbf16, #tpu.memory_space<vmem>>, vector<1x32x256xbf16>
    %39 = vector.shape_cast %38 : vector<1x32x256xbf16> to vector<32x256xbf16>
    %c3_27 = arith.constant 3 : index
    %c0_28 = arith.constant 0 : index
    %c0_29 = arith.constant 0 : index
    %40 = vector.load %arg0[%c3_27, %c0_28, %c0_29] : memref<4x256x32xbf16, #tpu.memory_space<vmem>>, vector<1x256x32xbf16>
    %41 = vector.shape_cast %40 : vector<1x256x32xbf16> to vector<256x32xbf16>
    %cst_30 = arith.constant dense<0.000000e+00> : vector<32x32xf32>
    %42 = tpu.matmul %39, %41, %cst_30 {dimension_numbers = #tpu.dot_dimension_numbers<[1], [0], [0], [1], [0, 0, 1, 1], [], []>} : vector<32x256xbf16>, vector<256x32xbf16>, vector<32x32xf32> -> vector<32x32xf32>
    %cst_31 = arith.constant dense<0.000000e+00> : vector<32xf32>
    %43 = vector.multi_reduction <add>, %42, %cst_31 [1] : vector<32x32xf32> to vector<32xf32>
    %44 = vector.shape_cast %43 : vector<32xf32> to vector<32x1xf32>
    %45 = arith.addf %33, %44 : vector<32x1xf32>
    %46 = arith.mulf %42, %42 : vector<32x32xf32>
    %cst_32 = arith.constant dense<0.000000e+00> : vector<32xf32>
    %47 = vector.multi_reduction <add>, %46, %cst_32 [1] : vector<32x32xf32> to vector<32xf32>
    %48 = vector.shape_cast %47 : vector<32xf32> to vector<32x1xf32>
    %49 = arith.addf %37, %48 : vector<32x1xf32>
    %cst_33 = arith.constant 7.812500e-03 : f32
    %50 = vector.broadcast %cst_33 : f32 to vector<32x1xf32>
    %51 = arith.mulf %45, %50 : vector<32x1xf32>
    %cst_34 = arith.constant 7.812500e-03 : f32
    %52 = vector.broadcast %cst_34 : f32 to vector<32x1xf32>
    %53 = arith.mulf %49, %52 : vector<32x1xf32>
    %54 = arith.mulf %51, %51 : vector<32x1xf32>
    %55 = arith.subf %53, %54 : vector<32x1xf32>
    %cst_35 = arith.constant 0.000000e+00 : f32
    %56 = vector.broadcast %cst_35 : f32 to vector<32x1xf32>
    %57 = arith.maximumf %55, %56 : vector<32x1xf32>
    %c0_36 = arith.constant 0 : index
    %c0_37 = arith.constant 0 : index
    %58 = vector.load %arg2[%c0_36, %c0_37] : memref<32x1xf32, #tpu.memory_space<vmem>>, vector<32x1xf32>
    %cst_38 = arith.constant 9.99999974E-6 : f32
    %59 = vector.broadcast %cst_38 : f32 to vector<32x1xf32>
    %60 = arith.addf %57, %59 : vector<32x1xf32>
    %61 = math.rsqrt %60 : vector<32x1xf32>
    %62 = arith.mulf %58, %61 : vector<32x1xf32>
    %c0_39 = arith.constant 0 : index
    %c0_40 = arith.constant 0 : index
    %63 = vector.load %arg3[%c0_39, %c0_40] : memref<32x1xf32, #tpu.memory_space<vmem>>, vector<32x1xf32>
    %64 = arith.mulf %51, %62 : vector<32x1xf32>
    %65 = arith.subf %63, %64 : vector<32x1xf32>
    %66 = vector.broadcast %62 : vector<32x1xf32> to vector<32x32xf32>
    %67 = arith.mulf %6, %66 : vector<32x32xf32>
    %68 = vector.broadcast %65 : vector<32x1xf32> to vector<32x32xf32>
    %69 = arith.addf %67, %68 : vector<32x32xf32>
    %cst_41 = arith.constant 0.000000e+00 : f32
    %70 = vector.broadcast %cst_41 : f32 to vector<32x32xf32>
    %71 = arith.maximumf %69, %70 : vector<32x32xf32>
    %c0_42 = arith.constant 0 : index
    %c0_43 = arith.constant 0 : index
    %c0_44 = arith.constant 0 : index
    %72 = vector.load %arg4[%c0_42, %c0_43, %c0_44] : memref<4x32x32xf32, #tpu.memory_space<vmem>>, vector<1x32x32xf32>
    %73 = vector.shape_cast %72 : vector<1x32x32xf32> to vector<32x32xf32>
    %74 = vector.shape_cast %71 : vector<32x32xf32> to vector<1x32x32xf32>
    tpu.vector_store %arg4[%c0_42, %c0_43, %c0_44], %74 {strides = array<i32>} : memref<4x32x32xf32, #tpu.memory_space<vmem>>, vector<1x32x32xf32>,
    %75 = vector.broadcast %62 : vector<32x1xf32> to vector<32x32xf32>
    %76 = arith.mulf %18, %75 : vector<32x32xf32>
    %77 = vector.broadcast %65 : vector<32x1xf32> to vector<32x32xf32>
    %78 = arith.addf %76, %77 : vector<32x32xf32>
    %cst_45 = arith.constant 0.000000e+00 : f32
    %79 = vector.broadcast %cst_45 : f32 to vector<32x32xf32>
    %80 = arith.maximumf %78, %79 : vector<32x32xf32>
    %c1_46 = arith.constant 1 : index
    %c0_47 = arith.constant 0 : index
    %c0_48 = arith.constant 0 : index
    %81 = vector.load %arg4[%c1_46, %c0_47, %c0_48] : memref<4x32x32xf32, #tpu.memory_space<vmem>>, vector<1x32x32xf32>
    %82 = vector.shape_cast %81 : vector<1x32x32xf32> to vector<32x32xf32>
    %83 = vector.shape_cast %80 : vector<32x32xf32> to vector<1x32x32xf32>
    tpu.vector_store %arg4[%c1_46, %c0_47, %c0_48], %83 {strides = array<i32>} : memref<4x32x32xf32, #tpu.memory_space<vmem>>, vector<1x32x32xf32>,
    %84 = vector.broadcast %62 : vector<32x1xf32> to vector<32x32xf32>
    %85 = arith.mulf %30, %84 : vector<32x32xf32>
    %86 = vector.broadcast %65 : vector<32x1xf32> to vector<32x32xf32>
    %87 = arith.addf %85, %86 : vector<32x32xf32>
    %cst_49 = arith.constant 0.000000e+00 : f32
    %88 = vector.broadcast %cst_49 : f32 to vector<32x32xf32>
    %89 = arith.maximumf %87, %88 : vector<32x32xf32>
    %c2_50 = arith.constant 2 : index
    %c0_51 = arith.constant 0 : index
    %c0_52 = arith.constant 0 : index
    %90 = vector.load %arg4[%c2_50, %c0_51, %c0_52] : memref<4x32x32xf32, #tpu.memory_space<vmem>>, vector<1x32x32xf32>
    %91 = vector.shape_cast %90 : vector<1x32x32xf32> to vector<32x32xf32>
    %92 = vector.shape_cast %89 : vector<32x32xf32> to vector<1x32x32xf32>
    tpu.vector_store %arg4[%c2_50, %c0_51, %c0_52], %92 {strides = array<i32>} : memref<4x32x32xf32, #tpu.memory_space<vmem>>, vector<1x32x32xf32>,
    %93 = vector.broadcast %62 : vector<32x1xf32> to vector<32x32xf32>
    %94 = arith.mulf %42, %93 : vector<32x32xf32>
    %95 = vector.broadcast %65 : vector<32x1xf32> to vector<32x32xf32>
    %96 = arith.addf %94, %95 : vector<32x32xf32>
    %cst_53 = arith.constant 0.000000e+00 : f32
    %97 = vector.broadcast %cst_53 : f32 to vector<32x32xf32>
    %98 = arith.maximumf %96, %97 : vector<32x32xf32>
    %c3_54 = arith.constant 3 : index
    %c0_55 = arith.constant 0 : index
    %c0_56 = arith.constant 0 : index
    %99 = vector.load %arg4[%c3_54, %c0_55, %c0_56] : memref<4x32x32xf32, #tpu.memory_space<vmem>>, vector<1x32x32xf32>
    %100 = vector.shape_cast %99 : vector<1x32x32xf32> to vector<32x32xf32>
    %101 = vector.shape_cast %98 : vector<32x32xf32> to vector<1x32x32xf32>
    tpu.vector_store %arg4[%c3_54, %c0_55, %c0_56], %101 {strides = array<i32>} : memref<4x32x32xf32, #tpu.memory_space<vmem>>, vector<1x32x32xf32>,
    return
  }
}

module attributes {stable_mosaic.version = 11 : i64} {
  func.func @_parity_convT_kernel(%arg0: memref<4x128x128xbf16, #tpu.memory_space<vmem>>, %arg1: memref<4x16x128xbf16, #tpu.memory_space<vmem>>, %arg2: memref<16x1xf32, #tpu.memory_space<vmem>>, %arg3: memref<16x1xf32, #tpu.memory_space<vmem>>, %arg4: memref<4x16x128xf32, #tpu.memory_space<vmem>>) attributes {dimension_semantics = [], scalar_prefetch = 0 : i64, scratch_operands = 0 : i64, tpu.core_type = #tpu.core_type<tc>} {
    %cst = arith.constant 0.000000e+00 : f32
    %0 = vector.broadcast %cst : f32 to vector<16x1xf32>
    %cst_0 = arith.constant 0.000000e+00 : f32
    %1 = vector.broadcast %cst_0 : f32 to vector<16x1xf32>
    %c0 = arith.constant 0 : index
    %c0_1 = arith.constant 0 : index
    %c0_2 = arith.constant 0 : index
    %2 = vector.load %arg1[%c0, %c0_1, %c0_2] : memref<4x16x128xbf16, #tpu.memory_space<vmem>>, vector<1x16x128xbf16>
    %3 = vector.shape_cast %2 : vector<1x16x128xbf16> to vector<16x128xbf16>
    %c0_3 = arith.constant 0 : index
    %c0_4 = arith.constant 0 : index
    %c0_5 = arith.constant 0 : index
    %4 = vector.load %arg0[%c0_3, %c0_4, %c0_5] : memref<4x128x128xbf16, #tpu.memory_space<vmem>>, vector<1x128x128xbf16>
    %5 = vector.shape_cast %4 : vector<1x128x128xbf16> to vector<128x128xbf16>
    %cst_6 = arith.constant dense<0.000000e+00> : vector<16x128xf32>
    %6 = tpu.matmul %3, %5, %cst_6 {dimension_numbers = #tpu.dot_dimension_numbers<[1], [0], [0], [1], [0, 0, 1, 1], [], []>} : vector<16x128xbf16>, vector<128x128xbf16>, vector<16x128xf32> -> vector<16x128xf32>
    %cst_7 = arith.constant dense<0.000000e+00> : vector<16xf32>
    %7 = vector.multi_reduction <add>, %6, %cst_7 [1] : vector<16x128xf32> to vector<16xf32>
    %8 = vector.shape_cast %7 : vector<16xf32> to vector<16x1xf32>
    %9 = arith.addf %0, %8 : vector<16x1xf32>
    %10 = arith.mulf %6, %6 : vector<16x128xf32>
    %cst_8 = arith.constant dense<0.000000e+00> : vector<16xf32>
    %11 = vector.multi_reduction <add>, %10, %cst_8 [1] : vector<16x128xf32> to vector<16xf32>
    %12 = vector.shape_cast %11 : vector<16xf32> to vector<16x1xf32>
    %13 = arith.addf %1, %12 : vector<16x1xf32>
    %c1 = arith.constant 1 : index
    %c0_9 = arith.constant 0 : index
    %c0_10 = arith.constant 0 : index
    %14 = vector.load %arg1[%c1, %c0_9, %c0_10] : memref<4x16x128xbf16, #tpu.memory_space<vmem>>, vector<1x16x128xbf16>
    %15 = vector.shape_cast %14 : vector<1x16x128xbf16> to vector<16x128xbf16>
    %c1_11 = arith.constant 1 : index
    %c0_12 = arith.constant 0 : index
    %c0_13 = arith.constant 0 : index
    %16 = vector.load %arg0[%c1_11, %c0_12, %c0_13] : memref<4x128x128xbf16, #tpu.memory_space<vmem>>, vector<1x128x128xbf16>
    %17 = vector.shape_cast %16 : vector<1x128x128xbf16> to vector<128x128xbf16>
    %cst_14 = arith.constant dense<0.000000e+00> : vector<16x128xf32>
    %18 = tpu.matmul %15, %17, %cst_14 {dimension_numbers = #tpu.dot_dimension_numbers<[1], [0], [0], [1], [0, 0, 1, 1], [], []>} : vector<16x128xbf16>, vector<128x128xbf16>, vector<16x128xf32> -> vector<16x128xf32>
    %cst_15 = arith.constant dense<0.000000e+00> : vector<16xf32>
    %19 = vector.multi_reduction <add>, %18, %cst_15 [1] : vector<16x128xf32> to vector<16xf32>
    %20 = vector.shape_cast %19 : vector<16xf32> to vector<16x1xf32>
    %21 = arith.addf %9, %20 : vector<16x1xf32>
    %22 = arith.mulf %18, %18 : vector<16x128xf32>
    %cst_16 = arith.constant dense<0.000000e+00> : vector<16xf32>
    %23 = vector.multi_reduction <add>, %22, %cst_16 [1] : vector<16x128xf32> to vector<16xf32>
    %24 = vector.shape_cast %23 : vector<16xf32> to vector<16x1xf32>
    %25 = arith.addf %13, %24 : vector<16x1xf32>
    %c2 = arith.constant 2 : index
    %c0_17 = arith.constant 0 : index
    %c0_18 = arith.constant 0 : index
    %26 = vector.load %arg1[%c2, %c0_17, %c0_18] : memref<4x16x128xbf16, #tpu.memory_space<vmem>>, vector<1x16x128xbf16>
    %27 = vector.shape_cast %26 : vector<1x16x128xbf16> to vector<16x128xbf16>
    %c2_19 = arith.constant 2 : index
    %c0_20 = arith.constant 0 : index
    %c0_21 = arith.constant 0 : index
    %28 = vector.load %arg0[%c2_19, %c0_20, %c0_21] : memref<4x128x128xbf16, #tpu.memory_space<vmem>>, vector<1x128x128xbf16>
    %29 = vector.shape_cast %28 : vector<1x128x128xbf16> to vector<128x128xbf16>
    %cst_22 = arith.constant dense<0.000000e+00> : vector<16x128xf32>
    %30 = tpu.matmul %27, %29, %cst_22 {dimension_numbers = #tpu.dot_dimension_numbers<[1], [0], [0], [1], [0, 0, 1, 1], [], []>} : vector<16x128xbf16>, vector<128x128xbf16>, vector<16x128xf32> -> vector<16x128xf32>
    %cst_23 = arith.constant dense<0.000000e+00> : vector<16xf32>
    %31 = vector.multi_reduction <add>, %30, %cst_23 [1] : vector<16x128xf32> to vector<16xf32>
    %32 = vector.shape_cast %31 : vector<16xf32> to vector<16x1xf32>
    %33 = arith.addf %21, %32 : vector<16x1xf32>
    %34 = arith.mulf %30, %30 : vector<16x128xf32>
    %cst_24 = arith.constant dense<0.000000e+00> : vector<16xf32>
    %35 = vector.multi_reduction <add>, %34, %cst_24 [1] : vector<16x128xf32> to vector<16xf32>
    %36 = vector.shape_cast %35 : vector<16xf32> to vector<16x1xf32>
    %37 = arith.addf %25, %36 : vector<16x1xf32>
    %c3 = arith.constant 3 : index
    %c0_25 = arith.constant 0 : index
    %c0_26 = arith.constant 0 : index
    %38 = vector.load %arg1[%c3, %c0_25, %c0_26] : memref<4x16x128xbf16, #tpu.memory_space<vmem>>, vector<1x16x128xbf16>
    %39 = vector.shape_cast %38 : vector<1x16x128xbf16> to vector<16x128xbf16>
    %c3_27 = arith.constant 3 : index
    %c0_28 = arith.constant 0 : index
    %c0_29 = arith.constant 0 : index
    %40 = vector.load %arg0[%c3_27, %c0_28, %c0_29] : memref<4x128x128xbf16, #tpu.memory_space<vmem>>, vector<1x128x128xbf16>
    %41 = vector.shape_cast %40 : vector<1x128x128xbf16> to vector<128x128xbf16>
    %cst_30 = arith.constant dense<0.000000e+00> : vector<16x128xf32>
    %42 = tpu.matmul %39, %41, %cst_30 {dimension_numbers = #tpu.dot_dimension_numbers<[1], [0], [0], [1], [0, 0, 1, 1], [], []>} : vector<16x128xbf16>, vector<128x128xbf16>, vector<16x128xf32> -> vector<16x128xf32>
    %cst_31 = arith.constant dense<0.000000e+00> : vector<16xf32>
    %43 = vector.multi_reduction <add>, %42, %cst_31 [1] : vector<16x128xf32> to vector<16xf32>
    %44 = vector.shape_cast %43 : vector<16xf32> to vector<16x1xf32>
    %45 = arith.addf %33, %44 : vector<16x1xf32>
    %46 = arith.mulf %42, %42 : vector<16x128xf32>
    %cst_32 = arith.constant dense<0.000000e+00> : vector<16xf32>
    %47 = vector.multi_reduction <add>, %46, %cst_32 [1] : vector<16x128xf32> to vector<16xf32>
    %48 = vector.shape_cast %47 : vector<16xf32> to vector<16x1xf32>
    %49 = arith.addf %37, %48 : vector<16x1xf32>
    %cst_33 = arith.constant 0.001953125 : f32
    %50 = vector.broadcast %cst_33 : f32 to vector<16x1xf32>
    %51 = arith.mulf %45, %50 : vector<16x1xf32>
    %cst_34 = arith.constant 0.001953125 : f32
    %52 = vector.broadcast %cst_34 : f32 to vector<16x1xf32>
    %53 = arith.mulf %49, %52 : vector<16x1xf32>
    %54 = arith.mulf %51, %51 : vector<16x1xf32>
    %55 = arith.subf %53, %54 : vector<16x1xf32>
    %cst_35 = arith.constant 0.000000e+00 : f32
    %56 = vector.broadcast %cst_35 : f32 to vector<16x1xf32>
    %57 = arith.maximumf %55, %56 : vector<16x1xf32>
    %c0_36 = arith.constant 0 : index
    %c0_37 = arith.constant 0 : index
    %58 = vector.load %arg2[%c0_36, %c0_37] : memref<16x1xf32, #tpu.memory_space<vmem>>, vector<16x1xf32>
    %cst_38 = arith.constant 9.99999974E-6 : f32
    %59 = vector.broadcast %cst_38 : f32 to vector<16x1xf32>
    %60 = arith.addf %57, %59 : vector<16x1xf32>
    %61 = math.rsqrt %60 : vector<16x1xf32>
    %62 = arith.mulf %58, %61 : vector<16x1xf32>
    %c0_39 = arith.constant 0 : index
    %c0_40 = arith.constant 0 : index
    %63 = vector.load %arg3[%c0_39, %c0_40] : memref<16x1xf32, #tpu.memory_space<vmem>>, vector<16x1xf32>
    %64 = arith.mulf %51, %62 : vector<16x1xf32>
    %65 = arith.subf %63, %64 : vector<16x1xf32>
    %66 = vector.broadcast %62 : vector<16x1xf32> to vector<16x128xf32>
    %67 = arith.mulf %6, %66 : vector<16x128xf32>
    %68 = vector.broadcast %65 : vector<16x1xf32> to vector<16x128xf32>
    %69 = arith.addf %67, %68 : vector<16x128xf32>
    %cst_41 = arith.constant 0.000000e+00 : f32
    %70 = vector.broadcast %cst_41 : f32 to vector<16x128xf32>
    %71 = arith.maximumf %69, %70 : vector<16x128xf32>
    %c0_42 = arith.constant 0 : index
    %c0_43 = arith.constant 0 : index
    %c0_44 = arith.constant 0 : index
    %72 = vector.load %arg4[%c0_42, %c0_43, %c0_44] : memref<4x16x128xf32, #tpu.memory_space<vmem>>, vector<1x16x128xf32>
    %73 = vector.shape_cast %72 : vector<1x16x128xf32> to vector<16x128xf32>
    %74 = vector.shape_cast %71 : vector<16x128xf32> to vector<1x16x128xf32>
    tpu.vector_store %arg4[%c0_42, %c0_43, %c0_44], %74 {strides = array<i32>} : memref<4x16x128xf32, #tpu.memory_space<vmem>>, vector<1x16x128xf32>,
    %75 = vector.broadcast %62 : vector<16x1xf32> to vector<16x128xf32>
    %76 = arith.mulf %18, %75 : vector<16x128xf32>
    %77 = vector.broadcast %65 : vector<16x1xf32> to vector<16x128xf32>
    %78 = arith.addf %76, %77 : vector<16x128xf32>
    %cst_45 = arith.constant 0.000000e+00 : f32
    %79 = vector.broadcast %cst_45 : f32 to vector<16x128xf32>
    %80 = arith.maximumf %78, %79 : vector<16x128xf32>
    %c1_46 = arith.constant 1 : index
    %c0_47 = arith.constant 0 : index
    %c0_48 = arith.constant 0 : index
    %81 = vector.load %arg4[%c1_46, %c0_47, %c0_48] : memref<4x16x128xf32, #tpu.memory_space<vmem>>, vector<1x16x128xf32>
    %82 = vector.shape_cast %81 : vector<1x16x128xf32> to vector<16x128xf32>
    %83 = vector.shape_cast %80 : vector<16x128xf32> to vector<1x16x128xf32>
    tpu.vector_store %arg4[%c1_46, %c0_47, %c0_48], %83 {strides = array<i32>} : memref<4x16x128xf32, #tpu.memory_space<vmem>>, vector<1x16x128xf32>,
    %84 = vector.broadcast %62 : vector<16x1xf32> to vector<16x128xf32>
    %85 = arith.mulf %30, %84 : vector<16x128xf32>
    %86 = vector.broadcast %65 : vector<16x1xf32> to vector<16x128xf32>
    %87 = arith.addf %85, %86 : vector<16x128xf32>
    %cst_49 = arith.constant 0.000000e+00 : f32
    %88 = vector.broadcast %cst_49 : f32 to vector<16x128xf32>
    %89 = arith.maximumf %87, %88 : vector<16x128xf32>
    %c2_50 = arith.constant 2 : index
    %c0_51 = arith.constant 0 : index
    %c0_52 = arith.constant 0 : index
    %90 = vector.load %arg4[%c2_50, %c0_51, %c0_52] : memref<4x16x128xf32, #tpu.memory_space<vmem>>, vector<1x16x128xf32>
    %91 = vector.shape_cast %90 : vector<1x16x128xf32> to vector<16x128xf32>
    %92 = vector.shape_cast %89 : vector<16x128xf32> to vector<1x16x128xf32>
    tpu.vector_store %arg4[%c2_50, %c0_51, %c0_52], %92 {strides = array<i32>} : memref<4x16x128xf32, #tpu.memory_space<vmem>>, vector<1x16x128xf32>,
    %93 = vector.broadcast %62 : vector<16x1xf32> to vector<16x128xf32>
    %94 = arith.mulf %42, %93 : vector<16x128xf32>
    %95 = vector.broadcast %65 : vector<16x1xf32> to vector<16x128xf32>
    %96 = arith.addf %94, %95 : vector<16x128xf32>
    %cst_53 = arith.constant 0.000000e+00 : f32
    %97 = vector.broadcast %cst_53 : f32 to vector<16x128xf32>
    %98 = arith.maximumf %96, %97 : vector<16x128xf32>
    %c3_54 = arith.constant 3 : index
    %c0_55 = arith.constant 0 : index
    %c0_56 = arith.constant 0 : index
    %99 = vector.load %arg4[%c3_54, %c0_55, %c0_56] : memref<4x16x128xf32, #tpu.memory_space<vmem>>, vector<1x16x128xf32>
    %100 = vector.shape_cast %99 : vector<1x16x128xf32> to vector<16x128xf32>
    %101 = vector.shape_cast %98 : vector<16x128xf32> to vector<1x16x128xf32>
    tpu.vector_store %arg4[%c3_54, %c0_55, %c0_56], %101 {strides = array<i32>} : memref<4x16x128xf32, #tpu.memory_space<vmem>>, vector<1x16x128xf32>,
    return
  }
}

module attributes {stable_mosaic.version = 11 : i64} {
  func.func @_parity_convT_kernel(%arg0: memref<4x64x512xbf16, #tpu.memory_space<vmem>>, %arg1: memref<4x8x64xbf16, #tpu.memory_space<vmem>>, %arg2: memref<8x1xf32, #tpu.memory_space<vmem>>, %arg3: memref<8x1xf32, #tpu.memory_space<vmem>>, %arg4: memref<3x8xf32, #tpu.memory_space<vmem>>, %arg5: memref<4x3x512xf32, #tpu.memory_space<vmem>>) attributes {dimension_semantics = [], scalar_prefetch = 0 : i64, scratch_operands = 0 : i64, tpu.core_type = #tpu.core_type<tc>} {
    %cst = arith.constant 0.000000e+00 : f32
    %0 = vector.broadcast %cst : f32 to vector<8x1xf32>
    %cst_0 = arith.constant 0.000000e+00 : f32
    %1 = vector.broadcast %cst_0 : f32 to vector<8x1xf32>
    %c0 = arith.constant 0 : index
    %c0_1 = arith.constant 0 : index
    %c0_2 = arith.constant 0 : index
    %2 = vector.load %arg1[%c0, %c0_1, %c0_2] : memref<4x8x64xbf16, #tpu.memory_space<vmem>>, vector<1x8x64xbf16>
    %3 = vector.shape_cast %2 : vector<1x8x64xbf16> to vector<8x64xbf16>
    %c0_3 = arith.constant 0 : index
    %c0_4 = arith.constant 0 : index
    %c0_5 = arith.constant 0 : index
    %4 = vector.load %arg0[%c0_3, %c0_4, %c0_5] : memref<4x64x512xbf16, #tpu.memory_space<vmem>>, vector<1x64x512xbf16>
    %5 = vector.shape_cast %4 : vector<1x64x512xbf16> to vector<64x512xbf16>
    %cst_6 = arith.constant dense<0.000000e+00> : vector<8x512xf32>
    %6 = tpu.matmul %3, %5, %cst_6 {dimension_numbers = #tpu.dot_dimension_numbers<[1], [0], [0], [1], [0, 0, 1, 1], [], []>} : vector<8x64xbf16>, vector<64x512xbf16>, vector<8x512xf32> -> vector<8x512xf32>
    %cst_7 = arith.constant dense<0.000000e+00> : vector<8xf32>
    %7 = vector.multi_reduction <add>, %6, %cst_7 [1] : vector<8x512xf32> to vector<8xf32>
    %8 = vector.shape_cast %7 : vector<8xf32> to vector<8x1xf32>
    %9 = arith.addf %0, %8 : vector<8x1xf32>
    %10 = arith.mulf %6, %6 : vector<8x512xf32>
    %cst_8 = arith.constant dense<0.000000e+00> : vector<8xf32>
    %11 = vector.multi_reduction <add>, %10, %cst_8 [1] : vector<8x512xf32> to vector<8xf32>
    %12 = vector.shape_cast %11 : vector<8xf32> to vector<8x1xf32>
    %13 = arith.addf %1, %12 : vector<8x1xf32>
    %c1 = arith.constant 1 : index
    %c0_9 = arith.constant 0 : index
    %c0_10 = arith.constant 0 : index
    %14 = vector.load %arg1[%c1, %c0_9, %c0_10] : memref<4x8x64xbf16, #tpu.memory_space<vmem>>, vector<1x8x64xbf16>
    %15 = vector.shape_cast %14 : vector<1x8x64xbf16> to vector<8x64xbf16>
    %c1_11 = arith.constant 1 : index
    %c0_12 = arith.constant 0 : index
    %c0_13 = arith.constant 0 : index
    %16 = vector.load %arg0[%c1_11, %c0_12, %c0_13] : memref<4x64x512xbf16, #tpu.memory_space<vmem>>, vector<1x64x512xbf16>
    %17 = vector.shape_cast %16 : vector<1x64x512xbf16> to vector<64x512xbf16>
    %cst_14 = arith.constant dense<0.000000e+00> : vector<8x512xf32>
    %18 = tpu.matmul %15, %17, %cst_14 {dimension_numbers = #tpu.dot_dimension_numbers<[1], [0], [0], [1], [0, 0, 1, 1], [], []>} : vector<8x64xbf16>, vector<64x512xbf16>, vector<8x512xf32> -> vector<8x512xf32>
    %cst_15 = arith.constant dense<0.000000e+00> : vector<8xf32>
    %19 = vector.multi_reduction <add>, %18, %cst_15 [1] : vector<8x512xf32> to vector<8xf32>
    %20 = vector.shape_cast %19 : vector<8xf32> to vector<8x1xf32>
    %21 = arith.addf %9, %20 : vector<8x1xf32>
    %22 = arith.mulf %18, %18 : vector<8x512xf32>
    %cst_16 = arith.constant dense<0.000000e+00> : vector<8xf32>
    %23 = vector.multi_reduction <add>, %22, %cst_16 [1] : vector<8x512xf32> to vector<8xf32>
    %24 = vector.shape_cast %23 : vector<8xf32> to vector<8x1xf32>
    %25 = arith.addf %13, %24 : vector<8x1xf32>
    %c2 = arith.constant 2 : index
    %c0_17 = arith.constant 0 : index
    %c0_18 = arith.constant 0 : index
    %26 = vector.load %arg1[%c2, %c0_17, %c0_18] : memref<4x8x64xbf16, #tpu.memory_space<vmem>>, vector<1x8x64xbf16>
    %27 = vector.shape_cast %26 : vector<1x8x64xbf16> to vector<8x64xbf16>
    %c2_19 = arith.constant 2 : index
    %c0_20 = arith.constant 0 : index
    %c0_21 = arith.constant 0 : index
    %28 = vector.load %arg0[%c2_19, %c0_20, %c0_21] : memref<4x64x512xbf16, #tpu.memory_space<vmem>>, vector<1x64x512xbf16>
    %29 = vector.shape_cast %28 : vector<1x64x512xbf16> to vector<64x512xbf16>
    %cst_22 = arith.constant dense<0.000000e+00> : vector<8x512xf32>
    %30 = tpu.matmul %27, %29, %cst_22 {dimension_numbers = #tpu.dot_dimension_numbers<[1], [0], [0], [1], [0, 0, 1, 1], [], []>} : vector<8x64xbf16>, vector<64x512xbf16>, vector<8x512xf32> -> vector<8x512xf32>
    %cst_23 = arith.constant dense<0.000000e+00> : vector<8xf32>
    %31 = vector.multi_reduction <add>, %30, %cst_23 [1] : vector<8x512xf32> to vector<8xf32>
    %32 = vector.shape_cast %31 : vector<8xf32> to vector<8x1xf32>
    %33 = arith.addf %21, %32 : vector<8x1xf32>
    %34 = arith.mulf %30, %30 : vector<8x512xf32>
    %cst_24 = arith.constant dense<0.000000e+00> : vector<8xf32>
    %35 = vector.multi_reduction <add>, %34, %cst_24 [1] : vector<8x512xf32> to vector<8xf32>
    %36 = vector.shape_cast %35 : vector<8xf32> to vector<8x1xf32>
    %37 = arith.addf %25, %36 : vector<8x1xf32>
    %c3 = arith.constant 3 : index
    %c0_25 = arith.constant 0 : index
    %c0_26 = arith.constant 0 : index
    %38 = vector.load %arg1[%c3, %c0_25, %c0_26] : memref<4x8x64xbf16, #tpu.memory_space<vmem>>, vector<1x8x64xbf16>
    %39 = vector.shape_cast %38 : vector<1x8x64xbf16> to vector<8x64xbf16>
    %c3_27 = arith.constant 3 : index
    %c0_28 = arith.constant 0 : index
    %c0_29 = arith.constant 0 : index
    %40 = vector.load %arg0[%c3_27, %c0_28, %c0_29] : memref<4x64x512xbf16, #tpu.memory_space<vmem>>, vector<1x64x512xbf16>
    %41 = vector.shape_cast %40 : vector<1x64x512xbf16> to vector<64x512xbf16>
    %cst_30 = arith.constant dense<0.000000e+00> : vector<8x512xf32>
    %42 = tpu.matmul %39, %41, %cst_30 {dimension_numbers = #tpu.dot_dimension_numbers<[1], [0], [0], [1], [0, 0, 1, 1], [], []>} : vector<8x64xbf16>, vector<64x512xbf16>, vector<8x512xf32> -> vector<8x512xf32>
    %cst_31 = arith.constant dense<0.000000e+00> : vector<8xf32>
    %43 = vector.multi_reduction <add>, %42, %cst_31 [1] : vector<8x512xf32> to vector<8xf32>
    %44 = vector.shape_cast %43 : vector<8xf32> to vector<8x1xf32>
    %45 = arith.addf %33, %44 : vector<8x1xf32>
    %46 = arith.mulf %42, %42 : vector<8x512xf32>
    %cst_32 = arith.constant dense<0.000000e+00> : vector<8xf32>
    %47 = vector.multi_reduction <add>, %46, %cst_32 [1] : vector<8x512xf32> to vector<8xf32>
    %48 = vector.shape_cast %47 : vector<8xf32> to vector<8x1xf32>
    %49 = arith.addf %37, %48 : vector<8x1xf32>
    %cst_33 = arith.constant 4.8828125E-4 : f32
    %50 = vector.broadcast %cst_33 : f32 to vector<8x1xf32>
    %51 = arith.mulf %45, %50 : vector<8x1xf32>
    %cst_34 = arith.constant 4.8828125E-4 : f32
    %52 = vector.broadcast %cst_34 : f32 to vector<8x1xf32>
    %53 = arith.mulf %49, %52 : vector<8x1xf32>
    %54 = arith.mulf %51, %51 : vector<8x1xf32>
    %55 = arith.subf %53, %54 : vector<8x1xf32>
    %cst_35 = arith.constant 0.000000e+00 : f32
    %56 = vector.broadcast %cst_35 : f32 to vector<8x1xf32>
    %57 = arith.maximumf %55, %56 : vector<8x1xf32>
    %c0_36 = arith.constant 0 : index
    %c0_37 = arith.constant 0 : index
    %58 = vector.load %arg2[%c0_36, %c0_37] : memref<8x1xf32, #tpu.memory_space<vmem>>, vector<8x1xf32>
    %cst_38 = arith.constant 9.99999974E-6 : f32
    %59 = vector.broadcast %cst_38 : f32 to vector<8x1xf32>
    %60 = arith.addf %57, %59 : vector<8x1xf32>
    %61 = math.rsqrt %60 : vector<8x1xf32>
    %62 = arith.mulf %58, %61 : vector<8x1xf32>
    %c0_39 = arith.constant 0 : index
    %c0_40 = arith.constant 0 : index
    %63 = vector.load %arg3[%c0_39, %c0_40] : memref<8x1xf32, #tpu.memory_space<vmem>>, vector<8x1xf32>
    %64 = arith.mulf %51, %62 : vector<8x1xf32>
    %65 = arith.subf %63, %64 : vector<8x1xf32>
    %66 = vector.broadcast %62 : vector<8x1xf32> to vector<8x512xf32>
    %67 = arith.mulf %6, %66 : vector<8x512xf32>
    %68 = vector.broadcast %65 : vector<8x1xf32> to vector<8x512xf32>
    %69 = arith.addf %67, %68 : vector<8x512xf32>
    %cst_41 = arith.constant 0.000000e+00 : f32
    %70 = vector.broadcast %cst_41 : f32 to vector<8x512xf32>
    %71 = arith.maximumf %69, %70 : vector<8x512xf32>
    %c0_42 = arith.constant 0 : index
    %c0_43 = arith.constant 0 : index
    %72 = vector.load %arg4[%c0_42, %c0_43] : memref<3x8xf32, #tpu.memory_space<vmem>>, vector<3x8xf32>
    %cst_44 = arith.constant dense<0.000000e+00> : vector<3x512xf32>
    %73 = tpu.matmul %72, %71, %cst_44 {dimension_numbers = #tpu.dot_dimension_numbers<[1], [0], [0], [1], [0, 0, 1, 1], [], []>} : vector<3x8xf32>, vector<8x512xf32>, vector<3x512xf32> -> vector<3x512xf32>
    %74 = math.tanh %73 : vector<3x512xf32>
    %c0_45 = arith.constant 0 : index
    %c0_46 = arith.constant 0 : index
    %c0_47 = arith.constant 0 : index
    %75 = vector.load %arg5[%c0_45, %c0_46, %c0_47] : memref<4x3x512xf32, #tpu.memory_space<vmem>>, vector<1x3x512xf32>
    %76 = vector.shape_cast %75 : vector<1x3x512xf32> to vector<3x512xf32>
    %77 = vector.shape_cast %74 : vector<3x512xf32> to vector<1x3x512xf32>
    tpu.vector_store %arg5[%c0_45, %c0_46, %c0_47], %77 {strides = array<i32>} : memref<4x3x512xf32, #tpu.memory_space<vmem>>, vector<1x3x512xf32>,
    %78 = vector.broadcast %62 : vector<8x1xf32> to vector<8x512xf32>
    %79 = arith.mulf %18, %78 : vector<8x512xf32>
    %80 = vector.broadcast %65 : vector<8x1xf32> to vector<8x512xf32>
    %81 = arith.addf %79, %80 : vector<8x512xf32>
    %cst_48 = arith.constant 0.000000e+00 : f32
    %82 = vector.broadcast %cst_48 : f32 to vector<8x512xf32>
    %83 = arith.maximumf %81, %82 : vector<8x512xf32>
    %c0_49 = arith.constant 0 : index
    %c0_50 = arith.constant 0 : index
    %84 = vector.load %arg4[%c0_49, %c0_50] : memref<3x8xf32, #tpu.memory_space<vmem>>, vector<3x8xf32>
    %cst_51 = arith.constant dense<0.000000e+00> : vector<3x512xf32>
    %85 = tpu.matmul %84, %83, %cst_51 {dimension_numbers = #tpu.dot_dimension_numbers<[1], [0], [0], [1], [0, 0, 1, 1], [], []>} : vector<3x8xf32>, vector<8x512xf32>, vector<3x512xf32> -> vector<3x512xf32>
    %86 = math.tanh %85 : vector<3x512xf32>
    %c1_52 = arith.constant 1 : index
    %c0_53 = arith.constant 0 : index
    %c0_54 = arith.constant 0 : index
    %87 = vector.load %arg5[%c1_52, %c0_53, %c0_54] : memref<4x3x512xf32, #tpu.memory_space<vmem>>, vector<1x3x512xf32>
    %88 = vector.shape_cast %87 : vector<1x3x512xf32> to vector<3x512xf32>
    %89 = vector.shape_cast %86 : vector<3x512xf32> to vector<1x3x512xf32>
    tpu.vector_store %arg5[%c1_52, %c0_53, %c0_54], %89 {strides = array<i32>} : memref<4x3x512xf32, #tpu.memory_space<vmem>>, vector<1x3x512xf32>,
    %90 = vector.broadcast %62 : vector<8x1xf32> to vector<8x512xf32>
    %91 = arith.mulf %30, %90 : vector<8x512xf32>
    %92 = vector.broadcast %65 : vector<8x1xf32> to vector<8x512xf32>
    %93 = arith.addf %91, %92 : vector<8x512xf32>
    %cst_55 = arith.constant 0.000000e+00 : f32
    %94 = vector.broadcast %cst_55 : f32 to vector<8x512xf32>
    %95 = arith.maximumf %93, %94 : vector<8x512xf32>
    %c0_56 = arith.constant 0 : index
    %c0_57 = arith.constant 0 : index
    %96 = vector.load %arg4[%c0_56, %c0_57] : memref<3x8xf32, #tpu.memory_space<vmem>>, vector<3x8xf32>
    %cst_58 = arith.constant dense<0.000000e+00> : vector<3x512xf32>
    %97 = tpu.matmul %96, %95, %cst_58 {dimension_numbers = #tpu.dot_dimension_numbers<[1], [0], [0], [1], [0, 0, 1, 1], [], []>} : vector<3x8xf32>, vector<8x512xf32>, vector<3x512xf32> -> vector<3x512xf32>
    %98 = math.tanh %97 : vector<3x512xf32>
    %c2_59 = arith.constant 2 : index
    %c0_60 = arith.constant 0 : index
    %c0_61 = arith.constant 0 : index
    %99 = vector.load %arg5[%c2_59, %c0_60, %c0_61] : memref<4x3x512xf32, #tpu.memory_space<vmem>>, vector<1x3x512xf32>
    %100 = vector.shape_cast %99 : vector<1x3x512xf32> to vector<3x512xf32>
    %101 = vector.shape_cast %98 : vector<3x512xf32> to vector<1x3x512xf32>
    tpu.vector_store %arg5[%c2_59, %c0_60, %c0_61], %101 {strides = array<i32>} : memref<4x3x512xf32, #tpu.memory_space<vmem>>, vector<1x3x512xf32>,
    %102 = vector.broadcast %62 : vector<8x1xf32> to vector<8x512xf32>
    %103 = arith.mulf %42, %102 : vector<8x512xf32>
    %104 = vector.broadcast %65 : vector<8x1xf32> to vector<8x512xf32>
    %105 = arith.addf %103, %104 : vector<8x512xf32>
    %cst_62 = arith.constant 0.000000e+00 : f32
    %106 = vector.broadcast %cst_62 : f32 to vector<8x512xf32>
    %107 = arith.maximumf %105, %106 : vector<8x512xf32>
    %c0_63 = arith.constant 0 : index
    %c0_64 = arith.constant 0 : index
    %108 = vector.load %arg4[%c0_63, %c0_64] : memref<3x8xf32, #tpu.memory_space<vmem>>, vector<3x8xf32>
    %cst_65 = arith.constant dense<0.000000e+00> : vector<3x512xf32>
    %109 = tpu.matmul %108, %107, %cst_65 {dimension_numbers = #tpu.dot_dimension_numbers<[1], [0], [0], [1], [0, 0, 1, 1], [], []>} : vector<3x8xf32>, vector<8x512xf32>, vector<3x512xf32> -> vector<3x512xf32>
    %110 = math.tanh %109 : vector<3x512xf32>
    %c3_66 = arith.constant 3 : index
    %c0_67 = arith.constant 0 : index
    %c0_68 = arith.constant 0 : index
    %111 = vector.load %arg5[%c3_66, %c0_67, %c0_68] : memref<4x3x512xf32, #tpu.memory_space<vmem>>, vector<1x3x512xf32>
    %112 = vector.shape_cast %111 : vector<1x3x512xf32> to vector<3x512xf32>
    %113 = vector.shape_cast %110 : vector<3x512xf32> to vector<1x3x512xf32>
    tpu.vector_store %arg5[%c3_66, %c0_67, %c0_68], %113 {strides = array<i32>} : memref<4x3x512xf32, #tpu.memory_space<vmem>>, vector<1x3x512xf32>,
    return
  }
}

</mosaic_0001>

<bundles_post_ra>
// kernel: generator_forward.5
= control target key start
LH: loop header
LB: loop body
LE: loop exit
PB: predicated region body
PF: predicated region fallthrough
CT: control target
= control target key end

     0   :  { %vm219_vm0 = vcmask 261120   ;;  %s2030_s0 = inlined_call_operand.vmem [shape: bf16[4,256,32], index: 0, kind: input, shape index: {}]   ;;  %s2031_s1 = inlined_call_operand.vmem [shape: bf16[4,32,256], index: 1, kind: input, shape index: {}]   ;;  %s2032_s2 = inlined_call_operand.vmem [shape: f32[32,1], index: 2, kind: input, shape index: {}]   ;;  %s2033_s3 = inlined_call_operand.vmem [shape: f32[32,1], index: 3, kind: input, shape index: {}]   ;;  %s2034_s4 = inlined_call_operand.vmem [shape: f32[4,32,32], index: 4, kind: output, shape index: {}]  }
   0x1   :  { %v1447_v0 = vld [vmem:[%s2030_s0 + $0x40] sm:$0xff]   ;;  %v1451_v4 = vld [vmem:[%s2030_s0 + $0x48] sm:$0xff]   ;;  %v1455_v8 = vld [vmem:[%s2030_s0 + $0x50] sm:$0xff]  }
   0x2   :  { %v1448_v1 = vld [vmem:[%s2030_s0 + $0xc0] sm:$0xff]   ;;  %1332 = vmatprep.subr.bf16.mxu0 %v1447_v0  ;;  %v1452_v5 = vld [vmem:[%s2030_s0 + $0xc8] sm:$0xff]   ;;  %v1456_v9 = vld [vmem:[%s2030_s0 + $0xd0] sm:$0xff]  }
   0x3   :  { %v1449_v2 = vld [vmem:[%s2030_s0] sm:$0xff]   ;;  %1360 = vmatprep.subr.bf16.mxu1 %v1448_v1  ;;  %v1453_v6 = vld [vmem:[%s2030_s0 + $0x8] sm:$0xff]   ;;  %v1457_v10 = vld [vmem:[%s2030_s0 + $0x10] sm:$0xff]  }
   0x4   :  { %v1450_v3 = vld [vmem:[%s2030_s0 + $0x80] sm:$0xff]   ;;  %1333 = vmatpush3.bf16.msra.mxu0 %v1449_v2  ;;  %v1454_v7 = vld [vmem:[%s2030_s0 + $0x88] sm:$0xff]   ;;  %v1458_v11 = vld [vmem:[%s2030_s0 + $0x90] sm:$0xff]  }
   0x5   :  { %1361 = vmatpush3.bf16.msra.mxu1 %v1450_v3  ;;  %1334 = vmatprep.subr.bf16.mxu0 %v1451_v4  ;;  %v1459_v12 = vld [vmem:[%s2030_s0 + $0x58] sm:$0xff]   ;;  %v1463_v16 = vld [vmem:[%s2030_s0 + $0x60] sm:$0xff]   ;;  %v1467_v20 = vld [vmem:[%s2030_s0 + $0x68] sm:$0xff]  }
   0x6   :  { %1362 = vmatprep.subr.bf16.mxu1 %v1452_v5  ;;  %v1460_v13 = vld [vmem:[%s2030_s0 + $0xd8] sm:$0xff]   ;;  %v1464_v17 = vld [vmem:[%s2030_s0 + $0xe0] sm:$0xff]   ;;  %v1468_v21 = vld [vmem:[%s2030_s0 + $0xe8] sm:$0xff]  }
   0x7   :  { %v1461_v14 = vld [vmem:[%s2030_s0 + $0x18] sm:$0xff]   ;;  %v1465_v18 = vld [vmem:[%s2030_s0 + $0x20] sm:$0xff]   ;;  %v1469_v22 = vld [vmem:[%s2030_s0 + $0x28] sm:$0xff]  }
   0x8   :  { %1335 = vmatpush3.bf16.msra.mxu0 %v1453_v6  ;;  %v1462_v15 = vld [vmem:[%s2030_s0 + $0x98] sm:$0xff]   ;;  %v1466_v19 = vld [vmem:[%s2030_s0 + $0xa0] sm:$0xff]   ;;  %v1470_v23 = vld [vmem:[%s2030_s0 + $0xa8] sm:$0xff]  }
   0x9   :  { %1363 = vmatpush3.bf16.msra.mxu1 %v1454_v7  ;;  %1336 = vmatprep.subr.bf16.mxu0 %v1455_v8  ;;  %v1471_v24 = vld [vmem:[%s2030_s0 + $0x70] sm:$0xff]   ;;  %v1475_v28 = vld [vmem:[%s2030_s0 + $0x78] sm:$0xff]   ;;  %v1479_v32 = vld [vmem:[%s2031_s1] ss:$8 sps:$4 sm:$0xff]  }
   0xa   :  { %1364 = vmatprep.subr.bf16.mxu1 %v1456_v9  ;;  %v1472_v25 = vld [vmem:[%s2030_s0 + $0xf0] sm:$0xff]   ;;  %v1476_v29 = vld [vmem:[%s2030_s0 + $0xf8] sm:$0xff]   ;;  %v1481_v33 = vld [vmem:[%s2031_s1 + $0x4] ss:$8 sps:$4 sm:$0xff]  }
   0xb   :  { %v1473_v26 = vld [vmem:[%s2030_s0 + $0x30] sm:$0xff]   ;;  %v1477_v30 = vld [vmem:[%s2030_s0 + $0x38] sm:$0xff]   ;;  %v1482_v34 = vld [vmem:[%s2031_s1 + $0x20] ss:$8 sps:$4 sm:$0xff]   ;;  %202 = vmatprep.mubr.bf16.mxu0 %v1481_v33 }
   0xc   :  { %1337 = vmatpush3.bf16.msra.mxu0 %v1457_v10  ;;  %v1474_v27 = vld [vmem:[%s2030_s0 + $0xb0] sm:$0xff]   ;;  %v1478_v31 = vld [vmem:[%s2030_s0 + $0xb8] sm:$0xff]   ;;  %v1484_v35 = vld [vmem:[%s2031_s1 + $0x24] ss:$8 sps:$4 sm:$0xff]  }
   0xd   :  { %1365 = vmatpush3.bf16.msra.mxu1 %v1458_v11  ;;  %1338 = vmatprep.subr.bf16.mxu0 %v1459_v12  ;;  %v1485_v36 = vld [vmem:[%s2030_s0 + $0x140] sm:$0xff]   ;;  %v1489_v40 = vld [vmem:[%s2030_s0 + $0x148] sm:$0xff]   ;;  %v1493_v44 = vld [vmem:[%s2030_s0 + $0x150] sm:$0xff]  }
   0xe   :  { %1366 = vmatprep.subr.bf16.mxu1 %v1460_v13  ;;  %442 = vmatprep.mubr.bf16.mxu1 %v1484_v35  ;;  %v1486_v37 = vld [vmem:[%s2030_s0 + $0x100] sm:$0xff]   ;;  %v1490_v41 = vld [vmem:[%s2030_s0 + $0x108] sm:$0xff]   ;;  %v1494_v45 = vld [vmem:[%s2030_s0 + $0x110] sm:$0xff]  }
   0xf   :  { %v1487_v38 = vld [vmem:[%s2030_s0 + $0x1c0] sm:$0xff]   ;;  %v1491_v42 = vld [vmem:[%s2030_s0 + $0x1c8] sm:$0xff]   ;;  %v1495_v46 = vld [vmem:[%s2030_s0 + $0x1d0] sm:$0xff]  }
  0x10   :  { %1339 = vmatpush3.bf16.msra.mxu0 %v1461_v14  ;;  %v1488_v39 = vld [vmem:[%s2030_s0 + $0x180] sm:$0xff]   ;;  %v1492_v43 = vld [vmem:[%s2030_s0 + $0x188] sm:$0xff]   ;;  %v1496_v47 = vld [vmem:[%s2030_s0 + $0x190] sm:$0xff]  }
  0x11   :  { %1367 = vmatpush3.bf16.msra.mxu1 %v1462_v15  ;;  %1340 = vmatprep.subr.bf16.mxu0 %v1463_v16  ;;  %v1497_v48 = vld [vmem:[%s2031_s1 + $0x14] ss:$8 sps:$4 sm:$0xff]   ;;  %v1500_v50 = vld [vmem:[%s2031_s1 + $0x10] ss:$8 sps:$4 sm:$0xff]   ;;  %v1506_v55 = vld [vmem:[%s2030_s0 + $0x160] sm:$0xff]  }
  0x12   :  { %1368 = vmatprep.subr.bf16.mxu1 %v1464_v17  ;;  %v1499_v49 = vld [vmem:[%s2030_s0 + $0x158] sm:$0xff]   ;;  %v1508_v57 = vld [vmem:[%s2030_s0 + $0x120] sm:$0xff]   ;;  %v1511_v60 = vld [vmem:[%s2030_s0 + $0x168] sm:$0xff]  }
  0x13   :  { %v1501_v51 = vld [vmem:[%s2030_s0 + $0x118] sm:$0xff]   ;;  %v1509_v58 = vld [vmem:[%s2030_s0 + $0x1e0] sm:$0xff]   ;;  %v1512_v61 = vld [vmem:[%s2030_s0 + $0x128] sm:$0xff]  }
  0x14   :  { %1341 = vmatpush3.bf16.msra.mxu0 %v1465_v18  ;;  %v1502_v52 = vld [vmem:[%s2030_s0 + $0x1d8] sm:$0xff]   ;;  %v1510_v59 = vld [vmem:[%s2030_s0 + $0x1a0] sm:$0xff]   ;;  %v1513_v62 = vld [vmem:[%s2030_s0 + $0x1e8] sm:$0xff]  }
  0x15   :  { %1369 = vmatpush3.bf16.msra.mxu1 %v1466_v19  ;;  %1342 = vmatprep.subr.bf16.mxu0 %v1467_v20  ;;  %v1503_v53 = vld [vmem:[%s2030_s0 + $0x198] sm:$0xff]   ;;  %v1514_v63 = vld [vmem:[%s2030_s0 + $0x1a8] sm:$0xff]   ;;  %v1515_v0 = vld [vmem:[%s2030_s0 + $0x170] sm:$0xff]  }
  0x16   :  { %1370 = vmatprep.subr.bf16.mxu1 %v1468_v21  ;;  %v1504_v54 = vld [vmem:[%s2031_s1 + $0x34] ss:$8 sps:$4 sm:$0xff]   ;;  %v1507_v56 = vld [vmem:[%s2031_s1 + $0x30] ss:$8 sps:$4 sm:$0xff]   ;;  %v1523_v8 = vld [vmem:[%s2031_s1 + $0x40] ss:$8 sps:$4 sm:$0xff]  }
  0x17   :  { %v1516_v1 = vld [vmem:[%s2030_s0 + $0x130] sm:$0xff]   ;;  %v1519_v4 = vld [vmem:[%s2030_s0 + $0x178] sm:$0xff]   ;;  %v1525_v9 = vld [vmem:[%s2031_s1 + $0x44] ss:$8 sps:$4 sm:$0xff]  }
  0x18   :  { %1343 = vmatpush3.bf16.msra.mxu0 %v1469_v22  ;;  %v1517_v2 = vld [vmem:[%s2030_s0 + $0x1f0] sm:$0xff]   ;;  %v1520_v5 = vld [vmem:[%s2030_s0 + $0x138] sm:$0xff]   ;;  %v1526_v10 = vld [vmem:[%s2031_s1 + $0x60] ss:$8 sps:$4 sm:$0xff]  }
  0x19   :  { %1371 = vmatpush3.bf16.msra.mxu1 %v1470_v23  ;;  %1344 = vmatprep.subr.bf16.mxu0 %v1471_v24  ;;  %v1518_v3 = vld [vmem:[%s2030_s0 + $0x1b0] sm:$0xff]   ;;  %v1521_v6 = vld [vmem:[%s2030_s0 + $0x1f8] sm:$0xff]   ;;  %v1528_v11 = vld [vmem:[%s2031_s1 + $0x64] ss:$8 sps:$4 sm:$0xff]  }
  0x1a   :  { %1372 = vmatprep.subr.bf16.mxu1 %v1472_v25  ;;  %v1522_v7 = vld [vmem:[%s2030_s0 + $0x1b8] sm:$0xff]  }
  0x1b   :  { %v1529_v12 = vld [vmem:[%s2031_s1 + $0x54] ss:$8 sps:$4 sm:$0xff]   ;;  %v1531_v14 = vld [vmem:[%s2031_s1 + $0x50] ss:$8 sps:$4 sm:$0xff]  }
  0x1c   :  { %1345 = vmatpush3.bf16.msra.mxu0 %v1473_v26  ;;  %v1532_v13 = vld [vmem:[%s2031_s1 + $0x74] ss:$8 sps:$4 sm:$0xff]   ;;  %v1534_v15 = vld [vmem:[%s2031_s1 + $0x70] ss:$8 sps:$4 sm:$0xff]  }
  0x1d   :  { %1373 = vmatpush3.bf16.msra.mxu1 %v1474_v27  ;;  %1346 = vmatprep.subr.bf16.mxu0 %v1475_v28 }
  0x1e   :  { %1374 = vmatprep.subr.bf16.mxu1 %v1476_v29 }
  0x20   :  { %1347 = vmatpush3.bf16.msra.mxu0 %v1477_v30 }
  0x21   :  { %1375 = vmatpush3.bf16.msra.mxu1 %v1478_v31  ;;  %1388 = vmatprep.subr.bf16.mxu0 %v1485_v36 }
  0x22   :  { %1416 = vmatprep.subr.bf16.mxu1 %v1487_v38 }
  0x23   :  { %203 = vmatmul.mubr.bf16.vlgmr.msra.gmra.mrb[0].mxu0 %v1479_v32 }
  0x24   :  { %443 = vmatmul.mubr.bf16.vlgmr.msra.gmra.mrb[0].mxu1 %v1482_v34  ;;  %1389 = vmatpush3.bf16.msra.mxu0 %v1486_v37 }
  0x25   :  { %1417 = vmatpush3.bf16.msra.mxu1 %v1488_v39  ;;  %1390 = vmatprep.subr.bf16.mxu0 %v1489_v40 }
  0x26   :  { %1418 = vmatprep.subr.bf16.mxu1 %v1491_v42  ;;  %210 = vmatprep.mubr.bf16.mxu0 %v1497_v48 }
  0x27   :  { %450 = vmatprep.mubr.bf16.mxu1 %v1504_v54 }
  0x28   :  { %1391 = vmatpush3.bf16.msra.mxu0 %v1490_v41 }
  0x29   :  { %1419 = vmatpush3.bf16.msra.mxu1 %v1492_v43  ;;  %1392 = vmatprep.subr.bf16.mxu0 %v1493_v44 }
  0x2a   :  { %1420 = vmatprep.subr.bf16.mxu1 %v1495_v46 }
  0x2b   :  { %211 = vmatmul.mubr.bf16.gmra.mrb[4].mxu0 %v1500_v50 }
  0x2c   :  { %1393 = vmatpush3.bf16.msra.mxu0 %v1494_v45  ;;  %451 = vmatmul.mubr.bf16.gmra.mrb[4].mxu1 %v1507_v56 }
  0x2d   :  { %1421 = vmatpush3.bf16.msra.mxu1 %v1496_v47  ;;  %1394 = vmatprep.subr.bf16.mxu0 %v1499_v49 }
  0x2e   :  { %1422 = vmatprep.subr.bf16.mxu1 %v1502_v52  ;;  %681 = vmatprep.mubr.bf16.mxu0 %v1525_v9 }
  0x2f   :  { %920 = vmatprep.mubr.bf16.mxu1 %v1528_v11 }
  0x30   :  { %1395 = vmatpush3.bf16.msra.mxu0 %v1501_v51 }
  0x31   :  { %1423 = vmatpush3.bf16.msra.mxu1 %v1503_v53  ;;  %1396 = vmatprep.subr.bf16.mxu0 %v1506_v55 }
  0x32   :  { %1424 = vmatprep.subr.bf16.mxu1 %v1509_v58 }
  0x34   :  { %1397 = vmatpush3.bf16.msra.mxu0 %v1508_v57 }
  0x35   :  { %1425 = vmatpush3.bf16.msra.mxu1 %v1510_v59  ;;  %1398 = vmatprep.subr.bf16.mxu0 %v1511_v60 }
  0x36   :  { %1426 = vmatprep.subr.bf16.mxu1 %v1513_v62 }
  0x38   :  { %1399 = vmatpush3.bf16.msra.mxu0 %v1512_v61 }
  0x39   :  { %1427 = vmatpush3.bf16.msra.mxu1 %v1514_v63  ;;  %1400 = vmatprep.subr.bf16.mxu0 %v1515_v0 }
  0x3a   :  { %1428 = vmatprep.subr.bf16.mxu1 %v1517_v2 }
  0x3c   :  { %1401 = vmatpush3.bf16.msra.mxu0 %v1516_v1 }
  0x3d   :  { %1429 = vmatpush3.bf16.msra.mxu1 %v1518_v3  ;;  %1402 = vmatprep.subr.bf16.mxu0 %v1519_v4 }
  0x3e   :  { %1430 = vmatprep.subr.bf16.mxu1 %v1521_v6 }
  0x40   :  { %1403 = vmatpush3.bf16.msra.mxu0 %v1520_v5 }
  0x41   :  { %1431 = vmatpush3.bf16.msra.mxu1 %v1522_v7 }
  0x43   :  { %682 = vmatmul.mubr.bf16.vlgmr.msra.gmra.mrb[8].mxu0 %v1523_v8 }
  0x44   :  { %921 = vmatmul.mubr.bf16.vlgmr.msra.gmra.mrb[8].mxu1 %v1526_v10  ;;  %689 = vmatprep.mubr.bf16.mxu0 %v1529_v12 }
  0x45   :  { %928 = vmatprep.mubr.bf16.mxu1 %v1532_v13 }
  0x4b   :  { %690 = vmatmul.mubr.bf16.gmra.mrb[12].mxu0 %v1531_v14 }
  0x4c   :  { %929 = vmatmul.mubr.bf16.gmra.mrb[12].mxu1 %v1534_v15 }
  0xf6   :  { %v1348_v16 = vpop.f32.mrb[0].mxu0 }
  0xf7   :  { %v1376_v17 = vpop.f32.mrb[0].mxu1  ;;  %v1349_v18 = vpop.f32.mrb[1].mxu0 }
  0xf8   :  { %v1809_v19 = vadd.f32 %v1349_v18, %v1348_v16  ;;  %v1377_v20 = vpop.f32.mrb[1].mxu1  ;;  %v1351_v21 = vpop.f32.mrb[2].mxu0 }
  0xf9   :  { %v1811_v22 = vadd.f32 %v1377_v20, %v1376_v17  ;;  %v1379_v23 = vpop.f32.mrb[2].mxu1  ;;  %v1352_v24 = vpop.f32.mrb[3].mxu0 }
  0xfa   :  { %v1813_v25 = vadd.f32 %v1352_v24, %v1351_v21  ;;  %v1380_v26 = vpop.f32.mrb[3].mxu1  ;;  %v220_v27 = vsel %vm219_vm0, %v1809_v19, 0.0  ;;  %v236_v35 = vmul.f32 %v1809_v19, %v1809_v19 }
  0xfb   :  { %v1817_v28 = vadd.f32 %v1380_v26, %v1379_v23  ;;  %221 = vadd.xlane.f32.xlu0 %v220_v27  ;;  %v459_v31 = vsel %vm219_vm0, %v1811_v22, 0.0  ;;  %v475_v42 = vmul.f32 %v1811_v22, %v1811_v22 }
  0xfc   :  { %v237_v30 = vmul.f32 %v1813_v25, %v1813_v25  ;;  %v223_v34 = vsel %vm219_vm0, %v1813_v25, 0.0  ;;  %v240_v41 = vsel %vm219_vm0, %v236_v35, 0.0 }
  0xfd   :  { %v462_v29 = vsel %vm219_vm0, %v1817_v28, 0.0  ;;  %v476_v33 = vmul.f32 %v1817_v28, %v1817_v28  ;;  %v479_v47 = vsel %vm219_vm0, %v475_v42, 0.0 }
  0xfe   :  { %463 = vadd.xlane.f32.xlu1 %v462_v29  ;;  %v243_v32 = vsel %vm219_vm0, %v237_v30, 0.0  ;;  %v1354_v36 = vpop.f32.mrb[4].mxu0 }
  0xff   :  { %460 = vadd.xlane.f32.xlu0 %v459_v31  ;;  %v1355_v37 = vpop.f32.mrb[5].mxu0  ;;  %v482_v38 = vsel %vm219_vm0, %v476_v33, 0.0  ;;  %v1382_v46 = vpop.f32.mrb[4].mxu1 }
 0x100   :  { %v1833_v39 = vadd.f32 %v1355_v37, %v1354_v36  ;;  %v1357_v40 = vpop.f32.mrb[6].mxu0  ;;  %v1383_v48 = vpop.f32.mrb[5].mxu1 }
 0x101   :  { %v1358_v43 = vpop.f32.mrb[7].mxu0  ;;  %v1843_v49 = vadd.f32 %v1383_v48, %v1382_v46  ;;  %v1385_v50 = vpop.f32.mrb[6].mxu1 }
 0x102   :  { %244 = vadd.xlane.f32.xlu1 %v243_v32  ;;  %v1838_v44 = vadd.f32 %v1358_v43, %v1357_v40  ;;  %v226_v45 = vsel %vm219_vm0, %v1833_v39, 0.0  ;;  %v1386_v51 = vpop.f32.mrb[7].mxu1  ;;  %v238_v55 = vmul.f32 %v1833_v39, %v1833_v39 }
 0x103   :  { %224 = vadd.xlane.f32.xlu0 %v223_v34  ;;  %v1847_v53 = vadd.f32 %v1386_v51, %v1385_v50  ;;  %v465_v54 = vsel %vm219_vm0, %v1843_v49, 0.0  ;;  %v477_v59 = vmul.f32 %v1843_v49, %v1843_v49 }
 0x104   :  { %v229_v52 = vsel %vm219_vm0, %v1838_v44, 0.0  ;;  %v239_v57 = vmul.f32 %v1838_v44, %v1838_v44  ;;  %v246_v58 = vsel %vm219_vm0, %v238_v55, 0.0 }
 0x105   :  { %v468_v56 = vsel %vm219_vm0, %v1847_v53, 0.0  ;;  %v478_v61 = vmul.f32 %v1847_v53, %v1847_v53  ;;  %v485_v62 = vsel %vm219_vm0, %v477_v59, 0.0 }
 0x106   :  { %483 = vadd.xlane.f32.xlu1 %v482_v38  ;;  %v249_v60 = vsel %vm219_vm0, %v239_v57, 0.0 }
 0x107   :  { %241 = vadd.xlane.f32.xlu0 %v240_v41  ;;  %v488_v63 = vsel %vm219_vm0, %v478_v61, 0.0 }
 0x10a   :  { %227 = vadd.xlane.f32.xlu1 %v226_v45 }
 0x10b   :  { %480 = vadd.xlane.f32.xlu0 %v479_v47 }
 0x10e   :  { %230 = vadd.xlane.f32.xlu1 %v229_v52 }
 0x10f   :  { %466 = vadd.xlane.f32.xlu0 %v465_v54 }
 0x112   :  { %469 = vadd.xlane.f32.xlu1 %v468_v56  ;;  %v1543_v56 = vmov 0  }
 0x113   :  { %247 = vadd.xlane.f32.xlu0 %v246_v58  ;;  %1446 = vset.pattern.permute.xlu1 %v1543_v56 }
 0x114   :  { %1445 = vset.pattern.permute.xlu0 %v1543_v56 }
 0x116   :  { %250 = vadd.xlane.f32.xlu1 %v249_v60  ;;  %v1404_v0 = vpop.f32.mrb[8].mxu0 }
 0x117   :  { %486 = vadd.xlane.f32.xlu0 %v485_v62  ;;  %v1405_v1 = vpop.f32.mrb[9].mxu0  ;;  %v1432_v2 = vpop.f32.mrb[8].mxu1 }
 0x118   :  { %v1865_v3 = vadd.f32 %v1405_v1, %v1404_v0  ;;  %v1407_v4 = vpop.f32.mrb[10].mxu0  ;;  %v1433_v5 = vpop.f32.mrb[9].mxu1 }
 0x119   :  { %v1867_v6 = vadd.f32 %v1433_v5, %v1432_v2  ;;  %v1408_v7 = vpop.f32.mrb[11].mxu0  ;;  %v1435_v8 = vpop.f32.mrb[10].mxu1 }
 0x11a   :  { %489 = vadd.xlane.f32.xlu1 %v488_v63  ;;  %v1869_v9 = vadd.f32 %v1408_v7, %v1407_v4  ;;  %v1436_v10 = vpop.f32.mrb[11].mxu1  ;;  %v698_v11 = vsel %vm219_vm0, %v1865_v3, 0.0  ;;  %v714_v16 = vmul.f32 %v1865_v3, %v1865_v3 }
 0x11b   :  { %v1873_v12 = vadd.f32 %v1436_v10, %v1435_v8  ;;  %699 = vadd.xlane.f32.xlu0 %v698_v11  ;;  %v937_v14 = vsel %vm219_vm0, %v1867_v6, 0.0  ;;  %v953_v33 = vmul.f32 %v1867_v6, %v1867_v6 }
 0x11c   :  { %v701_v13 = vsel %vm219_vm0, %v1869_v9, 0.0  ;;  %v715_v24 = vmul.f32 %v1869_v9, %v1869_v9  ;;  %v718_v31 = vsel %vm219_vm0, %v714_v16, 0.0 }
 0x11d   :  { %v940_v20 = vsel %vm219_vm0, %v1873_v12, 0.0  ;;  %v954_v37 = vmul.f32 %v1873_v12, %v1873_v12  ;;  %v957_v38 = vsel %vm219_vm0, %v953_v33, 0.0 }
 0x11e   :  { %702 = vadd.xlane.f32.xlu1 %v701_v13  ;;  %v1410_v15 = vpop.f32.mrb[12].mxu0  ;;  %v721_v36 = vsel %vm219_vm0, %v715_v24, 0.0 }
 0x11f   :  { %938 = vadd.xlane.f32.xlu0 %v937_v14  ;;  %v1411_v17 = vpop.f32.mrb[13].mxu0  ;;  %v1438_v18 = vpop.f32.mrb[12].mxu1  ;;  %v960_v40 = vsel %vm219_vm0, %v954_v37, 0.0 }
 0x120   :  { %v1883_v21 = vadd.f32 %v1411_v17, %v1410_v15  ;;  %v1413_v23 = vpop.f32.mrb[14].mxu0  ;;  %v1439_v26 = vpop.f32.mrb[13].mxu1 }
 0x121   :  { %v1414_v27 = vpop.f32.mrb[15].mxu0  ;;  %v1887_v29 = vadd.f32 %v1439_v26, %v1438_v18  ;;  %v1441_v30 = vpop.f32.mrb[14].mxu1 }
 0x122   :  { %941 = vadd.xlane.f32.xlu1 %v940_v20  ;;  %v1890_v32 = vadd.f32 %v1414_v27, %v1413_v23  ;;  %v1442_v34 = vpop.f32.mrb[15].mxu1  ;;  %v704_v41 = vsel %vm219_vm0, %v1883_v21, 0.0  ;;  %v716_v45 = vmul.f32 %v1883_v21, %v1883_v21 }
 0x123   :  { %719 = vadd.xlane.f32.xlu0 %v718_v31  ;;  %v1894_v35 = vadd.f32 %v1442_v34, %v1441_v30  ;;  %v943_v43 = vsel %vm219_vm0, %v1887_v29, 0.0  ;;  %v955_v50 = vmul.f32 %v1887_v29, %v1887_v29 }
 0x124   :  { %v707_v42 = vsel %vm219_vm0, %v1890_v32, 0.0  ;;  %v717_v47 = vmul.f32 %v1890_v32, %v1890_v32  ;;  %v724_v48 = vsel %vm219_vm0, %v716_v45, 0.0 }
 0x125   :  { %v946_v46 = vsel %vm219_vm0, %v1894_v35, 0.0  ;;  %v956_v52 = vmul.f32 %v1894_v35, %v1894_v35  ;;  %v963_v54 = vsel %vm219_vm0, %v955_v50, 0.0 }
 0x126   :  { %722 = vadd.xlane.f32.xlu1 %v721_v36  ;;  %v727_v51 = vsel %vm219_vm0, %v717_v47, 0.0 }
 0x127   :  { %958 = vadd.xlane.f32.xlu0 %v957_v38  ;;  %v966_v55 = vsel %vm219_vm0, %v956_v52, 0.0 }
 0x12a   :  { %961 = vadd.xlane.f32.xlu1 %v960_v40 }
 0x12b   :  { %705 = vadd.xlane.f32.xlu0 %v704_v41 }
 0x12e   :  { %708 = vadd.xlane.f32.xlu1 %v707_v42 }
 0x12f   :  { %944 = vadd.xlane.f32.xlu0 %v943_v43 }
 0x132   :  { %947 = vadd.xlane.f32.xlu1 %v946_v46 }
 0x133   :  { %725 = vadd.xlane.f32.xlu0 %v724_v48 }
 0x136   :  { %728 = vadd.xlane.f32.xlu1 %v727_v51 }
 0x137   :  { %964 = vadd.xlane.f32.xlu0 %v963_v54 }
 0x13a   :  { %967 = vadd.xlane.f32.xlu1 %v966_v55 }
 0x188   :  { %v222_v57 = vpop.xlane.xlu0 %221 }
 0x18b   :  { %v464_v58 = vpop.xlane.xlu1 %463 }
 0x18c   :  { %v461_v59 = vpop.xlane.xlu0 %460 }
 0x18d   :  { %v471_v15 = vadd.f32 %v461_v59, %v222_v57 }
 0x18f   :  { %v245_v60 = vpop.xlane.xlu1 %244 }
 0x190   :  { %v225_v61 = vpop.xlane.xlu0 %224 }
 0x191   :  { %v472_v17 = vadd.f32 %v464_v58, %v225_v61 }
 0x193   :  { %v484_v62 = vpop.xlane.xlu1 %483 }
 0x194   :  { %v242_v63 = vpop.xlane.xlu0 %241  ;;  %v492_v33 = vadd.f32 %v484_v62, %v245_v60 }
 0x197   :  { %v228_v0 = vpop.xlane.xlu1 %227 }
 0x198   :  { %v481_v1 = vpop.xlane.xlu0 %480 }
 0x199   :  { %v491_v27 = vadd.f32 %v481_v1, %v242_v63 }
 0x19b   :  { %v231_v2 = vpop.xlane.xlu1 %230 }
 0x19c   :  { %v467_v4 = vpop.xlane.xlu0 %466 }
 0x19d   :  { %v473_v54 = vadd.f32 %v467_v4, %v228_v0 }
 0x19f   :  { %v470_v5 = vpop.xlane.xlu1 %469 }
 0x1a0   :  { %v248_v7 = vpop.xlane.xlu0 %247  ;;  %v474_v58 = vadd.f32 %v470_v5, %v231_v2 }
 0x1a3   :  { %v251_v8 = vpop.xlane.xlu1 %250 }
 0x1a4   :  { %v487_v10 = vpop.xlane.xlu0 %486 }
 0x1a7   :  { %v490_v11 = vpop.xlane.xlu1 %489 }
 0x1a8   :  { %v700_v13 = vpop.xlane.xlu0 %699 }
 0x1a9   :  { %v710_v18 = vadd.f32 %v700_v13, %v471_v15  ;;  %v493_v15 = vadd.f32 %v487_v10, %v248_v7 }
 0x1ab   :  { %v703_v14 = vpop.xlane.xlu1 %702 }
 0x1ac   :  { %v939_v16 = vpop.xlane.xlu0 %938  ;;  %v711_v23 = vadd.f32 %v703_v14, %v472_v17 }
 0x1ad   :  { %v949_v24 = vadd.f32 %v939_v16, %v710_v18  ;;  %v494_v18 = vadd.f32 %v490_v11, %v251_v8  ;;  %v994_v8 = vld [vmem:[%s2032_s2 + $0x8] sm:$0xff] }
 0x1af   :  { %v942_v20 = vpop.xlane.xlu1 %941  ;;  %v973_v34 = vmul.f32 0.0078125, %v949_v24 }
 0x1b0   :  { %v720_v26 = vpop.xlane.xlu0 %719  ;;  %v950_v30 = vadd.f32 %v942_v20, %v711_v23 }
 0x1b1   :  { %v730_v36 = vadd.f32 %v720_v26, %v491_v27  ;;  %v981_v43 = vmul.f32 %v973_v34, %v973_v34 }
 0x1b2   :  { %v1921_v38 = vmul.f32 0.0078125, %v950_v30 }
 0x1b3   :  { %v723_v31 = vpop.xlane.xlu1 %722 }
 0x1b4   :  { %v959_v37 = vpop.xlane.xlu0 %958  ;;  %v731_v40 = vadd.f32 %v723_v31, %v492_v33  ;;  %v982_v48 = vmul.f32 %v1921_v38, %v1921_v38  ;;  %v993_v31 = vld [vmem:[%s2032_s2] sm:$0xff] }
 0x1b5   :  { %v969_v41 = vadd.f32 %v959_v37, %v730_v36 }
 0x1b7   :  { %v962_v42 = vpop.xlane.xlu1 %961  ;;  %v977_v45 = vmul.f32 0.0078125, %v969_v41 }
 0x1b8   :  { %v970_v46 = vadd.f32 %v962_v42, %v731_v40  ;;  %v706_v47 = vpop.xlane.xlu0 %705 }
 0x1b9   :  { %v985_v50 = vsub.f32 %v977_v45, %v981_v43  ;;  %v712_v61 = vadd.f32 %v706_v47, %v473_v54  ;;  %v1009_v47 = vld [vmem:[%s2033_s3] sm:$0xff] }
 0x1ba   :  { %v978_v51 = vmul.f32 0.0078125, %v970_v46 }
 0x1bb   :  { %v709_v52 = vpop.xlane.xlu1 %708  ;;  %v989_v55 = vmax.f32 %v985_v50, 0.0 }
 0x1bc   :  { %v986_v56 = vsub.f32 %v978_v51, %v982_v48  ;;  %v945_v57 = vpop.xlane.xlu0 %944  ;;  %v713_v1 = vadd.f32 %v709_v52, %v474_v58  ;;  %v1010_v52 = vld [vmem:[%s2033_s3 + $0x8] sm:$0xff]  ;;  %v996_v58 = vld [vmem:[%s2032_s2 + $0x18] sm:$0xff] }
 0x1bd   :  { %v997_v59 = vadd.f32 1e-05, %v989_v55  ;;  %v951_v13 = vadd.f32 %v945_v57, %v712_v61 }
 0x1be   :  { %v990_v60 = vmax.f32 %v986_v56, 0.0 }
 0x1bf   :  { %v948_v62 = vpop.xlane.xlu1 %947  ;;  %1535 = vrsqrt.f32 %v997_v59  ;;  %v975_v20 = vmul.f32 0.0078125, %v951_v13 }
 0x1c0   :  { %v998_v63 = vadd.f32 1e-05, %v990_v60  ;;  %v726_v14 = vpop.xlane.xlu0 %725  ;;  %v952_v16 = vadd.f32 %v948_v62, %v713_v1  ;;  %v1011_v60 = vld [vmem:[%s2033_s3 + $0x10] sm:$0xff] }
 0x1c1   :  { %v732_v0 = vadd.f32 %v726_v14, %v493_v15  ;;  %v983_v26 = vmul.f32 %v975_v20, %v975_v20 }
 0x1c2   :  { %1537 = vrsqrt.f32 %v998_v63  ;;  %v976_v23 = vmul.f32 0.0078125, %v952_v16  ;;  %v1012_v63 = vld [vmem:[%s2033_s3 + $0x18] sm:$0xff] }
 0x1c3   :  { %v729_v17 = vpop.xlane.xlu1 %728 }
 0x1c4   :  { %v965_v4 = vpop.xlane.xlu0 %964  ;;  %v733_v24 = vadd.f32 %v729_v17, %v494_v18  ;;  %v984_v7 = vmul.f32 %v976_v23, %v976_v23 }
 0x1c5   :  { %v971_v2 = vadd.f32 %v965_v4, %v732_v0 }
 0x1c7   :  { %v968_v5 = vpop.xlane.xlu1 %967  ;;  %v979_v27 = vmul.f32 0.0078125, %v971_v2 }
 0x1c8   :  { %v972_v30 = vadd.f32 %v968_v5, %v733_v24 }
 0x1c9   :  { %v1536_v33 = vpop.eup %1535  ;;  %v987_v10 = vsub.f32 %v979_v27, %v983_v26 }
 0x1ca   :  { %v980_v36 = vmul.f32 0.0078125, %v972_v30  ;;  %v1005_v11 = vmul.f32 %v1536_v33, %v993_v31 }
 0x1cb   :  { %v991_v40 = vmax.f32 %v987_v10, 0.0 }
 0x1cc   :  { %v1538_v37 = vpop.eup %1537  ;;  %v988_v41 = vsub.f32 %v980_v36, %v984_v7  ;;  %1023 = vperm.xlu0 %1445, %v1005_v11   ;;  %v1013_v43 = vmul.f32 %v1005_v11, %v973_v34  ;;  %v995_v34 = vld [vmem:[%s2032_s2 + $0x10] sm:$0xff] }
 0x1cd   :  { %v1006_v42 = vmul.f32 %v1538_v37, %v994_v8  ;;  %v999_v45 = vadd.f32 1e-05, %v991_v40 }
 0x1ce   :  { %v992_v46 = vmax.f32 %v988_v41, 0.0  ;;  %v1017_v50 = vsub.f32 %v1009_v47, %v1013_v43 }
 0x1cf   :  { %1028 = vperm.xlu1 %1446, %v1006_v42   ;;  %1539 = vrsqrt.f32 %v999_v45  ;;  %v1014_v51 = vmul.f32 %v1006_v42, %v1921_v38 }
 0x1d0   :  { %v1000_v48 = vadd.f32 1e-05, %v992_v46 }
 0x1d1   :  { %v1018_v54 = vsub.f32 %v1010_v52, %v1014_v51 }
 0x1d2   :  { %1541 = vrsqrt.f32 %v1000_v48 }
 0x1d3   :  { %1047 = vperm.xlu1 %1446, %v1017_v50  }
 0x1d7   :  { %1052 = vperm.xlu1 %1446, %v1018_v54  }
 0x1d9   :  { %v1540_v55 = vpop.eup %1539 }
 0x1da   :  { %v1007_v56 = vmul.f32 %v1540_v55, %v995_v34 }
 0x1dc   :  { %v1542_v57 = vpop.eup %1541  ;;  %1033 = vperm.xlu1 %1446, %v1007_v56   ;;  %v1015_v59 = vmul.f32 %v1007_v56, %v975_v20 }
 0x1dd   :  { %v1008_v38 = vmul.f32 %v1542_v57, %v996_v58 }
 0x1de   :  { %v1019_v61 = vsub.f32 %v1011_v60, %v1015_v59 }
 0x1df   :  { %v1016_v62 = vmul.f32 %v1008_v38, %v976_v23 }
 0x1e0   :  { %1038 = vperm.xlu1 %1446, %v1008_v38  }
 0x1e1   :  { %v1020_v1 = vsub.f32 %v1012_v63, %v1016_v62 }
 0x1e4   :  { %1057 = vperm.xlu1 %1446, %v1019_v61  }
 0x1e8   :  { %1062 = vperm.xlu1 %1446, %v1020_v1  }
 0x24b   :  { %v1024_v13 = vpop.permute.xlu0 %1023 }
 0x24c   :  { %v1041_v15 = vmul.f32 %v1809_v19, %v1024_v13  ;;  %v1077_v16 = vmul.f32 %v1811_v22, %v1024_v13  ;;  %v1094_v17 = vmul.f32 %v1865_v3, %v1024_v13  ;;  %v1111_v18 = vmul.f32 %v1867_v6, %v1024_v13 }
 0x24e   :  { %v1029_v14 = vpop.permute.xlu1 %1028 }
 0x24f   :  { %v1042_v2 = vmul.f32 %v1813_v25, %v1029_v14  ;;  %v1078_v5 = vmul.f32 %v1817_v28, %v1029_v14  ;;  %v1095_v26 = vmul.f32 %v1869_v9, %v1029_v14  ;;  %v1112_v27 = vmul.f32 %v1873_v12, %v1029_v14 }
 0x252   :  { %v1048_v20 = vpop.permute.xlu1 %1047 }
 0x253   :  { %v1065_v0 = vadd.f32 %v1048_v20, %v1041_v15  ;;  %v1081_v4 = vadd.f32 %v1077_v16, %v1048_v20  ;;  %v1098_v23 = vadd.f32 %v1094_v17, %v1048_v20  ;;  %v1115_v24 = vadd.f32 %v1111_v18, %v1048_v20 }
 0x255   :  { %v1069_v19 = vmax.f32 %v1065_v0, 0.0  ;;  %v1085_v30 = vmax.f32 %v1081_v4, 0.0  ;;  %v1102_v22 = vmax.f32 %v1098_v23, 0.0  ;;  %v1119_v31 = vmax.f32 %v1115_v24, 0.0 }
 0x256   :  { %v1053_v3 = vpop.permute.xlu1 %1052 }
 0x257   :  { %1073 = vst.msk [vmem:[%s2034_s4] sm:$0xff] %vm219_vm0, %v1069_v19  ;;  %1320 = vst.msk [vmem:[%s2034_s4 + $0x20] sm:$0xff] %vm219_vm0, %v1085_v30  ;;  %v1066_v25 = vadd.f32 %v1053_v3, %v1042_v2  ;;  %v1082_v28 = vadd.f32 %v1078_v5, %v1053_v3  ;;  %v1099_v6 = vadd.f32 %v1095_v26, %v1053_v3 }
 0x258   :  { %1324 = vst.msk [vmem:[%s2034_s4 + $0x40] sm:$0xff] %vm219_vm0, %v1102_v22  ;;  %1328 = vst.msk [vmem:[%s2034_s4 + $0x60] sm:$0xff] %vm219_vm0, %v1119_v31  ;;  %v1116_v9 = vadd.f32 %v1112_v27, %v1053_v3 }
 0x259   :  { %v1070_v12 = vmax.f32 %v1066_v25, 0.0  ;;  %v1086_v33 = vmax.f32 %v1082_v28, 0.0  ;;  %v1103_v7 = vmax.f32 %v1099_v6, 0.0 }
 0x25a   :  { %v1120_v10 = vmax.f32 %v1116_v9, 0.0 }
 0x25b   :  { %1074 = vst.msk [vmem:[%s2034_s4 + $0x8] sm:$0xff] %vm219_vm0, %v1070_v12  ;;  %1321 = vst.msk [vmem:[%s2034_s4 + $0x28] sm:$0xff] %vm219_vm0, %v1086_v33  ;;  %v1034_v36 = vpop.permute.xlu1 %1033 }
 0x25c   :  { %1325 = vst.msk [vmem:[%s2034_s4 + $0x48] sm:$0xff] %vm219_vm0, %v1103_v7  ;;  %1329 = vst.msk [vmem:[%s2034_s4 + $0x68] sm:$0xff] %vm219_vm0, %v1120_v10  ;;  %v1043_v11 = vmul.f32 %v1833_v39, %v1034_v36  ;;  %v1079_v37 = vmul.f32 %v1843_v49, %v1034_v36  ;;  %v1096_v40 = vmul.f32 %v1883_v21, %v1034_v36 }
 0x25d   :  { %v1113_v41 = vmul.f32 %v1887_v29, %v1034_v36 }
 0x25f   :  { %v1039_v8 = vpop.permute.xlu1 %1038 }
 0x260   :  { %v1044_v48 = vmul.f32 %v1838_v44, %v1039_v8  ;;  %v1080_v50 = vmul.f32 %v1847_v53, %v1039_v8  ;;  %v1097_v51 = vmul.f32 %v1890_v32, %v1039_v8  ;;  %v1114_v52 = vmul.f32 %v1894_v35, %v1039_v8 }
 0x263   :  { %v1058_v42 = vpop.permute.xlu1 %1057 }
 0x264   :  { %v1067_v43 = vadd.f32 %v1058_v42, %v1043_v11  ;;  %v1083_v45 = vadd.f32 %v1079_v37, %v1058_v42  ;;  %v1100_v46 = vadd.f32 %v1096_v40, %v1058_v42  ;;  %v1117_v47 = vadd.f32 %v1113_v41, %v1058_v42 }
 0x266   :  { %v1071_v39 = vmax.f32 %v1067_v43, 0.0  ;;  %v1087_v54 = vmax.f32 %v1083_v45, 0.0  ;;  %v1104_v49 = vmax.f32 %v1100_v46, 0.0  ;;  %v1121_v34 = vmax.f32 %v1117_v47, 0.0 }
 0x267   :  { %v1063_v21 = vpop.permute.xlu1 %1062 }
 0x268   :  { %1075 = vst.msk [vmem:[%s2034_s4 + $0x10] sm:$0xff] %vm219_vm0, %v1071_v39  ;;  %1322 = vst.msk [vmem:[%s2034_s4 + $0x30] sm:$0xff] %vm219_vm0, %v1087_v54  ;;  %v1068_v44 = vadd.f32 %v1063_v21, %v1044_v48  ;;  %v1084_v53 = vadd.f32 %v1080_v50, %v1063_v21  ;;  %v1101_v29 = vadd.f32 %v1097_v51, %v1063_v21 }
 0x269   :  { %1326 = vst.msk [vmem:[%s2034_s4 + $0x50] sm:$0xff] %vm219_vm0, %v1104_v49  ;;  %1330 = vst.msk [vmem:[%s2034_s4 + $0x70] sm:$0xff] %vm219_vm0, %v1121_v34  ;;  %v1118_v32 = vadd.f32 %v1114_v52, %v1063_v21 }
 0x26a   :  { %v1072_v35 = vmax.f32 %v1068_v44, 0.0  ;;  %v1088_v55 = vmax.f32 %v1084_v53, 0.0  ;;  %v1105_v56 = vmax.f32 %v1101_v29, 0.0 }
 0x26b   :  { %v1122_v57 = vmax.f32 %v1118_v32, 0.0 }
 0x26c   :  { %1076 = vst.msk [vmem:[%s2034_s4 + $0x18] sm:$0xff] %vm219_vm0, %v1072_v35  ;;  %1323 = vst.msk [vmem:[%s2034_s4 + $0x38] sm:$0xff] %vm219_vm0, %v1088_v55 }
 0x26d   :  { %1327 = vst.msk [vmem:[%s2034_s4 + $0x58] sm:$0xff] %vm219_vm0, %v1105_v56  ;;  %1331 = vst.msk [vmem:[%s2034_s4 + $0x78] sm:$0xff] %vm219_vm0, %v1122_v57 }

// kernel: generator_forward.4
= control target key start
LH: loop header
LB: loop body
LE: loop exit
PB: predicated region body
PF: predicated region fallthrough
CT: control target
= control target key end

     0   :  { %v4120_v0 = vmov 0.0|0.0   ;;  %v4121_v4 = vmov 0   ;;  %vm152_vm0 = vcmask 588800   ;;  %v4122_v52 = vmov 0.0   ;;  %s7405_s0 = inlined_call_operand.vmem [shape: f32[200,2], index: 0, kind: input, shape index: {}]   ;;  %s7406_s1 = inlined_call_operand.vmem [shape: f32[100,200], index: 1, kind: input, shape index: {}]   ;;  %s7407_s2 = inlined_call_operand.vmem [shape: f32[100,1], index: 2, kind: input, shape index: {}]   ;;  %s7408_s3 = inlined_call_operand.vmem [shape: f32[1024,100], index: 3, kind: input, shape index: {}]   ;;  %s7409_s4 = inlined_call_operand.vmem [shape: f32[64,1], index: 4, kind: input, shape index: {}]   ;;  %s7410_s5 = inlined_call_operand.vmem [shape: f32[64,1], index: 5, kind: input, shape index: {}]   ;;  %s7411_s6 = inlined_call_operand.vmem [shape: f32[16,64,2], index: 6, kind: output, shape index: {}]  }
   0x1   :  { %4025 = vmatprep.subr.bf16.mxu0 %v4120_v0  ;;  %v49_v1 = vld [vmem:[%s7405_s0] sm:$0xff]  ;;  %v50_v2 = vld [vmem:[%s7405_s0 + $0x8] sm:$0xff]  ;;  %v51_v3 = vld [vmem:[%s7405_s0 + $0x10] sm:$0xff]  ;;  %4102 = vset.pattern.permute.xlu0 %v4121_v4  ;;  %vm450_vm1 = vcmask 818176   ;;  %vm835_vm2 = vcmask 1043456   ;;  %vm1544_vm3 = vcmask 15360  }
   0x2   :  { %v4026_v5 = vpack.c.bf16 %v50_v2, %v49_v1  ;;  %v52_v6 = vld [vmem:[%s7405_s0 + $0x18] sm:$0xff]  ;;  %4103 = vset.pattern.permute.xlu1 %v4121_v4  ;;  %v53_v8 = vld [vmem:[%s7405_s0 + $0x20] sm:$0xff]  ;;  %v54_v9 = vld [vmem:[%s7405_s0 + $0x28] sm:$0xff] }
   0x3   :  { %v4029_v7 = vpack.c.bf16 %v52_v6, %v51_v3  ;;  %v4032_v10 = vpack.c.bf16 %v54_v9, %v53_v8  ;;  %v55_v11 = vld [vmem:[%s7405_s0 + $0x30] sm:$0xff]  ;;  %v56_v12 = vld [vmem:[%s7405_s0 + $0x38] sm:$0xff]  ;;  %v24_v13 = vld [vmem:[%s7406_s1 + $0x8] sm:$0xff] }
   0x4   :  { %4027 = vmatpush1.bf16.msra.mxu0 %v4026_v5  ;;  %3404 = vmatprep.mubr.msk.f32.mxu0 %vm152_vm0, %v24_v13  ;;  %v4035_v14 = vpack.c.bf16 %v56_v12, %v55_v11  ;;  %v57_v15 = vld [vmem:[%s7405_s0 + $0x40] sm:$0xff]  ;;  %v58_v16 = vld [vmem:[%s7405_s0 + $0x48] sm:$0xff]  ;;  %v59_v18 = vld [vmem:[%s7405_s0 + $0x50] sm:$0xff] }
   0x5   :  { %4028 = vmatprep.subr.bf16.mxu0 %v4120_v0  ;;  %v4038_v17 = vpack.c.bf16 %v58_v16, %v57_v15  ;;  %v60_v19 = vld [vmem:[%s7405_s0 + $0x58] sm:$0xff]  ;;  %v74_v20 = vld [vmem:[%s7407_s2] sm:$0xff]  ;;  %v76_v21 = vld [vmem:[%s7407_s2 + $0x10] sm:$0xff] }
   0x6   :  { %89 = vperm.xlu0 %4102, %v74_v20   ;;  %v4041_v22 = vpack.c.bf16 %v60_v19, %v59_v18  ;;  %v75_v23 = vld [vmem:[%s7407_s2 + $0x8] sm:$0xff]  ;;  %99 = vperm.xlu1 %4103, %v76_v21   ;;  %v61_v24 = vld [vmem:[%s7405_s0 + $0x60] sm:$0xff]  ;;  %v77_v26 = vld [vmem:[%s7407_s2 + $0x18] sm:$0xff] }
   0x7   :  { %v62_v25 = vld [vmem:[%s7405_s0 + $0x68] sm:$0xff]  ;;  %v78_v28 = vld [vmem:[%s7407_s2 + $0x20] sm:$0xff]  ;;  %v63_v29 = vld [vmem:[%s7405_s0 + $0x70] sm:$0xff] }
   0x8   :  { %4030 = vmatpush1.bf16.msra.mxu0 %v4029_v7  ;;  %v4044_v27 = vpack.c.bf16 %v62_v25, %v61_v24  ;;  %v64_v30 = vld [vmem:[%s7405_s0 + $0x78] sm:$0xff]  ;;  %v79_v31 = vld [vmem:[%s7407_s2 + $0x28] sm:$0xff]  ;;  %v80_v33 = vld [vmem:[%s7407_s2 + $0x30] sm:$0xff] }
   0x9   :  { %4031 = vmatprep.subr.bf16.mxu0 %v4120_v0  ;;  %v4047_v32 = vpack.c.bf16 %v64_v30, %v63_v29  ;;  %v65_v34 = vld [vmem:[%s7405_s0 + $0x80] sm:$0xff]  ;;  %v66_v35 = vld [vmem:[%s7405_s0 + $0x88] sm:$0xff]  ;;  %v81_v36 = vld [vmem:[%s7407_s2 + $0x38] sm:$0xff] }
   0xa   :  { %94 = vperm.xlu0 %4102, %v75_v23   ;;  %104 = vperm.xlu1 %4103, %v77_v26   ;;  %v4050_v37 = vpack.c.bf16 %v66_v35, %v65_v34  ;;  %v82_v38 = vld [vmem:[%s7407_s2 + $0x40] sm:$0xff]  ;;  %v67_v39 = vld [vmem:[%s7405_s0 + $0x90] sm:$0xff]  ;;  %v68_v40 = vld [vmem:[%s7405_s0 + $0x98] sm:$0xff] }
   0xb   :  { %v83_v41 = vld [vmem:[%s7407_s2 + $0x48] sm:$0xff]  ;;  %v4053_v42 = vpack.c.bf16 %v68_v40, %v67_v39  ;;  %v84_v43 = vld [vmem:[%s7407_s2 + $0x50] sm:$0xff]  ;;  %v69_v44 = vld [vmem:[%s7405_s0 + $0xa0] sm:$0xff] }
   0xc   :  { %4033 = vmatpush1.bf16.msra.mxu0 %v4032_v10  ;;  %v70_v45 = vld [vmem:[%s7405_s0 + $0xa8] sm:$0xff]  ;;  %v85_v46 = vld [vmem:[%s7407_s2 + $0x58] sm:$0xff]  ;;  %v86_v48 = vld [vmem:[%s7407_s2 + $0x60] sm:$0xf] }
   0xd   :  { %4034 = vmatprep.subr.bf16.mxu0 %v4120_v0  ;;  %v4056_v47 = vpack.c.bf16 %v70_v45, %v69_v44  ;;  %v71_v49 = vld [vmem:[%s7405_s0 + $0xb0] sm:$0xff]  ;;  %v72_v50 = vld [vmem:[%s7405_s0 + $0xb8] sm:$0xff]  ;;  %v73_v53 = vld [vmem:[%s7405_s0 + $0xc0] sm:$0xff] }
   0xe   :  { %109 = vperm.xlu0 %4102, %v78_v28   ;;  %114 = vperm.xlu1 %4103, %v79_v31   ;;  %v4059_v51 = vpack.c.bf16 %v72_v50, %v71_v49  ;;  %v23_v54 = vld [vmem:[%s7406_s1] sm:$0xff]  ;;  %v26_v55 = vld [vmem:[%s7406_s1 + $0x18] sm:$0xff]  ;;  %v25_v56 = vld [vmem:[%s7406_s1 + $0x10] sm:$0xff] }
   0xf   :  { %v28_v57 = vld [vmem:[%s7406_s1 + $0x28] sm:$0xff]  ;;  %v27_v58 = vld [vmem:[%s7406_s1 + $0x20] sm:$0xff]  ;;  %v30_v59 = vld [vmem:[%s7406_s1 + $0x38] sm:$0xff] }
  0x10   :  { %4036 = vmatpush1.bf16.msra.mxu0 %v4035_v14  ;;  %v29_v60 = vld [vmem:[%s7406_s1 + $0x30] sm:$0xff]  ;;  %v32_v61 = vld [vmem:[%s7406_s1 + $0x48] sm:$0xff]  ;;  %v31_v62 = vld [vmem:[%s7406_s1 + $0x40] sm:$0xff] }
  0x11   :  { %4037 = vmatprep.subr.bf16.mxu0 %v4120_v0  ;;  %v34_v63 = vld [vmem:[%s7406_s1 + $0x58] sm:$0xff]  ;;  %v36_v1 = vld [vmem:[%s7406_s1 + $0x68] sm:$0xff]  ;;  %v35_v2 = vld [vmem:[%s7406_s1 + $0x60] sm:$0xff] }
  0x12   :  { %119 = vperm.xlu0 %4102, %v80_v33   ;;  %124 = vperm.xlu1 %4103, %v81_v36   ;;  %v38_v3 = vld [vmem:[%s7406_s1 + $0x78] sm:$0xff]  ;;  %v37_v4 = vld [vmem:[%s7406_s1 + $0x70] sm:$0xff]  ;;  %v40_v5 = vld [vmem:[%s7406_s1 + $0x88] sm:$0xff] }
  0x13   :  { %v39_v6 = vld [vmem:[%s7406_s1 + $0x80] sm:$0xff]  ;;  %v42_v7 = vld [vmem:[%s7406_s1 + $0x98] sm:$0xff]  ;;  %v41_v8 = vld [vmem:[%s7406_s1 + $0x90] sm:$0xff] }
  0x14   :  { %4039 = vmatpush1.bf16.msra.mxu0 %v4038_v17  ;;  %v44_v9 = vld [vmem:[%s7406_s1 + $0xa8] sm:$0xff]  ;;  %v43_v10 = vld [vmem:[%s7406_s1 + $0xa0] sm:$0xff]  ;;  %v46_v11 = vld [vmem:[%s7406_s1 + $0xb8] sm:$0xff] }
  0x15   :  { %4040 = vmatprep.subr.bf16.mxu0 %v4120_v0  ;;  %v45_v12 = vld [vmem:[%s7406_s1 + $0xb0] sm:$0xff]  ;;  %v48_v13 = vld [vmem:[%s7406_s1 + $0xc8] sm:$0xf]  ;;  %v47_v14 = vld [vmem:[%s7406_s1 + $0xc0] sm:$0xf] }
  0x16   :  { %129 = vperm.xlu0 %4102, %v82_v38   ;;  %134 = vperm.xlu1 %4103, %v83_v41   ;;  %v322_v15 = vld [vmem:[%s7408_s3] sm:$0xff] }
  0x17   :  { %v366_v16 = vld [vmem:[%s7408_s3 + $0x160] sm:$0xff] }
  0x18   :  { %4042 = vmatpush1.bf16.msra.mxu0 %v4041_v22  ;;  %3899 = vmatprep.mubr.msk.f32.mxu1 %vm450_vm1, %v366_v16  ;;  %v369_v16 = vld [vmem:[%s7408_s3 + $0x178] sm:$0xff] }
  0x19   :  { %4043 = vmatprep.subr.bf16.mxu0 %v4120_v0 }
  0x1a   :  { %139 = vperm.xlu0 %4102, %v84_v43   ;;  %144 = vperm.xlu1 %4103, %v85_v46  }
  0x1c   :  { %4045 = vmatpush1.bf16.msra.mxu0 %v4044_v27 }
  0x1d   :  { %4046 = vmatprep.subr.bf16.mxu0 %v4120_v0 }
  0x1e   :  { %149 = vperm.xlu0 %4102, %v86_v48  }
  0x20   :  { %4048 = vmatpush1.bf16.msra.mxu0 %v4047_v32 }
  0x21   :  { %4049 = vmatprep.subr.bf16.mxu0 %v4120_v0 }
  0x24   :  { %4051 = vmatpush1.bf16.msra.mxu0 %v4050_v37 }
  0x25   :  { %4052 = vmatprep.subr.bf16.mxu0 %v4120_v0 }
  0x28   :  { %4054 = vmatpush1.bf16.msra.mxu0 %v4053_v42 }
  0x29   :  { %4055 = vmatprep.subr.bf16.mxu0 %v4120_v0 }
  0x2c   :  { %4057 = vmatpush1.bf16.msra.mxu0 %v4056_v47 }
  0x2d   :  { %4058 = vmatprep.subr.bf16.mxu0 %v4120_v0  ;;  %v33_v0 = vld [vmem:[%s7406_s1 + $0x50] sm:$0xff] }
  0x30   :  { %4060 = vmatpush1.bf16.msra.mxu0 %v4059_v51 }
  0x31   :  { %240 = vmatprep.subr.mxu0 %v4122_v52 }
  0x34   :  { %241 = vmatpush1.msra.mxu0 %v73_v53 }
  0x35   :  { %257 = vmatmul.mubr.f32.vlgmr.msra.gmra.mrb[0].mxu0 %v23_v54 }
  0x36   :  { %3405 = vmatprep.mubr.msk.f32.mxu0 %vm152_vm0, %v26_v55 }
  0x39   :  { %262 = vmatmul.mubr.f32.gmra.mrb[2].mxu0 %v25_v56 }
  0x3a   :  { %3406 = vmatprep.mubr.msk.f32.mxu0 %vm152_vm0, %v28_v57 }
  0x3d   :  { %267 = vmatmul.mubr.f32.gmra.mrb[4].mxu0 %v27_v58 }
  0x3e   :  { %3407 = vmatprep.mubr.msk.f32.mxu0 %vm152_vm0, %v30_v59 }
  0x41   :  { %272 = vmatmul.mubr.f32.gmra.mrb[6].mxu0 %v29_v60 }
  0x42   :  { %3408 = vmatprep.mubr.msk.f32.mxu0 %vm152_vm0, %v32_v61 }
  0x45   :  { %277 = vmatmul.mubr.f32.gmra.mrb[8].mxu0 %v31_v62 }
  0x46   :  { %3409 = vmatprep.mubr.msk.f32.mxu0 %vm152_vm0, %v34_v63 }
  0x49   :  { %282 = vmatmul.mubr.f32.gmra.mrb[10].mxu0 %v33_v0 }
  0x4a   :  { %3410 = vmatprep.mubr.msk.f32.mxu0 %vm152_vm0, %v36_v1 }
  0x4d   :  { %287 = vmatmul.mubr.f32.gmra.mrb[12].mxu0 %v35_v2 }
  0x4e   :  { %3411 = vmatprep.mubr.msk.f32.mxu0 %vm152_vm0, %v38_v3 }
  0x51   :  { %292 = vmatmul.mubr.f32.gmra.mrb[14].mxu0 %v37_v4 }
  0x52   :  { %3412 = vmatprep.mubr.msk.f32.mxu0 %vm152_vm0, %v40_v5 }
  0x55   :  { %297 = vmatmul.mubr.f32.gmra.mrb[16].mxu0 %v39_v6 }
  0x56   :  { %3413 = vmatprep.mubr.msk.f32.mxu0 %vm152_vm0, %v42_v7 }
  0x59   :  { %302 = vmatmul.mubr.f32.gmra.mrb[18].mxu0 %v41_v8 }
  0x5a   :  { %3414 = vmatprep.mubr.msk.f32.mxu0 %vm152_vm0, %v44_v9 }
  0x5d   :  { %307 = vmatmul.mubr.f32.gmra.mrb[20].mxu0 %v43_v10 }
  0x5e   :  { %3415 = vmatprep.mubr.msk.f32.mxu0 %vm152_vm0, %v46_v11  ;;  %v323_v11 = vld [vmem:[%s7408_s3 + $0x8] sm:$0xff] }
  0x61   :  { %312 = vmatmul.mubr.f32.gmra.mrb[22].mxu0 %v45_v12  ;;  %v367_v12 = vld [vmem:[%s7408_s3 + $0x168] sm:$0xff] }
  0x62   :  { %3416 = vmatprep.mubr.msk.f32.mxu0 %vm152_vm0, %v48_v13  ;;  %v324_v13 = vld [vmem:[%s7408_s3 + $0x10] sm:$0xff] }
  0x65   :  { %317 = vmatmul.mubr.f32.gmra.mrb[24].mxu0 %v47_v14  ;;  %v368_v14 = vld [vmem:[%s7408_s3 + $0x170] sm:$0xff] }
  0x66   :  { %3833 = vmatprep.mubr.msk.f32.mxu0 %vm450_vm1, %v322_v15  ;;  %v325_v15 = vld [vmem:[%s7408_s3 + $0x18] sm:$0xff] }
  0x85   :  { %v90_v17 = vpop.permute.xlu0 %89  ;;  %v100_v25 = vpop.permute.xlu1 %99 }
  0x89   :  { %v95_v20 = vpop.permute.xlu0 %94  ;;  %v105_v29 = vpop.permute.xlu1 %104 }
  0x8d   :  { %v110_v37 = vpop.permute.xlu0 %109  ;;  %v115_v38 = vpop.permute.xlu1 %114 }
  0x91   :  { %v120_v46 = vpop.permute.xlu0 %119  ;;  %v125_v47 = vpop.permute.xlu1 %124 }
  0x95   :  { %v130_v55 = vpop.permute.xlu0 %129  ;;  %v135_v56 = vpop.permute.xlu1 %134 }
  0x99   :  { %v140_v0 = vpop.permute.xlu0 %139  ;;  %v145_v1 = vpop.permute.xlu1 %144 }
  0x9d   :  { %v150_v7 = vpop.permute.xlu0 %149 }
 0x108   :  { %v258_v18 = vpop.f32.mrb[0].mxu0 }
 0x109   :  { %v260_v19 = vpop.f32.mrb[1].mxu0  ;;  %v259_v22 = vadd.f32 %v258_v18, %v90_v17  ;;  %v326_v17 = vld [vmem:[%s7408_s3 + $0x20] sm:$0xff] }
 0x10a   :  { %v370_v18 = vld [vmem:[%s7408_s3 + $0x180] sm:$0xff]  ;;  %v327_v19 = vld [vmem:[%s7408_s3 + $0x28] sm:$0xff] }
 0x10c   :  { %v263_v21 = vpop.f32.mrb[2].mxu0 }
 0x10d   :  { %v264_v23 = vadd.f32 %v263_v21, %v95_v20  ;;  %v265_v24 = vpop.f32.mrb[3].mxu0  ;;  %v371_v20 = vld [vmem:[%s7408_s3 + $0x188] sm:$0xff]  ;;  %v328_v21 = vld [vmem:[%s7408_s3 + $0x30] sm:$0xff] }
 0x10e   :  { %v373_v24 = vld [vmem:[%s7408_s3 + $0x198] sm:$0xff] }
 0x10f   :  { %v4061_v26 = vpack.c.bf16 %v264_v23, %v259_v22  ;;  %v372_v22 = vld [vmem:[%s7408_s3 + $0x190] sm:$0xff]  ;;  %v329_v23 = vld [vmem:[%s7408_s3 + $0x38] sm:$0xff] }
 0x110   :  { %v268_v27 = vpop.f32.mrb[4].mxu0 }
 0x111   :  { %v270_v28 = vpop.f32.mrb[5].mxu0  ;;  %4062 = vmatprep.subr.bf16.mxu0 %v4061_v26  ;;  %4085 = vmatprep.subr.bf16.mxu1 %v4061_v26  ;;  %v269_v31 = vadd.f32 %v268_v27, %v100_v25  ;;  %v330_v25 = vld [vmem:[%s7408_s3 + $0x40] sm:$0xff]  ;;  %v331_v27 = vld [vmem:[%s7408_s3 + $0x48] sm:$0xff] }
 0x112   :  { %4064 = vmatpush3.bf16.msra.mxu0 %v4061_v26  ;;  %4092 = vmatpush3.bf16.msra.mxu1 %v4061_v26  ;;  %v374_v26 = vld [vmem:[%s7408_s3 + $0x1a0] sm:$0xff]  ;;  %v375_v28 = vld [vmem:[%s7408_s3 + $0x1a8] sm:$0xff] }
 0x114   :  { %v273_v30 = vpop.f32.mrb[6].mxu0 }
 0x115   :  { %v274_v32 = vadd.f32 %v273_v30, %v105_v29  ;;  %v275_v33 = vpop.f32.mrb[7].mxu0  ;;  %v332_v29 = vld [vmem:[%s7408_s3 + $0x50] sm:$0xff] }
 0x116   :  { %v376_v30 = vld [vmem:[%s7408_s3 + $0x1b0] sm:$0xff]  ;;  %v334_v33 = vld [vmem:[%s7408_s3 + $0x60] sm:$0xff] }
 0x117   :  { %v4065_v34 = vpack.c.bf16 %v274_v32, %v269_v31  ;;  %v333_v31 = vld [vmem:[%s7408_s3 + $0x58] sm:$0xff] }
 0x118   :  { %v278_v35 = vpop.f32.mrb[8].mxu0  ;;  %v377_v32 = vld [vmem:[%s7408_s3 + $0x1b8] sm:$0xff] }
 0x119   :  { %v280_v36 = vpop.f32.mrb[9].mxu0  ;;  %4066 = vmatprep.subr.bf16.mxu0 %v4065_v34  ;;  %4086 = vmatprep.subr.bf16.mxu1 %v4065_v34  ;;  %v279_v40 = vadd.f32 %v278_v35, %v110_v37  ;;  %v335_v35 = vld [vmem:[%s7408_s3 + $0x68] sm:$0xff]  ;;  %v336_v37 = vld [vmem:[%s7408_s3 + $0x70] sm:$0xff] }
 0x11a   :  { %4068 = vmatpush3.bf16.msra.mxu0 %v4065_v34  ;;  %4093 = vmatpush3.bf16.msra.mxu1 %v4065_v34  ;;  %v378_v34 = vld [vmem:[%s7408_s3 + $0x1c0] sm:$0xff]  ;;  %v379_v36 = vld [vmem:[%s7408_s3 + $0x1c8] sm:$0xff] }
 0x11c   :  { %v283_v39 = vpop.f32.mrb[10].mxu0 }
 0x11d   :  { %v284_v41 = vadd.f32 %v283_v39, %v115_v38  ;;  %v285_v42 = vpop.f32.mrb[11].mxu0  ;;  %v380_v38 = vld [vmem:[%s7408_s3 + $0x1d0] sm:$0xff]  ;;  %v337_v39 = vld [vmem:[%s7408_s3 + $0x78] sm:$0xff] }
 0x11e   :  { %v382_v42 = vld [vmem:[%s7408_s3 + $0x1e0] sm:$0xff] }
 0x11f   :  { %v4069_v43 = vpack.c.bf16 %v284_v41, %v279_v40  ;;  %v381_v40 = vld [vmem:[%s7408_s3 + $0x1d8] sm:$0xff]  ;;  %v338_v41 = vld [vmem:[%s7408_s3 + $0x80] sm:$0xff] }
 0x120   :  { %v288_v44 = vpop.f32.mrb[12].mxu0 }
 0x121   :  { %v290_v45 = vpop.f32.mrb[13].mxu0  ;;  %4070 = vmatprep.subr.bf16.mxu0 %v4069_v43  ;;  %4087 = vmatprep.subr.bf16.mxu1 %v4069_v43  ;;  %v289_v49 = vadd.f32 %v288_v44, %v120_v46  ;;  %v383_v44 = vld [vmem:[%s7408_s3 + $0x1e8] sm:$0xff]  ;;  %v384_v46 = vld [vmem:[%s7408_s3 + $0x1f0] sm:$0xff] }
 0x122   :  { %4072 = vmatpush3.bf16.msra.mxu0 %v4069_v43  ;;  %4094 = vmatpush3.bf16.msra.mxu1 %v4069_v43  ;;  %v339_v43 = vld [vmem:[%s7408_s3 + $0x88] sm:$0xff]  ;;  %v340_v45 = vld [vmem:[%s7408_s3 + $0x90] sm:$0xff] }
 0x124   :  { %v293_v48 = vpop.f32.mrb[14].mxu0 }
 0x125   :  { %v294_v50 = vadd.f32 %v293_v48, %v125_v47  ;;  %v295_v51 = vpop.f32.mrb[15].mxu0  ;;  %v341_v47 = vld [vmem:[%s7408_s3 + $0x98] sm:$0xff] }
 0x126   :  { %v385_v48 = vld [vmem:[%s7408_s3 + $0x1f8] sm:$0xff]  ;;  %v343_v51 = vld [vmem:[%s7408_s3 + $0xa8] sm:$0xff] }
 0x127   :  { %v4073_v52 = vpack.c.bf16 %v294_v50, %v289_v49  ;;  %v342_v49 = vld [vmem:[%s7408_s3 + $0xa0] sm:$0xff] }
 0x128   :  { %v298_v53 = vpop.f32.mrb[16].mxu0  ;;  %v386_v50 = vld [vmem:[%s7408_s3 + $0x200] sm:$0xff] }
 0x129   :  { %v300_v54 = vpop.f32.mrb[17].mxu0  ;;  %4074 = vmatprep.subr.bf16.mxu0 %v4073_v52  ;;  %4088 = vmatprep.subr.bf16.mxu1 %v4073_v52  ;;  %v299_v58 = vadd.f32 %v298_v53, %v130_v55  ;;  %v344_v53 = vld [vmem:[%s7408_s3 + $0xb0] sm:$0xff]  ;;  %v345_v55 = vld [vmem:[%s7408_s3 + $0xb8] sm:$0xff] }
 0x12a   :  { %4076 = vmatpush3.bf16.msra.mxu0 %v4073_v52  ;;  %4095 = vmatpush3.bf16.msra.mxu1 %v4073_v52  ;;  %v387_v52 = vld [vmem:[%s7408_s3 + $0x208] sm:$0xff]  ;;  %v388_v54 = vld [vmem:[%s7408_s3 + $0x210] sm:$0xff] }
 0x12c   :  { %v303_v57 = vpop.f32.mrb[18].mxu0 }
 0x12d   :  { %v304_v59 = vadd.f32 %v303_v57, %v135_v56  ;;  %v305_v60 = vpop.f32.mrb[19].mxu0  ;;  %v389_v56 = vld [vmem:[%s7408_s3 + $0x218] sm:$0xff]  ;;  %v346_v57 = vld [vmem:[%s7408_s3 + $0xc0] sm:$0xff] }
 0x12e   :  { %v391_v60 = vld [vmem:[%s7408_s3 + $0x228] sm:$0xff] }
 0x12f   :  { %v4077_v61 = vpack.c.bf16 %v304_v59, %v299_v58  ;;  %v390_v58 = vld [vmem:[%s7408_s3 + $0x220] sm:$0xff]  ;;  %v347_v59 = vld [vmem:[%s7408_s3 + $0xc8] sm:$0xff] }
 0x130   :  { %v308_v62 = vpop.f32.mrb[20].mxu0 }
 0x131   :  { %v310_v63 = vpop.f32.mrb[21].mxu0  ;;  %4078 = vmatprep.subr.bf16.mxu0 %v4077_v61  ;;  %4089 = vmatprep.subr.bf16.mxu1 %v4077_v61  ;;  %v309_v3 = vadd.f32 %v308_v62, %v140_v0  ;;  %v392_v62 = vld [vmem:[%s7408_s3 + $0x230] sm:$0xff]  ;;  %v393_v0 = vld [vmem:[%s7408_s3 + $0x238] sm:$0xff] }
 0x132   :  { %4080 = vmatpush3.bf16.msra.mxu0 %v4077_v61  ;;  %4096 = vmatpush3.bf16.msra.mxu1 %v4077_v61  ;;  %v348_v61 = vld [vmem:[%s7408_s3 + $0xd0] sm:$0xff]  ;;  %v349_v63 = vld [vmem:[%s7408_s3 + $0xd8] sm:$0xff] }
 0x134   :  { %v313_v2 = vpop.f32.mrb[22].mxu0 }
 0x135   :  { %v314_v4 = vadd.f32 %v313_v2, %v145_v1  ;;  %v315_v5 = vpop.f32.mrb[23].mxu0  ;;  %v350_v1 = vld [vmem:[%s7408_s3 + $0xe0] sm:$0xff]  ;;  %v351_v2 = vld [vmem:[%s7408_s3 + $0xe8] sm:$0xff] }
 0x136   :  { %v352_v5 = vld [vmem:[%s7408_s3 + $0xf0] sm:$0xff] }
 0x137   :  { %v4081_v6 = vpack.c.bf16 %v314_v4, %v309_v3  ;;  %v394_v3 = vld [vmem:[%s7408_s3 + $0x240] sm:$0xff]  ;;  %v395_v4 = vld [vmem:[%s7408_s3 + $0x248] sm:$0xff] }
 0x138   :  { %v318_v8 = vpop.f32.mrb[24].mxu0 }
 0x139   :  { %v319_v9 = vadd.f32 %v318_v8, %v150_v7  ;;  %4082 = vmatprep.subr.bf16.mxu0 %v4081_v6  ;;  %4090 = vmatprep.subr.bf16.mxu1 %v4081_v6  ;;  %v320_v10 = vpop.f32.mrb[25].mxu0  ;;  %v396_v7 = vld [vmem:[%s7408_s3 + $0x250] sm:$0xff]  ;;  %v397_v8 = vld [vmem:[%s7408_s3 + $0x258] sm:$0xff] }
 0x13a   :  { %4084 = vmatpush3.bf16.msra.mxu0 %v4081_v6  ;;  %4097 = vmatpush3.bf16.msra.mxu1 %v4081_v6  ;;  %v353_v6 = vld [vmem:[%s7408_s3 + $0xf8] sm:$0xff]  ;;  %v355_v10 = vld [vmem:[%s7408_s3 + $0x108] sm:$0xff] }
 0x13b   :  { %3831 = vmatprep.subr.msk.mxu0 %vm835_vm2, %v319_v9  ;;  %4091 = vmatprep.subr.msk.mxu1 %vm835_vm2, %v319_v9 }
 0x13e   :  { %3832 = vmatpush3.msk.msra.mxu0 %vm835_vm2, %v319_v9  ;;  %4098 = vmatpush3.msk.msra.mxu1 %vm835_vm2, %v319_v9  ;;  %v354_v9 = vld [vmem:[%s7408_s3 + $0x100] sm:$0xff] }
 0x13f   :  { %3834 = vmatmul.mubr.msk.f32.vlgmr.msra.gmra.mrb[26].mxu0 %vm450_vm1, %v323_v11  ;;  %3900 = vmatmul.mubr.msk.f32.vlgmr.msra.gmra.mrb[0].mxu1 %vm450_vm1, %v367_v12  ;;  %v398_v11 = vld [vmem:[%s7408_s3 + $0x260] sm:$0xff]  ;;  %v399_v12 = vld [vmem:[%s7408_s3 + $0x268] sm:$0xff] }
 0x140   :  { %3836 = vmatprep.mubr.msk.f32.mxu0 %vm450_vm1, %v324_v13  ;;  %3902 = vmatprep.mubr.msk.f32.mxu1 %vm450_vm1, %v368_v14  ;;  %v356_v13 = vld [vmem:[%s7408_s3 + $0x110] sm:$0xff]  ;;  %v357_v14 = vld [vmem:[%s7408_s3 + $0x118] sm:$0xff] }
 0x143   :  { %3837 = vmatmul.mubr.msk.f32.gmra.mrb[28].mxu0 %vm450_vm1, %v325_v15  ;;  %3903 = vmatmul.mubr.msk.f32.gmra.mrb[2].mxu1 %vm450_vm1, %v369_v16  ;;  %v400_v15 = vld [vmem:[%s7408_s3 + $0x270] sm:$0xff]  ;;  %v401_v16 = vld [vmem:[%s7408_s3 + $0x278] sm:$0xff] }
 0x144   :  { %3839 = vmatprep.mubr.msk.f32.mxu0 %vm450_vm1, %v326_v17  ;;  %3905 = vmatprep.mubr.msk.f32.mxu1 %vm450_vm1, %v370_v18  ;;  %v358_v17 = vld [vmem:[%s7408_s3 + $0x120] sm:$0xff]  ;;  %v359_v18 = vld [vmem:[%s7408_s3 + $0x128] sm:$0xff] }
 0x147   :  { %3840 = vmatmul.mubr.msk.f32.gmra.mrb[30].mxu0 %vm450_vm1, %v327_v19  ;;  %3906 = vmatmul.mubr.msk.f32.gmra.mrb[4].mxu1 %vm450_vm1, %v371_v20  ;;  %v402_v19 = vld [vmem:[%s7408_s3 + $0x280] sm:$0xff]  ;;  %v403_v20 = vld [vmem:[%s7408_s3 + $0x288] sm:$0xff] }
 0x148   :  { %3842 = vmatprep.mubr.msk.f32.mxu0 %vm450_vm1, %v328_v21  ;;  %3908 = vmatprep.mubr.msk.f32.mxu1 %vm450_vm1, %v372_v22  ;;  %v360_v21 = vld [vmem:[%s7408_s3 + $0x130] sm:$0xff]  ;;  %v361_v22 = vld [vmem:[%s7408_s3 + $0x138] sm:$0xff] }
 0x14b   :  { %3843 = vmatmul.mubr.msk.f32.gmra.mrb[32].mxu0 %vm450_vm1, %v329_v23  ;;  %3909 = vmatmul.mubr.msk.f32.gmra.mrb[6].mxu1 %vm450_vm1, %v373_v24  ;;  %v404_v23 = vld [vmem:[%s7408_s3 + $0x290] sm:$0xff]  ;;  %v405_v24 = vld [vmem:[%s7408_s3 + $0x298] sm:$0xff] }
 0x14c   :  { %3845 = vmatprep.mubr.msk.f32.mxu0 %vm450_vm1, %v330_v25  ;;  %3911 = vmatprep.mubr.msk.f32.mxu1 %vm450_vm1, %v374_v26  ;;  %v362_v25 = vld [vmem:[%s7408_s3 + $0x140] sm:$0xff]  ;;  %v363_v26 = vld [vmem:[%s7408_s3 + $0x148] sm:$0xff] }
 0x14f   :  { %3846 = vmatmul.mubr.msk.f32.gmra.mrb[34].mxu0 %vm450_vm1, %v331_v27  ;;  %3912 = vmatmul.mubr.msk.f32.gmra.mrb[8].mxu1 %vm450_vm1, %v375_v28  ;;  %v406_v27 = vld [vmem:[%s7408_s3 + $0x2a0] sm:$0xff]  ;;  %v407_v28 = vld [vmem:[%s7408_s3 + $0x2a8] sm:$0xff] }
 0x150   :  { %3848 = vmatprep.mubr.msk.f32.mxu0 %vm450_vm1, %v332_v29  ;;  %3914 = vmatprep.mubr.msk.f32.mxu1 %vm450_vm1, %v376_v30  ;;  %v364_v29 = vld [vmem:[%s7408_s3 + $0x150] sm:$0xff]  ;;  %v365_v30 = vld [vmem:[%s7408_s3 + $0x158] sm:$0xff] }
 0x153   :  { %3849 = vmatmul.mubr.msk.f32.gmra.mrb[36].mxu0 %vm450_vm1, %v333_v31  ;;  %3915 = vmatmul.mubr.msk.f32.gmra.mrb[10].mxu1 %vm450_vm1, %v377_v32  ;;  %v408_v31 = vld [vmem:[%s7408_s3 + $0x2b0] sm:$0xff]  ;;  %v409_v32 = vld [vmem:[%s7408_s3 + $0x2b8] sm:$0xff] }
 0x154   :  { %3851 = vmatprep.mubr.msk.f32.mxu0 %vm450_vm1, %v334_v33  ;;  %3917 = vmatprep.mubr.msk.f32.mxu1 %vm450_vm1, %v378_v34 }
 0x157   :  { %3852 = vmatmul.mubr.msk.f32.gmra.mrb[38].mxu0 %vm450_vm1, %v335_v35  ;;  %3918 = vmatmul.mubr.msk.f32.gmra.mrb[12].mxu1 %vm450_vm1, %v379_v36 }
 0x158   :  { %3854 = vmatprep.mubr.msk.f32.mxu0 %vm450_vm1, %v336_v37  ;;  %3920 = vmatprep.mubr.msk.f32.mxu1 %vm450_vm1, %v380_v38 }
 0x15b   :  { %3855 = vmatmul.mubr.msk.f32.gmra.mrb[40].mxu0 %vm450_vm1, %v337_v39  ;;  %3921 = vmatmul.mubr.msk.f32.gmra.mrb[14].mxu1 %vm450_vm1, %v381_v40 }
 0x15c   :  { %3857 = vmatprep.mubr.msk.f32.mxu0 %vm450_vm1, %v338_v41  ;;  %3923 = vmatprep.mubr.msk.f32.mxu1 %vm450_vm1, %v382_v42 }
 0x15f   :  { %3858 = vmatmul.mubr.msk.f32.gmra.mrb[42].mxu0 %vm450_vm1, %v339_v43  ;;  %3924 = vmatmul.mubr.msk.f32.gmra.mrb[16].mxu1 %vm450_vm1, %v383_v44 }
 0x160   :  { %3860 = vmatprep.mubr.msk.f32.mxu0 %vm450_vm1, %v340_v45  ;;  %3926 = vmatprep.mubr.msk.f32.mxu1 %vm450_vm1, %v384_v46 }
 0x163   :  { %3861 = vmatmul.mubr.msk.f32.gmra.mrb[44].mxu0 %vm450_vm1, %v341_v47  ;;  %3927 = vmatmul.mubr.msk.f32.gmra.mrb[18].mxu1 %vm450_vm1, %v385_v48 }
 0x164   :  { %3863 = vmatprep.mubr.msk.f32.mxu0 %vm450_vm1, %v342_v49  ;;  %3929 = vmatprep.mubr.msk.f32.mxu1 %vm450_vm1, %v386_v50 }
 0x167   :  { %3864 = vmatmul.mubr.msk.f32.gmra.mrb[46].mxu0 %vm450_vm1, %v343_v51  ;;  %3930 = vmatmul.mubr.msk.f32.gmra.mrb[20].mxu1 %vm450_vm1, %v387_v52 }
 0x168   :  { %3866 = vmatprep.mubr.msk.f32.mxu0 %vm450_vm1, %v344_v53  ;;  %3932 = vmatprep.mubr.msk.f32.mxu1 %vm450_vm1, %v388_v54 }
 0x16b   :  { %3867 = vmatmul.mubr.msk.f32.gmra.mrb[48].mxu0 %vm450_vm1, %v345_v55  ;;  %3933 = vmatmul.mubr.msk.f32.gmra.mrb[22].mxu1 %vm450_vm1, %v389_v56  ;;  %v410_v55 = vld [vmem:[%s7408_s3 + $0x2c0] sm:$0xff]  ;;  %v411_v56 = vld [vmem:[%s7408_s3 + $0x2c8] sm:$0xff] }
 0x16c   :  { %3869 = vmatprep.mubr.msk.f32.mxu0 %vm450_vm1, %v346_v57  ;;  %3935 = vmatprep.mubr.msk.f32.mxu1 %vm450_vm1, %v390_v58 }
 0x16f   :  { %3870 = vmatmul.mubr.msk.f32.gmra.mrb[50].mxu0 %vm450_vm1, %v347_v59  ;;  %3936 = vmatmul.mubr.msk.f32.gmra.mrb[24].mxu1 %vm450_vm1, %v391_v60 }
 0x170   :  { %3872 = vmatprep.mubr.msk.f32.mxu0 %vm450_vm1, %v348_v61  ;;  %3938 = vmatprep.mubr.msk.f32.mxu1 %vm450_vm1, %v392_v62 }
 0x173   :  { %3873 = vmatmul.mubr.msk.f32.gmra.mrb[52].mxu0 %vm450_vm1, %v349_v63  ;;  %3939 = vmatmul.mubr.msk.f32.gmra.mrb[26].mxu1 %vm450_vm1, %v393_v0 }
 0x174   :  { %3875 = vmatprep.mubr.msk.f32.mxu0 %vm450_vm1, %v350_v1  ;;  %3941 = vmatprep.mubr.msk.f32.mxu1 %vm450_vm1, %v394_v3 }
 0x177   :  { %3876 = vmatmul.mubr.msk.f32.gmra.mrb[54].mxu0 %vm450_vm1, %v351_v2  ;;  %3942 = vmatmul.mubr.msk.f32.gmra.mrb[28].mxu1 %vm450_vm1, %v395_v4 }
 0x178   :  { %3878 = vmatprep.mubr.msk.f32.mxu0 %vm450_vm1, %v352_v5  ;;  %3944 = vmatprep.mubr.msk.f32.mxu1 %vm450_vm1, %v396_v7  ;;  %v412_v5 = vld [vmem:[%s7408_s3 + $0x2d0] sm:$0xff] }
 0x17b   :  { %3879 = vmatmul.mubr.msk.f32.gmra.mrb[56].mxu0 %vm450_vm1, %v353_v6  ;;  %3945 = vmatmul.mubr.msk.f32.gmra.mrb[30].mxu1 %vm450_vm1, %v397_v8  ;;  %v413_v6 = vld [vmem:[%s7408_s3 + $0x2d8] sm:$0xff] }
 0x17c   :  { %3881 = vmatprep.mubr.msk.f32.mxu0 %vm450_vm1, %v354_v9  ;;  %3947 = vmatprep.mubr.msk.f32.mxu1 %vm450_vm1, %v398_v11 }
 0x17f   :  { %3882 = vmatmul.mubr.msk.f32.gmra.mrb[58].mxu0 %vm450_vm1, %v355_v10  ;;  %3948 = vmatmul.mubr.msk.f32.gmra.mrb[32].mxu1 %vm450_vm1, %v399_v12 }
 0x180   :  { %3884 = vmatprep.mubr.msk.f32.mxu0 %vm450_vm1, %v356_v13  ;;  %3950 = vmatprep.mubr.msk.f32.mxu1 %vm450_vm1, %v400_v15 }
 0x183   :  { %3885 = vmatmul.mubr.msk.f32.gmra.mrb[60].mxu0 %vm450_vm1, %v357_v14  ;;  %3951 = vmatmul.mubr.msk.f32.gmra.mrb[34].mxu1 %vm450_vm1, %v401_v16 }
 0x184   :  { %3887 = vmatprep.mubr.msk.f32.mxu0 %vm450_vm1, %v358_v17  ;;  %3953 = vmatprep.mubr.msk.f32.mxu1 %vm450_vm1, %v402_v19 }
 0x187   :  { %3888 = vmatmul.mubr.msk.f32.gmra.mrb[62].mxu0 %vm450_vm1, %v359_v18  ;;  %3954 = vmatmul.mubr.msk.f32.gmra.mrb[36].mxu1 %vm450_vm1, %v403_v20 }
 0x188   :  { %3890 = vmatprep.mubr.msk.f32.mxu0 %vm450_vm1, %v360_v21  ;;  %3956 = vmatprep.mubr.msk.f32.mxu1 %vm450_vm1, %v404_v23  ;;  %v414_v23 = vld [vmem:[%s7408_s3 + $0x2e0] sm:$0xff] }
 0x18b   :  { %3891 = vmatmul.mubr.msk.f32.gmra.mrb[64].mxu0 %vm450_vm1, %v361_v22  ;;  %3957 = vmatmul.mubr.msk.f32.gmra.mrb[38].mxu1 %vm450_vm1, %v405_v24  ;;  %v415_v24 = vld [vmem:[%s7408_s3 + $0x2e8] sm:$0xff] }
 0x18c   :  { %3893 = vmatprep.mubr.msk.f32.mxu0 %vm450_vm1, %v362_v25  ;;  %3959 = vmatprep.mubr.msk.f32.mxu1 %vm450_vm1, %v406_v27 }
 0x18f   :  { %3894 = vmatmul.mubr.msk.f32.gmra.mrb[66].mxu0 %vm450_vm1, %v363_v26  ;;  %3960 = vmatmul.mubr.msk.f32.gmra.mrb[40].mxu1 %vm450_vm1, %v407_v28 }
 0x190   :  { %3896 = vmatprep.mubr.msk.f32.mxu0 %vm450_vm1, %v364_v29  ;;  %3962 = vmatprep.mubr.msk.f32.mxu1 %vm450_vm1, %v408_v31 }
 0x193   :  { %3897 = vmatmul.mubr.msk.f32.gmra.mrb[68].mxu0 %vm450_vm1, %v365_v30  ;;  %3963 = vmatmul.mubr.msk.f32.gmra.mrb[42].mxu1 %vm450_vm1, %v409_v32 }
 0x194   :  { %3965 = vmatprep.mubr.msk.f32.mxu1 %vm450_vm1, %v410_v55 }
 0x197   :  { %3966 = vmatmul.mubr.msk.f32.gmra.mrb[44].mxu1 %vm450_vm1, %v411_v56 }
 0x198   :  { %3968 = vmatprep.mubr.msk.f32.mxu1 %vm450_vm1, %v412_v5 }
 0x19b   :  { %3969 = vmatmul.mubr.msk.f32.gmra.mrb[46].mxu1 %vm450_vm1, %v413_v6 }
 0x19c   :  { %3971 = vmatprep.mubr.msk.f32.mxu1 %vm450_vm1, %v414_v23 }
 0x19f   :  { %3972 = vmatmul.mubr.msk.f32.gmra.mrb[48].mxu1 %vm450_vm1, %v415_v24 }
 0x212   :  { %v4727_v33 = vpop.f32.mrb[26].mxu0  ;;  %v4729_v34 = vpop.f32.mrb[0].mxu1 }
 0x213   :  { %7551 = vst [vmem:[#allocation2_spill] sm:$0xff] %v4727_v33  ;;  %7552 = vst [vmem:[#allocation3_spill] sm:$0xff] %v4729_v34  ;;  %v1920_v35 = vsel %vm1544_vm3, %v4729_v34, 0.0  ;;  %v1548_v36 = vsel %vm1544_vm3, %v4727_v33, 0.0  ;;  %v4735_v37 = vpop.f32.mrb[27].mxu0  ;;  %v4737_v38 = vpop.f32.mrb[1].mxu1  ;;  %v1578_v44 = vmul.f32 %v4727_v33, %v4727_v33  ;;  %v1942_v52 = vmul.f32 %v4729_v34, %v4729_v34 }
 0x214   :  { %7553 = vst [vmem:[#allocation4_spill] sm:$0xff] %v4735_v37  ;;  %7554 = vst [vmem:[#allocation5_spill] sm:$0xff] %v4737_v38  ;;  %1921 = vadd.xlane.f32.xlu1 %v1920_v35  ;;  %1549 = vadd.xlane.f32.xlu0 %v1548_v36  ;;  %v1917_v41 = vsel %vm1544_vm3, %v4737_v38, 0.0  ;;  %v1545_v42 = vsel %vm1544_vm3, %v4735_v37, 0.0  ;;  %v1577_v43 = vmul.f32 %v4735_v37, %v4735_v37 }
 0x215   :  { %v1588_v50 = vsel %vm1544_vm3, %v1578_v44, 0.0  ;;  %v1941_v51 = vmul.f32 %v4737_v38, %v4737_v38  ;;  %v1960_v60 = vsel %vm1544_vm3, %v1942_v52, 0.0  ;;  %v417_v44 = vld [vmem:[%s7408_s3 + $0x2f8] sm:$0xff] }
 0x216   :  { %v4739_v39 = vpop.f32.mrb[28].mxu0  ;;  %v4741_v40 = vpop.f32.mrb[2].mxu1  ;;  %v1585_v49 = vsel %vm1544_vm3, %v1577_v43, 0.0  ;;  %v416_v43 = vld [vmem:[%s7408_s3 + $0x2f0] sm:$0xff] }
 0x217   :  { %7555 = vst [vmem:[#allocation6_spill] sm:$0xff] %v4739_v39  ;;  %7556 = vst [vmem:[#allocation7_spill] sm:$0xff] %v4741_v40  ;;  %v4751_v45 = vpop.f32.mrb[29].mxu0  ;;  %v4753_v46 = vpop.f32.mrb[3].mxu1  ;;  %v1957_v59 = vsel %vm1544_vm3, %v1941_v51, 0.0  ;;  %v1554_v63 = vsel %vm1544_vm3, %v4739_v39, 0.0  ;;  %v1580_v11 = vmul.f32 %v4739_v39, %v4739_v39  ;;  %v1944_v19 = vmul.f32 %v4741_v40, %v4741_v40  ;;  %3974 = vmatprep.mubr.msk.f32.mxu1 %vm450_vm1, %v416_v43 }
 0x218   :  { %7557 = vst [vmem:[#allocation8_spill] sm:$0xff] %v4751_v45  ;;  %7558 = vst [vmem:[#allocation9_spill] sm:$0xff] %v4753_v46  ;;  %1918 = vadd.xlane.f32.xlu0 %v1917_v41  ;;  %1546 = vadd.xlane.f32.xlu1 %v1545_v42  ;;  %v1551_v0 = vsel %vm1544_vm3, %v4751_v45, 0.0  ;;  %v1926_v7 = vsel %vm1544_vm3, %v4741_v40, 0.0  ;;  %v1923_v8 = vsel %vm1544_vm3, %v4753_v46, 0.0  ;;  %v1579_v12 = vmul.f32 %v4751_v45, %v4751_v45  ;;  %v421_v43 = vld [vmem:[%s7408_s3 + $0x318] sm:$0xff] }
 0x219   :  { %v1594_v17 = vsel %vm1544_vm3, %v1580_v11, 0.0  ;;  %v1943_v20 = vmul.f32 %v4753_v46, %v4753_v46  ;;  %v1966_v27 = vsel %vm1544_vm3, %v1944_v19, 0.0  ;;  %3975 = vmatmul.mubr.msk.f32.gmra.mrb[50].mxu1 %vm450_vm1, %v417_v44 }
 0x21a   :  { %v4755_v47 = vpop.f32.mrb[30].mxu0  ;;  %v4757_v48 = vpop.f32.mrb[4].mxu1  ;;  %v1591_v18 = vsel %vm1544_vm3, %v1579_v12, 0.0 }
 0x21b   :  { %7559 = vst [vmem:[#allocation10_spill] sm:$0xff] %v4755_v47  ;;  %7560 = vst [vmem:[#allocation11_spill] sm:$0xff] %v4757_v48  ;;  %v4765_v53 = vpop.f32.mrb[31].mxu0  ;;  %v4767_v54 = vpop.f32.mrb[5].mxu1  ;;  %v1963_v28 = vsel %vm1544_vm3, %v1943_v20, 0.0  ;;  %v1560_v31 = vsel %vm1544_vm3, %v4755_v47, 0.0  ;;  %v1582_v55 = vmul.f32 %v4755_v47, %v4755_v47 }
 0x21c   :  { %7561 = vst [vmem:[#allocation12_spill] sm:$0xff] %v4765_v53  ;;  %7562 = vst [vmem:[#allocation13_spill] sm:$0xff] %v4767_v54  ;;  %1586 = vadd.xlane.f32.xlu0 %v1585_v49  ;;  %1589 = vadd.xlane.f32.xlu1 %v1588_v50  ;;  %v1557_v32 = vsel %vm1544_vm3, %v4765_v53, 0.0  ;;  %v1980_v49 = vsel %vm1544_vm3, %v4757_v48, 0.0  ;;  %v1977_v50 = vsel %vm1544_vm3, %v4767_v54, 0.0  ;;  %v1581_v56 = vmul.f32 %v4765_v53, %v4765_v53 }
 0x21d   :  { %v1600_v5 = vsel %vm1544_vm3, %v1582_v55, 0.0 }
 0x21e   :  { %v4776_v57 = vpop.f32.mrb[32].mxu0  ;;  %v4778_v58 = vpop.f32.mrb[6].mxu1  ;;  %v1597_v6 = vsel %vm1544_vm3, %v1581_v56, 0.0 }
 0x21f   :  { %7563 = vst [vmem:[#allocation14_spill] sm:$0xff] %v4776_v57  ;;  %7564 = vst [vmem:[#allocation15_spill] sm:$0xff] %v4778_v58  ;;  %v4783_v61 = vpop.f32.mrb[33].mxu0  ;;  %v4785_v62 = vpop.f32.mrb[7].mxu1  ;;  %v1566_v24 = vsel %vm1544_vm3, %v4776_v57, 0.0  ;;  %v1986_v44 = vsel %vm1544_vm3, %v4778_v58, 0.0  ;;  %v1584_v55 = vmul.f32 %v4776_v57, %v4776_v57 }
 0x220   :  { %7565 = vst [vmem:[#allocation16_spill] sm:$0xff] %v4783_v61  ;;  %7566 = vst [vmem:[#allocation17_spill] sm:$0xff] %v4785_v62  ;;  %1958 = vadd.xlane.f32.xlu0 %v1957_v59  ;;  %1961 = vadd.xlane.f32.xlu1 %v1960_v60  ;;  %v1583_v56 = vmul.f32 %v4783_v61, %v4783_v61 }
 0x222   :  { %v4791_v1 = vpop.f32.mrb[34].mxu0  ;;  %v4793_v2 = vpop.f32.mrb[8].mxu1 }
 0x223   :  { %7567 = vst [vmem:[#allocation18_spill] sm:$0xff] %v4791_v1  ;;  %7568 = vst [vmem:[#allocation19_spill] sm:$0xff] %v4793_v2  ;;  %v4795_v3 = vpop.f32.mrb[35].mxu0  ;;  %v4797_v4 = vpop.f32.mrb[9].mxu1 }
 0x224   :  { %7569 = vst [vmem:[#allocation20_spill] sm:$0xff] %v4795_v3  ;;  %7570 = vst [vmem:[#allocation21_spill] sm:$0xff] %v4797_v4  ;;  %1555 = vadd.xlane.f32.xlu1 %v1554_v63  ;;  %1552 = vadd.xlane.f32.xlu0 %v1551_v0 }
 0x226   :  { %v4810_v9 = vpop.f32.mrb[36].mxu0  ;;  %v4812_v10 = vpop.f32.mrb[10].mxu1 }
 0x227   :  { %7571 = vst [vmem:[#allocation22_spill] sm:$0xff] %v4810_v9  ;;  %7572 = vst [vmem:[#allocation23_spill] sm:$0xff] %v4812_v10  ;;  %v4819_v13 = vpop.f32.mrb[37].mxu0  ;;  %v4821_v14 = vpop.f32.mrb[11].mxu1  ;;  %v2016_v40 = vmul.f32 %v4812_v10, %v4812_v10 }
 0x228   :  { %7573 = vst [vmem:[#allocation24_spill] sm:$0xff] %v4819_v13  ;;  %7574 = vst [vmem:[#allocation25_spill] sm:$0xff] %v4821_v14  ;;  %1927 = vadd.xlane.f32.xlu1 %v1926_v7  ;;  %1924 = vadd.xlane.f32.xlu0 %v1923_v8  ;;  %v2010_v7 = vmul.f32 %v4757_v48, %v4757_v48  ;;  %v2009_v8 = vmul.f32 %v4767_v54, %v4767_v54 }
 0x22a   :  { %v4823_v15 = vpop.f32.mrb[38].mxu0  ;;  %v4825_v16 = vpop.f32.mrb[12].mxu1  ;;  %v2020_v19 = vsel %vm1544_vm3, %v2010_v7, 0.0  ;;  %v2017_v20 = vsel %vm1544_vm3, %v2009_v8, 0.0  ;;  %v2012_v7 = vmul.f32 %v4778_v58, %v4778_v58  ;;  %v2011_v8 = vmul.f32 %v4785_v62, %v4785_v62 }
 0x22b   :  { %7575 = vst [vmem:[#allocation26_spill] sm:$0xff] %v4823_v15  ;;  %7576 = vst [vmem:[#allocation27_spill] sm:$0xff] %v4825_v16  ;;  %v4833_v21 = vpop.f32.mrb[39].mxu0  ;;  %v4835_v22 = vpop.f32.mrb[13].mxu1  ;;  %v2082_v46 = vmul.f32 %v4825_v16, %v4825_v16 }
 0x22c   :  { %7577 = vst [vmem:[#allocation28_spill] sm:$0xff] %v4833_v21  ;;  %7578 = vst [vmem:[#allocation29_spill] sm:$0xff] %v4835_v22  ;;  %1595 = vadd.xlane.f32.xlu1 %v1594_v17  ;;  %1592 = vadd.xlane.f32.xlu0 %v1591_v18  ;;  %v418_v17 = vld [vmem:[%s7408_s3 + $0x300] sm:$0xff]  ;;  %v419_v18 = vld [vmem:[%s7408_s3 + $0x308] sm:$0xff] }
 0x22d   :  { %3977 = vmatprep.mubr.msk.f32.mxu1 %vm450_vm1, %v418_v17  ;;  %v422_v17 = vld [vmem:[%s7408_s3 + $0x320] sm:$0xff] }
 0x22e   :  { %v4844_v25 = vpop.f32.mrb[40].mxu0  ;;  %v4846_v26 = vpop.f32.mrb[14].mxu1  ;;  %3978 = vmatmul.mubr.msk.f32.gmra.mrb[52].mxu1 %vm450_vm1, %v419_v18  ;;  %v423_v18 = vld [vmem:[%s7408_s3 + $0x328] sm:$0xff] }
 0x22f   :  { %7579 = vst [vmem:[#allocation30_spill] sm:$0xff] %v4844_v25  ;;  %7580 = vst [vmem:[#allocation31_spill] sm:$0xff] %v4846_v26  ;;  %v4851_v29 = vpop.f32.mrb[41].mxu0  ;;  %v4853_v30 = vpop.f32.mrb[15].mxu1 }
 0x230   :  { %7581 = vst [vmem:[#allocation32_spill] sm:$0xff] %v4851_v29  ;;  %7582 = vst [vmem:[#allocation33_spill] sm:$0xff] %v4853_v30  ;;  %1967 = vadd.xlane.f32.xlu1 %v1966_v27  ;;  %1964 = vadd.xlane.f32.xlu0 %v1963_v28  ;;  %v1563_v27 = vsel %vm1544_vm3, %v4783_v61, 0.0 }
 0x232   :  { %v4859_v35 = vpop.f32.mrb[42].mxu0  ;;  %v4861_v36 = vpop.f32.mrb[16].mxu1 }
 0x233   :  { %7583 = vst [vmem:[#allocation34_spill] sm:$0xff] %v4859_v35  ;;  %7584 = vst [vmem:[#allocation35_spill] sm:$0xff] %v4861_v36  ;;  %v4863_v41 = vpop.f32.mrb[43].mxu0  ;;  %v4865_v42 = vpop.f32.mrb[17].mxu1 }
 0x234   :  { %7585 = vst [vmem:[#allocation36_spill] sm:$0xff] %v4863_v41  ;;  %7586 = vst [vmem:[#allocation37_spill] sm:$0xff] %v4865_v42  ;;  %1561 = vadd.xlane.f32.xlu1 %v1560_v31  ;;  %1558 = vadd.xlane.f32.xlu0 %v1557_v32  ;;  %v420_v31 = vld [vmem:[%s7408_s3 + $0x310] sm:$0xff] }
 0x235   :  { %3980 = vmatprep.mubr.msk.f32.mxu1 %vm450_vm1, %v420_v31  ;;  %v1617_v31 = vsel %vm1544_vm3, %v4795_v3, 0.0 }
 0x236   :  { %v4878_v51 = vpop.f32.mrb[44].mxu0  ;;  %v4880_v52 = vpop.f32.mrb[18].mxu1  ;;  %3981 = vmatmul.mubr.msk.f32.gmra.mrb[54].mxu1 %vm450_vm1, %v421_v43 }
 0x237   :  { %7587 = vst [vmem:[#allocation38_spill] sm:$0xff] %v4878_v51  ;;  %7588 = vst [vmem:[#allocation39_spill] sm:$0xff] %v4880_v52  ;;  %v4887_v59 = vpop.f32.mrb[45].mxu0  ;;  %v4889_v60 = vpop.f32.mrb[19].mxu1  ;;  %3983 = vmatprep.mubr.msk.f32.mxu1 %vm450_vm1, %v422_v17  ;;  %v2070_v38 = vsel %vm1544_vm3, %v4880_v52, 0.0 }
 0x238   :  { %7589 = vst [vmem:[#allocation40_spill] sm:$0xff] %v4887_v59  ;;  %7590 = vst [vmem:[#allocation41_spill] sm:$0xff] %v4889_v60  ;;  %1981 = vadd.xlane.f32.xlu1 %v1980_v49  ;;  %1978 = vadd.xlane.f32.xlu0 %v1977_v50  ;;  %v1983_v49 = vsel %vm1544_vm3, %v4785_v62, 0.0  ;;  %v1723_v53 = vmul.f32 %v4887_v59, %v4887_v59  ;;  %v2088_v62 = vmul.f32 %v4880_v52, %v4880_v52 }
 0x23a   :  { %v4891_v63 = vpop.f32.mrb[46].mxu0  ;;  %v4893_v0 = vpop.f32.mrb[20].mxu1  ;;  %3984 = vmatmul.mubr.msk.f32.gmra.mrb[56].mxu1 %vm450_vm1, %v423_v18 }
 0x23b   :  { %7591 = vst [vmem:[#allocation42_spill] sm:$0xff] %v4891_v63  ;;  %7592 = vst [vmem:[#allocation43_spill] sm:$0xff] %v4893_v0  ;;  %v4901_v11 = vpop.f32.mrb[47].mxu0  ;;  %v4903_v12 = vpop.f32.mrb[21].mxu1  ;;  %v1726_v39 = vmul.f32 %v4891_v63, %v4891_v63 }
 0x23c   :  { %7593 = vst [vmem:[#allocation44_spill] sm:$0xff] %v4901_v11  ;;  %7594 = vst [vmem:[#allocation45_spill] sm:$0xff] %v4903_v12  ;;  %1601 = vadd.xlane.f32.xlu1 %v1600_v5  ;;  %1598 = vadd.xlane.f32.xlu0 %v1597_v6  ;;  %v1606_v5 = vsel %vm1544_vm3, %v1584_v55, 0.0  ;;  %v1603_v6 = vsel %vm1544_vm3, %v1583_v56, 0.0  ;;  %v425_v55 = vld [vmem:[%s7408_s3 + $0x338] sm:$0xff]  ;;  %v1992_v56 = vsel %vm1544_vm3, %v4793_v2, 0.0 }
 0x23e   :  { %v4915_v23 = vpop.f32.mrb[48].mxu0  ;;  %v4926_v32 = vpop.f32.mrb[22].mxu1 }
 0x23f   :  { %7595 = vst [vmem:[#allocation46_spill] sm:$0xff] %v4915_v23  ;;  %v4921_v28 = vpop.f32.mrb[49].mxu0  ;;  %7597 = vst [vmem:[#allocation48_spill] sm:$0xff] %v4926_v32  ;;  %v4936_v50 = vpop.f32.mrb[23].mxu1  ;;  %v1728_v48 = vmul.f32 %v4915_v23, %v4915_v23 }
 0x240   :  { %2021 = vadd.xlane.f32.xlu1 %v2020_v19  ;;  %2018 = vadd.xlane.f32.xlu0 %v2017_v20  ;;  %7596 = vst [vmem:[#allocation47_spill] sm:$0xff] %v4921_v28  ;;  %7598 = vst [vmem:[#allocation49_spill] sm:$0xff] %v4936_v50  ;;  %v2026_v19 = vsel %vm1544_vm3, %v2012_v7, 0.0  ;;  %v2023_v20 = vsel %vm1544_vm3, %v2011_v8, 0.0  ;;  %v1650_v7 = vmul.f32 %v4791_v1, %v4791_v1 }
 0x241   :  { %v1649_v8 = vmul.f32 %v4795_v3, %v4795_v3  ;;  %v2155_v33 = vmul.f32 %v4936_v50, %v4936_v50 }
 0x242   :  { %v1660_v17 = vsel %vm1544_vm3, %v1650_v7, 0.0  ;;  %v1623_v7 = vsel %vm1544_vm3, %v4819_v13, 0.0 }
 0x243   :  { %v1657_v18 = vsel %vm1544_vm3, %v1649_v8, 0.0 }
 0x244   :  { %1567 = vadd.xlane.f32.xlu1 %v1566_v24  ;;  %1564 = vadd.xlane.f32.xlu0 %v1563_v27  ;;  %v4959_v24 = vpop.f32.mrb[50].mxu0  ;;  %v1620_v27 = vsel %vm1544_vm3, %v4791_v1, 0.0  ;;  %v2156_v1 = vmul.f32 %v4926_v32, %v4926_v32 }
 0x245   :  { %7599 = vst [vmem:[#allocation50_spill] sm:$0xff] %v4959_v24  ;;  %v4965_v43 = vpop.f32.mrb[51].mxu0 }
 0x246   :  { %7600 = vst [vmem:[#allocation51_spill] sm:$0xff] %v4965_v43 }
 0x248   :  { %1987 = vadd.xlane.f32.xlu1 %v1986_v44  ;;  %1984 = vadd.xlane.f32.xlu0 %v1983_v49  ;;  %v424_v44 = vld [vmem:[%s7408_s3 + $0x330] sm:$0xff]  ;;  %v4970_v49 = vpop.f32.mrb[24].mxu1 }
 0x249   :  { %7601 = vst [vmem:[#allocation52_spill] sm:$0xff] %v4970_v49  ;;  %3986 = vmatprep.mubr.msk.f32.mxu1 %vm450_vm1, %v424_v44 }
 0x24a   :  { %3987 = vmatmul.mubr.msk.f32.gmra.mrb[58].mxu1 %vm450_vm1, %v425_v55 }
 0x24c   :  { %1607 = vadd.xlane.f32.xlu1 %v1606_v5  ;;  %1604 = vadd.xlane.f32.xlu0 %v1603_v6  ;;  %v1989_v5 = vsel %vm1544_vm3, %v4797_v4, 0.0  ;;  %v4980_v6 = vpop.f32.mrb[25].mxu1 }
 0x24d   :  { %7602 = vst [vmem:[#allocation53_spill] sm:$0xff] %v4980_v6 }
 0x250   :  { %2027 = vadd.xlane.f32.xlu1 %v2026_v19  ;;  %2024 = vadd.xlane.f32.xlu0 %v2023_v20  ;;  %v2014_v19 = vmul.f32 %v4793_v2, %v4793_v2  ;;  %v2013_v20 = vmul.f32 %v4797_v4, %v4797_v4  ;;  %v2086_v4 = vmul.f32 %v4861_v36, %v4861_v36 }
 0x252   :  { %v2032_v44 = vsel %vm1544_vm3, %v2014_v19, 0.0  ;;  %v2029_v55 = vsel %vm1544_vm3, %v2013_v20, 0.0  ;;  %v429_v19 = vld [vmem:[%s7408_s3 + $0x358] sm:$0xff]  ;;  %v1998_v20 = vsel %vm1544_vm3, %v4812_v10, 0.0 }
 0x254   :  { %1621 = vadd.xlane.f32.xlu1 %v1620_v27  ;;  %1618 = vadd.xlane.f32.xlu0 %v1617_v31  ;;  %v426_v27 = vld [vmem:[%s7408_s3 + $0x340] sm:$0xff]  ;;  %v427_v31 = vld [vmem:[%s7408_s3 + $0x348] sm:$0xff] }
 0x255   :  { %3989 = vmatprep.mubr.msk.f32.mxu1 %vm450_vm1, %v426_v27  ;;  %v1995_v27 = vsel %vm1544_vm3, %v4821_v14, 0.0 }
 0x256   :  { %3990 = vmatmul.mubr.msk.f32.gmra.mrb[60].mxu1 %vm450_vm1, %v427_v31 }
 0x258   :  { %1993 = vadd.xlane.f32.xlu1 %v1992_v56  ;;  %1990 = vadd.xlane.f32.xlu0 %v1989_v5  ;;  %v5003_v56 = vpop.f32.mrb[52].mxu0  ;;  %v1626_v5 = vsel %vm1544_vm3, %v4810_v9, 0.0 }
 0x259   :  { %7603 = vst [vmem:[#allocation54_spill] sm:$0xff] %v5003_v56  ;;  %v5009_v8 = vpop.f32.mrb[53].mxu0 }
 0x25a   :  { %7604 = vst [vmem:[#allocation55_spill] sm:$0xff] %v5009_v8 }
 0x25c   :  { %1661 = vadd.xlane.f32.xlu1 %v1660_v17  ;;  %1658 = vadd.xlane.f32.xlu0 %v1657_v18  ;;  %v428_v17 = vld [vmem:[%s7408_s3 + $0x350] sm:$0xff]  ;;  %v5014_v18 = vpop.f32.mrb[26].mxu1 }
 0x25d   :  { %7605 = vst [vmem:[#allocation56_spill] sm:$0xff] %v5014_v18  ;;  %3992 = vmatprep.mubr.msk.f32.mxu1 %vm450_vm1, %v428_v17  ;;  %v5024_v31 = vpop.f32.mrb[27].mxu1  ;;  %v2015_v17 = vmul.f32 %v4821_v14, %v4821_v14 }
 0x25e   :  { %7606 = vst [vmem:[#allocation57_spill] sm:$0xff] %v5024_v31  ;;  %3993 = vmatmul.mubr.msk.f32.gmra.mrb[62].mxu1 %vm450_vm1, %v429_v19  ;;  %v430_v19 = vld [vmem:[%s7408_s3 + $0x360] sm:$0xff] }
 0x25f   :  { %3995 = vmatprep.mubr.msk.f32.mxu1 %vm450_vm1, %v430_v19  ;;  %v432_v19 = vld [vmem:[%s7408_s3 + $0x370] sm:$0xff] }
 0x260   :  { %2033 = vadd.xlane.f32.xlu1 %v2032_v44  ;;  %2030 = vadd.xlane.f32.xlu0 %v2029_v55  ;;  %v1652_v44 = vmul.f32 %v4810_v9, %v4810_v9  ;;  %v1651_v55 = vmul.f32 %v4819_v13, %v4819_v13  ;;  %v1704_v13 = vsel %vm1544_vm3, %v4891_v63, 0.0  ;;  %v2121_v9 = vsel %vm1544_vm3, %v4903_v12, 0.0 }
 0x264   :  { %1627 = vadd.xlane.f32.xlu1 %v1626_v5  ;;  %1624 = vadd.xlane.f32.xlu0 %v1623_v7  ;;  %v1666_v5 = vsel %vm1544_vm3, %v1652_v44, 0.0  ;;  %v1663_v7 = vsel %vm1544_vm3, %v1651_v55, 0.0  ;;  %v2035_v44 = vsel %vm1544_vm3, %v2015_v17, 0.0  ;;  %v5047_v55 = vpop.f32.mrb[54].mxu0  ;;  %v433_v17 = vld [vmem:[%s7408_s3 + $0x378] sm:$0xff] }
 0x265   :  { %7607 = vst [vmem:[#allocation58_spill] sm:$0xff] %v5047_v55  ;;  %v5053_v10 = vpop.f32.mrb[55].mxu0 }
 0x266   :  { %7608 = vst [vmem:[#allocation59_spill] sm:$0xff] %v5053_v10 }
 0x268   :  { %1999 = vadd.xlane.f32.xlu1 %v1998_v20  ;;  %1996 = vadd.xlane.f32.xlu0 %v1995_v27  ;;  %v431_v20 = vld [vmem:[%s7408_s3 + $0x368] sm:$0xff]  ;;  %v2038_v27 = vsel %vm1544_vm3, %v2016_v40, 0.0  ;;  %v5058_v40 = vpop.f32.mrb[28].mxu1 }
 0x269   :  { %3996 = vmatmul.mubr.msk.f32.gmra.mrb[64].mxu1 %vm450_vm1, %v431_v20  ;;  %7609 = vst [vmem:[#allocation60_spill] sm:$0xff] %v5058_v40  ;;  %v2052_v20 = vsel %vm1544_vm3, %v4825_v16, 0.0 }
 0x26a   :  { %3998 = vmatprep.mubr.msk.f32.mxu1 %vm450_vm1, %v432_v19  ;;  %v2081_v19 = vmul.f32 %v4835_v22, %v4835_v22 }
 0x26c   :  { %1667 = vadd.xlane.f32.xlu1 %v1666_v5  ;;  %1664 = vadd.xlane.f32.xlu0 %v1663_v7  ;;  %v1632_v5 = vsel %vm1544_vm3, %v4823_v15, 0.0  ;;  %v1629_v7 = vsel %vm1544_vm3, %v4833_v21, 0.0 }
 0x26d   :  { %3999 = vmatmul.mubr.msk.f32.gmra.mrb[66].mxu1 %vm450_vm1, %v433_v17  ;;  %v434_v17 = vld [vmem:[%s7408_s3 + $0x380] sm:$0xff] }
 0x26e   :  { %4001 = vmatprep.mubr.msk.f32.mxu1 %vm450_vm1, %v434_v17  ;;  %v436_v17 = vld [vmem:[%s7408_s3 + $0x390] sm:$0xff] }
 0x270   :  { %2039 = vadd.xlane.f32.xlu1 %v2038_v27  ;;  %2036 = vadd.xlane.f32.xlu0 %v2035_v44  ;;  %v2049_v27 = vsel %vm1544_vm3, %v4835_v22, 0.0  ;;  %v5068_v44 = vpop.f32.mrb[29].mxu1 }
 0x271   :  { %7610 = vst [vmem:[#allocation61_spill] sm:$0xff] %v5068_v44 }
 0x274   :  { %1633 = vadd.xlane.f32.xlu1 %v1632_v5  ;;  %1630 = vadd.xlane.f32.xlu0 %v1629_v7  ;;  %v1654_v5 = vmul.f32 %v4823_v15, %v4823_v15  ;;  %v1653_v7 = vmul.f32 %v4833_v21, %v4833_v21  ;;  %v2084_v15 = vmul.f32 %v4846_v26, %v4846_v26  ;;  %v2067_v21 = vsel %vm1544_vm3, %v4889_v60, 0.0 }
 0x276   :  { %v1672_v57 = vsel %vm1544_vm3, %v1654_v5, 0.0  ;;  %v1669_v14 = vsel %vm1544_vm3, %v1653_v7, 0.0  ;;  %v2089_v5 = vsel %vm1544_vm3, %v2081_v19, 0.0  ;;  %v5091_v7 = vpop.f32.mrb[56].mxu0  ;;  %v437_v19 = vld [vmem:[%s7408_s3 + $0x398] sm:$0xff] }
 0x277   :  { %7611 = vst [vmem:[#allocation62_spill] sm:$0xff] %v5091_v7  ;;  %v5097_v61 = vpop.f32.mrb[57].mxu0 }
 0x278   :  { %2053 = vadd.xlane.f32.xlu1 %v2052_v20  ;;  %2050 = vadd.xlane.f32.xlu0 %v2049_v27  ;;  %v435_v20 = vld [vmem:[%s7408_s3 + $0x388] sm:$0xff]  ;;  %v2092_v27 = vsel %vm1544_vm3, %v2082_v46, 0.0  ;;  %7612 = vst [vmem:[#allocation63_spill] sm:$0xff] %v5097_v61  ;;  %v5102_v46 = vpop.f32.mrb[30].mxu1 }
 0x279   :  { %4002 = vmatmul.mubr.msk.f32.gmra.mrb[68].mxu1 %vm450_vm1, %v435_v20  ;;  %7613 = vst [vmem:[#allocation64_spill] sm:$0xff] %v5102_v46  ;;  %v2058_v20 = vsel %vm1544_vm3, %v4846_v26, 0.0 }
 0x27a   :  { %4004 = vmatprep.mubr.msk.f32.mxu1 %vm450_vm1, %v436_v17  ;;  %v2083_v17 = vmul.f32 %v4853_v30, %v4853_v30 }
 0x27c   :  { %1673 = vadd.xlane.f32.xlu1 %v1672_v57  ;;  %1670 = vadd.xlane.f32.xlu0 %v1669_v14  ;;  %v1638_v57 = vsel %vm1544_vm3, %v4844_v25, 0.0  ;;  %v1635_v14 = vsel %vm1544_vm3, %v4851_v29, 0.0 }
 0x27d   :  { %4005 = vmatmul.mubr.msk.f32.gmra.mrb[70].mxu1 %vm450_vm1, %v437_v19  ;;  %v438_v19 = vld [vmem:[%s7408_s3 + $0x3a0] sm:$0xff] }
 0x27e   :  { %4007 = vmatprep.mubr.msk.f32.mxu1 %vm450_vm1, %v438_v19  ;;  %v440_v19 = vld [vmem:[%s7408_s3 + $0x3b0] sm:$0xff] }
 0x280   :  { %2093 = vadd.xlane.f32.xlu1 %v2092_v27  ;;  %2090 = vadd.xlane.f32.xlu0 %v2089_v5  ;;  %v2055_v27 = vsel %vm1544_vm3, %v4853_v30, 0.0  ;;  %v5112_v5 = vpop.f32.mrb[31].mxu1 }
 0x281   :  { %7614 = vst [vmem:[#allocation65_spill] sm:$0xff] %v5112_v5 }
 0x284   :  { %1639 = vadd.xlane.f32.xlu1 %v1638_v57  ;;  %1636 = vadd.xlane.f32.xlu0 %v1635_v14  ;;  %v1656_v57 = vmul.f32 %v4844_v25, %v4844_v25  ;;  %v1655_v14 = vmul.f32 %v4851_v29, %v4851_v29 }
 0x286   :  { %v1678_v2 = vsel %vm1544_vm3, %v1656_v57, 0.0  ;;  %v1675_v34 = vsel %vm1544_vm3, %v1655_v14, 0.0  ;;  %v2095_v57 = vsel %vm1544_vm3, %v2083_v17, 0.0  ;;  %v5135_v14 = vpop.f32.mrb[58].mxu0  ;;  %v441_v17 = vld [vmem:[%s7408_s3 + $0x3b8] sm:$0xff] }
 0x287   :  { %7615 = vst [vmem:[#allocation66_spill] sm:$0xff] %v5135_v14  ;;  %v5141_v25 = vpop.f32.mrb[59].mxu0 }
 0x288   :  { %2059 = vadd.xlane.f32.xlu1 %v2058_v20  ;;  %2056 = vadd.xlane.f32.xlu0 %v2055_v27  ;;  %v439_v20 = vld [vmem:[%s7408_s3 + $0x3a8] sm:$0xff]  ;;  %v2098_v27 = vsel %vm1544_vm3, %v2084_v15, 0.0  ;;  %7616 = vst [vmem:[#allocation67_spill] sm:$0xff] %v5141_v25  ;;  %v5146_v15 = vpop.f32.mrb[32].mxu1 }
 0x289   :  { %4008 = vmatmul.mubr.msk.f32.gmra.mrb[72].mxu1 %vm450_vm1, %v439_v20  ;;  %7617 = vst [vmem:[#allocation68_spill] sm:$0xff] %v5146_v15  ;;  %v2064_v20 = vsel %vm1544_vm3, %v4861_v36, 0.0 }
 0x28a   :  { %4010 = vmatprep.mubr.msk.f32.mxu1 %vm450_vm1, %v440_v19  ;;  %v2085_v19 = vmul.f32 %v4865_v42, %v4865_v42 }
 0x28c   :  { %1679 = vadd.xlane.f32.xlu1 %v1678_v2  ;;  %1676 = vadd.xlane.f32.xlu0 %v1675_v34  ;;  %v1692_v2 = vsel %vm1544_vm3, %v4859_v35, 0.0  ;;  %v1689_v34 = vsel %vm1544_vm3, %v4863_v41, 0.0 }
 0x28d   :  { %4011 = vmatmul.mubr.msk.f32.gmra.mrb[74].mxu1 %vm450_vm1, %v441_v17  ;;  %v442_v17 = vld [vmem:[%s7408_s3 + $0x3c0] sm:$0xff] }
 0x28e   :  { %4013 = vmatprep.mubr.msk.f32.mxu1 %vm450_vm1, %v442_v17  ;;  %v1695_v17 = vsel %vm1544_vm3, %v4887_v59, 0.0  ;;  %v446_v59 = vld [vmem:[%s7408_s3 + $0x3e0] sm:$0xff] }
 0x290   :  { %2099 = vadd.xlane.f32.xlu1 %v2098_v27  ;;  %2096 = vadd.xlane.f32.xlu0 %v2095_v57  ;;  %v2061_v27 = vsel %vm1544_vm3, %v4865_v42, 0.0  ;;  %v5156_v57 = vpop.f32.mrb[33].mxu1 }
 0x291   :  { %7618 = vst [vmem:[#allocation69_spill] sm:$0xff] %v5156_v57 }
 0x294   :  { %1693 = vadd.xlane.f32.xlu1 %v1692_v2  ;;  %1690 = vadd.xlane.f32.xlu0 %v1689_v34  ;;  %v1722_v2 = vmul.f32 %v4859_v35, %v4859_v35  ;;  %v1721_v34 = vmul.f32 %v4863_v41, %v4863_v41  ;;  %v2154_v41 = vmul.f32 %v4893_v0, %v4893_v0 }
 0x296   :  { %v1732_v29 = vsel %vm1544_vm3, %v1722_v2, 0.0  ;;  %v1729_v47 = vsel %vm1544_vm3, %v1721_v34, 0.0  ;;  %v2101_v2 = vsel %vm1544_vm3, %v2085_v19, 0.0  ;;  %v5179_v34 = vpop.f32.mrb[60].mxu0  ;;  %v5194_v19 = vpop.f32.mrb[34].mxu1 }
 0x297   :  { %7619 = vst [vmem:[#allocation70_spill] sm:$0xff] %v5179_v34  ;;  %v5189_v42 = vpop.f32.mrb[61].mxu0  ;;  %7621 = vst [vmem:[#allocation72_spill] sm:$0xff] %v5194_v19 }
 0x298   :  { %2065 = vadd.xlane.f32.xlu1 %v2064_v20  ;;  %2062 = vadd.xlane.f32.xlu0 %v2061_v27  ;;  %v443_v20 = vld [vmem:[%s7408_s3 + $0x3c8] sm:$0xff]  ;;  %v2104_v27 = vsel %vm1544_vm3, %v2086_v4, 0.0  ;;  %7620 = vst [vmem:[#allocation71_spill] sm:$0xff] %v5189_v42  ;;  %v444_v4 = vld [vmem:[%s7408_s3 + $0x3d0] sm:$0xff] }
 0x299   :  { %4014 = vmatmul.mubr.msk.f32.gmra.mrb[76].mxu1 %vm450_vm1, %v443_v20  ;;  %v445_v20 = vld [vmem:[%s7408_s3 + $0x3d8] sm:$0xff] }
 0x29a   :  { %4016 = vmatprep.mubr.msk.f32.mxu1 %vm450_vm1, %v444_v4  ;;  %v1735_v4 = vsel %vm1544_vm3, %v1723_v53, 0.0  ;;  %v2110_v53 = vsel %vm1544_vm3, %v2088_v62, 0.0  ;;  %v448_v62 = vld [vmem:[%s7408_s3 + $0x3f0] sm:$0xff] }
 0x29c   :  { %1733 = vadd.xlane.f32.xlu1 %v1732_v29  ;;  %1730 = vadd.xlane.f32.xlu0 %v1729_v47  ;;  %v1698_v47 = vsel %vm1544_vm3, %v4878_v51, 0.0 }
 0x29d   :  { %4017 = vmatmul.mubr.msk.f32.gmra.mrb[78].mxu1 %vm450_vm1, %v445_v20  ;;  %v2087_v20 = vmul.f32 %v4889_v60, %v4889_v60 }
 0x29e   :  { %4019 = vmatprep.mubr.msk.f32.mxu1 %vm450_vm1, %v446_v59  ;;  %v1701_v59 = vsel %vm1544_vm3, %v4901_v11, 0.0 }
 0x29f   :  { %v2107_v52 = vsel %vm1544_vm3, %v2087_v20, 0.0  ;;  %v449_v20 = vld [vmem:[%s7408_s3 + $0x3f8] sm:$0xff] }
 0x2a0   :  { %2105 = vadd.xlane.f32.xlu1 %v2104_v27  ;;  %2102 = vadd.xlane.f32.xlu0 %v2101_v2 }
 0x2a1   :  { %v5181_v36 = vpop.xlane.xlu1 %1921  ;;  %v5183_v29 = vpop.xlane.xlu0 %1549 }
 0x2a4   :  { %1699 = vadd.xlane.f32.xlu1 %v1698_v47  ;;  %1696 = vadd.xlane.f32.xlu0 %v1695_v17  ;;  %v5208_v47 = vpop.f32.mrb[35].mxu1  ;;  %v1724_v17 = vmul.f32 %v4878_v51, %v4878_v51  ;;  %v2124_v51 = vsel %vm1544_vm3, %v4893_v0, 0.0 }
 0x2a5   :  { %v5199_v27 = vpop.xlane.xlu0 %1918  ;;  %v5201_v2 = vpop.xlane.xlu1 %1546  ;;  %7622 = vst [vmem:[#allocation73_spill] sm:$0xff] %v5208_v47 }
 0x2a6   :  { %v1738_v30 = vsel %vm1544_vm3, %v1724_v17, 0.0 }
 0x2a8   :  { %2071 = vadd.xlane.f32.xlu1 %v2070_v38  ;;  %2068 = vadd.xlane.f32.xlu0 %v2067_v21  ;;  %v447_v38 = vld [vmem:[%s7408_s3 + $0x3e8] sm:$0xff] }
 0x2a9   :  { %v5215_v26 = vpop.xlane.xlu0 %1586  ;;  %v5217_v58 = vpop.xlane.xlu1 %1589  ;;  %4020 = vmatmul.mubr.msk.f32.gmra.mrb[80].mxu1 %vm450_vm1, %v447_v38 }
 0x2aa   :  { %4022 = vmatprep.mubr.msk.f32.mxu1 %vm450_vm1, %v448_v62  ;;  %v2153_v62 = vmul.f32 %v4903_v12, %v4903_v12 }
 0x2ac   :  { %1739 = vadd.xlane.f32.xlu1 %v1738_v30  ;;  %1736 = vadd.xlane.f32.xlu0 %v1735_v4  ;;  %v5239_v30 = vpop.f32.mrb[62].mxu0  ;;  %v2161_v63 = vsel %vm1544_vm3, %v2153_v62, 0.0 }
 0x2ad   :  { %v5231_v21 = vpop.xlane.xlu0 %1958  ;;  %v5233_v17 = vpop.xlane.xlu1 %1961  ;;  %7625 = vst [vmem:[#allocation76_spill] sm:$0xff] %v5239_v30  ;;  %4023 = vmatmul.mubr.msk.f32.gmra.mrb[82].mxu1 %vm450_vm1, %v449_v20  ;;  %v1744_v20 = vsel %vm1544_vm3, %v1726_v39, 0.0  ;;  %v1710_v39 = vsel %vm1544_vm3, %v4915_v23, 0.0 }
 0x2ae   :  { %7623 = vst [vmem:[#allocation74_spill] sm:$0xff] %v5231_v21  ;;  %7624 = vst [vmem:[#allocation75_spill] sm:$0xff] %v5233_v17  ;;  %v5249_v45 = vpop.f32.mrb[63].mxu0 }
 0x2af   :  { %7626 = vst [vmem:[#allocation77_spill] sm:$0xff] %v5249_v45  ;;  %v5291_v37 = vpop.f32.mrb[64].mxu0 }
 0x2b0   :  { %2111 = vadd.xlane.f32.xlu1 %v2110_v53  ;;  %2108 = vadd.xlane.f32.xlu0 %v2107_v52  ;;  %v5254_v52 = vpop.f32.mrb[36].mxu1  ;;  %7633 = vst [vmem:[#allocation84_spill] sm:$0xff] %v5291_v37 }
 0x2b1   :  { %v5241_v4 = vpop.xlane.xlu1 %1555  ;;  %v5243_v60 = vpop.xlane.xlu0 %1552  ;;  %7627 = vst [vmem:[#allocation78_spill] sm:$0xff] %v5254_v52 }
 0x2b4   :  { %1705 = vadd.xlane.f32.xlu1 %v1704_v13  ;;  %1702 = vadd.xlane.f32.xlu0 %v1701_v59  ;;  %v5268_v13 = vpop.f32.mrb[37].mxu1  ;;  %v1725_v59 = vmul.f32 %v4901_v11, %v4901_v11 }
 0x2b5   :  { %v5259_v38 = vpop.xlane.xlu1 %1927  ;;  %v5261_v53 = vpop.xlane.xlu0 %1924  ;;  %7630 = vst [vmem:[#allocation81_spill] sm:$0xff] %v5268_v13 }
 0x2b6   :  { %7628 = vst [vmem:[#allocation79_spill] sm:$0xff] %v5259_v38  ;;  %7629 = vst [vmem:[#allocation80_spill] sm:$0xff] %v5261_v53  ;;  %v1741_v3 = vsel %vm1544_vm3, %v1725_v59, 0.0  ;;  %v5301_v59 = vpop.f32.mrb[65].mxu0 }
 0x2b7   :  { %7634 = vst [vmem:[#allocation85_spill] sm:$0xff] %v5301_v59 }
 0x2b8   :  { %2125 = vadd.xlane.f32.xlu1 %v2124_v51  ;;  %2122 = vadd.xlane.f32.xlu0 %v2121_v9  ;;  %v2164_v9 = vsel %vm1544_vm3, %v2154_v41, 0.0  ;;  %v5303_v41 = vpop.f32.mrb[38].mxu1 }
 0x2b9   :  { %v5275_v22 = vpop.xlane.xlu1 %1595  ;;  %v5277_v54 = vpop.xlane.xlu0 %1592  ;;  %7635 = vst [vmem:[#allocation86_spill] sm:$0xff] %v5303_v41 }
 0x2ba   :  { %v5313_v16 = vpop.f32.mrb[39].mxu1 }
 0x2bb   :  { %7638 = vst [vmem:[#allocation89_spill] sm:$0xff] %v5313_v16 }
 0x2bc   :  { %1745 = vadd.xlane.f32.xlu1 %v1744_v20  ;;  %1742 = vadd.xlane.f32.xlu0 %v1741_v3  ;;  %v1707_v3 = vsel %vm1544_vm3, %v4921_v28, 0.0  ;;  %v2130_v20 = vsel %vm1544_vm3, %v4926_v32, 0.0  ;;  %v5335_v32 = vpop.f32.mrb[66].mxu0 }
 0x2bd   :  { %v5285_v11 = vpop.xlane.xlu1 %1967  ;;  %v5287_v51 = vpop.xlane.xlu0 %1964  ;;  %7641 = vst [vmem:[#allocation92_spill] sm:$0xff] %v5335_v32 }
 0x2be   :  { %7631 = vst [vmem:[#allocation82_spill] sm:$0xff] %v5285_v11  ;;  %7632 = vst [vmem:[#allocation83_spill] sm:$0xff] %v5287_v51  ;;  %v2157_v11 = vmul.f32 %v4980_v6, %v4980_v6 }
 0x2c0   :  { %2165 = vadd.xlane.f32.xlu1 %v2164_v9  ;;  %2162 = vadd.xlane.f32.xlu0 %v2161_v63  ;;  %v2127_v9 = vsel %vm1544_vm3, %v4936_v50, 0.0 }
 0x2c1   :  { %v5293_v0 = vpop.xlane.xlu1 %1561  ;;  %v5295_v12 = vpop.xlane.xlu0 %1558 }
 0x2c4   :  { %1711 = vadd.xlane.f32.xlu1 %v1710_v39  ;;  %1708 = vadd.xlane.f32.xlu0 %v1707_v3  ;;  %v1727_v39 = vmul.f32 %v4921_v28, %v4921_v28  ;;  %v2167_v28 = vsel %vm1544_vm3, %v2155_v33, 0.0 }
 0x2c5   :  { %v5305_v62 = vpop.xlane.xlu1 %1981  ;;  %v5307_v63 = vpop.xlane.xlu0 %1978 }
 0x2c6   :  { %7636 = vst [vmem:[#allocation87_spill] sm:$0xff] %v5305_v62  ;;  %7637 = vst [vmem:[#allocation88_spill] sm:$0xff] %v5307_v63  ;;  %v1750_v63 = vsel %vm1544_vm3, %v1728_v48, 0.0  ;;  %v1747_v62 = vsel %vm1544_vm3, %v1727_v39, 0.0  ;;  %v1764_v48 = vsel %vm1544_vm3, %v4959_v24, 0.0  ;;  %v2136_v39 = vsel %vm1544_vm3, %v4970_v49, 0.0 }
 0x2c8   :  { %2131 = vadd.xlane.f32.xlu1 %v2130_v20  ;;  %2128 = vadd.xlane.f32.xlu0 %v2127_v9  ;;  %v2170_v9 = vsel %vm1544_vm3, %v2156_v1, 0.0  ;;  %v5347_v1 = vpop.f32.mrb[40].mxu1 }
 0x2c9   :  { %v5319_v3 = vpop.xlane.xlu1 %1601  ;;  %v5321_v35 = vpop.xlane.xlu0 %1598  ;;  %7643 = vst [vmem:[#allocation94_spill] sm:$0xff] %v5347_v1 }
 0x2cc   :  { %1751 = vadd.xlane.f32.xlu1 %v1750_v63  ;;  %1748 = vadd.xlane.f32.xlu0 %v1747_v62  ;;  %v1761_v62 = vsel %vm1544_vm3, %v4965_v43, 0.0  ;;  %v5345_v63 = vpop.f32.mrb[67].mxu0 }
 0x2cd   :  { %v5329_v23 = vpop.xlane.xlu1 %2021  ;;  %v5331_v20 = vpop.xlane.xlu0 %2018  ;;  %7642 = vst [vmem:[#allocation93_spill] sm:$0xff] %v5345_v63 }
 0x2ce   :  { %7639 = vst [vmem:[#allocation90_spill] sm:$0xff] %v5329_v23  ;;  %7640 = vst [vmem:[#allocation91_spill] sm:$0xff] %v5331_v20  ;;  %v5357_v20 = vpop.f32.mrb[41].mxu1  ;;  %v1794_v23 = vmul.f32 %v4959_v24, %v4959_v24 }
 0x2cf   :  { %7646 = vst [vmem:[#allocation97_spill] sm:$0xff] %v5357_v20 }
 0x2d0   :  { %2171 = vadd.xlane.f32.xlu1 %v2170_v9  ;;  %2168 = vadd.xlane.f32.xlu0 %v2167_v28  ;;  %v2133_v9 = vsel %vm1544_vm3, %v4980_v6, 0.0  ;;  %v1804_v53 = vsel %vm1544_vm3, %v1794_v23, 0.0  ;;  %v1770_v23 = vsel %vm1544_vm3, %v5003_v56, 0.0 }
 0x2d1   :  { %v5337_v51 = vpop.xlane.xlu1 %1567  ;;  %v5339_v50 = vpop.xlane.xlu0 %1564 }
 0x2d4   :  { %1765 = vadd.xlane.f32.xlu1 %v1764_v48  ;;  %1762 = vadd.xlane.f32.xlu0 %v1761_v62  ;;  %v1793_v48 = vmul.f32 %v4965_v43, %v4965_v43  ;;  %v2173_v43 = vsel %vm1544_vm3, %v2157_v11, 0.0  ;;  %v5393_v11 = vpop.f32.mrb[42].mxu1 }
 0x2d5   :  { %v5349_v33 = vpop.xlane.xlu1 %1987  ;;  %v5351_v28 = vpop.xlane.xlu0 %1984  ;;  %7651 = vst [vmem:[#allocation102_spill] sm:$0xff] %v5393_v11 }
 0x2d6   :  { %7644 = vst [vmem:[#allocation95_spill] sm:$0xff] %v5349_v33  ;;  %7645 = vst [vmem:[#allocation96_spill] sm:$0xff] %v5351_v28  ;;  %v2158_v28 = vmul.f32 %v4970_v49, %v4970_v49  ;;  %v1801_v38 = vsel %vm1544_vm3, %v1793_v48, 0.0  ;;  %v5379_v49 = vpop.f32.mrb[68].mxu0 }
 0x2d7   :  { %7649 = vst [vmem:[#allocation100_spill] sm:$0xff] %v5379_v49 }
 0x2d8   :  { %2137 = vadd.xlane.f32.xlu1 %v2136_v39  ;;  %2134 = vadd.xlane.f32.xlu0 %v2133_v9  ;;  %v2176_v9 = vsel %vm1544_vm3, %v2158_v28, 0.0  ;;  %v5391_v28 = vpop.f32.mrb[69].mxu0 }
 0x2d9   :  { %v5363_v62 = vpop.xlane.xlu1 %1607  ;;  %v5365_v33 = vpop.xlane.xlu0 %1604  ;;  %7650 = vst [vmem:[#allocation101_spill] sm:$0xff] %v5391_v28 }
 0x2dc   :  { %1805 = vadd.xlane.f32.xlu1 %v1804_v53  ;;  %1802 = vadd.xlane.f32.xlu0 %v1801_v38  ;;  %v1767_v38 = vsel %vm1544_vm3, %v5009_v8, 0.0 }
 0x2dd   :  { %v5373_v24 = vpop.xlane.xlu1 %2027  ;;  %v5375_v39 = vpop.xlane.xlu0 %2024 }
 0x2de   :  { %7647 = vst [vmem:[#allocation98_spill] sm:$0xff] %v5373_v24  ;;  %7648 = vst [vmem:[#allocation99_spill] sm:$0xff] %v5375_v39  ;;  %v2142_v39 = vsel %vm1544_vm3, %v5014_v18, 0.0 }
 0x2e0   :  { %2177 = vadd.xlane.f32.xlu1 %v2176_v9  ;;  %2174 = vadd.xlane.f32.xlu0 %v2173_v43 }
 0x2e1   :  { %v1622_v21 = vpop.xlane.xlu1 %1621  ;;  %v1619_v6 = vpop.xlane.xlu0 %1618 }
 0x2e2   :  { %v5386_v53 = vadd.f32 %v1622_v21, %v5183_v29  ;;  %v5389_v48 = vadd.f32 %v1619_v6, %v5201_v2  ;;  %v2139_v29 = vsel %vm1544_vm3, %v5024_v31, 0.0  ;;  %v5403_v21 = vpop.f32.mrb[43].mxu1  ;;  %v1796_v6 = vmul.f32 %v5003_v56, %v5003_v56 }
 0x2e3   :  { %7654 = vst [vmem:[#allocation105_spill] sm:$0xff] %v5403_v21  ;;  %v1795_v2 = vmul.f32 %v5009_v8, %v5009_v8 }
 0x2e4   :  { %1771 = vadd.xlane.f32.xlu1 %v1770_v23  ;;  %1768 = vadd.xlane.f32.xlu0 %v1767_v38  ;;  %v1810_v56 = vsel %vm1544_vm3, %v1796_v6, 0.0  ;;  %v1773_v6 = vsel %vm1544_vm3, %v5053_v10, 0.0 }
 0x2e5   :  { %v5395_v43 = vpop.xlane.xlu1 %1993  ;;  %v5397_v9 = vpop.xlane.xlu0 %1990  ;;  %v1807_v8 = vsel %vm1544_vm3, %v1795_v2, 0.0 }
 0x2e6   :  { %7652 = vst [vmem:[#allocation103_spill] sm:$0xff] %v5395_v43  ;;  %7653 = vst [vmem:[#allocation104_spill] sm:$0xff] %v5397_v9  ;;  %v2160_v9 = vmul.f32 %v5014_v18, %v5014_v18  ;;  %v2159_v43 = vmul.f32 %v5024_v31, %v5024_v31  ;;  %v1776_v18 = vsel %vm1544_vm3, %v5047_v55, 0.0  ;;  %v5437_v2 = vpop.f32.mrb[44].mxu1 }
 0x2e7   :  { %7657 = vst [vmem:[#allocation108_spill] sm:$0xff] %v5437_v2 }
 0x2e8   :  { %2143 = vadd.xlane.f32.xlu1 %v2142_v39  ;;  %2140 = vadd.xlane.f32.xlu0 %v2139_v29 }
 0x2e9   :  { %v1662_v23 = vpop.xlane.xlu1 %1661  ;;  %v1659_v38 = vpop.xlane.xlu0 %1658 }
 0x2ea   :  { %v5410_v24 = vadd.f32 %v1662_v23, %v5217_v58  ;;  %v5413_v17 = vadd.f32 %v1659_v38, %v5215_v26  ;;  %v2182_v58 = vsel %vm1544_vm3, %v2160_v9, 0.0  ;;  %v2179_v26 = vsel %vm1544_vm3, %v2159_v43, 0.0  ;;  %v5439_v9 = vpop.f32.mrb[45].mxu1 }
 0x2eb   :  { %7658 = vst [vmem:[#allocation109_spill] sm:$0xff] %v5439_v9 }
 0x2ec   :  { %1811 = vadd.xlane.f32.xlu1 %v1810_v56  ;;  %1808 = vadd.xlane.f32.xlu0 %v1807_v8 }
 0x2ed   :  { %v5421_v39 = vpop.xlane.xlu1 %2033  ;;  %v5423_v29 = vpop.xlane.xlu0 %2030 }
 0x2ee   :  { %7655 = vst [vmem:[#allocation106_spill] sm:$0xff] %v5421_v39  ;;  %7656 = vst [vmem:[#allocation107_spill] sm:$0xff] %v5423_v29  ;;  %v2232_v39 = vmul.f32 %v5194_v19, %v5194_v19 }
 0x2f0   :  { %2183 = vadd.xlane.f32.xlu1 %v2182_v58  ;;  %2180 = vadd.xlane.f32.xlu0 %v2179_v26  ;;  %v2196_v26 = vsel %vm1544_vm3, %v5058_v40, 0.0 }
 0x2f1   :  { %v1628_v23 = vpop.xlane.xlu1 %1627  ;;  %v1625_v38 = vpop.xlane.xlu0 %1624 }
 0x2f2   :  { %v5432_v56 = vadd.f32 %v1628_v23, %v5241_v4  ;;  %v5435_v8 = vadd.f32 %v1625_v38, %v5243_v60  ;;  %v2193_v4 = vsel %vm1544_vm3, %v5068_v44, 0.0  ;;  %v1798_v60 = vmul.f32 %v5047_v55, %v5047_v55 }
 0x2f3   :  { %v1797_v23 = vmul.f32 %v5053_v10, %v5053_v10  ;;  %v2225_v55 = vmul.f32 %v5068_v44, %v5068_v44 }
 0x2f4   :  { %1777 = vadd.xlane.f32.xlu1 %v1776_v18  ;;  %1774 = vadd.xlane.f32.xlu0 %v1773_v6  ;;  %v1816_v10 = vsel %vm1544_vm3, %v1798_v60, 0.0  ;;  %v1782_v60 = vsel %vm1544_vm3, %v5091_v7, 0.0 }
 0x2f5   :  { %v5441_v43 = vpop.xlane.xlu1 %1999  ;;  %v5443_v58 = vpop.xlane.xlu0 %1996 }
 0x2f6   :  { %7659 = vst [vmem:[#allocation110_spill] sm:$0xff] %v5441_v43  ;;  %7660 = vst [vmem:[#allocation111_spill] sm:$0xff] %v5443_v58  ;;  %v5459_v58 = vpop.f32.mrb[46].mxu1  ;;  %v2226_v43 = vmul.f32 %v5058_v40, %v5058_v40 }
 0x2f7   :  { %7661 = vst [vmem:[#allocation112_spill] sm:$0xff] %v5459_v58 }
 0x2f8   :  { %2197 = vadd.xlane.f32.xlu1 %v2196_v26  ;;  %2194 = vadd.xlane.f32.xlu0 %v2193_v4  ;;  %v1813_v26 = vsel %vm1544_vm3, %v1797_v23, 0.0  ;;  %v5467_v4 = vpop.f32.mrb[47].mxu1  ;;  %v1779_v23 = vsel %vm1544_vm3, %v5097_v61, 0.0 }
 0x2f9   :  { %v1668_v18 = vpop.xlane.xlu1 %1667  ;;  %v1665_v38 = vpop.xlane.xlu0 %1664  ;;  %7662 = vst [vmem:[#allocation113_spill] sm:$0xff] %v5467_v4 }
 0x2fa   :  { %v5454_v6 = vadd.f32 %v1668_v18, %v5275_v22  ;;  %v5457_v31 = vadd.f32 %v1665_v38, %v5277_v54  ;;  %v2236_v18 = vsel %vm1544_vm3, %v2226_v43, 0.0  ;;  %v2233_v38 = vsel %vm1544_vm3, %v2225_v55, 0.0 }
 0x2fc   :  { %1817 = vadd.xlane.f32.xlu1 %v1816_v10  ;;  %1814 = vadd.xlane.f32.xlu0 %v1813_v26 }
 0x2fd   :  { %v5469_v22 = vpop.xlane.xlu1 %2039  ;;  %v5471_v54 = vpop.xlane.xlu0 %2036 }
 0x2fe   :  { %7663 = vst [vmem:[#allocation114_spill] sm:$0xff] %v5469_v22  ;;  %7664 = vst [vmem:[#allocation115_spill] sm:$0xff] %v5471_v54  ;;  %v5485_v54 = vpop.f32.mrb[48].mxu1  ;;  %v2228_v22 = vmul.f32 %v5102_v46, %v5102_v46 }
 0x2ff   :  { %7665 = vst [vmem:[#allocation116_spill] sm:$0xff] %v5485_v54  ;;  %v5487_v43 = vpop.f32.mrb[49].mxu1 }
 0x300   :  { %2237 = vadd.xlane.f32.xlu1 %v2236_v18  ;;  %2234 = vadd.xlane.f32.xlu0 %v2233_v38  ;;  %7666 = vst [vmem:[#allocation117_spill] sm:$0xff] %v5487_v43  ;;  %v2202_v38 = vsel %vm1544_vm3, %v5102_v46, 0.0 }
 0x301   :  { %v1634_v40 = vpop.xlane.xlu1 %1633  ;;  %v1631_v44 = vpop.xlane.xlu0 %1630 }
 0x302   :  { %v5480_v10 = vadd.f32 %v1634_v40, %v5293_v0  ;;  %v5483_v26 = vadd.f32 %v1631_v44, %v5295_v12  ;;  %v2199_v0 = vsel %vm1544_vm3, %v5112_v5, 0.0  ;;  %v1800_v12 = vmul.f32 %v5091_v7, %v5091_v7 }
 0x303   :  { %v1799_v40 = vmul.f32 %v5097_v61, %v5097_v61  ;;  %v2227_v7 = vmul.f32 %v5112_v5, %v5112_v5 }
 0x304   :  { %1783 = vadd.xlane.f32.xlu1 %v1782_v60  ;;  %1780 = vadd.xlane.f32.xlu0 %v1779_v23  ;;  %v1822_v61 = vsel %vm1544_vm3, %v1800_v12, 0.0  ;;  %v1836_v12 = vsel %vm1544_vm3, %v5135_v14, 0.0 }
 0x305   :  { %v5489_v55 = vpop.xlane.xlu1 %2053  ;;  %v5491_v18 = vpop.xlane.xlu0 %2050 }
 0x306   :  { %7667 = vst [vmem:[#allocation118_spill] sm:$0xff] %v5489_v55  ;;  %7668 = vst [vmem:[#allocation119_spill] sm:$0xff] %v5491_v18  ;;  %v5507_v55 = vpop.f32.mrb[50].mxu1 }
 0x307   :  { %7669 = vst [vmem:[#allocation120_spill] sm:$0xff] %v5507_v55 }
 0x308   :  { %2203 = vadd.xlane.f32.xlu1 %v2202_v38  ;;  %2200 = vadd.xlane.f32.xlu0 %v2199_v0  ;;  %v1819_v38 = vsel %vm1544_vm3, %v1799_v40, 0.0  ;;  %v5515_v0 = vpop.f32.mrb[51].mxu1  ;;  %v1833_v40 = vsel %vm1544_vm3, %v5141_v25, 0.0 }
 0x309   :  { %v1674_v44 = vpop.xlane.xlu1 %1673  ;;  %v1671_v60 = vpop.xlane.xlu0 %1670  ;;  %7670 = vst [vmem:[#allocation121_spill] sm:$0xff] %v5515_v0 }
 0x30a   :  { %v5502_v23 = vadd.f32 %v1674_v44, %v5319_v3  ;;  %v5505_v18 = vadd.f32 %v1671_v60, %v5321_v35  ;;  %v2242_v44 = vsel %vm1544_vm3, %v2228_v22, 0.0  ;;  %v2239_v60 = vsel %vm1544_vm3, %v2227_v7, 0.0 }
 0x30c   :  { %1823 = vadd.xlane.f32.xlu1 %v1822_v61  ;;  %1820 = vadd.xlane.f32.xlu0 %v1819_v38 }
 0x30d   :  { %v5517_v3 = vpop.xlane.xlu1 %2093  ;;  %v5519_v35 = vpop.xlane.xlu0 %2090 }
 0x30e   :  { %7671 = vst [vmem:[#allocation122_spill] sm:$0xff] %v5517_v3  ;;  %7672 = vst [vmem:[#allocation123_spill] sm:$0xff] %v5519_v35  ;;  %v5533_v35 = vpop.f32.mrb[52].mxu1  ;;  %v2230_v3 = vmul.f32 %v5146_v15, %v5146_v15 }
 0x30f   :  { %7673 = vst [vmem:[#allocation124_spill] sm:$0xff] %v5533_v35  ;;  %v5535_v22 = vpop.f32.mrb[53].mxu1 }
 0x310   :  { %2243 = vadd.xlane.f32.xlu1 %v2242_v44  ;;  %2240 = vadd.xlane.f32.xlu0 %v2239_v60  ;;  %7674 = vst [vmem:[#allocation125_spill] sm:$0xff] %v5535_v22  ;;  %v2208_v60 = vsel %vm1544_vm3, %v5146_v15, 0.0 }
 0x311   :  { %v1640_v46 = vpop.xlane.xlu1 %1639  ;;  %v1637_v5 = vpop.xlane.xlu0 %1636 }
 0x312   :  { %v5528_v61 = vadd.f32 %v1640_v46, %v5337_v51  ;;  %v5531_v38 = vadd.f32 %v1637_v5, %v5339_v50  ;;  %v2205_v46 = vsel %vm1544_vm3, %v5156_v57, 0.0  ;;  %v1866_v50 = vmul.f32 %v5135_v14, %v5135_v14 }
 0x313   :  { %v1865_v5 = vmul.f32 %v5141_v25, %v5141_v25  ;;  %v2229_v14 = vmul.f32 %v5156_v57, %v5156_v57 }
 0x314   :  { %1837 = vadd.xlane.f32.xlu1 %v1836_v12  ;;  %1834 = vadd.xlane.f32.xlu0 %v1833_v40  ;;  %v1876_v25 = vsel %vm1544_vm3, %v1866_v50, 0.0  ;;  %v1842_v50 = vsel %vm1544_vm3, %v5179_v34, 0.0 }
 0x315   :  { %v5537_v7 = vpop.xlane.xlu1 %2059  ;;  %v5539_v44 = vpop.xlane.xlu0 %2056 }
 0x316   :  { %7675 = vst [vmem:[#allocation126_spill] sm:$0xff] %v5537_v7  ;;  %7676 = vst [vmem:[#allocation127_spill] sm:$0xff] %v5539_v44  ;;  %v5555_v7 = vpop.f32.mrb[54].mxu1 }
 0x317   :  { %7677 = vst [vmem:[#allocation128_spill] sm:$0xff] %v5555_v7 }
 0x318   :  { %2209 = vadd.xlane.f32.xlu1 %v2208_v60  ;;  %2206 = vadd.xlane.f32.xlu0 %v2205_v46  ;;  %v1873_v60 = vsel %vm1544_vm3, %v1865_v5, 0.0  ;;  %v5563_v46 = vpop.f32.mrb[55].mxu1  ;;  %v1839_v5 = vsel %vm1544_vm3, %v5189_v42, 0.0 }
 0x319   :  { %v1680_v51 = vpop.xlane.xlu1 %1679  ;;  %v1677_v12 = vpop.xlane.xlu0 %1676  ;;  %7678 = vst [vmem:[#allocation129_spill] sm:$0xff] %v5563_v46 }
 0x31a   :  { %v5550_v40 = vadd.f32 %v1680_v51, %v5363_v62  ;;  %v5553_v44 = vadd.f32 %v1677_v12, %v5365_v33  ;;  %v2248_v51 = vsel %vm1544_vm3, %v2230_v3, 0.0  ;;  %v2245_v12 = vsel %vm1544_vm3, %v2229_v14, 0.0 }
 0x31c   :  { %1877 = vadd.xlane.f32.xlu1 %v1876_v25  ;;  %1874 = vadd.xlane.f32.xlu0 %v1873_v60 }
 0x31d   :  { %v5565_v62 = vpop.xlane.xlu1 %2099  ;;  %v5567_v33 = vpop.xlane.xlu0 %2096 }
 0x31e   :  { %7679 = vst [vmem:[#allocation130_spill] sm:$0xff] %v5565_v62  ;;  %7680 = vst [vmem:[#allocation131_spill] sm:$0xff] %v5567_v33  ;;  %v5581_v33 = vpop.f32.mrb[56].mxu1 }
 0x31f   :  { %7681 = vst [vmem:[#allocation132_spill] sm:$0xff] %v5581_v33  ;;  %v5583_v3 = vpop.f32.mrb[57].mxu1 }
 0x320   :  { %2249 = vadd.xlane.f32.xlu1 %v2248_v51  ;;  %2246 = vadd.xlane.f32.xlu0 %v2245_v12  ;;  %7682 = vst [vmem:[#allocation133_spill] sm:$0xff] %v5583_v3  ;;  %v2214_v12 = vsel %vm1544_vm3, %v5194_v19, 0.0  ;;  %v5603_v29 = vpop.f32.mrb[58].mxu1 }
 0x321   :  { %v1694_v15 = vpop.xlane.xlu1 %1693  ;;  %v1691_v57 = vpop.xlane.xlu0 %1690  ;;  %7683 = vst [vmem:[#allocation134_spill] sm:$0xff] %v5603_v29 }
 0x322   :  { %v5576_v25 = vadd.f32 %v1694_v15, %v5386_v53  ;;  %v5579_v60 = vadd.f32 %v1691_v57, %v5389_v48  ;;  %v2211_v15 = vsel %vm1544_vm3, %v5208_v47, 0.0  ;;  %v1868_v57 = vmul.f32 %v5179_v34, %v5179_v34 }
 0x323   :  { %v1867_v53 = vmul.f32 %v5189_v42, %v5189_v42  ;;  %v2231_v34 = vmul.f32 %v5208_v47, %v5208_v47 }
 0x324   :  { %1843 = vadd.xlane.f32.xlu1 %v1842_v50  ;;  %1840 = vadd.xlane.f32.xlu0 %v1839_v5  ;;  %v1882_v42 = vsel %vm1544_vm3, %v1868_v57, 0.0  ;;  %v1848_v57 = vsel %vm1544_vm3, %v5239_v30, 0.0 }
 0x325   :  { %v5585_v14 = vpop.xlane.xlu1 %2065  ;;  %v5587_v51 = vpop.xlane.xlu0 %2062 }
 0x328   :  { %2215 = vadd.xlane.f32.xlu1 %v2214_v12  ;;  %2212 = vadd.xlane.f32.xlu0 %v2211_v15  ;;  %v1879_v12 = vsel %vm1544_vm3, %v1867_v53, 0.0  ;;  %v5611_v15 = vpop.f32.mrb[59].mxu1  ;;  %v1845_v53 = vsel %vm1544_vm3, %v5249_v45, 0.0 }
 0x329   :  { %v1734_v48 = vpop.xlane.xlu1 %1733  ;;  %v1731_v50 = vpop.xlane.xlu0 %1730  ;;  %7684 = vst [vmem:[#allocation135_spill] sm:$0xff] %v5611_v15 }
 0x32a   :  { %v5598_v5 = vadd.f32 %v1734_v48, %v5410_v24  ;;  %v5601_v62 = vadd.f32 %v1731_v50, %v5413_v17  ;;  %v2254_v48 = vsel %vm1544_vm3, %v2232_v39, 0.0  ;;  %v2251_v50 = vsel %vm1544_vm3, %v2231_v34, 0.0 }
 0x32c   :  { %1883 = vadd.xlane.f32.xlu1 %v1882_v42  ;;  %1880 = vadd.xlane.f32.xlu0 %v1879_v12 }
 0x32d   :  { %v5613_v24 = vpop.xlane.xlu1 %2105  ;;  %v5615_v17 = vpop.xlane.xlu0 %2102 }
 0x32e   :  { %7685 = vst [vmem:[#allocation136_spill] sm:$0xff] %v5613_v24  ;;  %7686 = vst [vmem:[#allocation137_spill] sm:$0xff] %v5615_v17  ;;  %v5629_v17 = vpop.f32.mrb[60].mxu1  ;;  %v2298_v24 = vmul.f32 %v5254_v52, %v5254_v52 }
 0x32f   :  { %7687 = vst [vmem:[#allocation138_spill] sm:$0xff] %v5629_v17  ;;  %v5631_v39 = vpop.f32.mrb[61].mxu1 }
 0x330   :  { %2255 = vadd.xlane.f32.xlu1 %v2254_v48  ;;  %2252 = vadd.xlane.f32.xlu0 %v2251_v50  ;;  %7688 = vst [vmem:[#allocation139_spill] sm:$0xff] %v5631_v39  ;;  %v2268_v50 = vsel %vm1544_vm3, %v5254_v52, 0.0 }
 0x331   :  { %v1700_v19 = vpop.xlane.xlu1 %1699  ;;  %v1697_v47 = vpop.xlane.xlu0 %1696 }
 0x332   :  { %v5624_v42 = vadd.f32 %v1700_v19, %v5432_v56  ;;  %v5627_v12 = vadd.f32 %v1697_v47, %v5435_v8  ;;  %v2265_v19 = vsel %vm1544_vm3, %v5268_v13, 0.0  ;;  %v1870_v47 = vmul.f32 %v5239_v30, %v5239_v30 }
 0x333   :  { %v1869_v56 = vmul.f32 %v5249_v45, %v5249_v45  ;;  %v2297_v30 = vmul.f32 %v5268_v13, %v5268_v13 }
 0x334   :  { %1849 = vadd.xlane.f32.xlu1 %v1848_v57  ;;  %1846 = vadd.xlane.f32.xlu0 %v1845_v53  ;;  %v1888_v45 = vsel %vm1544_vm3, %v1870_v47, 0.0  ;;  %v1854_v47 = vsel %vm1544_vm3, %v5291_v37, 0.0 }
 0x335   :  { %v5633_v34 = vpop.xlane.xlu1 %2071  ;;  %v5635_v48 = vpop.xlane.xlu0 %2068 }
 0x336   :  { %7689 = vst [vmem:[#allocation140_spill] sm:$0xff] %v5633_v34  ;;  %7690 = vst [vmem:[#allocation141_spill] sm:$0xff] %v5635_v48  ;;  %v5651_v34 = vpop.f32.mrb[62].mxu1 }
 0x337   :  { %7691 = vst [vmem:[#allocation142_spill] sm:$0xff] %v5651_v34 }
 0x338   :  { %2269 = vadd.xlane.f32.xlu1 %v2268_v50  ;;  %2266 = vadd.xlane.f32.xlu0 %v2265_v19  ;;  %v1885_v50 = vsel %vm1544_vm3, %v1869_v56, 0.0  ;;  %v5659_v19 = vpop.f32.mrb[63].mxu1  ;;  %v1851_v56 = vsel %vm1544_vm3, %v5301_v59, 0.0 }
 0x339   :  { %v1740_v8 = vpop.xlane.xlu1 %1739  ;;  %v1737_v57 = vpop.xlane.xlu0 %1736  ;;  %7692 = vst [vmem:[#allocation143_spill] sm:$0xff] %v5659_v19 }
 0x33a   :  { %v5646_v53 = vadd.f32 %v1740_v8, %v5454_v6  ;;  %v5649_v48 = vadd.f32 %v1737_v57, %v5457_v31  ;;  %v2308_v8 = vsel %vm1544_vm3, %v2298_v24, 0.0  ;;  %v2305_v57 = vsel %vm1544_vm3, %v2297_v30, 0.0 }
 0x33c   :  { %1889 = vadd.xlane.f32.xlu1 %v1888_v45  ;;  %1886 = vadd.xlane.f32.xlu0 %v1885_v50 }
 0x33d   :  { %v5661_v6 = vpop.xlane.xlu1 %2111  ;;  %v5663_v31 = vpop.xlane.xlu0 %2108 }
 0x33e   :  { %7693 = vst [vmem:[#allocation144_spill] sm:$0xff] %v5661_v6  ;;  %7694 = vst [vmem:[#allocation145_spill] sm:$0xff] %v5663_v31  ;;  %v5677_v31 = vpop.f32.mrb[64].mxu1  ;;  %v2300_v6 = vmul.f32 %v5303_v41, %v5303_v41 }
 0x33f   :  { %7695 = vst [vmem:[#allocation146_spill] sm:$0xff] %v5677_v31  ;;  %v5679_v24 = vpop.f32.mrb[65].mxu1 }
 0x340   :  { %2309 = vadd.xlane.f32.xlu1 %v2308_v8  ;;  %2306 = vadd.xlane.f32.xlu0 %v2305_v57  ;;  %7696 = vst [vmem:[#allocation147_spill] sm:$0xff] %v5679_v24  ;;  %v2274_v57 = vsel %vm1544_vm3, %v5303_v41, 0.0 }
 0x341   :  { %v1706_v52 = vpop.xlane.xlu1 %1705  ;;  %v1703_v13 = vpop.xlane.xlu0 %1702 }
 0x342   :  { %v5672_v45 = vadd.f32 %v1706_v52, %v5480_v10  ;;  %v5675_v50 = vadd.f32 %v1703_v13, %v5483_v26  ;;  %v2271_v52 = vsel %vm1544_vm3, %v5313_v16, 0.0  ;;  %v1872_v13 = vmul.f32 %v5291_v37, %v5291_v37 }
 0x343   :  { %v1871_v10 = vmul.f32 %v5301_v59, %v5301_v59  ;;  %v2299_v37 = vmul.f32 %v5313_v16, %v5313_v16 }
 0x344   :  { %1855 = vadd.xlane.f32.xlu1 %v1854_v47  ;;  %1852 = vadd.xlane.f32.xlu0 %v1851_v56  ;;  %v1894_v59 = vsel %vm1544_vm3, %v1872_v13, 0.0  ;;  %v1908_v13 = vsel %vm1544_vm3, %v5335_v32, 0.0 }
 0x345   :  { %v5681_v30 = vpop.xlane.xlu1 %2125  ;;  %v5683_v8 = vpop.xlane.xlu0 %2122 }
 0x346   :  { %7697 = vst [vmem:[#allocation148_spill] sm:$0xff] %v5681_v30  ;;  %7698 = vst [vmem:[#allocation149_spill] sm:$0xff] %v5683_v8  ;;  %v5699_v30 = vpop.f32.mrb[66].mxu1 }
 0x347   :  { %7699 = vst [vmem:[#allocation150_spill] sm:$0xff] %v5699_v30 }
 0x348   :  { %2275 = vadd.xlane.f32.xlu1 %v2274_v57  ;;  %2272 = vadd.xlane.f32.xlu0 %v2271_v52  ;;  %v1891_v57 = vsel %vm1544_vm3, %v1871_v10, 0.0  ;;  %v5707_v52 = vpop.f32.mrb[67].mxu1  ;;  %v1905_v10 = vsel %vm1544_vm3, %v5345_v63, 0.0 }
 0x349   :  { %v1746_v26 = vpop.xlane.xlu1 %1745  ;;  %v1743_v47 = vpop.xlane.xlu0 %1742  ;;  %7700 = vst [vmem:[#allocation151_spill] sm:$0xff] %v5707_v52 }
 0x34a   :  { %v5694_v56 = vadd.f32 %v1746_v26, %v5502_v23  ;;  %v5697_v8 = vadd.f32 %v1743_v47, %v5505_v18  ;;  %v2314_v26 = vsel %vm1544_vm3, %v2300_v6, 0.0  ;;  %v2311_v47 = vsel %vm1544_vm3, %v2299_v37, 0.0 }
 0x34c   :  { %1895 = vadd.xlane.f32.xlu1 %v1894_v59  ;;  %1892 = vadd.xlane.f32.xlu0 %v1891_v57 }
 0x34d   :  { %v5709_v23 = vpop.xlane.xlu1 %2165  ;;  %v5711_v18 = vpop.xlane.xlu0 %2162 }
 0x34e   :  { %7701 = vst [vmem:[#allocation152_spill] sm:$0xff] %v5709_v23  ;;  %7702 = vst [vmem:[#allocation153_spill] sm:$0xff] %v5711_v18  ;;  %v5725_v18 = vpop.f32.mrb[68].mxu1  ;;  %v2302_v23 = vmul.f32 %v5347_v1, %v5347_v1 }
 0x34f   :  { %v5727_v6 = vpop.f32.mrb[69].mxu1 }
 0x350   :  { %2315 = vadd.xlane.f32.xlu1 %v2314_v26  ;;  %2312 = vadd.xlane.f32.xlu0 %v2311_v47  ;;  %7703 = vst [vmem:[#allocation154_spill] sm:$0xff] %v5727_v6  ;;  %v2280_v47 = vsel %vm1544_vm3, %v5347_v1, 0.0 }
 0x351   :  { %v1712_v41 = vpop.xlane.xlu1 %1711  ;;  %v1709_v16 = vpop.xlane.xlu0 %1708 }
 0x352   :  { %v5720_v59 = vadd.f32 %v1712_v41, %v5528_v61  ;;  %v5723_v57 = vadd.f32 %v1709_v16, %v5531_v38  ;;  %v2277_v41 = vsel %vm1544_vm3, %v5357_v20, 0.0  ;;  %v1938_v16 = vmul.f32 %v5335_v32, %v5335_v32 }
 0x353   :  { %v1937_v61 = vmul.f32 %v5345_v63, %v5345_v63  ;;  %v2301_v32 = vmul.f32 %v5357_v20, %v5357_v20 }
 0x354   :  { %1909 = vadd.xlane.f32.xlu1 %v1908_v13  ;;  %1906 = vadd.xlane.f32.xlu0 %v1905_v10  ;;  %v1948_v63 = vsel %vm1544_vm3, %v1938_v16, 0.0  ;;  %v1914_v16 = vsel %vm1544_vm3, %v5379_v49, 0.0 }
 0x355   :  { %v5729_v37 = vpop.xlane.xlu1 %2131  ;;  %v5731_v26 = vpop.xlane.xlu0 %2128 }
 0x356   :  { %7704 = vst [vmem:[#allocation155_spill] sm:$0xff] %v5729_v37  ;;  %7705 = vst [vmem:[#allocation156_spill] sm:$0xff] %v5731_v26  ;;  %v5747_v37 = vpop.f32.mrb[70].mxu1 }
 0x357   :  { %7706 = vst [vmem:[#allocation157_spill] sm:$0xff] %v5747_v37 }
 0x358   :  { %2281 = vadd.xlane.f32.xlu1 %v2280_v47  ;;  %2278 = vadd.xlane.f32.xlu0 %v2277_v41  ;;  %v1945_v47 = vsel %vm1544_vm3, %v1937_v61, 0.0  ;;  %v5755_v41 = vpop.f32.mrb[71].mxu1  ;;  %v1911_v61 = vsel %vm1544_vm3, %v5391_v28, 0.0 }
 0x359   :  { %v1752_v38 = vpop.xlane.xlu1 %1751  ;;  %v1749_v13 = vpop.xlane.xlu0 %1748  ;;  %7707 = vst [vmem:[#allocation158_spill] sm:$0xff] %v5755_v41 }
 0x35a   :  { %v5742_v10 = vadd.f32 %v1752_v38, %v5550_v40  ;;  %v5745_v26 = vadd.f32 %v1749_v13, %v5553_v44  ;;  %v2320_v38 = vsel %vm1544_vm3, %v2302_v23, 0.0  ;;  %v2317_v13 = vsel %vm1544_vm3, %v2301_v32, 0.0 }
 0x35c   :  { %1949 = vadd.xlane.f32.xlu1 %v1948_v63  ;;  %1946 = vadd.xlane.f32.xlu0 %v1945_v47 }
 0x35d   :  { %v5757_v40 = vpop.xlane.xlu1 %2171  ;;  %v5759_v44 = vpop.xlane.xlu0 %2168 }
 0x35e   :  { %7708 = vst [vmem:[#allocation159_spill] sm:$0xff] %v5757_v40  ;;  %7709 = vst [vmem:[#allocation160_spill] sm:$0xff] %v5759_v44  ;;  %v5773_v44 = vpop.f32.mrb[72].mxu1 }
 0x35f   :  { %7710 = vst [vmem:[#allocation161_spill] sm:$0xff] %v5773_v44  ;;  %v5775_v23 = vpop.f32.mrb[73].mxu1  ;;  %v2304_v44 = vmul.f32 %v5393_v11, %v5393_v11 }
 0x360   :  { %2321 = vadd.xlane.f32.xlu1 %v2320_v38  ;;  %2318 = vadd.xlane.f32.xlu0 %v2317_v13  ;;  %7711 = vst [vmem:[#allocation162_spill] sm:$0xff] %v5775_v23  ;;  %v2286_v13 = vsel %vm1544_vm3, %v5393_v11, 0.0  ;;  %v5795_v23 = vpop.f32.mrb[74].mxu1 }
 0x361   :  { %v1766_v1 = vpop.xlane.xlu1 %1765  ;;  %v1763_v20 = vpop.xlane.xlu0 %1762  ;;  %7712 = vst [vmem:[#allocation163_spill] sm:$0xff] %v5795_v23 }
 0x362   :  { %v5768_v63 = vadd.f32 %v1766_v1, %v5576_v25  ;;  %v5771_v47 = vadd.f32 %v1763_v20, %v5579_v60  ;;  %v2283_v1 = vsel %vm1544_vm3, %v5403_v21, 0.0  ;;  %v1940_v20 = vmul.f32 %v5379_v49, %v5379_v49 }
 0x363   :  { %v1939_v25 = vmul.f32 %v5391_v28, %v5391_v28  ;;  %v2303_v49 = vmul.f32 %v5403_v21, %v5403_v21 }
 0x364   :  { %1915 = vadd.xlane.f32.xlu1 %v1914_v16  ;;  %1912 = vadd.xlane.f32.xlu0 %v1911_v61  ;;  %v1954_v28 = vsel %vm1544_vm3, %v1940_v20, 0.0  ;;  %v2340_v20 = vsel %vm1544_vm3, %v5437_v2, 0.0 }
 0x365   :  { %v5777_v32 = vpop.xlane.xlu1 %2137  ;;  %v5779_v38 = vpop.xlane.xlu0 %2134 }
 0x368   :  { %2287 = vadd.xlane.f32.xlu1 %v2286_v13  ;;  %2284 = vadd.xlane.f32.xlu0 %v2283_v1  ;;  %v1951_v13 = vsel %vm1544_vm3, %v1939_v25, 0.0  ;;  %v5803_v1 = vpop.f32.mrb[75].mxu1  ;;  %v2337_v25 = vsel %vm1544_vm3, %v5439_v9, 0.0 }
 0x369   :  { %v1806_v60 = vpop.xlane.xlu1 %1805  ;;  %v1803_v16 = vpop.xlane.xlu0 %1802  ;;  %7713 = vst [vmem:[#allocation164_spill] sm:$0xff] %v5803_v1 }
 0x36a   :  { %v5790_v61 = vadd.f32 %v1806_v60, %v5598_v5  ;;  %v5793_v40 = vadd.f32 %v1803_v16, %v5601_v62  ;;  %v2326_v60 = vsel %vm1544_vm3, %v2304_v44, 0.0  ;;  %v2323_v16 = vsel %vm1544_vm3, %v2303_v49, 0.0 }
 0x36b   :  { %v2370_v49 = vmul.f32 %v5437_v2, %v5437_v2  ;;  %v2369_v44 = vmul.f32 %v5439_v9, %v5439_v9  ;;  %v2346_v2 = vsel %vm1544_vm3, %v5459_v58, 0.0  ;;  %v2343_v9 = vsel %vm1544_vm3, %v5467_v4, 0.0 }
 0x36c   :  { %1955 = vadd.xlane.f32.xlu1 %v1954_v28  ;;  %1952 = vadd.xlane.f32.xlu0 %v1951_v13  ;;  %v5821_v1 = vpop.f32.mrb[76].mxu1 }
 0x36d   :  { %v5805_v5 = vpop.xlane.xlu1 %2177  ;;  %v5807_v62 = vpop.xlane.xlu0 %2174  ;;  %7714 = vst [vmem:[#allocation165_spill] sm:$0xff] %v5821_v1 }
 0x370   :  { %2327 = vadd.xlane.f32.xlu1 %v2326_v60  ;;  %2324 = vadd.xlane.f32.xlu0 %v2323_v16  ;;  %v5827_v60 = vpop.f32.mrb[77].mxu1 }
 0x371   :  { %v1772_v11 = vpop.xlane.xlu1 %1771  ;;  %v1769_v21 = vpop.xlane.xlu0 %1768  ;;  %7715 = vst [vmem:[#allocation166_spill] sm:$0xff] %v5827_v60 }
 0x372   :  { %v5816_v28 = vadd.f32 %v1772_v11, %v5624_v42  ;;  %v5819_v13 = vadd.f32 %v1769_v21, %v5627_v12  ;;  %v2380_v11 = vsel %vm1544_vm3, %v2370_v49, 0.0  ;;  %v2377_v21 = vsel %vm1544_vm3, %v2369_v44, 0.0  ;;  %v5845_v60 = vpop.f32.mrb[78].mxu1 }
 0x373   :  { %7716 = vst [vmem:[#allocation167_spill] sm:$0xff] %v5845_v60  ;;  %v2372_v49 = vmul.f32 %v5459_v58, %v5459_v58  ;;  %v2371_v44 = vmul.f32 %v5467_v4, %v5467_v4  ;;  %v2352_v58 = vsel %vm1544_vm3, %v5485_v54, 0.0  ;;  %v2349_v4 = vsel %vm1544_vm3, %v5487_v43, 0.0 }
 0x374   :  { %2341 = vadd.xlane.f32.xlu1 %v2340_v20  ;;  %2338 = vadd.xlane.f32.xlu0 %v2337_v25 }
 0x375   :  { %v5829_v16 = vpop.xlane.xlu1 %2143  ;;  %v5831_v23 = vpop.xlane.xlu0 %2140 }
 0x378   :  { %2381 = vadd.xlane.f32.xlu1 %v2380_v11  ;;  %2378 = vadd.xlane.f32.xlu0 %v2377_v21  ;;  %v5851_v11 = vpop.f32.mrb[79].mxu1 }
 0x379   :  { %v1812_v42 = vpop.xlane.xlu1 %1811  ;;  %v1809_v12 = vpop.xlane.xlu0 %1808  ;;  %7717 = vst [vmem:[#allocation168_spill] sm:$0xff] %v5851_v11 }
 0x37a   :  { %v5840_v20 = vadd.f32 %v1812_v42, %v5646_v53  ;;  %v5843_v25 = vadd.f32 %v1809_v12, %v5649_v48  ;;  %v2386_v53 = vsel %vm1544_vm3, %v2372_v49, 0.0  ;;  %v2383_v48 = vsel %vm1544_vm3, %v2371_v44, 0.0 }
 0x37b   :  { %v2374_v49 = vmul.f32 %v5485_v54, %v5485_v54  ;;  %v2373_v44 = vmul.f32 %v5487_v43, %v5487_v43  ;;  %v2358_v54 = vsel %vm1544_vm3, %v5507_v55, 0.0  ;;  %v2355_v43 = vsel %vm1544_vm3, %v5515_v0, 0.0 }
 0x37c   :  { %2347 = vadd.xlane.f32.xlu1 %v2346_v2  ;;  %2344 = vadd.xlane.f32.xlu0 %v2343_v9  ;;  %v5869_v11 = vpop.f32.mrb[80].mxu1 }
 0x37d   :  { %v5853_v21 = vpop.xlane.xlu1 %2183  ;;  %v5855_v1 = vpop.xlane.xlu0 %2180  ;;  %7718 = vst [vmem:[#allocation169_spill] sm:$0xff] %v5869_v11 }
 0x380   :  { %2387 = vadd.xlane.f32.xlu1 %v2386_v53  ;;  %2384 = vadd.xlane.f32.xlu0 %v2383_v48  ;;  %v5875_v53 = vpop.f32.mrb[81].mxu1 }
 0x381   :  { %v1778_v42 = vpop.xlane.xlu1 %1777  ;;  %v1775_v12 = vpop.xlane.xlu0 %1774  ;;  %7719 = vst [vmem:[#allocation170_spill] sm:$0xff] %v5875_v53 }
 0x382   :  { %v5864_v2 = vadd.f32 %v1778_v42, %v5672_v45  ;;  %v5867_v9 = vadd.f32 %v1775_v12, %v5675_v50  ;;  %v2392_v45 = vsel %vm1544_vm3, %v2374_v49, 0.0  ;;  %v2389_v50 = vsel %vm1544_vm3, %v2373_v44, 0.0  ;;  %v5893_v53 = vpop.f32.mrb[82].mxu1 }
 0x383   :  { %7720 = vst [vmem:[#allocation171_spill] sm:$0xff] %v5893_v53  ;;  %v2376_v49 = vmul.f32 %v5507_v55, %v5507_v55  ;;  %v2375_v44 = vmul.f32 %v5515_v0, %v5515_v0  ;;  %v2412_v55 = vsel %vm1544_vm3, %v5533_v35, 0.0  ;;  %v2409_v0 = vsel %vm1544_vm3, %v5535_v22, 0.0 }
 0x384   :  { %2353 = vadd.xlane.f32.xlu1 %v2352_v58  ;;  %2350 = vadd.xlane.f32.xlu0 %v2349_v4 }
 0x385   :  { %v5877_v48 = vpop.xlane.xlu1 %2197  ;;  %v5879_v60 = vpop.xlane.xlu0 %2194 }
 0x388   :  { %2393 = vadd.xlane.f32.xlu1 %v2392_v45  ;;  %2390 = vadd.xlane.f32.xlu0 %v2389_v50  ;;  %v5899_v45 = vpop.f32.mrb[83].mxu1 }
 0x389   :  { %v1818_v42 = vpop.xlane.xlu1 %1817  ;;  %v1815_v12 = vpop.xlane.xlu0 %1814  ;;  %7721 = vst [vmem:[#allocation172_spill] sm:$0xff] %v5899_v45 }
 0x38a   :  { %v5888_v58 = vadd.f32 %v1818_v42, %v5694_v56  ;;  %v5891_v4 = vadd.f32 %v1815_v12, %v5697_v8  ;;  %v2398_v56 = vsel %vm1544_vm3, %v2376_v49, 0.0  ;;  %v2395_v8 = vsel %vm1544_vm3, %v2375_v44, 0.0 }
 0x38b   :  { %v2442_v49 = vmul.f32 %v5533_v35, %v5533_v35  ;;  %v2441_v44 = vmul.f32 %v5535_v22, %v5535_v22  ;;  %v2415_v22 = vsel %vm1544_vm3, %v5563_v46, 0.0 }
 0x38c   :  { %2359 = vadd.xlane.f32.xlu1 %v2358_v54  ;;  %2356 = vadd.xlane.f32.xlu0 %v2355_v43 }
 0x38d   :  { %v5901_v50 = vpop.xlane.xlu1 %2237  ;;  %v5903_v11 = vpop.xlane.xlu0 %2234  ;;  %v2452_v45 = vsel %vm1544_vm3, %v2442_v49, 0.0  ;;  %v2444_v49 = vmul.f32 %v5555_v7, %v5555_v7 }
 0x38f   :  { %v2458_v35 = vsel %vm1544_vm3, %v2444_v49, 0.0  ;;  %v2446_v49 = vmul.f32 %v5581_v33, %v5581_v33 }
 0x390   :  { %2399 = vadd.xlane.f32.xlu1 %v2398_v56  ;;  %2396 = vadd.xlane.f32.xlu0 %v2395_v8 }
 0x391   :  { %v1784_v42 = vpop.xlane.xlu1 %1783  ;;  %v1781_v12 = vpop.xlane.xlu0 %1780 }
 0x392   :  { %v5912_v54 = vadd.f32 %v1784_v42, %v5720_v59  ;;  %v5915_v43 = vadd.f32 %v1781_v12, %v5723_v57  ;;  %v2449_v59 = vsel %vm1544_vm3, %v2441_v44, 0.0  ;;  %v2418_v12 = vsel %vm1544_vm3, %v5555_v7, 0.0 }
 0x393   :  { %v2421_v7 = vsel %vm1544_vm3, %v5583_v3, 0.0 }
 0x394   :  { %2413 = vadd.xlane.f32.xlu1 %v2412_v55  ;;  %2410 = vadd.xlane.f32.xlu0 %v2409_v0 }
 0x395   :  { %v5921_v56 = vpop.xlane.xlu1 %2203  ;;  %v5923_v8 = vpop.xlane.xlu0 %2200 }
 0x398   :  { %2453 = vadd.xlane.f32.xlu1 %v2452_v45  ;;  %2450 = vadd.xlane.f32.xlu0 %v2449_v59  ;;  %v2443_v45 = vmul.f32 %v5563_v46, %v5563_v46  ;;  %v2464_v46 = vsel %vm1544_vm3, %v2446_v49, 0.0  ;;  %v2448_v49 = vmul.f32 %v5603_v29, %v5603_v29 }
 0x399   :  { %v1824_v57 = vpop.xlane.xlu1 %1823  ;;  %v1821_v42 = vpop.xlane.xlu0 %1820 }
 0x39a   :  { %v5932_v55 = vadd.f32 %v1824_v57, %v5742_v10  ;;  %v5935_v0 = vadd.f32 %v1821_v42, %v5745_v26  ;;  %v2455_v10 = vsel %vm1544_vm3, %v2443_v45, 0.0  ;;  %v2424_v42 = vsel %vm1544_vm3, %v5581_v33, 0.0 }
 0x39b   :  { %v2427_v33 = vsel %vm1544_vm3, %v5611_v15, 0.0 }
 0x39c   :  { %2419 = vadd.xlane.f32.xlu1 %v2418_v12  ;;  %2416 = vadd.xlane.f32.xlu0 %v2415_v22 }
 0x39d   :  { %v5941_v44 = vpop.xlane.xlu1 %2243  ;;  %v5943_v59 = vpop.xlane.xlu0 %2240 }
 0x39e   :  { %7722 = vst [vmem:[#allocation173_spill] sm:$0xff] %v5943_v59  ;;  %v7723_v59 = vld [vmem:[#allocation103_spill] sm:$0xff] }
 0x3a0   :  { %2459 = vadd.xlane.f32.xlu1 %v2458_v35  ;;  %2456 = vadd.xlane.f32.xlu0 %v2455_v10  ;;  %v2445_v35 = vmul.f32 %v5583_v3, %v5583_v3  ;;  %v2470_v3 = vsel %vm1544_vm3, %v2448_v49, 0.0  ;;  %v2514_v49 = vmul.f32 %v5629_v17, %v5629_v17 }
 0x3a1   :  { %v1838_v26 = vpop.xlane.xlu1 %1837  ;;  %v1835_v57 = vpop.xlane.xlu0 %1834 }
 0x3a2   :  { %v5952_v22 = vadd.f32 %v1838_v26, %v5768_v63  ;;  %v5955_v12 = vadd.f32 %v1835_v57, %v5771_v47  ;;  %v2461_v63 = vsel %vm1544_vm3, %v2445_v35, 0.0  ;;  %v2430_v57 = vsel %vm1544_vm3, %v5603_v29, 0.0 }
 0x3a3   :  { %v2481_v29 = vsel %vm1544_vm3, %v5631_v39, 0.0 }
 0x3a4   :  { %2425 = vadd.xlane.f32.xlu1 %v2424_v42  ;;  %2422 = vadd.xlane.f32.xlu0 %v2421_v7 }
 0x3a5   :  { %v5961_v45 = vpop.xlane.xlu1 %2209  ;;  %v5963_v10 = vpop.xlane.xlu0 %2206 }
 0x3a8   :  { %2465 = vadd.xlane.f32.xlu1 %v2464_v46  ;;  %2462 = vadd.xlane.f32.xlu0 %v2461_v63  ;;  %v2447_v46 = vmul.f32 %v5611_v15, %v5611_v15  ;;  %v2524_v15 = vsel %vm1544_vm3, %v2514_v49, 0.0  ;;  %v2516_v49 = vmul.f32 %v5651_v34, %v5651_v34 }
 0x3a9   :  { %v1878_v47 = vpop.xlane.xlu1 %1877  ;;  %v1875_v26 = vpop.xlane.xlu0 %1874 }
 0x3aa   :  { %v5972_v7 = vadd.f32 %v1878_v47, %v5790_v61  ;;  %v5975_v42 = vadd.f32 %v1875_v26, %v5793_v40  ;;  %v2467_v61 = vsel %vm1544_vm3, %v2447_v46, 0.0  ;;  %v2484_v26 = vsel %vm1544_vm3, %v5629_v17, 0.0 }
 0x3ab   :  { %v2530_v17 = vsel %vm1544_vm3, %v2516_v49, 0.0  ;;  %v2517_v49 = vmul.f32 %v5679_v24, %v5679_v24 }
 0x3ac   :  { %2431 = vadd.xlane.f32.xlu1 %v2430_v57  ;;  %2428 = vadd.xlane.f32.xlu0 %v2427_v33 }
 0x3ad   :  { %v5981_v35 = vpop.xlane.xlu1 %2249  ;;  %v5983_v63 = vpop.xlane.xlu0 %2246 }
 0x3b0   :  { %2471 = vadd.xlane.f32.xlu1 %v2470_v3  ;;  %2468 = vadd.xlane.f32.xlu0 %v2467_v61  ;;  %v2513_v3 = vmul.f32 %v5631_v39, %v5631_v39  ;;  %v2487_v39 = vsel %vm1544_vm3, %v5659_v19, 0.0 }
 0x3b1   :  { %v1844_v40 = vpop.xlane.xlu1 %1843  ;;  %v1841_v47 = vpop.xlane.xlu0 %1840 }
 0x3b2   :  { %v5992_v33 = vadd.f32 %v1844_v40, %v5816_v28  ;;  %v5995_v57 = vadd.f32 %v1841_v47, %v5819_v13  ;;  %v2521_v28 = vsel %vm1544_vm3, %v2513_v3, 0.0  ;;  %v2490_v47 = vsel %vm1544_vm3, %v5651_v34, 0.0 }
 0x3b3   :  { %v2493_v34 = vsel %vm1544_vm3, %v5679_v24, 0.0 }
 0x3b4   :  { %2485 = vadd.xlane.f32.xlu1 %v2484_v26  ;;  %2482 = vadd.xlane.f32.xlu0 %v2481_v29 }
 0x3b5   :  { %v6001_v46 = vpop.xlane.xlu1 %2215  ;;  %v6003_v61 = vpop.xlane.xlu0 %2212 }
 0x3b8   :  { %2525 = vadd.xlane.f32.xlu1 %v2524_v15  ;;  %2522 = vadd.xlane.f32.xlu0 %v2521_v28  ;;  %v2515_v15 = vmul.f32 %v5659_v19, %v5659_v19  ;;  %v2518_v19 = vmul.f32 %v5677_v31, %v5677_v31 }
 0x3b9   :  { %v1884_v13 = vpop.xlane.xlu1 %1883  ;;  %v1881_v40 = vpop.xlane.xlu0 %1880 }
 0x3ba   :  { %v6012_v29 = vadd.f32 %v1884_v13, %v5840_v20  ;;  %v6015_v26 = vadd.f32 %v1881_v40, %v5843_v25  ;;  %v2527_v20 = vsel %vm1544_vm3, %v2515_v15, 0.0  ;;  %v2496_v40 = vsel %vm1544_vm3, %v5677_v31, 0.0 }
 0x3bb   :  { %v2533_v31 = vsel %vm1544_vm3, %v2517_v49, 0.0 }
 0x3bc   :  { %2491 = vadd.xlane.f32.xlu1 %v2490_v47  ;;  %2488 = vadd.xlane.f32.xlu0 %v2487_v39 }
 0x3bd   :  { %v6021_v3 = vpop.xlane.xlu1 %2255  ;;  %v6023_v28 = vpop.xlane.xlu0 %2252 }
 0x3c0   :  { %2531 = vadd.xlane.f32.xlu1 %v2530_v17  ;;  %2528 = vadd.xlane.f32.xlu0 %v2527_v20 }
 0x3c1   :  { %v1850_v25 = vpop.xlane.xlu1 %1849  ;;  %v1847_v13 = vpop.xlane.xlu0 %1846 }
 0x3c2   :  { %v1862_v39 = vadd.f32 %v1850_v25, %v5864_v2  ;;  %v1861_v47 = vadd.f32 %v1847_v13, %v5867_v9  ;;  %v7724_v25 = vld [vmem:[#allocation104_spill] sm:$0xff]  ;;  %v2536_v13 = vsel %vm1544_vm3, %v2518_v19, 0.0 }
 0x3c4   :  { %v1934_v17 = vadd.f32 %v5181_v36, %v1862_v39  ;;  %v1933_v15 = vadd.f32 %v5199_v27, %v1861_v47  ;;  %2497 = vadd.xlane.f32.xlu1 %v2496_v40  ;;  %2494 = vadd.xlane.f32.xlu0 %v2493_v34  ;;  %v2502_v39 = vsel %vm1544_vm3, %v5699_v30, 0.0 }
 0x3c5   :  { %v6039_v20 = vpop.xlane.xlu1 %2269  ;;  %v6041_v53 = vpop.xlane.xlu0 %2266 }
 0x3c6   :  { %v2006_v2 = vadd.f32 %v7723_v59, %v1934_v17  ;;  %v2005_v9 = vadd.f32 %v7724_v25, %v1933_v15  ;;  %v2499_v59 = vsel %vm1544_vm3, %v5707_v52, 0.0  ;;  %v7725_v17 = vld [vmem:[#allocation75_spill] sm:$0xff] }
 0x3c8   :  { %2537 = vadd.xlane.f32.xlu1 %v2536_v13  ;;  %2534 = vadd.xlane.f32.xlu0 %v2533_v31  ;;  %v2078_v36 = vadd.f32 %v5585_v14, %v2006_v2  ;;  %v2077_v27 = vadd.f32 %v5587_v51, %v2005_v9  ;;  %v2520_v14 = vmul.f32 %v5699_v30, %v5699_v30  ;;  %v7726_v2 = vld [vmem:[#allocation74_spill] sm:$0xff] }
 0x3c9   :  { %v1890_v40 = vpop.xlane.xlu1 %1889  ;;  %v1887_v34 = vpop.xlane.xlu0 %1886  ;;  %v2519_v51 = vmul.f32 %v5707_v52, %v5707_v52  ;;  %v7727_v9 = vld [vmem:[#allocation106_spill] sm:$0xff] }
 0x3ca   :  { %v1902_v47 = vadd.f32 %v1890_v40, %v5888_v58  ;;  %v1901_v19 = vadd.f32 %v1887_v34, %v5891_v4  ;;  %v2150_v49 = vadd.f32 %v5777_v32, %v2078_v36  ;;  %v2149_v31 = vadd.f32 %v5779_v38, %v2077_v27  ;;  %v7728_v36 = vld [vmem:[#allocation107_spill] sm:$0xff] }
 0x3cb   :  { %v2542_v40 = vsel %vm1544_vm3, %v2520_v14, 0.0  ;;  %v2539_v34 = vsel %vm1544_vm3, %v2519_v51, 0.0 }
 0x3cc   :  { %v1974_v15 = vadd.f32 %v7725_v17, %v1902_v47  ;;  %v1973_v25 = vadd.f32 %v7726_v2, %v1901_v19  ;;  %2503 = vadd.xlane.f32.xlu1 %v2502_v39  ;;  %2500 = vadd.xlane.f32.xlu0 %v2499_v59  ;;  %v6064_v58 = vadd.f32 %v5961_v45, %v2150_v49  ;;  %v7729_v39 = vld [vmem:[#allocation136_spill] sm:$0xff]  ;;  %v7730_v59 = vld [vmem:[#allocation137_spill] sm:$0xff] }
 0x3cd   :  { %v6066_v4 = vpop.xlane.xlu1 %2309  ;;  %v6068_v32 = vpop.xlane.xlu0 %2306  ;;  %v6071_v38 = vadd.f32 %v5963_v10, %v2149_v31  ;;  %v2556_v10 = vsel %vm1544_vm3, %v5725_v18, 0.0  ;;  %v2553_v31 = vsel %vm1544_vm3, %v5727_v6, 0.0  ;;  %v2586_v2 = vmul.f32 %v5725_v18, %v5725_v18 }
 0x3ce   :  { %v2046_v13 = vadd.f32 %v7727_v9, %v1974_v15  ;;  %v2045_v27 = vadd.f32 %v7728_v36, %v1973_v25  ;;  %v2585_v25 = vmul.f32 %v5727_v6, %v5727_v6  ;;  %v7731_v9 = vld [vmem:[#allocation79_spill] sm:$0xff]  ;;  %v7732_v36 = vld [vmem:[#allocation80_spill] sm:$0xff] }
 0x3d0   :  { %2543 = vadd.xlane.f32.xlu1 %v2542_v40  ;;  %2540 = vadd.xlane.f32.xlu0 %v2539_v34  ;;  %v2118_v45 = vadd.f32 %v7729_v39, %v2046_v13  ;;  %v2117_v47 = vadd.f32 %v7730_v59, %v2045_v27  ;;  %v7733_v40 = vld [vmem:[#allocation110_spill] sm:$0xff]  ;;  %v7734_v39 = vld [vmem:[#allocation111_spill] sm:$0xff]  ;;  %v2596_v59 = vsel %vm1544_vm3, %v2586_v2, 0.0 }
 0x3d1   :  { %v1856_v19 = vpop.xlane.xlu1 %1855  ;;  %v1853_v49 = vpop.xlane.xlu0 %1852 }
 0x3d2   :  { %v1864_v17 = vadd.f32 %v1856_v19, %v5912_v54  ;;  %v1863_v14 = vadd.f32 %v1853_v49, %v5915_v43  ;;  %v2190_v51 = vadd.f32 %v5805_v5, %v2118_v45  ;;  %v2189_v15 = vadd.f32 %v5807_v62, %v2117_v47  ;;  %v7735_v19 = vld [vmem:[#allocation140_spill] sm:$0xff]  ;;  %v7736_v49 = vld [vmem:[#allocation141_spill] sm:$0xff] }
 0x3d3   :  { %v2593_v47 = vsel %vm1544_vm3, %v2585_v25, 0.0 }
 0x3d4   :  { %v1936_v13 = vadd.f32 %v7731_v9, %v1864_v17  ;;  %v1935_v27 = vadd.f32 %v7732_v36, %v1863_v14  ;;  %2557 = vadd.xlane.f32.xlu1 %v2556_v10  ;;  %2554 = vadd.xlane.f32.xlu0 %v2553_v31  ;;  %v6094_v54 = vadd.f32 %v5981_v35, %v2190_v51  ;;  %v2559_v14 = vsel %vm1544_vm3, %v5755_v41, 0.0  ;;  %v7737_v36 = vld [vmem:[#allocation82_spill] sm:$0xff] }
 0x3d5   :  { %v6096_v43 = vpop.xlane.xlu1 %2275  ;;  %v6098_v5 = vpop.xlane.xlu0 %2272  ;;  %v6101_v62 = vadd.f32 %v5983_v63, %v2189_v15  ;;  %v2562_v63 = vsel %vm1544_vm3, %v5747_v37, 0.0  ;;  %v2588_v9 = vmul.f32 %v5747_v37, %v5747_v37 }
 0x3d6   :  { %v2008_v34 = vadd.f32 %v7733_v40, %v1936_v13  ;;  %v2007_v45 = vadd.f32 %v7734_v39, %v1935_v27  ;;  %v2587_v13 = vmul.f32 %v5755_v41, %v5755_v41  ;;  %v7738_v40 = vld [vmem:[#allocation83_spill] sm:$0xff]  ;;  %v7739_v39 = vld [vmem:[#allocation114_spill] sm:$0xff] }
 0x3d8   :  { %2597 = vadd.xlane.f32.xlu1 %v2596_v59  ;;  %2594 = vadd.xlane.f32.xlu0 %v2593_v47  ;;  %v2080_v35 = vadd.f32 %v7735_v19, %v2008_v34  ;;  %v2079_v10 = vadd.f32 %v7736_v49, %v2007_v45  ;;  %v7740_v59 = vld [vmem:[#allocation115_spill] sm:$0xff]  ;;  %v2602_v19 = vsel %vm1544_vm3, %v2588_v9, 0.0  ;;  %v7741_v49 = vld [vmem:[#allocation144_spill] sm:$0xff] }
 0x3d9   :  { %v1896_v31 = vpop.xlane.xlu1 %1895  ;;  %v1893_v17 = vpop.xlane.xlu0 %1892 }
 0x3da   :  { %v1904_v51 = vadd.f32 %v1896_v31, %v5932_v55  ;;  %v1903_v15 = vadd.f32 %v1893_v17, %v5935_v0  ;;  %v2152_v2 = vadd.f32 %v5829_v16, %v2080_v35  ;;  %v2151_v25 = vadd.f32 %v5831_v23, %v2079_v10  ;;  %v7742_v10 = vld [vmem:[#allocation145_spill] sm:$0xff] }
 0x3db   :  { %v2599_v35 = vsel %vm1544_vm3, %v2587_v13, 0.0 }
 0x3dc   :  { %v1976_v27 = vadd.f32 %v7737_v36, %v1904_v51  ;;  %v1975_v34 = vadd.f32 %v7738_v40, %v1903_v15  ;;  %2563 = vadd.xlane.f32.xlu1 %v2562_v63  ;;  %2560 = vadd.xlane.f32.xlu0 %v2559_v14  ;;  %v6124_v55 = vadd.f32 %v6001_v46, %v2152_v2  ;;  %v7743_v14 = vld [vmem:[#allocation161_spill] sm:$0xff]  ;;  %v7744_v51 = vld [vmem:[#allocation162_spill] sm:$0xff]  ;;  %v7745_v40 = vld [vmem:[#allocation87_spill] sm:$0xff] }
 0x3dd   :  { %v6126_v0 = vpop.xlane.xlu1 %2315  ;;  %v6128_v16 = vpop.xlane.xlu0 %2312  ;;  %v6131_v23 = vadd.f32 %v6003_v61, %v2151_v25  ;;  %v2568_v61 = vsel %vm1544_vm3, %v7743_v14, 0.0  ;;  %v2565_v15 = vsel %vm1544_vm3, %v7744_v51, 0.0  ;;  %v2590_v36 = vmul.f32 %v7743_v14, %v7743_v14 }
 0x3de   :  { %v2048_v45 = vadd.f32 %v7739_v39, %v1976_v27  ;;  %v2047_v47 = vadd.f32 %v7740_v59, %v1975_v34  ;;  %v2589_v27 = vmul.f32 %v7744_v51, %v7744_v51  ;;  %v7746_v39 = vld [vmem:[#allocation88_spill] sm:$0xff]  ;;  %v7747_v59 = vld [vmem:[#allocation118_spill] sm:$0xff] }
 0x3e0   :  { %2603 = vadd.xlane.f32.xlu1 %v2602_v19  ;;  %2600 = vadd.xlane.f32.xlu0 %v2599_v35  ;;  %v2120_v46 = vadd.f32 %v7741_v49, %v2048_v45  ;;  %v2119_v31 = vadd.f32 %v7742_v10, %v2047_v47  ;;  %v7748_v19 = vld [vmem:[#allocation119_spill] sm:$0xff]  ;;  %v2608_v49 = vsel %vm1544_vm3, %v2590_v36, 0.0  ;;  %v7749_v10 = vld [vmem:[#allocation148_spill] sm:$0xff] }
 0x3e1   :  { %v1910_v17 = vpop.xlane.xlu1 %1909  ;;  %v1907_v63 = vpop.xlane.xlu0 %1906 }
 0x3e2   :  { %v1930_v2 = vadd.f32 %v1910_v17, %v5952_v22  ;;  %v1929_v25 = vadd.f32 %v1907_v63, %v5955_v12  ;;  %v2192_v9 = vadd.f32 %v5853_v21, %v2120_v46  ;;  %v2191_v13 = vadd.f32 %v5855_v1, %v2119_v31  ;;  %v7750_v31 = vld [vmem:[#allocation149_spill] sm:$0xff] }
 0x3e3   :  { %v2605_v46 = vsel %vm1544_vm3, %v2589_v27, 0.0 }
 0x3e4   :  { %v2002_v34 = vadd.f32 %v7745_v40, %v1930_v2  ;;  %v2001_v45 = vadd.f32 %v7746_v39, %v1929_v25  ;;  %2569 = vadd.xlane.f32.xlu1 %v2568_v61  ;;  %2566 = vadd.xlane.f32.xlu0 %v2565_v15  ;;  %v6154_v22 = vadd.f32 %v6021_v3, %v2192_v9  ;;  %v7751_v15 = vld [vmem:[#allocation163_spill] sm:$0xff]  ;;  %v7752_v2 = vld [vmem:[#allocation164_spill] sm:$0xff]  ;;  %v7753_v39 = vld [vmem:[#allocation90_spill] sm:$0xff] }
 0x3e5   :  { %v6156_v12 = vpop.xlane.xlu1 %2281  ;;  %v6158_v21 = vpop.xlane.xlu0 %2278  ;;  %v6161_v1 = vadd.f32 %v6023_v28, %v2191_v13  ;;  %v2574_v28 = vsel %vm1544_vm3, %v7751_v15, 0.0  ;;  %v2571_v25 = vsel %vm1544_vm3, %v7752_v2, 0.0  ;;  %v2592_v40 = vmul.f32 %v7751_v15, %v7751_v15 }
 0x3e6   :  { %v2074_v47 = vadd.f32 %v7747_v59, %v2002_v34  ;;  %v2073_v35 = vadd.f32 %v7748_v19, %v2001_v45  ;;  %v2591_v34 = vmul.f32 %v7752_v2, %v7752_v2  ;;  %v7754_v59 = vld [vmem:[#allocation91_spill] sm:$0xff]  ;;  %v7755_v19 = vld [vmem:[#allocation122_spill] sm:$0xff] }
 0x3e8   :  { %2609 = vadd.xlane.f32.xlu1 %v2608_v49  ;;  %2606 = vadd.xlane.f32.xlu0 %v2605_v46  ;;  %v2146_v3 = vadd.f32 %v7749_v10, %v2074_v47  ;;  %v2145_v17 = vadd.f32 %v7750_v31, %v2073_v35  ;;  %v7756_v49 = vld [vmem:[#allocation123_spill] sm:$0xff]  ;;  %v2614_v10 = vsel %vm1544_vm3, %v2592_v40, 0.0  ;;  %v7757_v31 = vld [vmem:[#allocation152_spill] sm:$0xff] }
 0x3e9   :  { %v1950_v63 = vpop.xlane.xlu1 %1949  ;;  %v1947_v61 = vpop.xlane.xlu0 %1946 }
 0x3ea   :  { %v1970_v9 = vadd.f32 %v1950_v63, %v5972_v7  ;;  %v1969_v13 = vadd.f32 %v1947_v61, %v5975_v42  ;;  %v2218_v36 = vadd.f32 %v5877_v48, %v2146_v3  ;;  %v2217_v27 = vadd.f32 %v5879_v60, %v2145_v17  ;;  %v7758_v17 = vld [vmem:[#allocation153_spill] sm:$0xff] }
 0x3eb   :  { %v2611_v3 = vsel %vm1544_vm3, %v2591_v34, 0.0 }
 0x3ec   :  { %v2042_v45 = vadd.f32 %v7753_v39, %v1970_v9  ;;  %v2041_v47 = vadd.f32 %v7754_v59, %v1969_v13  ;;  %2575 = vadd.xlane.f32.xlu1 %v2574_v28  ;;  %2572 = vadd.xlane.f32.xlu0 %v2571_v25  ;;  %v6184_v7 = vadd.f32 %v6039_v20, %v2218_v36  ;;  %v7759_v25 = vld [vmem:[#allocation165_spill] sm:$0xff]  ;;  %v7760_v9 = vld [vmem:[#allocation166_spill] sm:$0xff]  ;;  %v7761_v59 = vld [vmem:[#allocation95_spill] sm:$0xff] }
 0x3ed   :  { %v6186_v42 = vpop.xlane.xlu1 %2321  ;;  %v6188_v48 = vpop.xlane.xlu0 %2318  ;;  %v6191_v60 = vadd.f32 %v6041_v53, %v2217_v27  ;;  %v2628_v53 = vsel %vm1544_vm3, %v7759_v25, 0.0  ;;  %v2625_v13 = vsel %vm1544_vm3, %v7760_v9, 0.0  ;;  %v2658_v39 = vmul.f32 %v7759_v25, %v7759_v25 }
 0x3ee   :  { %v2114_v35 = vadd.f32 %v7755_v19, %v2042_v45  ;;  %v2113_v46 = vadd.f32 %v7756_v49, %v2041_v47  ;;  %v2657_v45 = vmul.f32 %v7760_v9, %v7760_v9  ;;  %v7762_v19 = vld [vmem:[#allocation96_spill] sm:$0xff] }
 0x3f0   :  { %2615 = vadd.xlane.f32.xlu1 %v2614_v10  ;;  %2612 = vadd.xlane.f32.xlu0 %v2611_v3  ;;  %v2186_v20 = vadd.f32 %v7757_v31, %v2114_v35  ;;  %v2185_v63 = vadd.f32 %v7758_v17, %v2113_v46  ;;  %v7764_v10 = vld [vmem:[#allocation127_spill] sm:$0xff]  ;;  %v2668_v31 = vsel %vm1544_vm3, %v2658_v39, 0.0 }
 0x3f1   :  { %v1916_v61 = vpop.xlane.xlu1 %1915  ;;  %v1913_v28 = vpop.xlane.xlu0 %1912  ;;  %v7765_v17 = vld [vmem:[#allocation155_spill] sm:$0xff] }
 0x3f2   :  { %v1932_v36 = vadd.f32 %v1916_v61, %v5992_v33  ;;  %v1931_v27 = vadd.f32 %v1913_v28, %v5995_v57  ;;  %v2258_v40 = vadd.f32 %v5901_v50, %v2186_v20  ;;  %v2257_v34 = vadd.f32 %v5903_v11, %v2185_v63  ;;  %v7763_v50 = vld [vmem:[#allocation126_spill] sm:$0xff]  ;;  %v7766_v61 = vld [vmem:[#allocation156_spill] sm:$0xff] }
 0x3f3   :  { %v2665_v20 = vsel %vm1544_vm3, %v2657_v45, 0.0 }
 0x3f4   :  { %v2004_v47 = vadd.f32 %v7761_v59, %v1932_v36  ;;  %v2003_v35 = vadd.f32 %v7762_v19, %v1931_v27  ;;  %2629 = vadd.xlane.f32.xlu1 %v2628_v53  ;;  %2626 = vadd.xlane.f32.xlu0 %v2625_v13  ;;  %v2330_v33 = vadd.f32 %v6066_v4, %v2258_v40  ;;  %v7767_v13 = vld [vmem:[#allocation167_spill] sm:$0xff]  ;;  %v7769_v19 = vld [vmem:[#allocation98_spill] sm:$0xff] }
 0x3f5   :  { %v6214_v49 = vpop.xlane.xlu1 %2287  ;;  %v6216_v57 = vpop.xlane.xlu0 %2284  ;;  %v2329_v11 = vadd.f32 %v6068_v32, %v2257_v34  ;;  %v2634_v36 = vsel %vm1544_vm3, %v7767_v13, 0.0  ;;  %v7768_v32 = vld [vmem:[#allocation168_spill] sm:$0xff]  ;;  %v2660_v59 = vmul.f32 %v7767_v13, %v7767_v13 }
 0x3f6   :  { %v2076_v46 = vadd.f32 %v7763_v50, %v2004_v47  ;;  %v2075_v3 = vadd.f32 %v7764_v10, %v2003_v35  ;;  %v2631_v27 = vsel %vm1544_vm3, %v7768_v32, 0.0  ;;  %v2659_v47 = vmul.f32 %v7768_v32, %v7768_v32  ;;  %v7770_v50 = vld [vmem:[#allocation99_spill] sm:$0xff] }
 0x3f8   :  { %2669 = vadd.xlane.f32.xlu1 %v2668_v31  ;;  %2666 = vadd.xlane.f32.xlu0 %v2665_v20  ;;  %v2148_v63 = vadd.f32 %v7765_v17, %v2076_v46  ;;  %v2147_v4 = vadd.f32 %v7766_v61, %v2075_v3  ;;  %v2674_v31 = vsel %vm1544_vm3, %v2660_v59, 0.0  ;;  %v2671_v20 = vsel %vm1544_vm3, %v2659_v47, 0.0  ;;  %v7771_v17 = vld [vmem:[#allocation130_spill] sm:$0xff]  ;;  %v7772_v61 = vld [vmem:[#allocation131_spill] sm:$0xff]  ;;  %v7776_v59 = vld [vmem:[#allocation160_spill] sm:$0xff] }
 0x3f9   :  { %v1956_v28 = vpop.xlane.xlu1 %1955  ;;  %v1953_v53 = vpop.xlane.xlu0 %1952 }
 0x3fa   :  { %v1972_v40 = vadd.f32 %v1956_v28, %v6012_v29  ;;  %v1971_v34 = vadd.f32 %v1953_v53, %v6015_v26  ;;  %v2220_v39 = vadd.f32 %v5921_v56, %v2148_v63  ;;  %v2219_v45 = vadd.f32 %v5923_v8, %v2147_v4  ;;  %v7773_v53 = vld [vmem:[#allocation169_spill] sm:$0xff] }
 0x3fc   :  { %v2044_v35 = vadd.f32 %v7769_v19, %v1972_v40  ;;  %v2043_v46 = vadd.f32 %v7770_v50, %v1971_v34  ;;  %2635 = vadd.xlane.f32.xlu1 %v2634_v36  ;;  %2632 = vadd.xlane.f32.xlu0 %v2631_v27  ;;  %v2292_v29 = vadd.f32 %v6096_v43, %v2220_v39  ;;  %v7775_v39 = vld [vmem:[#allocation159_spill] sm:$0xff] }
 0x3fd   :  { %v2328_v10 = vpop.xlane.xlu1 %2327  ;;  %v2325_v26 = vpop.xlane.xlu0 %2324  ;;  %v2291_v56 = vadd.f32 %v6098_v5, %v2219_v45  ;;  %v2640_v5 = vsel %vm1544_vm3, %v7773_v53, 0.0  ;;  %v2662_v40 = vmul.f32 %v7773_v53, %v7773_v53 }
 0x3fe   :  { %v6242_v8 = vadd.f32 %v2328_v10, %v6154_v22  ;;  %v6245_v3 = vadd.f32 %v2325_v26, %v6161_v1  ;;  %v2116_v63 = vadd.f32 %v7771_v17, %v2044_v35  ;;  %v2115_v4 = vadd.f32 %v7772_v61, %v2043_v46  ;;  %v7774_v22 = vld [vmem:[#allocation170_spill] sm:$0xff]  ;;  %v7777_v26 = vld [vmem:[#allocation173_spill] sm:$0xff]  ;;  %v7778_v61 = vld [vmem:[#allocation171_spill] sm:$0xff] }
 0x3ff   :  { %v2637_v36 = vsel %vm1544_vm3, %v7774_v22, 0.0  ;;  %v2661_v34 = vmul.f32 %v7774_v22, %v7774_v22 }
 0x400   :  { %2675 = vadd.xlane.f32.xlu1 %v2674_v31  ;;  %2672 = vadd.xlane.f32.xlu0 %v2671_v20  ;;  %v2188_v45 = vadd.f32 %v7775_v39, %v2116_v63  ;;  %v2187_v47 = vadd.f32 %v7776_v59, %v2115_v4  ;;  %v2646_v63 = vsel %vm1544_vm3, %v7778_v61, 0.0  ;;  %v7779_v4 = vld [vmem:[#allocation172_spill] sm:$0xff] }
 0x401   :  { %v2342_v43 = vpop.xlane.xlu1 %2341  ;;  %v2339_v28 = vpop.xlane.xlu0 %2338 }
 0x402   :  { %v2362_v1 = vadd.f32 %v2342_v43, %v6184_v7  ;;  %v2361_v27 = vadd.f32 %v2339_v28, %v6191_v60  ;;  %v2680_v7 = vsel %vm1544_vm3, %v2662_v40, 0.0  ;;  %v2677_v60 = vsel %vm1544_vm3, %v2661_v34, 0.0 }
 0x403   :  { %v2260_v10 = vadd.f32 %v5941_v44, %v2188_v45  ;;  %v2259_v31 = vadd.f32 %v7777_v26, %v2187_v47  ;;  %v2643_v43 = vsel %vm1544_vm3, %v7779_v4, 0.0  ;;  %v2664_v28 = vmul.f32 %v7778_v61, %v7778_v61 }
 0x404   :  { %2641 = vadd.xlane.f32.xlu1 %v2640_v5  ;;  %2638 = vadd.xlane.f32.xlu0 %v2637_v36  ;;  %v2663_v5 = vmul.f32 %v7779_v4, %v7779_v4  ;;  %v2293_v47 = vadd.f32 %v6158_v21, %v6071_v38  ;;  %v2295_v38 = vadd.f32 %v6216_v57, %v6131_v23 }
 0x405   :  { %v2382_v19 = vpop.xlane.xlu1 %2381  ;;  %v2379_v35 = vpop.xlane.xlu0 %2378  ;;  %v2332_v44 = vadd.f32 %v6126_v0, %v2260_v10  ;;  %v2331_v36 = vadd.f32 %v6128_v16, %v2259_v31  ;;  %v2686_v59 = vsel %vm1544_vm3, %v2664_v28, 0.0 }
 0x406   :  { %v2402_v50 = vadd.f32 %v2382_v19, %v2330_v33  ;;  %v2401_v46 = vadd.f32 %v2379_v35, %v2329_v11 }
 0x408   :  { %2681 = vadd.xlane.f32.xlu1 %v2680_v7  ;;  %2678 = vadd.xlane.f32.xlu0 %v2677_v60  ;;  %v2334_v7 = vadd.f32 %v6186_v42, %v6094_v54  ;;  %v2333_v60 = vadd.f32 %v6188_v48, %v6101_v62 }
 0x409   :  { %v2348_v20 = vpop.xlane.xlu1 %2347  ;;  %v2345_v17 = vpop.xlane.xlu0 %2344 }
 0x40a   :  { %v2364_v33 = vadd.f32 %v2348_v20, %v2292_v29  ;;  %v2363_v11 = vadd.f32 %v2345_v17, %v2291_v56  ;;  %v2683_v29 = vsel %vm1544_vm3, %v2663_v5, 0.0  ;;  %v2294_v56 = vadd.f32 %v6156_v12, %v6064_v58 }
 0x40b   :  { %v2296_v58 = vadd.f32 %v6214_v49, %v6124_v55 }
 0x40c   :  { %2647 = vadd.xlane.f32.xlu1 %v2646_v63  ;;  %2644 = vadd.xlane.f32.xlu0 %v2643_v43 }
 0x40d   :  { %v2388_v40 = vpop.xlane.xlu1 %2387  ;;  %v2385_v34 = vpop.xlane.xlu0 %2384 }
 0x40e   :  { %v2404_v39 = vadd.f32 %v2388_v40, %v2332_v44  ;;  %v2403_v45 = vadd.f32 %v2385_v34, %v2331_v36 }
 0x410   :  { %2687 = vadd.xlane.f32.xlu1 %v2686_v59  ;;  %2684 = vadd.xlane.f32.xlu0 %v2683_v29 }
 0x411   :  { %v2354_v19 = vpop.xlane.xlu1 %2353  ;;  %v2351_v0 = vpop.xlane.xlu0 %2350 }
 0x412   :  { %v2366_v35 = vadd.f32 %v2354_v19, %v2294_v56  ;;  %v2365_v16 = vadd.f32 %v2351_v0, %v2293_v47 }
 0x415   :  { %v2394_v10 = vpop.xlane.xlu1 %2393  ;;  %v2391_v26 = vpop.xlane.xlu0 %2390 }
 0x416   :  { %v2406_v31 = vadd.f32 %v2394_v10, %v2334_v7  ;;  %v2405_v20 = vadd.f32 %v2391_v26, %v2333_v60 }
 0x419   :  { %v2360_v12 = vpop.xlane.xlu1 %2359  ;;  %v2357_v21 = vpop.xlane.xlu0 %2356 }
 0x41a   :  { %v2368_v17 = vadd.f32 %v2360_v12, %v2296_v58  ;;  %v2367_v63 = vadd.f32 %v2357_v21, %v2295_v38 }
 0x41d   :  { %v2400_v43 = vpop.xlane.xlu1 %2399  ;;  %v2397_v28 = vpop.xlane.xlu0 %2396 }
 0x41e   :  { %v2408_v54 = vadd.f32 %v2400_v43, %v6242_v8  ;;  %v2407_v62 = vadd.f32 %v2397_v28, %v6245_v3 }
 0x421   :  { %v2414_v42 = vpop.xlane.xlu1 %2413  ;;  %v2411_v48 = vpop.xlane.xlu0 %2410 }
 0x422   :  { %v2434_v5 = vadd.f32 %v2414_v42, %v2362_v1  ;;  %v2433_v44 = vadd.f32 %v2411_v48, %v2361_v27 }
 0x425   :  { %v2454_v36 = vpop.xlane.xlu1 %2453  ;;  %v2451_v40 = vpop.xlane.xlu0 %2450 }
 0x426   :  { %v6293_v55 = vadd.f32 %v2454_v36, %v2402_v50  ;;  %v6295_v49 = vadd.f32 %v2451_v40, %v2401_v46 }
 0x429   :  { %v2420_v23 = vpop.xlane.xlu1 %2419  ;;  %v2417_v57 = vpop.xlane.xlu0 %2416 }
 0x42a   :  { %v6297_v34 = vadd.f32 %v2420_v23, %v2364_v33  ;;  %v6299_v59 = vadd.f32 %v2417_v57, %v2363_v11 }
 0x42d   :  { %v2460_v29 = vpop.xlane.xlu1 %2459  ;;  %v2457_v8 = vpop.xlane.xlu0 %2456 }
 0x42e   :  { %v6301_v56 = vadd.f32 %v2460_v29, %v2404_v39  ;;  %v6303_v3 = vadd.f32 %v2457_v8, %v2403_v45 }
 0x431   :  { %v2426_v1 = vpop.xlane.xlu1 %2425  ;;  %v2423_v27 = vpop.xlane.xlu0 %2422 }
 0x432   :  { %v6305_v47 = vadd.f32 %v2426_v1, %v2366_v35  ;;  %v6307_v50 = vadd.f32 %v2423_v27, %v2365_v16 }
 0x435   :  { %v2466_v46 = vpop.xlane.xlu1 %2465  ;;  %v2463_v19 = vpop.xlane.xlu0 %2462 }
 0x436   :  { %v6309_v0 = vadd.f32 %v2466_v46, %v2406_v31  ;;  %v6311_v33 = vadd.f32 %v2463_v19, %v2405_v20 }
 0x439   :  { %v2432_v11 = vpop.xlane.xlu1 %2431  ;;  %v2429_v7 = vpop.xlane.xlu0 %2428 }
 0x43a   :  { %v6313_v60 = vadd.f32 %v2432_v11, %v2368_v17  ;;  %v6315_v39 = vadd.f32 %v2429_v7, %v2367_v63 }
 0x43d   :  { %v2472_v45 = vpop.xlane.xlu1 %2471  ;;  %v2469_v10 = vpop.xlane.xlu0 %2468 }
 0x43e   :  { %v6317_v26 = vadd.f32 %v2472_v45, %v2408_v54  ;;  %v6319_v35 = vadd.f32 %v2469_v10, %v2407_v62 }
 0x441   :  { %v2486_v16 = vpop.xlane.xlu1 %2485  ;;  %v2483_v58 = vpop.xlane.xlu0 %2482 }
 0x442   :  { %v2506_v4 = vadd.f32 %v2486_v16, %v2434_v5  ;;  %v2505_v2 = vadd.f32 %v2483_v58, %v2433_v44 }
 0x445   :  { %v2526_v38 = vpop.xlane.xlu1 %2525  ;;  %v2523_v12 = vpop.xlane.xlu0 %2522 }
 0x446   :  { %v2546_v51 = vadd.f32 %v2526_v38, %v6293_v55  ;;  %v2545_v24 = vadd.f32 %v2523_v12, %v6295_v49 }
 0x449   :  { %v2492_v31 = vpop.xlane.xlu1 %2491  ;;  %v2489_v21 = vpop.xlane.xlu0 %2488 }
 0x44a   :  { %v2508_v25 = vadd.f32 %v2492_v31, %v6297_v34  ;;  %v2507_v5 = vadd.f32 %v2489_v21, %v6299_v59 }
 0x44d   :  { %v2532_v20 = vpop.xlane.xlu1 %2531  ;;  %v2529_v43 = vpop.xlane.xlu0 %2528 }
 0x44e   :  { %v2548_v59 = vadd.f32 %v2532_v20, %v6301_v56 }
 0x451   :  { %v6321_v28 = vpop.xlane.xlu1 %2497  ;;  %v6323_v17 = vpop.xlane.xlu0 %2494 }
 0x455   :  { %v6325_v63 = vpop.xlane.xlu1 %2537  ;;  %v6327_v42 = vpop.xlane.xlu0 %2534 }
 0x459   :  { %v6329_v54 = vpop.xlane.xlu1 %2503  ;;  %v6331_v62 = vpop.xlane.xlu0 %2500 }
 0x45d   :  { %v6333_v48 = vpop.xlane.xlu1 %2543  ;;  %v6335_v36 = vpop.xlane.xlu0 %2540 }
 0x461   :  { %v2558_v40 = vpop.xlane.xlu1 %2557  ;;  %v2555_v23 = vpop.xlane.xlu0 %2554 }
 0x462   :  { %v2578_v52 = vadd.f32 %v2558_v40, %v2506_v4  ;;  %v2577_v53 = vadd.f32 %v2555_v23, %v2505_v2 }
 0x465   :  { %v2598_v57 = vpop.xlane.xlu1 %2597  ;;  %v2595_v29 = vpop.xlane.xlu0 %2594 }
 0x466   :  { %v2618_v32 = vadd.f32 %v2598_v57, %v2546_v51  ;;  %v2617_v41 = vadd.f32 %v2595_v29, %v2545_v24  ;;  %v2510_v57 = vadd.f32 %v6321_v28, %v6305_v47  ;;  %v2509_v29 = vadd.f32 %v6323_v17, %v6307_v50 }
 0x467   :  { %v2550_v50 = vadd.f32 %v6325_v63, %v6309_v0  ;;  %v2549_v17 = vadd.f32 %v6327_v42, %v6311_v33 }
 0x469   :  { %v2564_v8 = vpop.xlane.xlu1 %2563  ;;  %v2561_v1 = vpop.xlane.xlu0 %2560 }
 0x46a   :  { %v2580_v58 = vadd.f32 %v2564_v8, %v2508_v25  ;;  %v2579_v55 = vadd.f32 %v2561_v1, %v2507_v5 }
 0x46d   :  { %v2604_v27 = vpop.xlane.xlu1 %2603  ;;  %v2601_v46 = vpop.xlane.xlu0 %2600 }
 0x46e   :  { %v2620_v12 = vadd.f32 %v2604_v27, %v2548_v59  ;;  %v2737_v59 = vld [vmem:[%s7409_s4] sm:$0xff] }
 0x471   :  { %v2570_v19 = vpop.xlane.xlu1 %2569  ;;  %v2567_v11 = vpop.xlane.xlu0 %2566 }
 0x472   :  { %v2581_v1 = vadd.f32 %v2567_v11, %v2509_v29 }
 0x475   :  { %v6337_v7 = vpop.xlane.xlu1 %2609  ;;  %v6339_v45 = vpop.xlane.xlu0 %2606 }
 0x479   :  { %v6341_v10 = vpop.xlane.xlu1 %2575  ;;  %v6343_v61 = vpop.xlane.xlu0 %2572 }
 0x47d   :  { %v6345_v15 = vpop.xlane.xlu1 %2615  ;;  %v6347_v30 = vpop.xlane.xlu0 %2612 }
 0x481   :  { %v2630_v14 = vpop.xlane.xlu1 %2629  ;;  %v2627_v22 = vpop.xlane.xlu0 %2626 }
 0x482   :  { %v2650_v13 = vadd.f32 %v2630_v14, %v2578_v52  ;;  %v2649_v37 = vadd.f32 %v2627_v22, %v2577_v53 }
 0x484   :  { %v6351_v9 = vmul.f32 0.03125, %v2650_v13  ;;  %v6353_v6 = vmul.f32 0.03125, %v2649_v37 }
 0x485   :  { %v2670_v4 = vpop.xlane.xlu1 %2669  ;;  %v2667_v2 = vpop.xlane.xlu0 %2666 }
 0x486   :  { %v2690_v44 = vadd.f32 %v2670_v4, %v2618_v32  ;;  %v2689_v16 = vadd.f32 %v2667_v2, %v2617_v41  ;;  %v2714_v52 = vmul.f32 %v6351_v9, %v6351_v9  ;;  %v2713_v24 = vmul.f32 %v6353_v6, %v6353_v6 }
 0x487   :  { %v2547_v41 = vadd.f32 %v2529_v43, %v6303_v3  ;;  %v2582_v43 = vadd.f32 %v2570_v19, %v2510_v57 }
 0x488   :  { %v2706_v14 = vmul.f32 0.03125, %v2690_v44  ;;  %v2705_v51 = vmul.f32 0.03125, %v2689_v16  ;;  %v2622_v16 = vadd.f32 %v6337_v7, %v2550_v50  ;;  %v2739_v50 = vld [vmem:[%s7409_s4 + $0x10] sm:$0xff] }
 0x489   :  { %v2636_v37 = vpop.xlane.xlu1 %2635  ;;  %v2633_v13 = vpop.xlane.xlu0 %2632  ;;  %v2619_v31 = vadd.f32 %v2601_v46, %v2547_v41 }
 0x48a   :  { %v2722_v53 = vsub.f32 %v2706_v14, %v2714_v52  ;;  %v2721_v22 = vsub.f32 %v2705_v51, %v2713_v24  ;;  %v2652_v49 = vadd.f32 %v2636_v37, %v2580_v58  ;;  %v2651_v34 = vadd.f32 %v2633_v13, %v2579_v55 }
 0x48b   :  { %v2621_v58 = vadd.f32 %v6339_v45, %v2549_v17  ;;  %v2512_v24 = vadd.f32 %v6329_v54, %v6313_v60  ;;  %v2511_v37 = vadd.f32 %v6331_v62, %v6315_v39 }
 0x48c   :  { %v2730_v25 = vmax.f32 %v2722_v53, 0.0  ;;  %v2729_v32 = vmax.f32 %v2721_v22, 0.0  ;;  %v6363_v38 = vmul.f32 0.03125, %v2652_v49  ;;  %v6365_v21 = vmul.f32 0.03125, %v2651_v34  ;;  %v2738_v49 = vld [vmem:[%s7409_s4 + $0x8] sm:$0xff] }
 0x48d   :  { %v2676_v40 = vpop.xlane.xlu1 %2675  ;;  %v2673_v23 = vpop.xlane.xlu0 %2672  ;;  %v2584_v7 = vadd.f32 %v6341_v10, %v2512_v24  ;;  %v2552_v34 = vadd.f32 %v6333_v48, %v6317_v26  ;;  %v2583_v39 = vadd.f32 %v6343_v61, %v2511_v37 }
 0x48e   :  { %v2746_v8 = vadd.f32 1e-05, %v2730_v25  ;;  %v2745_v56 = vadd.f32 1e-05, %v2729_v32  ;;  %v2692_v20 = vadd.f32 %v2676_v40, %v2620_v12  ;;  %v2691_v3 = vadd.f32 %v2673_v23, %v2619_v31 }
 0x48f   :  { %v2716_v27 = vmul.f32 %v6363_v38, %v6363_v38  ;;  %v2715_v46 = vmul.f32 %v6365_v21, %v6365_v21  ;;  %v2551_v40 = vadd.f32 %v6335_v36, %v6319_v35  ;;  %v2624_v26 = vadd.f32 %v6345_v15, %v2552_v34  ;;  %v2744_v34 = vld [vmem:[%s7409_s4 + $0x38] sm:$0xff] }
 0x490   :  { %4104 = vrsqrt.f32 %v2746_v8  ;;  %v2708_v5 = vmul.f32 0.03125, %v2692_v20  ;;  %v2707_v4 = vmul.f32 0.03125, %v2691_v3 }
 0x491   :  { %4106 = vrsqrt.f32 %v2745_v56  ;;  %v2642_v47 = vpop.xlane.xlu1 %2641  ;;  %v2639_v28 = vpop.xlane.xlu0 %2638  ;;  %v2623_v56 = vadd.f32 %v6347_v30, %v2551_v40 }
 0x492   :  { %v2654_v19 = vadd.f32 %v2642_v47, %v2582_v43  ;;  %v2653_v11 = vadd.f32 %v2639_v28, %v2581_v1  ;;  %v2724_v2 = vsub.f32 %v2708_v5, %v2716_v27  ;;  %v2723_v44 = vsub.f32 %v2707_v4, %v2715_v46 }
 0x494   :  { %v6381_v55 = vmul.f32 0.03125, %v2654_v19  ;;  %v6383_v52 = vmul.f32 0.03125, %v2653_v11  ;;  %v2732_v14 = vmax.f32 %v2724_v2, 0.0  ;;  %v2731_v0 = vmax.f32 %v2723_v44, 0.0 }
 0x495   :  { %v2682_v63 = vpop.xlane.xlu1 %2681  ;;  %v2679_v51 = vpop.xlane.xlu0 %2678 }
 0x496   :  { %v2694_v33 = vadd.f32 %v2682_v63, %v2622_v16  ;;  %v2693_v42 = vadd.f32 %v2679_v51, %v2621_v58  ;;  %v2748_v13 = vadd.f32 1e-05, %v2732_v14  ;;  %v2747_v45 = vadd.f32 1e-05, %v2731_v0  ;;  %v2770_v58 = vld [vmem:[%s7410_s5 + $0x8] sm:$0xff]  ;;  %v2769_v14 = vld [vmem:[%s7410_s5] sm:$0xff] }
 0x497   :  { %v2718_v53 = vmul.f32 %v6381_v55, %v6381_v55  ;;  %v2717_v22 = vmul.f32 %v6383_v52, %v6383_v52 }
 0x498   :  { %v2710_v60 = vmul.f32 0.03125, %v2694_v33  ;;  %v2709_v54 = vmul.f32 0.03125, %v2693_v42  ;;  %4108 = vrsqrt.f32 %v2748_v13  ;;  %v2742_v42 = vld [vmem:[%s7409_s4 + $0x28] sm:$0xff] }
 0x499   :  { %v2648_v62 = vpop.xlane.xlu1 %2647  ;;  %v2645_v10 = vpop.xlane.xlu0 %2644  ;;  %4110 = vrsqrt.f32 %v2747_v45 }
 0x49a   :  { %v4105_v41 = vpop.eup %4104  ;;  %v2726_v25 = vsub.f32 %v2710_v60, %v2718_v53  ;;  %v2725_v32 = vsub.f32 %v2709_v54, %v2717_v22  ;;  %v2656_v12 = vadd.f32 %v2648_v62, %v2584_v7  ;;  %v2655_v48 = vadd.f32 %v2645_v10, %v2583_v39  ;;  %v2741_v7 = vld [vmem:[%s7409_s4 + $0x20] sm:$0xff]  ;;  %v2771_v60 = vld [vmem:[%s7410_s5 + $0x10] sm:$0xff] }
 0x49b   :  { %v4107_v31 = vpop.eup %4106  ;;  %v2762_v61 = vmul.f32 %v4105_v41, %v2738_v49  ;;  %v2743_v62 = vld [vmem:[%s7409_s4 + $0x30] sm:$0xff] }
 0x49c   :  { %v2734_v23 = vmax.f32 %v2726_v25, 0.0  ;;  %v2733_v57 = vmax.f32 %v2725_v32, 0.0  ;;  %v6406_v29 = vmul.f32 0.03125, %v2656_v12  ;;  %v2761_v8 = vmul.f32 %v4107_v31, %v2737_v59  ;;  %v2773_v32 = vld [vmem:[%s7410_s5 + $0x20] sm:$0xff] }
 0x49d   :  { %v6409_v20 = vmul.f32 0.03125, %v2655_v48  ;;  %2800 = vperm.xlu1 %4103, %v2762_v61   ;;  %v2688_v3 = vpop.xlane.xlu1 %2687  ;;  %v2685_v43 = vpop.xlane.xlu0 %2684  ;;  %v2778_v1 = vmul.f32 %v2762_v61, %v6351_v9  ;;  %v2740_v9 = vld [vmem:[%s7409_s4 + $0x18] sm:$0xff]  ;;  %v2775_v48 = vld [vmem:[%s7410_s5 + $0x30] sm:$0xff] }
 0x49e   :  { %v2750_v27 = vadd.f32 1e-05, %v2734_v23  ;;  %v2749_v35 = vadd.f32 1e-05, %v2733_v57  ;;  %v2696_v36 = vadd.f32 %v2688_v3, %v2624_v26  ;;  %2795 = vperm.xlu0 %4102, %v2761_v8   ;;  %v2695_v15 = vadd.f32 %v2685_v43, %v2623_v56  ;;  %v2776_v26 = vld [vmem:[%s7410_s5 + $0x38] sm:$0xff]  ;;  %v7781_v56 = vld [vmem:[#allocation18_spill] sm:$0xff] }
 0x49f   :  { %v2777_v46 = vmul.f32 %v2761_v8, %v6353_v6  ;;  %v2720_v5 = vmul.f32 %v6406_v29, %v6406_v29  ;;  %v2719_v30 = vmul.f32 %v6409_v20, %v6409_v20  ;;  %v2786_v33 = vsub.f32 %v2770_v58, %v2778_v1  ;;  %v7782_v3 = vld [vmem:[#allocation34_spill] sm:$0xff] }
 0x4a0   :  { %4112 = vrsqrt.f32 %v2750_v27  ;;  %v2712_v4 = vmul.f32 0.03125, %v2696_v36  ;;  %v2711_v47 = vmul.f32 0.03125, %v2695_v15  ;;  %v7783_v1 = vld [vmem:[#allocation50_spill] sm:$0xff]  ;;  %v7785_v15 = vld [vmem:[#allocation92_spill] sm:$0xff] }
 0x4a1   :  { %4114 = vrsqrt.f32 %v2749_v35  ;;  %v2785_v37 = vsub.f32 %v2769_v14, %v2777_v46  ;;  %v7784_v35 = vld [vmem:[#allocation66_spill] sm:$0xff] }
 0x4a2   :  { %v2728_v28 = vsub.f32 %v2712_v4, %v2720_v5  ;;  %v4109_v6 = vpop.eup %4108  ;;  %v2727_v17 = vsub.f32 %v2711_v47, %v2719_v30  ;;  %v7786_v5 = vld [vmem:[#allocation11_spill] sm:$0xff] }
 0x4a3   :  { %v4111_v19 = vpop.eup %4110  ;;  %v2764_v2 = vmul.f32 %v4109_v6, %v2740_v9  ;;  %v7787_v30 = vld [vmem:[#allocation27_spill] sm:$0xff]  ;;  %v7789_v6 = vld [vmem:[#allocation60_spill] sm:$0xff] }
 0x4a4   :  { %v2736_v11 = vmax.f32 %v2728_v28, 0.0  ;;  %v2735_v44 = vmax.f32 %v2727_v17, 0.0  ;;  %v2763_v16 = vmul.f32 %v4111_v19, %v2739_v50  ;;  %v7788_v28 = vld [vmem:[#allocation43_spill] sm:$0xff]  ;;  %v7790_v19 = vld [vmem:[#allocation78_spill] sm:$0xff] }
 0x4a5   :  { %2810 = vperm.xlu0 %4102, %v2764_v2   ;;  %v2780_v0 = vmul.f32 %v2764_v2, %v6363_v38  ;;  %v7791_v2 = vld [vmem:[#allocation108_spill] sm:$0xff] }
 0x4a6   :  { %v2752_v24 = vadd.f32 1e-05, %v2736_v11  ;;  %v2751_v63 = vadd.f32 1e-05, %v2735_v44  ;;  %2805 = vperm.xlu1 %4103, %v2763_v16   ;;  %v2779_v51 = vmul.f32 %v2763_v16, %v6365_v21  ;;  %v2772_v21 = vld [vmem:[%s7410_s5 + $0x18] sm:$0xff]  ;;  %v7792_v16 = vld [vmem:[#allocation124_spill] sm:$0xff] }
 0x4a7   :  { %v2788_v49 = vsub.f32 %v2772_v21, %v2780_v0  ;;  %v7799_v21 = vld [vmem:[#allocation67_spill] sm:$0xff] }
 0x4a8   :  { %4116 = vrsqrt.f32 %v2752_v24  ;;  %v2787_v39 = vsub.f32 %v2771_v60, %v2779_v51  ;;  %v7793_v24 = vld [vmem:[#allocation138_spill] sm:$0xff]  ;;  %v7800_v60 = vld [vmem:[#allocation93_spill] sm:$0xff] }
 0x4a9   :  { %4118 = vrsqrt.f32 %v2751_v63  ;;  %2848 = vperm.xlu0 %4102, %v2786_v33   ;;  %v7794_v63 = vld [vmem:[#allocation165_spill] sm:$0xff]  ;;  %v7795_v33 = vld [vmem:[#allocation4_spill] sm:$0xff] }
 0x4aa   :  { %v4113_v13 = vpop.eup %4112  ;;  %2843 = vperm.xlu1 %4103, %v2785_v37   ;;  %v7796_v37 = vld [vmem:[#allocation20_spill] sm:$0xff] }
 0x4ab   :  { %v4115_v45 = vpop.eup %4114  ;;  %v2766_v38 = vmul.f32 %v4113_v13, %v2742_v42  ;;  %v7797_v13 = vld [vmem:[#allocation36_spill] sm:$0xff] }
 0x4ac   :  { %v2765_v53 = vmul.f32 %v4115_v45, %v2741_v7 }
 0x4ad   :  { %v2782_v22 = vmul.f32 %v2766_v38, %v6381_v55  ;;  %2820 = vperm.xlu0 %4102, %v2766_v38   ;;  %v7798_v38 = vld [vmem:[#allocation51_spill] sm:$0xff] }
 0x4ae   :  { %v2781_v54 = vmul.f32 %v2765_v53, %v6383_v52  ;;  %2815 = vperm.xlu1 %4103, %v2765_v53   ;;  %v2774_v52 = vld [vmem:[%s7410_s5 + $0x28] sm:$0xff] }
 0x4af   :  { %v2790_v31 = vsub.f32 %v2774_v52, %v2782_v22 }
 0x4b0   :  { %v2789_v40 = vsub.f32 %v2773_v32, %v2781_v54 }
 0x4b1   :  { %2858 = vperm.xlu0 %4102, %v2788_v49   ;;  %v7801_v49 = vld [vmem:[#allocation13_spill] sm:$0xff] }
 0x4b2   :  { %v4117_v10 = vpop.eup %4116  ;;  %2853 = vperm.xlu1 %4103, %v2787_v39   ;;  %v7802_v39 = vld [vmem:[#allocation29_spill] sm:$0xff] }
 0x4b3   :  { %v4119_v55 = vpop.eup %4118  ;;  %v2768_v59 = vmul.f32 %v4117_v10, %v2744_v34 }
 0x4b4   :  { %v2767_v41 = vmul.f32 %v4119_v55, %v2743_v62  ;;  %v7803_v62 = vld [vmem:[#allocation45_spill] sm:$0xff] }
 0x4b5   :  { %v2784_v25 = vmul.f32 %v2768_v59, %v6406_v29  ;;  %2830 = vperm.xlu0 %4102, %v2768_v59   ;;  %v7780_v29 = vld [vmem:[#allocation2_spill] sm:$0xff]  ;;  %v7804_v55 = vld [vmem:[#allocation61_spill] sm:$0xff] }
 0x4b6   :  { %v2783_v12 = vmul.f32 %v2767_v41, %v6409_v20  ;;  %2825 = vperm.xlu1 %4103, %v2767_v41   ;;  %v7805_v41 = vld [vmem:[#allocation81_spill] sm:$0xff] }
 0x4b7   :  { %v2792_v61 = vsub.f32 %v2776_v26, %v2784_v25  ;;  %v7806_v25 = vld [vmem:[#allocation109_spill] sm:$0xff] }
 0x4b8   :  { %v2791_v23 = vsub.f32 %v2775_v48, %v2783_v12  ;;  %v7807_v12 = vld [vmem:[#allocation125_spill] sm:$0xff]  ;;  %v7809_v48 = vld [vmem:[#allocation154_spill] sm:$0xff] }
 0x4b9   :  { %2868 = vperm.xlu0 %4102, %v2790_v31  }
 0x4ba   :  { %2863 = vperm.xlu1 %4103, %v2789_v40   ;;  %v7808_v40 = vld [vmem:[#allocation139_spill] sm:$0xff] }
 0x4bd   :  { %2878 = vperm.xlu0 %4102, %v2792_v61  }
 0x4be   :  { %2873 = vperm.xlu1 %4103, %v2791_v23   ;;  %v7810_v23 = vld [vmem:[#allocation166_spill] sm:$0xff] }
 0x51c   :  { %v2801_v57 = vpop.permute.xlu1 %2800 }
 0x51d   :  { %v6466_v8 = vmul.f32 %v7780_v29, %v2801_v57  ;;  %v6469_v20 = vmul.f32 %v7781_v56, %v2801_v57  ;;  %v6472_v43 = vmul.f32 %v7782_v3, %v2801_v57  ;;  %v6475_v27 = vmul.f32 %v7783_v1, %v2801_v57  ;;  %v2796_v9 = vpop.permute.xlu0 %2795  ;;  %v7811_v3 = vld [vmem:[#allocation6_spill] sm:$0xff] }
 0x51e   :  { %v6478_v36 = vmul.f32 %v7784_v35, %v2801_v57  ;;  %v6481_v46 = vmul.f32 %v7785_v15, %v2801_v57  ;;  %v6484_v4 = vmul.f32 %v7786_v5, %v2801_v57  ;;  %v6487_v47 = vmul.f32 %v7787_v30, %v2801_v57  ;;  %v7813_v35 = vld [vmem:[#allocation22_spill] sm:$0xff] }
 0x51f   :  { %v6490_v50 = vmul.f32 %v7788_v28, %v2801_v57  ;;  %v6493_v17 = vmul.f32 %v7789_v6, %v2801_v57  ;;  %v6496_v11 = vmul.f32 %v7790_v19, %v2801_v57  ;;  %v6499_v44 = vmul.f32 %v7791_v2, %v2801_v57  ;;  %v7815_v5 = vld [vmem:[#allocation38_spill] sm:$0xff]  ;;  %v7819_v19 = vld [vmem:[#allocation8_spill] sm:$0xff] }
 0x520   :  { %v6502_v58 = vmul.f32 %v7792_v16, %v2801_v57  ;;  %v6505_v14 = vmul.f32 %v7793_v24, %v2801_v57  ;;  %v6508_v0 = vmul.f32 %v5725_v18, %v2801_v57  ;;  %v6511_v51 = vmul.f32 %v7794_v63, %v2801_v57  ;;  %v7817_v28 = vld [vmem:[#allocation54_spill] sm:$0xff]  ;;  %v7820_v16 = vld [vmem:[#allocation24_spill] sm:$0xff] }
 0x521   :  { %v2833_v42 = vmul.f32 %v2796_v9, %v7795_v33  ;;  %v2905_v7 = vmul.f32 %v2796_v9, %v7796_v37  ;;  %v2938_v45 = vmul.f32 %v2796_v9, %v7797_v13  ;;  %v2971_v53 = vmul.f32 %v2796_v9, %v7798_v38  ;;  %v7821_v24 = vld [vmem:[#allocation40_spill] sm:$0xff]  ;;  %v7822_v33 = vld [vmem:[#allocation55_spill] sm:$0xff] }
 0x522   :  { %v3004_v22 = vmul.f32 %v2796_v9, %v7799_v21  ;;  %v3037_v54 = vmul.f32 %v2796_v9, %v7800_v60  ;;  %v3070_v34 = vmul.f32 %v2796_v9, %v7801_v49  ;;  %v3103_v18 = vmul.f32 %v2796_v9, %v7802_v39  ;;  %v7823_v13 = vld [vmem:[#allocation71_spill] sm:$0xff]  ;;  %v7824_v21 = vld [vmem:[#allocation101_spill] sm:$0xff] }
 0x523   :  { %v6522_v10 = vmul.f32 %v2796_v9, %v7803_v62  ;;  %v6525_v59 = vmul.f32 %v2796_v9, %v7804_v55  ;;  %v6528_v52 = vmul.f32 %v2796_v9, %v7805_v41  ;;  %v6531_v32 = vmul.f32 %v2796_v9, %v7806_v25  ;;  %v7825_v49 = vld [vmem:[#allocation17_spill] sm:$0xff] }
 0x524   :  { %v6534_v31 = vmul.f32 %v2796_v9, %v7807_v12  ;;  %v6537_v26 = vmul.f32 %v2796_v9, %v7808_v40  ;;  %v6540_v61 = vmul.f32 %v2796_v9, %v7809_v48  ;;  %v6543_v57 = vmul.f32 %v2796_v9, %v7810_v23  ;;  %v2811_v29 = vpop.permute.xlu0 %2810  ;;  %v7826_v62 = vld [vmem:[#allocation33_spill] sm:$0xff] }
 0x525   :  { %v2806_v56 = vpop.permute.xlu1 %2805  ;;  %v6546_v1 = vmul.f32 %v7811_v3, %v2811_v29  ;;  %v6549_v15 = vmul.f32 %v7813_v35, %v2811_v29  ;;  %v6552_v30 = vmul.f32 %v7815_v5, %v2811_v29  ;;  %v6555_v6 = vmul.f32 %v7817_v28, %v2811_v29  ;;  %v7827_v41 = vld [vmem:[#allocation49_spill] sm:$0xff] }
 0x526   :  { %v6558_v2 = vmul.f32 %v2806_v56, %v7819_v19  ;;  %v6561_v9 = vmul.f32 %v2806_v56, %v7820_v16  ;;  %v6564_v63 = vmul.f32 %v2806_v56, %v7821_v24  ;;  %v6567_v37 = vmul.f32 %v2806_v56, %v7822_v33  ;;  %v7828_v12 = vld [vmem:[#allocation65_spill] sm:$0xff]  ;;  %v7834_v19 = vld [vmem:[#allocation143_spill] sm:$0xff]  ;;  %v7836_v24 = vld [vmem:[#allocation158_spill] sm:$0xff] }
 0x527   :  { %7812 = vst [vmem:[#allocation103_spill] sm:$0xff] %v6546_v1  ;;  %7814 = vst [vmem:[#allocation104_spill] sm:$0xff] %v6549_v15  ;;  %v6570_v38 = vmul.f32 %v2806_v56, %v7823_v13  ;;  %v6573_v60 = vmul.f32 %v2806_v56, %v7824_v21  ;;  %v6576_v39 = vmul.f32 %v2806_v56, %v7825_v49  ;;  %v7829_v48 = vld [vmem:[#allocation89_spill] sm:$0xff]  ;;  %v7838_v13 = vld [vmem:[#allocation168_spill] sm:$0xff] }
 0x528   :  { %7816 = vst [vmem:[#allocation75_spill] sm:$0xff] %v6552_v30  ;;  %7818 = vst [vmem:[#allocation74_spill] sm:$0xff] %v6555_v6  ;;  %v6579_v55 = vmul.f32 %v2806_v56, %v7826_v62  ;;  %v6582_v25 = vmul.f32 %v2806_v56, %v7827_v41  ;;  %v6585_v40 = vmul.f32 %v2806_v56, %v7828_v12  ;;  %v7830_v3 = vld [vmem:[#allocation113_spill] sm:$0xff]  ;;  %v7840_v49 = vld [vmem:[#allocation70_spill] sm:$0xff] }
 0x529   :  { %v6588_v23 = vmul.f32 %v2806_v56, %v7829_v48  ;;  %v6591_v35 = vmul.f32 %v2806_v56, %v7830_v3  ;;  %v7832_v5 = vld [vmem:[#allocation129_spill] sm:$0xff]  ;;  %v6597_v16 = vmul.f32 %v2806_v56, %v7834_v19  ;;  %v6600_v33 = vmul.f32 %v2806_v56, %v7836_v24  ;;  %v7842_v41 = vld [vmem:[#allocation100_spill] sm:$0xff]  ;;  %v7844_v48 = vld [vmem:[#allocation15_spill] sm:$0xff]  ;;  %v2844_v19 = vpop.permute.xlu1 %2843 }
 0x52a   :  { %v6594_v28 = vmul.f32 %v2806_v56, %v7832_v5  ;;  %v6603_v21 = vmul.f32 %v2806_v56, %v7838_v13  ;;  %v6606_v62 = vmul.f32 %v7840_v49, %v2811_v29  ;;  %v6609_v12 = vmul.f32 %v7842_v41, %v2811_v29  ;;  %v7846_v5 = vld [vmem:[#allocation31_spill] sm:$0xff]  ;;  %v7848_v30 = vld [vmem:[#allocation48_spill] sm:$0xff]  ;;  %v7852_v56 = vld [vmem:[#allocation86_spill] sm:$0xff] }
 0x52b   :  { %7831 = vst [vmem:[#allocation106_spill] sm:$0xff] %v6591_v35  ;;  %7835 = vst [vmem:[#allocation136_spill] sm:$0xff] %v6597_v16  ;;  %v6612_v3 = vmul.f32 %v7844_v48, %v2811_v29  ;;  %v6615_v6 = vmul.f32 %v7846_v5, %v2811_v29  ;;  %v6618_v15 = vmul.f32 %v7848_v30, %v2811_v29  ;;  %v7850_v24 = vld [vmem:[#allocation64_spill] sm:$0xff]  ;;  %v7858_v48 = vld [vmem:[#allocation142_spill] sm:$0xff] }
 0x52c   :  { %7833 = vst [vmem:[#allocation107_spill] sm:$0xff] %v6594_v28  ;;  %7837 = vst [vmem:[#allocation137_spill] sm:$0xff] %v6600_v33  ;;  %v6621_v1 = vmul.f32 %v7850_v24, %v2811_v29  ;;  %v6624_v13 = vmul.f32 %v7852_v56, %v2811_v29  ;;  %v7854_v49 = vld [vmem:[#allocation112_spill] sm:$0xff]  ;;  %v7860_v5 = vld [vmem:[#allocation157_spill] sm:$0xff]  ;;  %v2881_v24 = vadd.f32 %v2844_v19, %v2833_v42 }
 0x52d   :  { %7839 = vst [vmem:[#allocation79_spill] sm:$0xff] %v6603_v21  ;;  %7841 = vst [vmem:[#allocation80_spill] sm:$0xff] %v6606_v62  ;;  %v6627_v62 = vmul.f32 %v7854_v49, %v2811_v29  ;;  %v7856_v41 = vld [vmem:[#allocation128_spill] sm:$0xff]  ;;  %v7861_v30 = vld [vmem:[#allocation167_spill] sm:$0xff]  ;;  %v2946_v21 = vadd.f32 %v2938_v45, %v2844_v19  ;;  %v2979_v56 = vadd.f32 %v2971_v53, %v2844_v19 }
 0x52e   :  { %7843 = vst [vmem:[#allocation110_spill] sm:$0xff] %v6609_v12  ;;  %7845 = vst [vmem:[#allocation111_spill] sm:$0xff] %v6612_v3  ;;  %v6630_v12 = vmul.f32 %v7856_v41, %v2811_v29  ;;  %v6633_v3 = vmul.f32 %v7858_v48, %v2811_v29  ;;  %v3045_v33 = vadd.f32 %v3037_v54, %v2844_v19  ;;  %v2889_v16 = vmax.f32 %v2881_v24, 0.0  ;;  %v2816_v24 = vpop.permute.xlu1 %2815 }
 0x52f   :  { %7847 = vst [vmem:[#allocation140_spill] sm:$0xff] %v6615_v6  ;;  %7849 = vst [vmem:[#allocation141_spill] sm:$0xff] %v6618_v15  ;;  %v6636_v6 = vmul.f32 %v7860_v5, %v2811_v29  ;;  %v6639_v15 = vmul.f32 %v7861_v30, %v2811_v29  ;;  %v3078_v49 = vadd.f32 %v3070_v34, %v2844_v19  ;;  %v2987_v28 = vmax.f32 %v2979_v56, 0.0 }
 0x530   :  { %7851 = vst [vmem:[#allocation82_spill] sm:$0xff] %v6621_v1  ;;  %7853 = vst [vmem:[#allocation83_spill] sm:$0xff] %v6624_v13  ;;  %v2913_v1 = vadd.f32 %v2905_v7, %v2844_v19  ;;  %v3012_v13 = vadd.f32 %v3004_v22, %v2844_v19  ;;  %v3144_v42 = vadd.f32 %v6522_v10, %v2844_v19  ;;  %v2849_v10 = vpop.permute.xlu0 %2848 }
 0x531   :  { %7855 = vst [vmem:[#allocation114_spill] sm:$0xff] %v6627_v62  ;;  %7857 = vst [vmem:[#allocation115_spill] sm:$0xff] %v6630_v12  ;;  %v3111_v62 = vadd.f32 %v3103_v18, %v2844_v19  ;;  %v2954_v12 = vmax.f32 %v2946_v21, 0.0  ;;  %v3086_v35 = vmax.f32 %v3078_v49, 0.0  ;;  %v3177_v7 = vadd.f32 %v6525_v59, %v2844_v19 }
 0x532   :  { %7859 = vst [vmem:[#allocation144_spill] sm:$0xff] %v6633_v3  ;;  %v2921_v41 = vmax.f32 %v2913_v1, 0.0  ;;  %v3020_v48 = vmax.f32 %v3012_v13, 0.0  ;;  %v3053_v3 = vmax.f32 %v3045_v33, 0.0  ;;  %2897 = vst.msk [vmem:[%s7411_s6] sm:$0xff] %vm1544_vm3, %v2889_v16  ;;  %v3210_v45 = vadd.f32 %v6528_v52, %v2844_v19 }
 0x533   :  { %v3119_v5 = vmax.f32 %v3111_v62, 0.0  ;;  %3554 = vst.msk [vmem:[%s7411_s6 + $0x80] sm:$0xff] %vm1544_vm3, %v2954_v12  ;;  %3562 = vst.msk [vmem:[%s7411_s6 + $0xc0] sm:$0xff] %vm1544_vm3, %v2987_v28  ;;  %v3243_v53 = vadd.f32 %v6531_v32, %v2844_v19  ;;  %v3276_v22 = vadd.f32 %v6534_v31, %v2844_v19  ;;  %v3309_v54 = vadd.f32 %v6537_v26, %v2844_v19 }
 0x534   :  { %3546 = vst.msk [vmem:[%s7411_s6 + $0x40] sm:$0xff] %vm1544_vm3, %v2921_v41  ;;  %3570 = vst.msk [vmem:[%s7411_s6 + $0x100] sm:$0xff] %vm1544_vm3, %v3020_v48  ;;  %v3342_v34 = vadd.f32 %v6540_v61, %v2844_v19  ;;  %v3375_v18 = vadd.f32 %v6543_v57, %v2844_v19  ;;  %v3152_v59 = vmax.f32 %v3144_v42, 0.0  ;;  %v3185_v52 = vmax.f32 %v3177_v7, 0.0 }
 0x535   :  { %3578 = vst.msk [vmem:[%s7411_s6 + $0x140] sm:$0xff] %vm1544_vm3, %v3053_v3  ;;  %3586 = vst.msk [vmem:[%s7411_s6 + $0x180] sm:$0xff] %vm1544_vm3, %v3086_v35  ;;  %v3218_v32 = vmax.f32 %v3210_v45, 0.0  ;;  %v3251_v29 = vmax.f32 %v3243_v53, 0.0  ;;  %v3284_v1 = vmax.f32 %v3276_v22, 0.0  ;;  %v3317_v35 = vmax.f32 %v3309_v54, 0.0 }
 0x536   :  { %3594 = vst.msk [vmem:[%s7411_s6 + $0x1c0] sm:$0xff] %vm1544_vm3, %v3119_v5  ;;  %v3350_v28 = vmax.f32 %v3342_v34, 0.0  ;;  %v3383_v16 = vmax.f32 %v3375_v18, 0.0  ;;  %3602 = vst.msk [vmem:[%s7411_s6 + $0x200] sm:$0xff] %vm1544_vm3, %v3152_v59  ;;  %v2882_v31 = vadd.f32 %v2849_v10, %v6466_v8  ;;  %v2914_v26 = vadd.f32 %v6469_v20, %v2849_v10  ;;  %v7864_v53 = vld [vmem:[#allocation44_spill] sm:$0xff]  ;;  %v7865_v54 = vld [vmem:[#allocation59_spill] sm:$0xff] }
 0x537   :  { %3610 = vst.msk [vmem:[%s7411_s6 + $0x240] sm:$0xff] %vm1544_vm3, %v3185_v52  ;;  %3618 = vst.msk [vmem:[%s7411_s6 + $0x280] sm:$0xff] %vm1544_vm3, %v3218_v32  ;;  %v2947_v61 = vadd.f32 %v6472_v43, %v2849_v10  ;;  %v2980_v57 = vadd.f32 %v6475_v27, %v2849_v10  ;;  %v3013_v8 = vadd.f32 %v6478_v36, %v2849_v10  ;;  %v7866_v18 = vld [vmem:[#allocation77_spill] sm:$0xff] }
 0x538   :  { %3626 = vst.msk [vmem:[%s7411_s6 + $0x2c0] sm:$0xff] %vm1544_vm3, %v3251_v29  ;;  %3634 = vst.msk [vmem:[%s7411_s6 + $0x300] sm:$0xff] %vm1544_vm3, %v3284_v1  ;;  %v3046_v20 = vadd.f32 %v6481_v46, %v2849_v10  ;;  %v3079_v43 = vadd.f32 %v6484_v4, %v2849_v10  ;;  %v3112_v27 = vadd.f32 %v6487_v47, %v2849_v10  ;;  %v2890_v33 = vmax.f32 %v2882_v31, 0.0  ;;  %v7867_v59 = vld [vmem:[#allocation5_spill] sm:$0xff] }
 0x539   :  { %3642 = vst.msk [vmem:[%s7411_s6 + $0x340] sm:$0xff] %vm1544_vm3, %v3317_v35  ;;  %3650 = vst.msk [vmem:[%s7411_s6 + $0x380] sm:$0xff] %vm1544_vm3, %v3350_v28  ;;  %v2922_v21 = vmax.f32 %v2914_v26, 0.0  ;;  %v2955_v62 = vmax.f32 %v2947_v61, 0.0  ;;  %v2988_v12 = vmax.f32 %v2980_v57, 0.0  ;;  %v3021_v3 = vmax.f32 %v3013_v8, 0.0  ;;  %v2821_v28 = vpop.permute.xlu0 %2820 }
 0x53a   :  { %3658 = vst.msk [vmem:[%s7411_s6 + $0x3c0] sm:$0xff] %vm1544_vm3, %v3383_v16  ;;  %v3054_v19 = vmax.f32 %v3046_v20, 0.0  ;;  %v3087_v13 = vmax.f32 %v3079_v43, 0.0  ;;  %v3120_v30 = vmax.f32 %v3112_v27, 0.0  ;;  %2898 = vst.msk [vmem:[%s7411_s6 + $0x8] sm:$0xff] %vm1544_vm3, %v2890_v33  ;;  %v3145_v36 = vadd.f32 %v6490_v50, %v2849_v10  ;;  %v7868_v32 = vld [vmem:[#allocation21_spill] sm:$0xff] }
 0x53b   :  { %3547 = vst.msk [vmem:[%s7411_s6 + $0x48] sm:$0xff] %vm1544_vm3, %v2922_v21  ;;  %3555 = vst.msk [vmem:[%s7411_s6 + $0x88] sm:$0xff] %vm1544_vm3, %v2955_v62  ;;  %v3178_v46 = vadd.f32 %v6493_v17, %v2849_v10  ;;  %v3211_v4 = vadd.f32 %v6496_v11, %v2849_v10  ;;  %v3244_v47 = vadd.f32 %v6499_v44, %v2849_v10  ;;  %v7869_v1 = vld [vmem:[#allocation37_spill] sm:$0xff]  ;;  %v7875_v21 = vld [vmem:[#allocation147_spill] sm:$0xff] }
 0x53c   :  { %3563 = vst.msk [vmem:[%s7411_s6 + $0xc8] sm:$0xff] %vm1544_vm3, %v2988_v12  ;;  %3571 = vst.msk [vmem:[%s7411_s6 + $0x108] sm:$0xff] %vm1544_vm3, %v3021_v3  ;;  %v3277_v50 = vadd.f32 %v6502_v58, %v2849_v10  ;;  %v3310_v17 = vadd.f32 %v6505_v14, %v2849_v10  ;;  %v3343_v11 = vadd.f32 %v6508_v0, %v2849_v10  ;;  %v3153_v56 = vmax.f32 %v3145_v36, 0.0  ;;  %v7862_v58 = vld [vmem:[#allocation12_spill] sm:$0xff]  ;;  %v7870_v16 = vld [vmem:[#allocation53_spill] sm:$0xff] }
 0x53d   :  { %3579 = vst.msk [vmem:[%s7411_s6 + $0x148] sm:$0xff] %vm1544_vm3, %v3054_v19  ;;  %3587 = vst.msk [vmem:[%s7411_s6 + $0x188] sm:$0xff] %vm1544_vm3, %v3087_v13  ;;  %v3376_v44 = vadd.f32 %v6511_v51, %v2849_v10  ;;  %v3186_v49 = vmax.f32 %v3178_v46, 0.0  ;;  %v3219_v41 = vmax.f32 %v3211_v4, 0.0  ;;  %v3252_v48 = vmax.f32 %v3244_v47, 0.0  ;;  %v7863_v0 = vld [vmem:[#allocation28_spill] sm:$0xff] }
 0x53e   :  { %3595 = vst.msk [vmem:[%s7411_s6 + $0x1c8] sm:$0xff] %vm1544_vm3, %v3120_v30  ;;  %v3285_v5 = vmax.f32 %v3277_v50, 0.0  ;;  %v3318_v42 = vmax.f32 %v3310_v17, 0.0  ;;  %v3351_v7 = vmax.f32 %v3343_v11, 0.0  ;;  %3603 = vst.msk [vmem:[%s7411_s6 + $0x208] sm:$0xff] %vm1544_vm3, %v3153_v56  ;;  %v6778_v14 = vmul.f32 %v2816_v24, %v7862_v58  ;;  %v7871_v26 = vld [vmem:[#allocation69_spill] sm:$0xff] }
 0x53f   :  { %v3384_v45 = vmax.f32 %v3376_v44, 0.0  ;;  %3611 = vst.msk [vmem:[%s7411_s6 + $0x248] sm:$0xff] %vm1544_vm3, %v3186_v49  ;;  %3619 = vst.msk [vmem:[%s7411_s6 + $0x288] sm:$0xff] %vm1544_vm3, %v3219_v41  ;;  %v6781_v51 = vmul.f32 %v2816_v24, %v7863_v0  ;;  %v6784_v22 = vmul.f32 %v2816_v24, %v7864_v53  ;;  %v6787_v34 = vmul.f32 %v2816_v24, %v7865_v54  ;;  %v7872_v57 = vld [vmem:[#allocation97_spill] sm:$0xff]  ;;  %v7876_v12 = vld [vmem:[#allocation162_spill] sm:$0xff] }
 0x540   :  { %3627 = vst.msk [vmem:[%s7411_s6 + $0x2c8] sm:$0xff] %vm1544_vm3, %v3252_v48  ;;  %3635 = vst.msk [vmem:[%s7411_s6 + $0x308] sm:$0xff] %vm1544_vm3, %v3285_v5  ;;  %v6806_v10 = vmul.f32 %v2816_v24, %v7866_v18  ;;  %v6809_v52 = vmul.f32 %v2816_v24, %v7867_v59  ;;  %v6812_v29 = vmul.f32 %v2816_v24, %v7868_v32  ;;  %v7873_v20 = vld [vmem:[#allocation117_spill] sm:$0xff]  ;;  %v7877_v19 = vld [vmem:[#allocation170_spill] sm:$0xff] }
 0x541   :  { %3643 = vst.msk [vmem:[%s7411_s6 + $0x348] sm:$0xff] %vm1544_vm3, %v3318_v42  ;;  %3651 = vst.msk [vmem:[%s7411_s6 + $0x388] sm:$0xff] %vm1544_vm3, %v3351_v7  ;;  %v6815_v35 = vmul.f32 %v2816_v24, %v7869_v1  ;;  %v6818_v31 = vmul.f32 %v2816_v24, %v7870_v16  ;;  %v6821_v61 = vmul.f32 %v2816_v24, %v7871_v26  ;;  %v7874_v27 = vld [vmem:[#allocation133_spill] sm:$0xff]  ;;  %v7878_v30 = vld [vmem:[#allocation10_spill] sm:$0xff]  ;;  %v2854_v7 = vpop.permute.xlu1 %2853 }
 0x542   :  { %3659 = vst.msk [vmem:[%s7411_s6 + $0x3c8] sm:$0xff] %vm1544_vm3, %v3384_v45  ;;  %v6824_v8 = vmul.f32 %v2816_v24, %v7872_v57  ;;  %v6827_v43 = vmul.f32 %v2816_v24, %v7873_v20  ;;  %v6830_v33 = vmul.f32 %v2816_v24, %v7874_v27  ;;  %v6833_v62 = vmul.f32 %v2816_v24, %v7875_v21  ;;  %v7879_v46 = vld [vmem:[#allocation26_spill] sm:$0xff]  ;;  %v7882_v44 = vld [vmem:[#allocation76_spill] sm:$0xff]  ;;  %v7883_v49 = vld [vmem:[#allocation3_spill] sm:$0xff] }
 0x543   :  { %v6836_v3 = vmul.f32 %v2816_v24, %v7876_v12  ;;  %v6839_v13 = vmul.f32 %v2816_v24, %v7877_v19  ;;  %v6842_v36 = vmul.f32 %v7878_v30, %v2821_v28  ;;  %v6845_v4 = vmul.f32 %v7879_v46, %v2821_v28  ;;  %v7880_v47 = vld [vmem:[#allocation42_spill] sm:$0xff]  ;;  %v7884_v24 = vld [vmem:[#allocation19_spill] sm:$0xff]  ;;  %v7886_v45 = vld [vmem:[#allocation52_spill] sm:$0xff] }
 0x544   :  { %v6848_v50 = vmul.f32 %v7880_v47, %v2821_v28  ;;  %v7881_v17 = vld [vmem:[#allocation58_spill] sm:$0xff]  ;;  %v6854_v56 = vmul.f32 %v7882_v44, %v2821_v28  ;;  %v6857_v41 = vmul.f32 %v7883_v49, %v2821_v28  ;;  %v6860_v48 = vmul.f32 %v7884_v24, %v2821_v28  ;;  %v7885_v5 = vld [vmem:[#allocation35_spill] sm:$0xff]  ;;  %v7887_v0 = vld [vmem:[#allocation68_spill] sm:$0xff] }
 0x545   :  { %v6851_v11 = vmul.f32 %v7881_v17, %v2821_v28  ;;  %v6863_v42 = vmul.f32 %v7885_v5, %v2821_v28  ;;  %v6866_v58 = vmul.f32 %v7886_v45, %v2821_v28  ;;  %v6869_v53 = vmul.f32 %v7887_v0, %v2821_v28  ;;  %v7888_v54 = vld [vmem:[#allocation94_spill] sm:$0xff]  ;;  %v7889_v59 = vld [vmem:[#allocation116_spill] sm:$0xff]  ;;  %v7892_v20 = vld [vmem:[#allocation161_spill] sm:$0xff] }
 0x546   :  { %v6872_v18 = vmul.f32 %v7888_v54, %v2821_v28  ;;  %v6875_v32 = vmul.f32 %v7889_v59, %v2821_v28  ;;  %v7890_v1 = vld [vmem:[#allocation132_spill] sm:$0xff]  ;;  %v7891_v26 = vld [vmem:[#allocation146_spill] sm:$0xff]  ;;  %v6884_v27 = vmul.f32 %v7892_v20, %v2821_v28  ;;  %v7893_v21 = vld [vmem:[#allocation169_spill] sm:$0xff]  ;;  %v2883_v19 = vadd.f32 %v2854_v7, %v6558_v2 }
 0x547   :  { %v6878_v16 = vmul.f32 %v7890_v1, %v2821_v28  ;;  %v6881_v57 = vmul.f32 %v7891_v26, %v2821_v28  ;;  %v6887_v12 = vmul.f32 %v7893_v21, %v2821_v28  ;;  %v2915_v30 = vadd.f32 %v6561_v9, %v2854_v7  ;;  %v7897_v1 = vld [vmem:[#allocation137_spill] sm:$0xff]  ;;  %v7898_v20 = vld [vmem:[#allocation79_spill] sm:$0xff] }
 0x548   :  { %v2948_v46 = vadd.f32 %v6564_v63, %v2854_v7  ;;  %v2981_v47 = vadd.f32 %v6567_v37, %v2854_v7  ;;  %v3014_v17 = vadd.f32 %v6570_v38, %v2854_v7  ;;  %v3047_v44 = vadd.f32 %v6573_v60, %v2854_v7  ;;  %v7894_v60 = vld [vmem:[#allocation106_spill] sm:$0xff] }
 0x549   :  { %v3080_v49 = vadd.f32 %v6576_v39, %v2854_v7  ;;  %v3113_v24 = vadd.f32 %v6579_v55, %v2854_v7  ;;  %v2891_v5 = vmax.f32 %v2883_v19, 0.0  ;;  %v2923_v45 = vmax.f32 %v2915_v30, 0.0  ;;  %v7895_v55 = vld [vmem:[#allocation107_spill] sm:$0xff]  ;;  %v2859_v19 = vpop.permute.xlu0 %2858 }
 0x54a   :  { %v2956_v28 = vmax.f32 %v2948_v46, 0.0  ;;  %v2989_v0 = vmax.f32 %v2981_v47, 0.0  ;;  %v3022_v54 = vmax.f32 %v3014_v17, 0.0  ;;  %v3055_v2 = vmax.f32 %v3047_v44, 0.0 }
 0x54b   :  { %v3088_v59 = vmax.f32 %v3080_v49, 0.0  ;;  %v3121_v9 = vmax.f32 %v3113_v24, 0.0  ;;  %2899 = vst.msk [vmem:[%s7411_s6 + $0x10] sm:$0xff] %vm1544_vm3, %v2891_v5  ;;  %3548 = vst.msk [vmem:[%s7411_s6 + $0x50] sm:$0xff] %vm1544_vm3, %v2923_v45  ;;  %v3146_v63 = vadd.f32 %v6582_v25, %v2854_v7  ;;  %v3179_v37 = vadd.f32 %v6585_v40, %v2854_v7  ;;  %v7896_v40 = vld [vmem:[#allocation136_spill] sm:$0xff]  ;;  %v6937_v45 = vpop.permute.xlu1 %2825 }
 0x54c   :  { %3556 = vst.msk [vmem:[%s7411_s6 + $0x90] sm:$0xff] %vm1544_vm3, %v2956_v28  ;;  %3564 = vst.msk [vmem:[%s7411_s6 + $0xd0] sm:$0xff] %vm1544_vm3, %v2989_v0  ;;  %v3212_v38 = vadd.f32 %v6588_v23, %v2854_v7  ;;  %v3245_v39 = vadd.f32 %v7894_v60, %v2854_v7  ;;  %v3278_v25 = vadd.f32 %v7895_v55, %v2854_v7  ;;  %v7900_v0 = vld [vmem:[#allocation104_spill] sm:$0xff]  ;;  %v7904_v60 = vld [vmem:[#allocation110_spill] sm:$0xff] }
 0x54d   :  { %3572 = vst.msk [vmem:[%s7411_s6 + $0x110] sm:$0xff] %vm1544_vm3, %v3022_v54  ;;  %3580 = vst.msk [vmem:[%s7411_s6 + $0x150] sm:$0xff] %vm1544_vm3, %v3055_v2  ;;  %v3311_v23 = vadd.f32 %v7896_v40, %v2854_v7  ;;  %v3344_v26 = vadd.f32 %v7897_v1, %v2854_v7  ;;  %v3377_v21 = vadd.f32 %v7898_v20, %v2854_v7  ;;  %v3154_v30 = vmax.f32 %v3146_v63, 0.0  ;;  %v7899_v7 = vld [vmem:[#allocation103_spill] sm:$0xff]  ;;  %v7906_v40 = vld [vmem:[#allocation140_spill] sm:$0xff] }
 0x54e   :  { %3588 = vst.msk [vmem:[%s7411_s6 + $0x190] sm:$0xff] %vm1544_vm3, %v3088_v59  ;;  %3596 = vst.msk [vmem:[%s7411_s6 + $0x1d0] sm:$0xff] %vm1544_vm3, %v3121_v9  ;;  %v3187_v46 = vmax.f32 %v3179_v37, 0.0  ;;  %v3220_v47 = vmax.f32 %v3212_v38, 0.0  ;;  %v3253_v17 = vmax.f32 %v3245_v39, 0.0  ;;  %v3286_v44 = vmax.f32 %v3278_v25, 0.0 }
 0x54f   :  { %v3319_v49 = vmax.f32 %v3311_v23, 0.0  ;;  %v3352_v24 = vmax.f32 %v3344_v26, 0.0  ;;  %v3385_v5 = vmax.f32 %v3377_v21, 0.0  ;;  %3604 = vst.msk [vmem:[%s7411_s6 + $0x210] sm:$0xff] %vm1544_vm3, %v3154_v30  ;;  %v2884_v28 = vadd.f32 %v2859_v19, %v7899_v7  ;;  %v7901_v2 = vld [vmem:[#allocation75_spill] sm:$0xff]  ;;  %v7902_v9 = vld [vmem:[#allocation74_spill] sm:$0xff] }
 0x550   :  { %3612 = vst.msk [vmem:[%s7411_s6 + $0x250] sm:$0xff] %vm1544_vm3, %v3187_v46  ;;  %3620 = vst.msk [vmem:[%s7411_s6 + $0x290] sm:$0xff] %vm1544_vm3, %v3220_v47  ;;  %v2916_v54 = vadd.f32 %v7900_v0, %v2859_v19  ;;  %v2949_v59 = vadd.f32 %v7901_v2, %v2859_v19  ;;  %v2982_v63 = vadd.f32 %v7902_v9, %v2859_v19  ;;  %v7903_v37 = vld [vmem:[#allocation80_spill] sm:$0xff]  ;;  %v7905_v55 = vld [vmem:[#allocation111_spill] sm:$0xff] }
 0x551   :  { %3628 = vst.msk [vmem:[%s7411_s6 + $0x2d0] sm:$0xff] %vm1544_vm3, %v3253_v17  ;;  %3636 = vst.msk [vmem:[%s7411_s6 + $0x310] sm:$0xff] %vm1544_vm3, %v3286_v44  ;;  %v3015_v38 = vadd.f32 %v7903_v37, %v2859_v19  ;;  %v3048_v39 = vadd.f32 %v7904_v60, %v2859_v19  ;;  %v3081_v25 = vadd.f32 %v7905_v55, %v2859_v19  ;;  %v2892_v1 = vmax.f32 %v2884_v28, 0.0  ;;  %v7907_v44 = vld [vmem:[#allocation141_spill] sm:$0xff]  ;;  %v7909_v7 = vld [vmem:[#allocation83_spill] sm:$0xff]  ;;  %v2864_v60 = vpop.permute.xlu1 %2863 }
 0x552   :  { %3644 = vst.msk [vmem:[%s7411_s6 + $0x350] sm:$0xff] %vm1544_vm3, %v3319_v49  ;;  %3652 = vst.msk [vmem:[%s7411_s6 + $0x390] sm:$0xff] %vm1544_vm3, %v3352_v24  ;;  %v3114_v23 = vadd.f32 %v7906_v40, %v2859_v19  ;;  %v2924_v26 = vmax.f32 %v2916_v54, 0.0  ;;  %v2957_v20 = vmax.f32 %v2949_v59, 0.0  ;;  %v2990_v21 = vmax.f32 %v2982_v63, 0.0  ;;  %v7908_v24 = vld [vmem:[#allocation82_spill] sm:$0xff] }
 0x553   :  { %3660 = vst.msk [vmem:[%s7411_s6 + $0x3d0] sm:$0xff] %vm1544_vm3, %v3385_v5  ;;  %v3023_v30 = vmax.f32 %v3015_v38, 0.0  ;;  %v3056_v46 = vmax.f32 %v3048_v39, 0.0  ;;  %v3089_v47 = vmax.f32 %v3081_v25, 0.0  ;;  %2900 = vst.msk [vmem:[%s7411_s6 + $0x18] sm:$0xff] %vm1544_vm3, %v2892_v1  ;;  %v3147_v49 = vadd.f32 %v7907_v44, %v2859_v19  ;;  %v7910_v0 = vld [vmem:[#allocation114_spill] sm:$0xff] }
 0x554   :  { %v3122_v17 = vmax.f32 %v3114_v23, 0.0  ;;  %3549 = vst.msk [vmem:[%s7411_s6 + $0x58] sm:$0xff] %vm1544_vm3, %v2924_v26  ;;  %3557 = vst.msk [vmem:[%s7411_s6 + $0x98] sm:$0xff] %vm1544_vm3, %v2957_v20  ;;  %v3180_v5 = vadd.f32 %v7908_v24, %v2859_v19  ;;  %v3213_v28 = vadd.f32 %v7909_v7, %v2859_v19  ;;  %v3246_v54 = vadd.f32 %v7910_v0, %v2859_v19  ;;  %v7911_v2 = vld [vmem:[#allocation115_spill] sm:$0xff]  ;;  %v7912_v9 = vld [vmem:[#allocation144_spill] sm:$0xff] }
 0x555   :  { %3565 = vst.msk [vmem:[%s7411_s6 + $0xd8] sm:$0xff] %vm1544_vm3, %v2990_v21  ;;  %3573 = vst.msk [vmem:[%s7411_s6 + $0x118] sm:$0xff] %vm1544_vm3, %v3023_v30  ;;  %v3279_v59 = vadd.f32 %v7911_v2, %v2859_v19  ;;  %v3312_v63 = vadd.f32 %v7912_v9, %v2859_v19  ;;  %v3345_v37 = vadd.f32 %v6636_v6, %v2859_v19  ;;  %v3155_v39 = vmax.f32 %v3147_v49, 0.0  ;;  %v7019_v21 = vpop.permute.xlu0 %2830 }
 0x556   :  { %3581 = vst.msk [vmem:[%s7411_s6 + $0x158] sm:$0xff] %vm1544_vm3, %v3056_v46  ;;  %3589 = vst.msk [vmem:[%s7411_s6 + $0x198] sm:$0xff] %vm1544_vm3, %v3089_v47  ;;  %v3378_v38 = vadd.f32 %v6639_v15, %v2859_v19  ;;  %v3188_v55 = vmax.f32 %v3180_v5, 0.0  ;;  %v3221_v25 = vmax.f32 %v3213_v28, 0.0  ;;  %v3254_v40 = vmax.f32 %v3246_v54, 0.0 }
 0x557   :  { %3597 = vst.msk [vmem:[%s7411_s6 + $0x1d8] sm:$0xff] %vm1544_vm3, %v3122_v17  ;;  %v3287_v23 = vmax.f32 %v3279_v59, 0.0  ;;  %v3320_v1 = vmax.f32 %v3312_v63, 0.0  ;;  %v3353_v26 = vmax.f32 %v3345_v37, 0.0  ;;  %3605 = vst.msk [vmem:[%s7411_s6 + $0x218] sm:$0xff] %vm1544_vm3, %v3155_v39  ;;  %v2885_v15 = vadd.f32 %v2864_v60, %v6778_v14 }
 0x558   :  { %v3386_v20 = vmax.f32 %v3378_v38, 0.0  ;;  %3613 = vst.msk [vmem:[%s7411_s6 + $0x258] sm:$0xff] %vm1544_vm3, %v3188_v55  ;;  %3621 = vst.msk [vmem:[%s7411_s6 + $0x298] sm:$0xff] %vm1544_vm3, %v3221_v25  ;;  %v2917_v6 = vadd.f32 %v6781_v51, %v2864_v60  ;;  %v2950_v19 = vadd.f32 %v6784_v22, %v2864_v60  ;;  %v2983_v30 = vadd.f32 %v6787_v34, %v2864_v60 }
 0x559   :  { %3629 = vst.msk [vmem:[%s7411_s6 + $0x2d8] sm:$0xff] %vm1544_vm3, %v3254_v40  ;;  %3637 = vst.msk [vmem:[%s7411_s6 + $0x318] sm:$0xff] %vm1544_vm3, %v3287_v23  ;;  %v3016_v14 = vadd.f32 %v6806_v10, %v2864_v60  ;;  %v3049_v51 = vadd.f32 %v6809_v52, %v2864_v60  ;;  %v3082_v22 = vadd.f32 %v6812_v29, %v2864_v60  ;;  %v2893_v46 = vmax.f32 %v2885_v15, 0.0  ;;  %v2869_v28 = vpop.permute.xlu0 %2868 }
 0x55a   :  { %3645 = vst.msk [vmem:[%s7411_s6 + $0x358] sm:$0xff] %vm1544_vm3, %v3320_v1  ;;  %3653 = vst.msk [vmem:[%s7411_s6 + $0x398] sm:$0xff] %vm1544_vm3, %v3353_v26  ;;  %v3115_v34 = vadd.f32 %v6815_v35, %v2864_v60  ;;  %v2925_v47 = vmax.f32 %v2917_v6, 0.0  ;;  %v2958_v17 = vmax.f32 %v2950_v19, 0.0  ;;  %v2991_v44 = vmax.f32 %v2983_v30, 0.0 }
 0x55b   :  { %3661 = vst.msk [vmem:[%s7411_s6 + $0x3d8] sm:$0xff] %vm1544_vm3, %v3386_v20  ;;  %v3024_v49 = vmax.f32 %v3016_v14, 0.0  ;;  %v3057_v24 = vmax.f32 %v3049_v51, 0.0  ;;  %v3090_v5 = vmax.f32 %v3082_v22, 0.0  ;;  %2901 = vst.msk [vmem:[%s7411_s6 + $0x20] sm:$0xff] %vm1544_vm3, %v2893_v46  ;;  %v3148_v10 = vadd.f32 %v6818_v31, %v2864_v60 }
 0x55c   :  { %v3123_v7 = vmax.f32 %v3115_v34, 0.0  ;;  %3550 = vst.msk [vmem:[%s7411_s6 + $0x60] sm:$0xff] %vm1544_vm3, %v2925_v47  ;;  %3558 = vst.msk [vmem:[%s7411_s6 + $0xa0] sm:$0xff] %vm1544_vm3, %v2958_v17  ;;  %v3181_v52 = vadd.f32 %v6821_v61, %v2864_v60  ;;  %v3214_v29 = vadd.f32 %v6824_v8, %v2864_v60  ;;  %v3247_v35 = vadd.f32 %v6827_v43, %v2864_v60  ;;  %v7915_v34 = vld [vmem:[#allocation47_spill] sm:$0xff] }
 0x55d   :  { %3566 = vst.msk [vmem:[%s7411_s6 + $0xe0] sm:$0xff] %vm1544_vm3, %v2991_v44  ;;  %3574 = vst.msk [vmem:[%s7411_s6 + $0x120] sm:$0xff] %vm1544_vm3, %v3024_v49  ;;  %v3280_v31 = vadd.f32 %v6830_v33, %v2864_v60  ;;  %v3313_v61 = vadd.f32 %v6833_v62, %v2864_v60  ;;  %v3346_v8 = vadd.f32 %v6836_v3, %v2864_v60  ;;  %v3156_v0 = vmax.f32 %v3148_v10, 0.0  ;;  %v7916_v47 = vld [vmem:[#allocation63_spill] sm:$0xff]  ;;  %v7917_v44 = vld [vmem:[#allocation85_spill] sm:$0xff] }
 0x55e   :  { %3582 = vst.msk [vmem:[%s7411_s6 + $0x160] sm:$0xff] %vm1544_vm3, %v3057_v24  ;;  %3590 = vst.msk [vmem:[%s7411_s6 + $0x1a0] sm:$0xff] %vm1544_vm3, %v3090_v5  ;;  %v3379_v43 = vadd.f32 %v6839_v13, %v2864_v60  ;;  %v3189_v54 = vmax.f32 %v3181_v52, 0.0  ;;  %v3222_v2 = vmax.f32 %v3214_v29, 0.0  ;;  %v3255_v59 = vmax.f32 %v3247_v35, 0.0  ;;  %v7918_v24 = vld [vmem:[#allocation9_spill] sm:$0xff]  ;;  %v2874_v35 = vpop.permute.xlu1 %2873 }
 0x55f   :  { %3598 = vst.msk [vmem:[%s7411_s6 + $0x1e0] sm:$0xff] %vm1544_vm3, %v3123_v7  ;;  %v3288_v9 = vmax.f32 %v3280_v31, 0.0  ;;  %v3321_v63 = vmax.f32 %v3313_v61, 0.0  ;;  %v3354_v37 = vmax.f32 %v3346_v8, 0.0  ;;  %3606 = vst.msk [vmem:[%s7411_s6 + $0x220] sm:$0xff] %vm1544_vm3, %v3156_v0  ;;  %v2886_v33 = vadd.f32 %v2869_v28, %v6842_v36  ;;  %v7919_v7 = vld [vmem:[#allocation25_spill] sm:$0xff] }
 0x560   :  { %v3387_v38 = vmax.f32 %v3379_v43, 0.0  ;;  %3614 = vst.msk [vmem:[%s7411_s6 + $0x260] sm:$0xff] %vm1544_vm3, %v3189_v54  ;;  %3622 = vst.msk [vmem:[%s7411_s6 + $0x2a0] sm:$0xff] %vm1544_vm3, %v3222_v2  ;;  %v2918_v62 = vadd.f32 %v6845_v4, %v2869_v28  ;;  %v2951_v3 = vadd.f32 %v6848_v50, %v2869_v28  ;;  %v2984_v13 = vadd.f32 %v6851_v11, %v2869_v28  ;;  %v7920_v52 = vld [vmem:[#allocation41_spill] sm:$0xff] }
 0x561   :  { %3630 = vst.msk [vmem:[%s7411_s6 + $0x2e0] sm:$0xff] %vm1544_vm3, %v3255_v59  ;;  %3638 = vst.msk [vmem:[%s7411_s6 + $0x320] sm:$0xff] %vm1544_vm3, %v3288_v9  ;;  %v3017_v36 = vadd.f32 %v6854_v56, %v2869_v28  ;;  %v3050_v4 = vadd.f32 %v6857_v41, %v2869_v28  ;;  %v3083_v50 = vadd.f32 %v6860_v48, %v2869_v28  ;;  %v2894_v60 = vmax.f32 %v2886_v33, 0.0  ;;  %v7921_v31 = vld [vmem:[#allocation57_spill] sm:$0xff]  ;;  %v7925_v59 = vld [vmem:[#allocation135_spill] sm:$0xff] }
 0x562   :  { %3646 = vst.msk [vmem:[%s7411_s6 + $0x360] sm:$0xff] %vm1544_vm3, %v3321_v63  ;;  %3654 = vst.msk [vmem:[%s7411_s6 + $0x3a0] sm:$0xff] %vm1544_vm3, %v3354_v37  ;;  %v3116_v11 = vadd.f32 %v6863_v42, %v2869_v28  ;;  %v2926_v39 = vmax.f32 %v2918_v62, 0.0  ;;  %v2959_v55 = vmax.f32 %v2951_v3, 0.0  ;;  %v2992_v25 = vmax.f32 %v2984_v13, 0.0  ;;  %v7922_v8 = vld [vmem:[#allocation73_spill] sm:$0xff] }
 0x563   :  { %3662 = vst.msk [vmem:[%s7411_s6 + $0x3e0] sm:$0xff] %vm1544_vm3, %v3387_v38  ;;  %v3025_v40 = vmax.f32 %v3017_v36, 0.0  ;;  %v3058_v23 = vmax.f32 %v3050_v4, 0.0  ;;  %v3091_v1 = vmax.f32 %v3083_v50, 0.0  ;;  %2902 = vst.msk [vmem:[%s7411_s6 + $0x28] sm:$0xff] %vm1544_vm3, %v2894_v60  ;;  %v3149_v56 = vadd.f32 %v6866_v58, %v2869_v28  ;;  %v7924_v54 = vld [vmem:[#allocation121_spill] sm:$0xff] }
 0x564   :  { %v3124_v26 = vmax.f32 %v3116_v11, 0.0  ;;  %3551 = vst.msk [vmem:[%s7411_s6 + $0x68] sm:$0xff] %vm1544_vm3, %v2926_v39  ;;  %3559 = vst.msk [vmem:[%s7411_s6 + $0xa8] sm:$0xff] %vm1544_vm3, %v2959_v55  ;;  %v3182_v41 = vadd.f32 %v6869_v53, %v2869_v28  ;;  %v3215_v48 = vadd.f32 %v6872_v18, %v2869_v28  ;;  %v3248_v42 = vadd.f32 %v6875_v32, %v2869_v28  ;;  %v7926_v63 = vld [vmem:[#allocation151_spill] sm:$0xff]  ;;  %v7927_v38 = vld [vmem:[#allocation164_spill] sm:$0xff] }
 0x565   :  { %3567 = vst.msk [vmem:[%s7411_s6 + $0xe8] sm:$0xff] %vm1544_vm3, %v2992_v25  ;;  %3575 = vst.msk [vmem:[%s7411_s6 + $0x128] sm:$0xff] %vm1544_vm3, %v3025_v40  ;;  %v3281_v58 = vadd.f32 %v6878_v16, %v2869_v28  ;;  %v3314_v53 = vadd.f32 %v6881_v57, %v2869_v28  ;;  %v3347_v18 = vadd.f32 %v6884_v27, %v2869_v28  ;;  %v3157_v20 = vmax.f32 %v3149_v56, 0.0  ;;  %v7913_v16 = vld [vmem:[#allocation16_spill] sm:$0xff] }
 0x566   :  { %3583 = vst.msk [vmem:[%s7411_s6 + $0x168] sm:$0xff] %vm1544_vm3, %v3058_v23  ;;  %3591 = vst.msk [vmem:[%s7411_s6 + $0x1a8] sm:$0xff] %vm1544_vm3, %v3091_v1  ;;  %v3380_v32 = vadd.f32 %v6887_v12, %v2869_v28  ;;  %v3190_v15 = vmax.f32 %v3182_v41, 0.0  ;;  %v3223_v6 = vmax.f32 %v3215_v48, 0.0  ;;  %v3256_v19 = vmax.f32 %v3248_v42, 0.0  ;;  %v7914_v27 = vld [vmem:[#allocation32_spill] sm:$0xff] }
 0x567   :  { %3599 = vst.msk [vmem:[%s7411_s6 + $0x1e8] sm:$0xff] %vm1544_vm3, %v3124_v26  ;;  %v3289_v30 = vmax.f32 %v3281_v58, 0.0  ;;  %v3322_v14 = vmax.f32 %v3314_v53, 0.0  ;;  %v3355_v51 = vmax.f32 %v3347_v18, 0.0  ;;  %3607 = vst.msk [vmem:[%s7411_s6 + $0x228] sm:$0xff] %vm1544_vm3, %v3157_v20  ;;  %v2839_v57 = vmul.f32 %v6937_v45, %v7913_v16  ;;  %v7923_v28 = vld [vmem:[#allocation105_spill] sm:$0xff] }
 0x568   :  { %v3388_v22 = vmax.f32 %v3380_v32, 0.0  ;;  %3615 = vst.msk [vmem:[%s7411_s6 + $0x268] sm:$0xff] %vm1544_vm3, %v3190_v15  ;;  %3623 = vst.msk [vmem:[%s7411_s6 + $0x2a8] sm:$0xff] %vm1544_vm3, %v3223_v6  ;;  %v2911_v12 = vmul.f32 %v6937_v45, %v7914_v27  ;;  %v2944_v46 = vmul.f32 %v6937_v45, %v7915_v34  ;;  %v2977_v17 = vmul.f32 %v6937_v45, %v7916_v47  ;;  %v7928_v62 = vld [vmem:[#allocation172_spill] sm:$0xff]  ;;  %v7929_v27 = vld [vmem:[#allocation14_spill] sm:$0xff] }
 0x569   :  { %3631 = vst.msk [vmem:[%s7411_s6 + $0x2e8] sm:$0xff] %vm1544_vm3, %v3256_v19  ;;  %3639 = vst.msk [vmem:[%s7411_s6 + $0x328] sm:$0xff] %vm1544_vm3, %v3289_v30  ;;  %v3010_v49 = vmul.f32 %v6937_v45, %v7917_v44  ;;  %v3043_v5 = vmul.f32 %v6937_v45, %v7918_v24  ;;  %v3076_v10 = vmul.f32 %v6937_v45, %v7919_v7  ;;  %v7930_v34 = vld [vmem:[#allocation30_spill] sm:$0xff]  ;;  %v7933_v24 = vld [vmem:[#allocation84_spill] sm:$0xff] }
 0x56a   :  { %3647 = vst.msk [vmem:[%s7411_s6 + $0x368] sm:$0xff] %vm1544_vm3, %v3322_v14  ;;  %3655 = vst.msk [vmem:[%s7411_s6 + $0x3a8] sm:$0xff] %vm1544_vm3, %v3355_v51  ;;  %v3109_v29 = vmul.f32 %v6937_v45, %v7920_v52  ;;  %v3142_v61 = vmul.f32 %v6937_v45, %v7921_v31  ;;  %v3175_v43 = vmul.f32 %v6937_v45, %v7922_v8  ;;  %v7931_v47 = vld [vmem:[#allocation46_spill] sm:$0xff]  ;;  %v7934_v7 = vld [vmem:[#allocation7_spill] sm:$0xff] }
 0x56b   :  { %3663 = vst.msk [vmem:[%s7411_s6 + $0x3e8] sm:$0xff] %vm1544_vm3, %v3388_v22  ;;  %v3208_v0 = vmul.f32 %v6937_v45, %v7923_v28  ;;  %v3241_v2 = vmul.f32 %v6937_v45, %v7924_v54  ;;  %v3274_v9 = vmul.f32 %v6937_v45, %v7925_v59  ;;  %v3307_v37 = vmul.f32 %v6937_v45, %v7926_v63  ;;  %v7932_v44 = vld [vmem:[#allocation62_spill] sm:$0xff]  ;;  %v7935_v52 = vld [vmem:[#allocation23_spill] sm:$0xff]  ;;  %v7937_v8 = vld [vmem:[#allocation56_spill] sm:$0xff] }
 0x56c   :  { %v3340_v33 = vmul.f32 %v6937_v45, %v7927_v38  ;;  %v3373_v3 = vmul.f32 %v6937_v45, %v7928_v62  ;;  %v2887_v13 = vadd.f32 %v2874_v35, %v2839_v57  ;;  %v2919_v36 = vadd.f32 %v2911_v12, %v2874_v35  ;;  %v7938_v28 = vld [vmem:[#allocation72_spill] sm:$0xff]  ;;  %v7939_v54 = vld [vmem:[#allocation102_spill] sm:$0xff]  ;;  %v7943_v62 = vld [vmem:[#allocation163_spill] sm:$0xff] }
 0x56d   :  { %v2952_v4 = vadd.f32 %v2944_v46, %v2874_v35  ;;  %v2985_v50 = vadd.f32 %v2977_v17, %v2874_v35  ;;  %v3018_v11 = vadd.f32 %v3010_v49, %v2874_v35  ;;  %v3051_v60 = vadd.f32 %v3043_v5, %v2874_v35  ;;  %v7940_v59 = vld [vmem:[#allocation120_spill] sm:$0xff]  ;;  %v7941_v63 = vld [vmem:[#allocation134_spill] sm:$0xff] }
 0x56e   :  { %v3084_v39 = vadd.f32 %v3076_v10, %v2874_v35  ;;  %v3117_v55 = vadd.f32 %v3109_v29, %v2874_v35  ;;  %v2895_v25 = vmax.f32 %v2887_v13, 0.0  ;;  %v2927_v40 = vmax.f32 %v2919_v36, 0.0  ;;  %v7942_v38 = vld [vmem:[#allocation150_spill] sm:$0xff]  ;;  %v7944_v13 = vld [vmem:[#allocation171_spill] sm:$0xff] }
 0x56f   :  { %v2960_v23 = vmax.f32 %v2952_v4, 0.0  ;;  %v2993_v1 = vmax.f32 %v2985_v50, 0.0  ;;  %v3026_v26 = vmax.f32 %v3018_v11, 0.0  ;;  %v3059_v56 = vmax.f32 %v3051_v60, 0.0 }
 0x570   :  { %v3092_v41 = vmax.f32 %v3084_v39, 0.0  ;;  %v3125_v48 = vmax.f32 %v3117_v55, 0.0  ;;  %2903 = vst.msk [vmem:[%s7411_s6 + $0x30] sm:$0xff] %vm1544_vm3, %v2895_v25  ;;  %3552 = vst.msk [vmem:[%s7411_s6 + $0x70] sm:$0xff] %vm1544_vm3, %v2927_v40  ;;  %v3150_v45 = vadd.f32 %v3142_v61, %v2874_v35  ;;  %v3183_v42 = vadd.f32 %v3175_v43, %v2874_v35  ;;  %v2879_v61 = vpop.permute.xlu0 %2878 }
 0x571   :  { %3560 = vst.msk [vmem:[%s7411_s6 + $0xb0] sm:$0xff] %vm1544_vm3, %v2960_v23  ;;  %3568 = vst.msk [vmem:[%s7411_s6 + $0xf0] sm:$0xff] %vm1544_vm3, %v2993_v1  ;;  %v3216_v58 = vadd.f32 %v3208_v0, %v2874_v35  ;;  %v3249_v53 = vadd.f32 %v3241_v2, %v2874_v35  ;;  %v3282_v18 = vadd.f32 %v3274_v9, %v2874_v35 }
 0x572   :  { %3576 = vst.msk [vmem:[%s7411_s6 + $0x130] sm:$0xff] %vm1544_vm3, %v3026_v26  ;;  %3584 = vst.msk [vmem:[%s7411_s6 + $0x170] sm:$0xff] %vm1544_vm3, %v3059_v56  ;;  %v3315_v32 = vadd.f32 %v3307_v37, %v2874_v35  ;;  %v3348_v20 = vadd.f32 %v3340_v33, %v2874_v35  ;;  %v3381_v15 = vadd.f32 %v3373_v3, %v2874_v35  ;;  %v3158_v6 = vmax.f32 %v3150_v45, 0.0  ;;  %v7936_v35 = vld [vmem:[#allocation39_spill] sm:$0xff] }
 0x573   :  { %3592 = vst.msk [vmem:[%s7411_s6 + $0x1b0] sm:$0xff] %vm1544_vm3, %v3092_v41  ;;  %3600 = vst.msk [vmem:[%s7411_s6 + $0x1f0] sm:$0xff] %vm1544_vm3, %v3125_v48  ;;  %v3191_v19 = vmax.f32 %v3183_v42, 0.0  ;;  %v3224_v30 = vmax.f32 %v3216_v58, 0.0  ;;  %v3257_v14 = vmax.f32 %v3249_v53, 0.0  ;;  %v3290_v51 = vmax.f32 %v3282_v18, 0.0 }
 0x574   :  { %v3323_v22 = vmax.f32 %v3315_v32, 0.0  ;;  %v3356_v16 = vmax.f32 %v3348_v20, 0.0  ;;  %v3389_v57 = vmax.f32 %v3381_v15, 0.0  ;;  %3608 = vst.msk [vmem:[%s7411_s6 + $0x230] sm:$0xff] %vm1544_vm3, %v3158_v6  ;;  %v2840_v12 = vmul.f32 %v7929_v27, %v7019_v21 }
 0x575   :  { %3616 = vst.msk [vmem:[%s7411_s6 + $0x270] sm:$0xff] %vm1544_vm3, %v3191_v19  ;;  %3624 = vst.msk [vmem:[%s7411_s6 + $0x2b0] sm:$0xff] %vm1544_vm3, %v3224_v30  ;;  %v2912_v46 = vmul.f32 %v7930_v34, %v7019_v21  ;;  %v2945_v17 = vmul.f32 %v7931_v47, %v7019_v21  ;;  %v2978_v49 = vmul.f32 %v7932_v44, %v7019_v21 }
 0x576   :  { %3632 = vst.msk [vmem:[%s7411_s6 + $0x2f0] sm:$0xff] %vm1544_vm3, %v3257_v14  ;;  %3640 = vst.msk [vmem:[%s7411_s6 + $0x330] sm:$0xff] %vm1544_vm3, %v3290_v51  ;;  %v3011_v5 = vmul.f32 %v7933_v24, %v7019_v21  ;;  %v3044_v10 = vmul.f32 %v7934_v7, %v7019_v21  ;;  %v3077_v29 = vmul.f32 %v7935_v52, %v7019_v21 }
 0x577   :  { %3648 = vst.msk [vmem:[%s7411_s6 + $0x370] sm:$0xff] %vm1544_vm3, %v3323_v22  ;;  %3656 = vst.msk [vmem:[%s7411_s6 + $0x3b0] sm:$0xff] %vm1544_vm3, %v3356_v16  ;;  %v3110_v31 = vmul.f32 %v7936_v35, %v7019_v21  ;;  %v3143_v43 = vmul.f32 %v7937_v8, %v7019_v21  ;;  %v3176_v0 = vmul.f32 %v7938_v28, %v7019_v21 }
 0x578   :  { %3664 = vst.msk [vmem:[%s7411_s6 + $0x3f0] sm:$0xff] %vm1544_vm3, %v3389_v57  ;;  %v3209_v2 = vmul.f32 %v7939_v54, %v7019_v21  ;;  %v3242_v9 = vmul.f32 %v7940_v59, %v7019_v21  ;;  %v3275_v37 = vmul.f32 %v7941_v63, %v7019_v21  ;;  %v3308_v33 = vmul.f32 %v7942_v38, %v7019_v21 }
 0x579   :  { %v3341_v3 = vmul.f32 %v7943_v62, %v7019_v21  ;;  %v3374_v36 = vmul.f32 %v7944_v13, %v7019_v21  ;;  %v2888_v4 = vadd.f32 %v2879_v61, %v2840_v12  ;;  %v2920_v50 = vadd.f32 %v2912_v46, %v2879_v61 }
 0x57a   :  { %v2953_v11 = vadd.f32 %v2945_v17, %v2879_v61  ;;  %v2986_v60 = vadd.f32 %v2978_v49, %v2879_v61  ;;  %v3019_v39 = vadd.f32 %v3011_v5, %v2879_v61  ;;  %v3052_v55 = vadd.f32 %v3044_v10, %v2879_v61 }
 0x57b   :  { %v3085_v25 = vadd.f32 %v3077_v29, %v2879_v61  ;;  %v3118_v40 = vadd.f32 %v3110_v31, %v2879_v61  ;;  %v2896_v23 = vmax.f32 %v2888_v4, 0.0  ;;  %v2928_v1 = vmax.f32 %v2920_v50, 0.0 }
 0x57c   :  { %v2961_v26 = vmax.f32 %v2953_v11, 0.0  ;;  %v2994_v56 = vmax.f32 %v2986_v60, 0.0  ;;  %v3027_v41 = vmax.f32 %v3019_v39, 0.0  ;;  %v3060_v48 = vmax.f32 %v3052_v55, 0.0 }
 0x57d   :  { %v3093_v45 = vmax.f32 %v3085_v25, 0.0  ;;  %v3126_v42 = vmax.f32 %v3118_v40, 0.0  ;;  %2904 = vst.msk [vmem:[%s7411_s6 + $0x38] sm:$0xff] %vm1544_vm3, %v2896_v23  ;;  %3553 = vst.msk [vmem:[%s7411_s6 + $0x78] sm:$0xff] %vm1544_vm3, %v2928_v1  ;;  %v3151_v21 = vadd.f32 %v3143_v43, %v2879_v61  ;;  %v3184_v58 = vadd.f32 %v3176_v0, %v2879_v61 }
 0x57e   :  { %3561 = vst.msk [vmem:[%s7411_s6 + $0xb8] sm:$0xff] %vm1544_vm3, %v2961_v26  ;;  %3569 = vst.msk [vmem:[%s7411_s6 + $0xf8] sm:$0xff] %vm1544_vm3, %v2994_v56  ;;  %v3217_v53 = vadd.f32 %v3209_v2, %v2879_v61  ;;  %v3250_v18 = vadd.f32 %v3242_v9, %v2879_v61  ;;  %v3283_v32 = vadd.f32 %v3275_v37, %v2879_v61 }
 0x57f   :  { %3577 = vst.msk [vmem:[%s7411_s6 + $0x138] sm:$0xff] %vm1544_vm3, %v3027_v41  ;;  %3585 = vst.msk [vmem:[%s7411_s6 + $0x178] sm:$0xff] %vm1544_vm3, %v3060_v48  ;;  %v3316_v20 = vadd.f32 %v3308_v33, %v2879_v61  ;;  %v3349_v15 = vadd.f32 %v3341_v3, %v2879_v61  ;;  %v3382_v6 = vadd.f32 %v3374_v36, %v2879_v61  ;;  %v3159_v19 = vmax.f32 %v3151_v21, 0.0 }
 0x580   :  { %3593 = vst.msk [vmem:[%s7411_s6 + $0x1b8] sm:$0xff] %vm1544_vm3, %v3093_v45  ;;  %3601 = vst.msk [vmem:[%s7411_s6 + $0x1f8] sm:$0xff] %vm1544_vm3, %v3126_v42  ;;  %v3192_v30 = vmax.f32 %v3184_v58, 0.0  ;;  %v3225_v14 = vmax.f32 %v3217_v53, 0.0  ;;  %v3258_v51 = vmax.f32 %v3250_v18, 0.0  ;;  %v3291_v22 = vmax.f32 %v3283_v32, 0.0 }
 0x581   :  { %v3324_v16 = vmax.f32 %v3316_v20, 0.0  ;;  %v3357_v57 = vmax.f32 %v3349_v15, 0.0  ;;  %v3390_v27 = vmax.f32 %v3382_v6, 0.0  ;;  %3609 = vst.msk [vmem:[%s7411_s6 + $0x238] sm:$0xff] %vm1544_vm3, %v3159_v19 }
 0x582   :  { %3617 = vst.msk [vmem:[%s7411_s6 + $0x278] sm:$0xff] %vm1544_vm3, %v3192_v30  ;;  %3625 = vst.msk [vmem:[%s7411_s6 + $0x2b8] sm:$0xff] %vm1544_vm3, %v3225_v14 }
 0x583   :  { %3633 = vst.msk [vmem:[%s7411_s6 + $0x2f8] sm:$0xff] %vm1544_vm3, %v3258_v51  ;;  %3641 = vst.msk [vmem:[%s7411_s6 + $0x338] sm:$0xff] %vm1544_vm3, %v3291_v22 }
 0x584   :  { %3649 = vst.msk [vmem:[%s7411_s6 + $0x378] sm:$0xff] %vm1544_vm3, %v3324_v16  ;;  %3657 = vst.msk [vmem:[%s7411_s6 + $0x3b8] sm:$0xff] %vm1544_vm3, %v3357_v57 }
 0x585   :  { %3665 = vst.msk [vmem:[%s7411_s6 + $0x3f8] sm:$0xff] %vm1544_vm3, %v3390_v27 }

// kernel: generator_forward.6
= control target key start
LH: loop header
LB: loop body
LE: loop exit
PB: predicated region body
PF: predicated region fallthrough
CT: control target
= control target key end

     0   :  { %v872_v0 = vmov 0.0   ;;  %vm873_vm0 = vmmov 0   ;;  %v874_v61 = vmov 0   ;;  %s1132_s0 = inlined_call_operand.vmem [shape: bf16[4,128,128], index: 0, kind: input, shape index: {}]   ;;  %s1133_s1 = inlined_call_operand.vmem [shape: bf16[4,16,128], index: 1, kind: input, shape index: {}]   ;;  %s1134_s2 = inlined_call_operand.vmem [shape: f32[16,1], index: 2, kind: input, shape index: {}]   ;;  %s1135_s3 = inlined_call_operand.vmem [shape: f32[16,1], index: 3, kind: input, shape index: {}]   ;;  %s1136_s4 = inlined_call_operand.vmem [shape: f32[4,16,128], index: 4, kind: output, shape index: {}]  }
   0x1   :  { %747 = vmatprep.subr.bf16.mxu0 %v872_v0  ;;  %767 = vmatprep.subr.bf16.mxu1 %v872_v0  ;;  %v832_v1 = vld [vmem:[%s1132_s0] sm:$0xff]   ;;  %v834_v3 = vld [vmem:[%s1132_s0 + $0x8] sm:$0xff]   ;;  %v836_v5 = vld [vmem:[%s1132_s0 + $0x10] sm:$0xff]  }
   0x2   :  { %v833_v2 = vld [vmem:[%s1132_s0 + $0x40] sm:$0xff]   ;;  %763 = vmatprep.mubr.msk.bf16.mxu0 %vm873_vm0, %v872_v0  ;;  %783 = vmatprep.mubr.msk.bf16.mxu1 %vm873_vm0, %v872_v0  ;;  %v835_v4 = vld [vmem:[%s1132_s0 + $0x48] sm:$0xff]   ;;  %v837_v6 = vld [vmem:[%s1132_s0 + $0x50] sm:$0xff]  }
   0x3   :  { %748 = vmatpush3.bf16.msra.mxu0 %v832_v1  ;;  %768 = vmatpush3.bf16.msra.mxu1 %v833_v2  ;;  %v838_v7 = vld [vmem:[%s1132_s0 + $0x18] sm:$0xff]   ;;  %v840_v9 = vld [vmem:[%s1132_s0 + $0x20] sm:$0xff]   ;;  %v842_v11 = vld [vmem:[%s1132_s0 + $0x28] sm:$0xff]  }
   0x4   :  { %749 = vmatprep.subr.bf16.mxu0 %v872_v0  ;;  %769 = vmatprep.subr.bf16.mxu1 %v872_v0  ;;  %v839_v8 = vld [vmem:[%s1132_s0 + $0x58] sm:$0xff]   ;;  %v841_v10 = vld [vmem:[%s1132_s0 + $0x60] sm:$0xff]   ;;  %v843_v12 = vld [vmem:[%s1132_s0 + $0x68] sm:$0xff]  }
   0x5   :  { %v844_v13 = vld [vmem:[%s1132_s0 + $0x30] sm:$0xff]   ;;  %v846_v15 = vld [vmem:[%s1132_s0 + $0x38] sm:$0xff]   ;;  %v848_v17 = vld [vmem:[%s1133_s1] sm:$0xff]   ;;  %830 = vset.pattern.permute.xlu0 %v874_v61  ;;  %831 = vset.pattern.permute.xlu1 %v874_v61 }
   0x6   :  { %v845_v14 = vld [vmem:[%s1132_s0 + $0x70] sm:$0xff]   ;;  %v847_v16 = vld [vmem:[%s1132_s0 + $0x78] sm:$0xff]   ;;  %v849_v18 = vld [vmem:[%s1133_s1 + $0x8] sm:$0xff]  }
   0x7   :  { %750 = vmatpush3.bf16.msra.mxu0 %v834_v3  ;;  %770 = vmatpush3.bf16.msra.mxu1 %v835_v4  ;;  %v850_v19 = vld [vmem:[%s1132_s0 + $0x80] sm:$0xff]   ;;  %v852_v21 = vld [vmem:[%s1132_s0 + $0x88] sm:$0xff]   ;;  %v854_v23 = vld [vmem:[%s1132_s0 + $0x90] sm:$0xff]  }
   0x8   :  { %751 = vmatprep.subr.bf16.mxu0 %v872_v0  ;;  %771 = vmatprep.subr.bf16.mxu1 %v872_v0  ;;  %v851_v20 = vld [vmem:[%s1132_s0 + $0xc0] sm:$0xff]   ;;  %v853_v22 = vld [vmem:[%s1132_s0 + $0xc8] sm:$0xff]   ;;  %v855_v24 = vld [vmem:[%s1132_s0 + $0xd0] sm:$0xff]  }
   0x9   :  { %v856_v25 = vld [vmem:[%s1132_s0 + $0x98] sm:$0xff]   ;;  %v858_v27 = vld [vmem:[%s1132_s0 + $0xa0] sm:$0xff]   ;;  %v860_v29 = vld [vmem:[%s1132_s0 + $0xa8] sm:$0xff]  }
   0xa   :  { %v857_v26 = vld [vmem:[%s1132_s0 + $0xd8] sm:$0xff]   ;;  %v859_v28 = vld [vmem:[%s1132_s0 + $0xe0] sm:$0xff]   ;;  %v861_v30 = vld [vmem:[%s1132_s0 + $0xe8] sm:$0xff]  }
   0xb   :  { %752 = vmatpush3.bf16.msra.mxu0 %v836_v5  ;;  %772 = vmatpush3.bf16.msra.mxu1 %v837_v6  ;;  %v862_v31 = vld [vmem:[%s1132_s0 + $0xb0] sm:$0xff]   ;;  %v864_v33 = vld [vmem:[%s1132_s0 + $0xb8] sm:$0xff]  }
   0xc   :  { %753 = vmatprep.subr.bf16.mxu0 %v872_v0  ;;  %773 = vmatprep.subr.bf16.mxu1 %v872_v0  ;;  %v863_v32 = vld [vmem:[%s1132_s0 + $0xf0] sm:$0xff]   ;;  %v865_v34 = vld [vmem:[%s1132_s0 + $0xf8] sm:$0xff]  }
   0xd   :  { %v866_v35 = vld [vmem:[%s1133_s1 + $0x10] sm:$0xff]   ;;  %v867_v36 = vld [vmem:[%s1133_s1 + $0x18] sm:$0xff]  }
   0xf   :  { %754 = vmatpush3.bf16.msra.mxu0 %v838_v7  ;;  %774 = vmatpush3.bf16.msra.mxu1 %v839_v8 }
  0x10   :  { %755 = vmatprep.subr.bf16.mxu0 %v872_v0  ;;  %775 = vmatprep.subr.bf16.mxu1 %v872_v0 }
  0x13   :  { %756 = vmatpush3.bf16.msra.mxu0 %v840_v9  ;;  %776 = vmatpush3.bf16.msra.mxu1 %v841_v10 }
  0x14   :  { %757 = vmatprep.subr.bf16.mxu0 %v872_v0  ;;  %777 = vmatprep.subr.bf16.mxu1 %v872_v0 }
  0x17   :  { %758 = vmatpush3.bf16.msra.mxu0 %v842_v11  ;;  %778 = vmatpush3.bf16.msra.mxu1 %v843_v12 }
  0x18   :  { %759 = vmatprep.subr.bf16.mxu0 %v872_v0  ;;  %779 = vmatprep.subr.bf16.mxu1 %v872_v0 }
  0x1b   :  { %760 = vmatpush3.bf16.msra.mxu0 %v844_v13  ;;  %780 = vmatpush3.bf16.msra.mxu1 %v845_v14 }
  0x1c   :  { %761 = vmatprep.subr.bf16.mxu0 %v872_v0  ;;  %781 = vmatprep.subr.bf16.mxu1 %v872_v0 }
  0x1f   :  { %762 = vmatpush3.bf16.msra.mxu0 %v846_v15  ;;  %782 = vmatpush3.bf16.msra.mxu1 %v847_v16 }
  0x20   :  { %787 = vmatprep.subr.bf16.mxu0 %v872_v0  ;;  %807 = vmatprep.subr.bf16.mxu1 %v872_v0 }
  0x22   :  { %764 = vmatmul.mubr.bf16.vlgmr.msra.gmra.mrb[0].mxu0 %v848_v17  ;;  %784 = vmatmul.mubr.bf16.vlgmr.msra.gmra.mrb[0].mxu1 %v849_v18 }
  0x23   :  { %788 = vmatpush3.bf16.msra.mxu0 %v850_v19  ;;  %808 = vmatpush3.bf16.msra.mxu1 %v851_v20 }
  0x24   :  { %789 = vmatprep.subr.bf16.mxu0 %v872_v0  ;;  %809 = vmatprep.subr.bf16.mxu1 %v872_v0 }
  0x25   :  { %803 = vmatprep.mubr.msk.bf16.mxu0 %vm873_vm0, %v872_v0  ;;  %823 = vmatprep.mubr.msk.bf16.mxu1 %vm873_vm0, %v872_v0 }
  0x27   :  { %790 = vmatpush3.bf16.msra.mxu0 %v852_v21  ;;  %810 = vmatpush3.bf16.msra.mxu1 %v853_v22 }
  0x28   :  { %791 = vmatprep.subr.bf16.mxu0 %v872_v0  ;;  %811 = vmatprep.subr.bf16.mxu1 %v872_v0 }
  0x2b   :  { %792 = vmatpush3.bf16.msra.mxu0 %v854_v23  ;;  %812 = vmatpush3.bf16.msra.mxu1 %v855_v24 }
  0x2c   :  { %793 = vmatprep.subr.bf16.mxu0 %v872_v0  ;;  %813 = vmatprep.subr.bf16.mxu1 %v872_v0 }
  0x2f   :  { %794 = vmatpush3.bf16.msra.mxu0 %v856_v25  ;;  %814 = vmatpush3.bf16.msra.mxu1 %v857_v26 }
  0x30   :  { %795 = vmatprep.subr.bf16.mxu0 %v872_v0  ;;  %815 = vmatprep.subr.bf16.mxu1 %v872_v0 }
  0x33   :  { %796 = vmatpush3.bf16.msra.mxu0 %v858_v27  ;;  %816 = vmatpush3.bf16.msra.mxu1 %v859_v28 }
  0x34   :  { %797 = vmatprep.subr.bf16.mxu0 %v872_v0  ;;  %817 = vmatprep.subr.bf16.mxu1 %v872_v0 }
  0x37   :  { %798 = vmatpush3.bf16.msra.mxu0 %v860_v29  ;;  %818 = vmatpush3.bf16.msra.mxu1 %v861_v30 }
  0x38   :  { %799 = vmatprep.subr.bf16.mxu0 %v872_v0  ;;  %819 = vmatprep.subr.bf16.mxu1 %v872_v0 }
  0x3b   :  { %800 = vmatpush3.bf16.msra.mxu0 %v862_v31  ;;  %820 = vmatpush3.bf16.msra.mxu1 %v863_v32 }
  0x3c   :  { %801 = vmatprep.subr.bf16.mxu0 %v872_v0  ;;  %821 = vmatprep.subr.bf16.mxu1 %v872_v0 }
  0x3f   :  { %802 = vmatpush3.bf16.msra.mxu0 %v864_v33  ;;  %822 = vmatpush3.bf16.msra.mxu1 %v865_v34 }
  0x42   :  { %804 = vmatmul.mubr.bf16.vlgmr.msra.gmra.mrb[4].mxu0 %v866_v35  ;;  %824 = vmatmul.mubr.bf16.vlgmr.msra.gmra.mrb[4].mxu1 %v867_v36 }
  0xf5   :  { %v1048_v37 = vpop.f32.mrb[0].mxu0  ;;  %v1050_v38 = vpop.f32.mrb[0].mxu1 }
  0xf6   :  { %131 = vadd.xlane.f32.xlu0 %v1048_v37  ;;  %v765_v39 = vpop.f32.mrb[1].mxu0  ;;  %260 = vadd.xlane.f32.xlu1 %v1050_v38  ;;  %v785_v41 = vpop.f32.mrb[1].mxu1  ;;  %v137_v45 = vmul.f32 %v1048_v37, %v1048_v37  ;;  %v266_v47 = vmul.f32 %v1050_v38, %v1050_v38 }
  0xf7   :  { %v1054_v40 = vpop.f32.mrb[2].mxu0  ;;  %v1056_v43 = vpop.f32.mrb[2].mxu1  ;;  %v542_v41 = vld [vmem:[%s1134_s2] sm:$0xff] }
  0xf8   :  { %v766_v42 = vpop.f32.mrb[3].mxu0  ;;  %v786_v44 = vpop.f32.mrb[3].mxu1  ;;  %v138_v46 = vmul.f32 %v1054_v40, %v1054_v40  ;;  %v267_v48 = vmul.f32 %v1056_v43, %v1056_v43 }
  0xf9   :  { %v543_v44 = vld [vmem:[%s1134_s2 + $0x8] sm:$0xff] }
  0xfa   :  { %133 = vadd.xlane.f32.xlu0 %v1054_v40  ;;  %262 = vadd.xlane.f32.xlu1 %v1056_v43 }
  0xfe   :  { %139 = vadd.xlane.f32.xlu0 %v137_v45  ;;  %141 = vadd.xlane.f32.xlu1 %v138_v46 }
 0x102   :  { %268 = vadd.xlane.f32.xlu0 %v266_v47  ;;  %270 = vadd.xlane.f32.xlu1 %v267_v48 }
 0x115   :  { %v1068_v49 = vpop.f32.mrb[4].mxu0  ;;  %v1070_v50 = vpop.f32.mrb[4].mxu1 }
 0x116   :  { %389 = vadd.xlane.f32.xlu0 %v1068_v49  ;;  %v805_v51 = vpop.f32.mrb[5].mxu0  ;;  %v825_v53 = vpop.f32.mrb[5].mxu1  ;;  %v395_v57 = vmul.f32 %v1068_v49, %v1068_v49  ;;  %v524_v59 = vmul.f32 %v1070_v50, %v1070_v50 }
 0x117   :  { %v1073_v52 = vpop.f32.mrb[6].mxu0  ;;  %v1075_v54 = vpop.f32.mrb[6].mxu1  ;;  %v550_v51 = vld [vmem:[%s1135_s3] sm:$0xff] }
 0x118   :  { %391 = vadd.xlane.f32.xlu1 %v1073_v52  ;;  %v806_v55 = vpop.f32.mrb[7].mxu0  ;;  %v826_v56 = vpop.f32.mrb[7].mxu1  ;;  %v396_v58 = vmul.f32 %v1073_v52, %v1073_v52  ;;  %v525_v60 = vmul.f32 %v1075_v54, %v1075_v54 }
 0x119   :  { %v551_v56 = vld [vmem:[%s1135_s3 + $0x8] sm:$0xff] }
 0x11a   :  { %518 = vadd.xlane.f32.xlu0 %v1070_v50 }
 0x11c   :  { %520 = vadd.xlane.f32.xlu1 %v1075_v54 }
 0x11e   :  { %397 = vadd.xlane.f32.xlu0 %v395_v57 }
 0x120   :  { %399 = vadd.xlane.f32.xlu1 %v396_v58 }
 0x122   :  { %526 = vadd.xlane.f32.xlu0 %v524_v59 }
 0x124   :  { %528 = vadd.xlane.f32.xlu1 %v525_v60 }
 0x183   :  { %v132_v62 = vpop.xlane.xlu0 %131  ;;  %v261_v63 = vpop.xlane.xlu1 %260 }
 0x184   :  { %v264_v8 = vadd.f32 %v261_v63, %v132_v62 }
 0x187   :  { %v134_v0 = vpop.xlane.xlu0 %133  ;;  %v263_v1 = vpop.xlane.xlu1 %262 }
 0x188   :  { %v265_v10 = vadd.f32 %v263_v1, %v134_v0 }
 0x18b   :  { %v140_v2 = vpop.xlane.xlu0 %139  ;;  %v142_v3 = vpop.xlane.xlu1 %141 }
 0x18f   :  { %v269_v4 = vpop.xlane.xlu0 %268  ;;  %v271_v5 = vpop.xlane.xlu1 %270 }
 0x190   :  { %v272_v16 = vadd.f32 %v269_v4, %v140_v2  ;;  %v273_v19 = vadd.f32 %v271_v5, %v142_v3 }
 0x1a3   :  { %v390_v6 = vpop.xlane.xlu0 %389 }
 0x1a4   :  { %v393_v11 = vadd.f32 %v390_v6, %v264_v8 }
 0x1a5   :  { %v392_v7 = vpop.xlane.xlu1 %391 }
 0x1a6   :  { %v394_v13 = vadd.f32 %v392_v7, %v265_v10 }
 0x1a7   :  { %v519_v9 = vpop.xlane.xlu0 %518 }
 0x1a8   :  { %v522_v14 = vadd.f32 %v519_v9, %v393_v11 }
 0x1a9   :  { %v521_v12 = vpop.xlane.xlu1 %520 }
 0x1aa   :  { %v523_v17 = vadd.f32 %v521_v12, %v394_v13  ;;  %v532_v20 = vmul.f32 0.001953125, %v522_v14 }
 0x1ab   :  { %v398_v15 = vpop.xlane.xlu0 %397 }
 0x1ac   :  { %v401_v21 = vadd.f32 %v398_v15, %v272_v16  ;;  %v533_v23 = vmul.f32 0.001953125, %v523_v17  ;;  %v536_v27 = vmul.f32 %v532_v20, %v532_v20 }
 0x1ad   :  { %v400_v18 = vpop.xlane.xlu1 %399 }
 0x1ae   :  { %v402_v24 = vadd.f32 %v400_v18, %v273_v19  ;;  %v537_v30 = vmul.f32 %v533_v23, %v533_v23 }
 0x1af   :  { %v527_v22 = vpop.xlane.xlu0 %526 }
 0x1b0   :  { %v530_v25 = vadd.f32 %v527_v22, %v401_v21 }
 0x1b1   :  { %v529_v26 = vpop.xlane.xlu1 %528 }
 0x1b2   :  { %v534_v28 = vmul.f32 0.001953125, %v530_v25  ;;  %v531_v29 = vadd.f32 %v529_v26, %v402_v24 }
 0x1b4   :  { %v538_v31 = vsub.f32 %v534_v28, %v536_v27  ;;  %v535_v32 = vmul.f32 0.001953125, %v531_v29 }
 0x1b6   :  { %v540_v33 = vmax.f32 %v538_v31, 0.0  ;;  %v539_v34 = vsub.f32 %v535_v32, %v537_v30 }
 0x1b8   :  { %v544_v35 = vadd.f32 1e-05, %v540_v33  ;;  %v541_v36 = vmax.f32 %v539_v34, 0.0 }
 0x1ba   :  { %868 = vrsqrt.f32 %v544_v35  ;;  %v545_v39 = vadd.f32 1e-05, %v541_v36 }
 0x1bc   :  { %870 = vrsqrt.f32 %v545_v39 }
 0x1c4   :  { %v869_v42 = vpop.eup %868 }
 0x1c5   :  { %v548_v45 = vmul.f32 %v869_v42, %v542_v41 }
 0x1c6   :  { %v871_v46 = vpop.eup %870 }
 0x1c7   :  { %558 = vperm.xlu0 %830, %v548_v45   ;;  %v549_v47 = vmul.f32 %v871_v46, %v543_v44  ;;  %v552_v48 = vmul.f32 %v548_v45, %v532_v20 }
 0x1c9   :  { %563 = vperm.xlu1 %831, %v549_v47   ;;  %v554_v53 = vsub.f32 %v550_v51, %v552_v48  ;;  %v553_v55 = vmul.f32 %v549_v47, %v533_v23 }
 0x1cb   :  { %v555_v57 = vsub.f32 %v551_v56, %v553_v55 }
 0x1cd   :  { %570 = vperm.xlu1 %831, %v554_v53  }
 0x1d1   :  { %575 = vperm.xlu1 %831, %v555_v57  }
 0x246   :  { %v559_v58 = vpop.permute.xlu0 %558 }
 0x247   :  { %v566_v60 = vmul.f32 %v559_v58, %v1048_v37  ;;  %v584_v61 = vmul.f32 %v559_v58, %v1050_v38  ;;  %v593_v62 = vmul.f32 %v559_v58, %v1068_v49  ;;  %v602_v63 = vmul.f32 %v559_v58, %v1070_v50 }
 0x248   :  { %v564_v59 = vpop.permute.xlu1 %563 }
 0x249   :  { %v567_v5 = vmul.f32 %v564_v59, %v1054_v40  ;;  %v585_v6 = vmul.f32 %v564_v59, %v1056_v43  ;;  %v594_v7 = vmul.f32 %v564_v59, %v1073_v52  ;;  %v603_v8 = vmul.f32 %v564_v59, %v1075_v54 }
 0x24c   :  { %v571_v0 = vpop.permute.xlu1 %570 }
 0x24d   :  { %v578_v1 = vadd.f32 %v571_v0, %v566_v60  ;;  %v586_v2 = vadd.f32 %v584_v61, %v571_v0  ;;  %v595_v3 = vadd.f32 %v593_v62, %v571_v0  ;;  %v604_v4 = vadd.f32 %v602_v63, %v571_v0 }
 0x24f   :  { %v580_v37 = vmax.f32 %v578_v1, 0.0  ;;  %v588_v9 = vmax.f32 %v586_v2, 0.0  ;;  %v597_v38 = vmax.f32 %v595_v3, 0.0  ;;  %v606_v10 = vmax.f32 %v604_v4, 0.0 }
 0x250   :  { %v576_v49 = vpop.permute.xlu1 %575 }
 0x251   :  { %582 = vst [vmem:[%s1136_s4] sm:$0xff] %v580_v37  ;;  %705 = vst [vmem:[%s1136_s4 + $0x10] sm:$0xff] %v588_v9  ;;  %v579_v40 = vadd.f32 %v576_v49, %v567_v5  ;;  %v587_v43 = vadd.f32 %v585_v6, %v576_v49  ;;  %v596_v50 = vadd.f32 %v594_v7, %v576_v49 }
 0x252   :  { %707 = vst [vmem:[%s1136_s4 + $0x20] sm:$0xff] %v597_v38  ;;  %709 = vst [vmem:[%s1136_s4 + $0x30] sm:$0xff] %v606_v10  ;;  %v605_v52 = vadd.f32 %v603_v8, %v576_v49 }
 0x253   :  { %v581_v54 = vmax.f32 %v579_v40, 0.0  ;;  %v589_v11 = vmax.f32 %v587_v43, 0.0  ;;  %v598_v12 = vmax.f32 %v596_v50, 0.0 }
 0x254   :  { %v607_v13 = vmax.f32 %v605_v52, 0.0 }
 0x255   :  { %583 = vst [vmem:[%s1136_s4 + $0x8] sm:$0xff] %v581_v54  ;;  %706 = vst [vmem:[%s1136_s4 + $0x18] sm:$0xff] %v589_v11 }
 0x256   :  { %708 = vst [vmem:[%s1136_s4 + $0x28] sm:$0xff] %v598_v12  ;;  %710 = vst [vmem:[%s1136_s4 + $0x38] sm:$0xff] %v607_v13 }

// kernel: generator_forward.7
= control target key start
LH: loop header
LB: loop body
LE: loop exit
PB: predicated region body
PF: predicated region fallthrough
CT: control target
= control target key end

     0   :  { %v1809_v1 = vmov 0   ;;  %vm118_vm0 = vcmask 523264   ;;  %vm855_vm1 = vcmask 64512   ;;  %s2217_s0 = inlined_call_operand.vmem [shape: bf16[4,64,512], index: 0, kind: input, shape index: {}]   ;;  %s2218_s1 = inlined_call_operand.vmem [shape: bf16[4,8,64], index: 1, kind: input, shape index: {}]   ;;  %s2219_s2 = inlined_call_operand.vmem [shape: f32[8,1], index: 2, kind: input, shape index: {}]   ;;  %s2220_s3 = inlined_call_operand.vmem [shape: f32[8,1], index: 3, kind: input, shape index: {}]   ;;  %s2221_s4 = inlined_call_operand.vmem [shape: f32[3,8], index: 4, kind: input, shape index: {}]   ;;  %s2222_s5 = inlined_call_operand.vmem [shape: f32[4,3,512], index: 5, kind: output, shape index: {}]  }
   0x1   :  { %v1679_v0 = vld [vmem:[%s2217_s0 + $0x4] ss:$16 sps:$4 sm:$0xff]   ;;  %154 = vmatprep.mubr.bf16.mxu0 %v1809_v1  ;;  %195 = vmatprep.mubr.bf16.mxu1 %v1809_v1  ;;  %v1681_v2 = vld [vmem:[%s2217_s0 + $0xc] ss:$16 sps:$4 sm:$0xff]   ;;  %v1683_v3 = vld [vmem:[%s2217_s0] ss:$16 sps:$4 sm:$0xff]  }
   0x2   :  { %1677 = vset.pattern.permute.xlu0 %v1809_v1  ;;  %1678 = vset.pattern.permute.xlu1 %v1809_v1  ;;  %v1684_v4 = vld [vmem:[%s2217_s0 + $0x8] ss:$16 sps:$4 sm:$0xff]   ;;  %v1685_v5 = vld [vmem:[%s2217_s0 + $0x24] ss:$16 sps:$4 sm:$0xff]   ;;  %v1687_v6 = vld [vmem:[%s2217_s0 + $0x2c] ss:$16 sps:$4 sm:$0xff]  }
   0x3   :  { %122 = vmatprep.subr.bf16.mxu0 %v1679_v0  ;;  %163 = vmatprep.subr.bf16.mxu1 %v1681_v2  ;;  %v1689_v7 = vld [vmem:[%s2217_s0 + $0x20] ss:$16 sps:$4 sm:$0xff]   ;;  %v1690_v8 = vld [vmem:[%s2217_s0 + $0x28] ss:$16 sps:$4 sm:$0xff]   ;;  %v1691_v9 = vld [vmem:[%s2217_s0 + $0x44] ss:$16 sps:$4 sm:$0xff]  }
   0x4   :  { %123 = vmatpush1.bf16.msra.mxu0 %v1683_v3  ;;  %164 = vmatpush1.bf16.msra.mxu1 %v1684_v4  ;;  %v1693_v10 = vld [vmem:[%s2217_s0 + $0x4c] ss:$16 sps:$4 sm:$0xff]   ;;  %v1695_v11 = vld [vmem:[%s2217_s0 + $0x40] ss:$16 sps:$4 sm:$0xff]   ;;  %v1696_v12 = vld [vmem:[%s2217_s0 + $0x48] ss:$16 sps:$4 sm:$0xff]  }
   0x5   :  { %124 = vmatprep.subr.bf16.mxu0 %v1685_v5  ;;  %165 = vmatprep.subr.bf16.mxu1 %v1687_v6  ;;  %v1697_v13 = vld [vmem:[%s2217_s0 + $0x64] ss:$16 sps:$4 sm:$0xff]   ;;  %v1699_v14 = vld [vmem:[%s2217_s0 + $0x6c] ss:$16 sps:$4 sm:$0xff]   ;;  %v1701_v15 = vld [vmem:[%s2217_s0 + $0x60] ss:$16 sps:$4 sm:$0xff]  }
   0x6   :  { %v1702_v16 = vld [vmem:[%s2217_s0 + $0x68] ss:$16 sps:$4 sm:$0xff]   ;;  %v1705_v17 = vld [vmem:[%s2217_s0 + $0x84] ss:$16 sps:$4 sm:$0xff]   ;;  %v1708_v18 = vld [vmem:[%s2217_s0 + $0x8c] ss:$16 sps:$4 sm:$0xff]  }
   0x7   :  { %v21_v19 = vld [vmem:[%s2218_s1] sm:$0xf]  ;;  %v1706_v21 = vld [vmem:[%s2217_s0 + $0x88] ss:$16 sps:$4 sm:$0xff]   ;;  %v1711_v22 = vld [vmem:[%s2217_s0 + $0xa4] ss:$16 sps:$4 sm:$0xff]  }
   0x8   :  { %125 = vmatpush1.bf16.msra.mxu0 %v1689_v7  ;;  %166 = vmatpush1.bf16.msra.mxu1 %v1690_v8  ;;  %v1703_v20 = vld [vmem:[%s2217_s0 + $0x80] ss:$16 sps:$4 sm:$0xff]   ;;  %v1714_v23 = vld [vmem:[%s2217_s0 + $0xac] ss:$16 sps:$4 sm:$0xff]   ;;  %v1712_v25 = vld [vmem:[%s2217_s0 + $0xa8] ss:$16 sps:$4 sm:$0xff]  }
   0x9   :  { %126 = vmatprep.subr.bf16.mxu0 %v1691_v9  ;;  %167 = vmatprep.subr.bf16.mxu1 %v1693_v10  ;;  %v1709_v24 = vld [vmem:[%s2217_s0 + $0xa0] ss:$16 sps:$4 sm:$0xff]   ;;  %v1717_v26 = vld [vmem:[%s2217_s0 + $0xc4] ss:$16 sps:$4 sm:$0xff]   ;;  %v1720_v27 = vld [vmem:[%s2217_s0 + $0xcc] ss:$16 sps:$4 sm:$0xff]  }
   0xa   :  { %v1715_v28 = vld [vmem:[%s2217_s0 + $0xc0] ss:$16 sps:$4 sm:$0xff]   ;;  %v1718_v29 = vld [vmem:[%s2217_s0 + $0xc8] ss:$16 sps:$4 sm:$0xff]   ;;  %v1723_v30 = vld [vmem:[%s2217_s0 + $0xe4] ss:$16 sps:$4 sm:$0xff]  }
   0xb   :  { %v1726_v31 = vld [vmem:[%s2217_s0 + $0xec] ss:$16 sps:$4 sm:$0xff]   ;;  %v1721_v32 = vld [vmem:[%s2217_s0 + $0xe0] ss:$16 sps:$4 sm:$0xff]   ;;  %v1724_v33 = vld [vmem:[%s2217_s0 + $0xe8] ss:$16 sps:$4 sm:$0xff]  }
   0xc   :  { %127 = vmatpush1.bf16.msra.mxu0 %v1695_v11  ;;  %168 = vmatpush1.bf16.msra.mxu1 %v1696_v12  ;;  %v1729_v34 = vld [vmem:[%s2217_s0 + $0x104] ss:$16 sps:$4 sm:$0xff]   ;;  %v1732_v35 = vld [vmem:[%s2217_s0 + $0x10c] ss:$16 sps:$4 sm:$0xff]   ;;  %v1727_v37 = vld [vmem:[%s2217_s0 + $0x100] ss:$16 sps:$4 sm:$0xff]  }
   0xd   :  { %128 = vmatprep.subr.bf16.mxu0 %v1697_v13  ;;  %169 = vmatprep.subr.bf16.mxu1 %v1699_v14  ;;  %v1556_v36 = vld [vmem:[%s2218_s1 + $0x4] sm:$0xf]  ;;  %v1730_v38 = vld [vmem:[%s2217_s0 + $0x108] ss:$16 sps:$4 sm:$0xff]   ;;  %v1738_v40 = vld [vmem:[%s2217_s0 + $0x12c] ss:$16 sps:$4 sm:$0xff]  }
   0xe   :  { %v1735_v39 = vld [vmem:[%s2217_s0 + $0x124] ss:$16 sps:$4 sm:$0xff]   ;;  %v1733_v41 = vld [vmem:[%s2217_s0 + $0x120] ss:$16 sps:$4 sm:$0xff]   ;;  %v1736_v42 = vld [vmem:[%s2217_s0 + $0x128] ss:$16 sps:$4 sm:$0xff]  }
   0xf   :  { %v1741_v43 = vld [vmem:[%s2217_s0 + $0x144] ss:$16 sps:$4 sm:$0xff]   ;;  %v1744_v44 = vld [vmem:[%s2217_s0 + $0x14c] ss:$16 sps:$4 sm:$0xff]   ;;  %v1739_v45 = vld [vmem:[%s2217_s0 + $0x140] ss:$16 sps:$4 sm:$0xff]  }
  0x10   :  { %129 = vmatpush1.bf16.msra.mxu0 %v1701_v15  ;;  %170 = vmatpush1.bf16.msra.mxu1 %v1702_v16  ;;  %v1742_v46 = vld [vmem:[%s2217_s0 + $0x148] ss:$16 sps:$4 sm:$0xff]   ;;  %v1747_v47 = vld [vmem:[%s2217_s0 + $0x164] ss:$16 sps:$4 sm:$0xff]   ;;  %v1750_v48 = vld [vmem:[%s2217_s0 + $0x16c] ss:$16 sps:$4 sm:$0xff]  }
  0x11   :  { %322 = vmatprep.subr.bf16.mxu0 %v1705_v17  ;;  %363 = vmatprep.subr.bf16.mxu1 %v1708_v18  ;;  %v1745_v49 = vld [vmem:[%s2217_s0 + $0x160] ss:$16 sps:$4 sm:$0xff]   ;;  %v1748_v50 = vld [vmem:[%s2217_s0 + $0x168] ss:$16 sps:$4 sm:$0xff]   ;;  %v1753_v51 = vld [vmem:[%s2217_s0 + $0x184] ss:$16 sps:$4 sm:$0xff]  }
  0x12   :  { %v1756_v52 = vld [vmem:[%s2217_s0 + $0x18c] ss:$16 sps:$4 sm:$0xff]   ;;  %v1591_v53 = vld [vmem:[%s2218_s1 + $0x8] sm:$0xf]  ;;  %v1751_v54 = vld [vmem:[%s2217_s0 + $0x180] ss:$16 sps:$4 sm:$0xff]  }
  0x13   :  { %1554 = vmatmul.mubr.msk.bf16.vlgmr.msra.gmra.mrb[0].mxu0 %vm118_vm0, %v21_v19  ;;  %1555 = vmatmul.mubr.msk.bf16.vlgmr.msra.gmra.mrb[0].mxu1 %vm118_vm0, %v21_v19  ;;  %v1754_v55 = vld [vmem:[%s2217_s0 + $0x188] ss:$16 sps:$4 sm:$0xff]   ;;  %v1759_v56 = vld [vmem:[%s2217_s0 + $0x1a4] ss:$16 sps:$4 sm:$0xff]   ;;  %v1762_v57 = vld [vmem:[%s2217_s0 + $0x1ac] ss:$16 sps:$4 sm:$0xff]  }
  0x14   :  { %323 = vmatpush1.bf16.msra.mxu0 %v1703_v20  ;;  %364 = vmatpush1.bf16.msra.mxu1 %v1706_v21  ;;  %v1757_v58 = vld [vmem:[%s2217_s0 + $0x1a0] ss:$16 sps:$4 sm:$0xff]   ;;  %v1760_v59 = vld [vmem:[%s2217_s0 + $0x1a8] ss:$16 sps:$4 sm:$0xff]   ;;  %v1765_v60 = vld [vmem:[%s2217_s0 + $0x1c4] ss:$16 sps:$4 sm:$0xff]  }
  0x15   :  { %324 = vmatprep.subr.bf16.mxu0 %v1711_v22  ;;  %365 = vmatprep.subr.bf16.mxu1 %v1714_v23  ;;  %v1768_v61 = vld [vmem:[%s2217_s0 + $0x1cc] ss:$16 sps:$4 sm:$0xff]   ;;  %v1763_v62 = vld [vmem:[%s2217_s0 + $0x1c0] ss:$16 sps:$4 sm:$0xff]   ;;  %v1766_v63 = vld [vmem:[%s2217_s0 + $0x1c8] ss:$16 sps:$4 sm:$0xff]  }
  0x16   :  { %354 = vmatprep.mubr.bf16.mxu0 %v1809_v1  ;;  %395 = vmatprep.mubr.bf16.mxu1 %v1809_v1  ;;  %v1771_v0 = vld [vmem:[%s2217_s0 + $0x1e4] ss:$16 sps:$4 sm:$0xff]   ;;  %v1769_v2 = vld [vmem:[%s2217_s0 + $0x1e0] ss:$16 sps:$4 sm:$0xff]   ;;  %v1772_v3 = vld [vmem:[%s2217_s0 + $0x1e8] ss:$16 sps:$4 sm:$0xff]  }
  0x17   :  { %v1626_v4 = vld [vmem:[%s2218_s1 + $0xc] sm:$0xf] }
  0x18   :  { %325 = vmatpush1.bf16.msra.mxu0 %v1709_v24  ;;  %366 = vmatpush1.bf16.msra.mxu1 %v1712_v25 }
  0x19   :  { %326 = vmatprep.subr.bf16.mxu0 %v1717_v26  ;;  %367 = vmatprep.subr.bf16.mxu1 %v1720_v27 }
  0x1c   :  { %327 = vmatpush1.bf16.msra.mxu0 %v1715_v28  ;;  %368 = vmatpush1.bf16.msra.mxu1 %v1718_v29 }
  0x1d   :  { %328 = vmatprep.subr.bf16.mxu0 %v1723_v30  ;;  %369 = vmatprep.subr.bf16.mxu1 %v1726_v31 }
  0x20   :  { %329 = vmatpush1.bf16.msra.mxu0 %v1721_v32  ;;  %370 = vmatpush1.bf16.msra.mxu1 %v1724_v33 }
  0x21   :  { %522 = vmatprep.subr.bf16.mxu0 %v1729_v34  ;;  %563 = vmatprep.subr.bf16.mxu1 %v1732_v35 }
  0x23   :  { %1589 = vmatmul.mubr.msk.bf16.vlgmr.msra.gmra.mrb[4].mxu0 %vm118_vm0, %v1556_v36  ;;  %1590 = vmatmul.mubr.msk.bf16.vlgmr.msra.gmra.mrb[4].mxu1 %vm118_vm0, %v1556_v36 }
  0x24   :  { %523 = vmatpush1.bf16.msra.mxu0 %v1727_v37  ;;  %564 = vmatpush1.bf16.msra.mxu1 %v1730_v38 }
  0x25   :  { %524 = vmatprep.subr.bf16.mxu0 %v1735_v39  ;;  %565 = vmatprep.subr.bf16.mxu1 %v1738_v40 }
  0x26   :  { %554 = vmatprep.mubr.bf16.mxu0 %v1809_v1  ;;  %595 = vmatprep.mubr.bf16.mxu1 %v1809_v1 }
  0x28   :  { %525 = vmatpush1.bf16.msra.mxu0 %v1733_v41  ;;  %566 = vmatpush1.bf16.msra.mxu1 %v1736_v42 }
  0x29   :  { %526 = vmatprep.subr.bf16.mxu0 %v1741_v43  ;;  %567 = vmatprep.subr.bf16.mxu1 %v1744_v44 }
  0x2c   :  { %527 = vmatpush1.bf16.msra.mxu0 %v1739_v45  ;;  %568 = vmatpush1.bf16.msra.mxu1 %v1742_v46 }
  0x2d   :  { %528 = vmatprep.subr.bf16.mxu0 %v1747_v47  ;;  %569 = vmatprep.subr.bf16.mxu1 %v1750_v48 }
  0x30   :  { %529 = vmatpush1.bf16.msra.mxu0 %v1745_v49  ;;  %570 = vmatpush1.bf16.msra.mxu1 %v1748_v50 }
  0x31   :  { %722 = vmatprep.subr.bf16.mxu0 %v1753_v51  ;;  %763 = vmatprep.subr.bf16.mxu1 %v1756_v52 }
  0x33   :  { %1624 = vmatmul.mubr.msk.bf16.vlgmr.msra.gmra.mrb[8].mxu0 %vm118_vm0, %v1591_v53  ;;  %1625 = vmatmul.mubr.msk.bf16.vlgmr.msra.gmra.mrb[8].mxu1 %vm118_vm0, %v1591_v53 }
  0x34   :  { %723 = vmatpush1.bf16.msra.mxu0 %v1751_v54  ;;  %764 = vmatpush1.bf16.msra.mxu1 %v1754_v55 }
  0x35   :  { %724 = vmatprep.subr.bf16.mxu0 %v1759_v56  ;;  %765 = vmatprep.subr.bf16.mxu1 %v1762_v57 }
  0x36   :  { %754 = vmatprep.mubr.bf16.mxu0 %v1809_v1  ;;  %795 = vmatprep.mubr.bf16.mxu1 %v1809_v1  ;;  %v1774_v1 = vld [vmem:[%s2217_s0 + $0x1ec] ss:$16 sps:$4 sm:$0xff]  }
  0x38   :  { %725 = vmatpush1.bf16.msra.mxu0 %v1757_v58  ;;  %766 = vmatpush1.bf16.msra.mxu1 %v1760_v59 }
  0x39   :  { %726 = vmatprep.subr.bf16.mxu0 %v1765_v60  ;;  %767 = vmatprep.subr.bf16.mxu1 %v1768_v61 }
  0x3c   :  { %727 = vmatpush1.bf16.msra.mxu0 %v1763_v62  ;;  %768 = vmatpush1.bf16.msra.mxu1 %v1766_v63 }
  0x3d   :  { %728 = vmatprep.subr.bf16.mxu0 %v1771_v0  ;;  %769 = vmatprep.subr.bf16.mxu1 %v1774_v1 }
  0x40   :  { %729 = vmatpush1.bf16.msra.mxu0 %v1769_v2  ;;  %770 = vmatpush1.bf16.msra.mxu1 %v1772_v3 }
  0x43   :  { %1659 = vmatmul.mubr.msk.bf16.vlgmr.msra.gmra.mrb[12].mxu0 %vm118_vm0, %v1626_v4  ;;  %1660 = vmatmul.mubr.msk.bf16.vlgmr.msra.gmra.mrb[12].mxu1 %vm118_vm0, %v1626_v4 }
  0xe6   :  { %v2063_v5 = vpop.f32.mrb[0].mxu0  ;;  %v2065_v6 = vpop.f32.mrb[0].mxu1 }
  0xe7   :  { %v210_v7 = vmul.f32 %v2063_v5, %v2063_v5  ;;  %v2069_v8 = vpop.f32.mrb[1].mxu0  ;;  %v2071_v9 = vpop.f32.mrb[1].mxu1  ;;  %v212_v12 = vmul.f32 %v2065_v6, %v2065_v6 }
  0xe8   :  { %v204_v10 = vadd.f32 %v2069_v8, %v2063_v5  ;;  %v211_v11 = vmul.f32 %v2069_v8, %v2069_v8  ;;  %v160_v13 = vpop.f32.mrb[2].mxu0  ;;  %v201_v14 = vpop.f32.mrb[2].mxu1  ;;  %v213_v18 = vmul.f32 %v2071_v9, %v2071_v9 }
  0xe9   :  { %v161_v15 = vpop.f32.mrb[3].mxu0  ;;  %v202_v16 = vpop.f32.mrb[3].mxu1 }
  0xea   :  { %v205_v17 = vadd.f32 %v204_v10, %v2065_v6  ;;  %v214_v19 = vadd.f32 %v211_v11, %v210_v7 }
  0xec   :  { %v206_v20 = vadd.f32 %v205_v17, %v2071_v9  ;;  %v215_v21 = vadd.f32 %v214_v19, %v212_v12 }
  0xee   :  { %207 = vadd.xlane.f32.xlu0 %v206_v20  ;;  %v216_v22 = vadd.f32 %v215_v21, %v213_v18 }
  0xf0   :  { %217 = vadd.xlane.f32.xlu1 %v216_v22 }
  0xf6   :  { %v2083_v23 = vpop.f32.mrb[4].mxu0  ;;  %v2085_v24 = vpop.f32.mrb[4].mxu1 }
  0xf7   :  { %v410_v25 = vmul.f32 %v2083_v23, %v2083_v23  ;;  %v2089_v26 = vpop.f32.mrb[5].mxu0  ;;  %v2091_v27 = vpop.f32.mrb[5].mxu1  ;;  %v412_v30 = vmul.f32 %v2085_v24, %v2085_v24 }
  0xf8   :  { %v404_v28 = vadd.f32 %v2089_v26, %v2083_v23  ;;  %v411_v29 = vmul.f32 %v2089_v26, %v2089_v26  ;;  %v360_v31 = vpop.f32.mrb[6].mxu0  ;;  %v401_v32 = vpop.f32.mrb[6].mxu1  ;;  %v413_v36 = vmul.f32 %v2091_v27, %v2091_v27 }
  0xf9   :  { %v361_v33 = vpop.f32.mrb[7].mxu0  ;;  %v402_v34 = vpop.f32.mrb[7].mxu1 }
  0xfa   :  { %v405_v35 = vadd.f32 %v404_v28, %v2085_v24  ;;  %v414_v37 = vadd.f32 %v411_v29, %v410_v25 }
  0xfc   :  { %v406_v38 = vadd.f32 %v405_v35, %v2091_v27  ;;  %v415_v39 = vadd.f32 %v414_v37, %v412_v30 }
  0xfe   :  { %407 = vadd.xlane.f32.xlu0 %v406_v38  ;;  %v416_v40 = vadd.f32 %v415_v39, %v413_v36 }
 0x100   :  { %417 = vadd.xlane.f32.xlu1 %v416_v40 }
 0x106   :  { %v2103_v41 = vpop.f32.mrb[8].mxu0  ;;  %v2105_v42 = vpop.f32.mrb[8].mxu1 }
 0x107   :  { %v610_v43 = vmul.f32 %v2103_v41, %v2103_v41  ;;  %v2109_v44 = vpop.f32.mrb[9].mxu0  ;;  %v2111_v45 = vpop.f32.mrb[9].mxu1  ;;  %v612_v48 = vmul.f32 %v2105_v42, %v2105_v42 }
 0x108   :  { %v604_v46 = vadd.f32 %v2109_v44, %v2103_v41  ;;  %v611_v47 = vmul.f32 %v2109_v44, %v2109_v44  ;;  %v560_v49 = vpop.f32.mrb[10].mxu0  ;;  %v601_v50 = vpop.f32.mrb[10].mxu1  ;;  %v613_v54 = vmul.f32 %v2111_v45, %v2111_v45 }
 0x109   :  { %v561_v51 = vpop.f32.mrb[11].mxu0  ;;  %v602_v52 = vpop.f32.mrb[11].mxu1 }
 0x10a   :  { %v605_v53 = vadd.f32 %v604_v46, %v2105_v42  ;;  %v614_v55 = vadd.f32 %v611_v47, %v610_v43  ;;  %v825_v43 = vld [vmem:[%s2219_s2] sm:$0xff]  ;;  %v1810_v51 = vmov 0.0  }
 0x10b   :  { %923 = vmatprep.mubr.f32.mxu0 %v1810_v51  ;;  %994 = vmatprep.mubr.f32.mxu1 %v1810_v51 }
 0x10c   :  { %v606_v56 = vadd.f32 %v605_v53, %v2111_v45  ;;  %v615_v57 = vadd.f32 %v614_v55, %v612_v48  ;;  %v829_v48 = vld [vmem:[%s2220_s3] sm:$0xff] }
 0x10e   :  { %607 = vadd.xlane.f32.xlu0 %v606_v56  ;;  %v616_v58 = vadd.f32 %v615_v57, %v613_v54 }
 0x110   :  { %617 = vadd.xlane.f32.xlu1 %v616_v58 }
 0x116   :  { %v2123_v59 = vpop.f32.mrb[12].mxu0  ;;  %v2125_v60 = vpop.f32.mrb[12].mxu1 }
 0x117   :  { %v810_v61 = vmul.f32 %v2123_v59, %v2123_v59  ;;  %v2129_v62 = vpop.f32.mrb[13].mxu0  ;;  %v2131_v63 = vpop.f32.mrb[13].mxu1  ;;  %v812_v0 = vmul.f32 %v2125_v60, %v2125_v60 }
 0x118   :  { %v804_v1 = vadd.f32 %v2129_v62, %v2123_v59  ;;  %v811_v2 = vmul.f32 %v2129_v62, %v2129_v62  ;;  %v760_v3 = vpop.f32.mrb[14].mxu0  ;;  %v801_v4 = vpop.f32.mrb[14].mxu1  ;;  %v813_v14 = vmul.f32 %v2131_v63, %v2131_v63 }
 0x119   :  { %v761_v7 = vpop.f32.mrb[15].mxu0  ;;  %v802_v10 = vpop.f32.mrb[15].mxu1 }
 0x11a   :  { %v805_v11 = vadd.f32 %v804_v1, %v2125_v60  ;;  %v814_v12 = vadd.f32 %v811_v2, %v810_v61 }
 0x11c   :  { %v806_v13 = vadd.f32 %v805_v11, %v2131_v63  ;;  %v815_v15 = vadd.f32 %v814_v12, %v812_v0 }
 0x11e   :  { %807 = vadd.xlane.f32.xlu0 %v806_v13  ;;  %v816_v16 = vadd.f32 %v815_v15, %v813_v14 }
 0x120   :  { %817 = vadd.xlane.f32.xlu1 %v816_v16 }
 0x17b   :  { %v208_v17 = vpop.xlane.xlu0 %207 }
 0x17d   :  { %v218_v18 = vpop.xlane.xlu1 %217 }
 0x18b   :  { %v408_v19 = vpop.xlane.xlu0 %407 }
 0x18c   :  { %v409_v22 = vadd.f32 %v408_v19, %v208_v17 }
 0x18d   :  { %v418_v20 = vpop.xlane.xlu1 %417 }
 0x18e   :  { %v419_v28 = vadd.f32 %v418_v20, %v218_v18 }
 0x19b   :  { %v608_v21 = vpop.xlane.xlu0 %607 }
 0x19c   :  { %v609_v29 = vadd.f32 %v608_v21, %v409_v22 }
 0x19d   :  { %v618_v25 = vpop.xlane.xlu1 %617 }
 0x19e   :  { %v619_v31 = vadd.f32 %v618_v25, %v419_v28 }
 0x1ab   :  { %v808_v30 = vpop.xlane.xlu0 %807 }
 0x1ac   :  { %v809_v32 = vadd.f32 %v808_v30, %v609_v29 }
 0x1ad   :  { %v818_v33 = vpop.xlane.xlu1 %817 }
 0x1ae   :  { %v820_v34 = vmul.f32 0.00048828125, %v809_v32  ;;  %v819_v35 = vadd.f32 %v818_v33, %v619_v31 }
 0x1b0   :  { %v822_v36 = vmul.f32 %v820_v34, %v820_v34  ;;  %v821_v37 = vmul.f32 0.00048828125, %v819_v35 }
 0x1b2   :  { %v823_v38 = vsub.f32 %v821_v37, %v822_v36  ;;  %v1373_v37 = vld [vmem:[%s2221_s4] sm:$0x7] }
 0x1b4   :  { %v824_v39 = vmax.f32 %v823_v38, 0.0 }
 0x1b6   :  { %v826_v40 = vadd.f32 1e-05, %v824_v39 }
 0x1b8   :  { %1775 = vrsqrt.f32 %v826_v40 }
 0x1c2   :  { %v1776_v46 = vpop.eup %1775 }
 0x1c3   :  { %v828_v47 = vmul.f32 %v1776_v46, %v825_v43 }
 0x1c5   :  { %834 = vperm.xlu0 %1677, %v828_v47   ;;  %v830_v49 = vmul.f32 %v828_v47, %v820_v34 }
 0x1c7   :  { %v831_v50 = vsub.f32 %v829_v48, %v830_v49 }
 0x1c9   :  { %843 = vperm.xlu1 %1678, %v831_v50  }
 0x244   :  { %v835_v52 = vpop.permute.xlu0 %834 }
 0x245   :  { %v838_v53 = vmul.f32 %v835_v52, %v2069_v8  ;;  %v840_v54 = vmul.f32 %v835_v52, %v2071_v9  ;;  %v837_v55 = vmul.f32 %v835_v52, %v2063_v5  ;;  %v839_v56 = vmul.f32 %v835_v52, %v2065_v6 }
 0x246   :  { %v1016_v57 = vmul.f32 %v835_v52, %v2089_v26  ;;  %v1018_v58 = vmul.f32 %v835_v52, %v2091_v27  ;;  %v1015_v0 = vmul.f32 %v835_v52, %v2083_v23  ;;  %v1017_v1 = vmul.f32 %v835_v52, %v2085_v24  ;;  %v854_v23 = vld [vmem:[%s2221_s4] sm:$0x7] }
 0x247   :  { %v1189_v2 = vmul.f32 %v835_v52, %v2109_v44  ;;  %v1191_v3 = vmul.f32 %v835_v52, %v2111_v45  ;;  %v1188_v24 = vmul.f32 %v835_v52, %v2103_v41  ;;  %v1190_v14 = vmul.f32 %v835_v52, %v2105_v42 }
 0x248   :  { %v844_v61 = vpop.permute.xlu1 %843  ;;  %v1362_v17 = vmul.f32 %v835_v52, %v2129_v62  ;;  %v1364_v18 = vmul.f32 %v835_v52, %v2131_v63  ;;  %v1027_v62 = vld [vmem:[%s2221_s4] sm:$0x7]  ;;  %v1361_v63 = vmul.f32 %v835_v52, %v2123_v59  ;;  %v1363_v29 = vmul.f32 %v835_v52, %v2125_v60 }
 0x249   :  { %v847_v8 = vadd.f32 %v844_v61, %v838_v53  ;;  %v849_v4 = vadd.f32 %v844_v61, %v840_v54  ;;  %v846_v9 = vadd.f32 %v844_v61, %v837_v55  ;;  %v848_v7 = vadd.f32 %v844_v61, %v839_v56  ;;  %v1200_v59 = vld [vmem:[%s2221_s4] sm:$0x7] }
 0x24a   :  { %v1020_v5 = vadd.f32 %v1016_v57, %v844_v61  ;;  %v1022_v10 = vadd.f32 %v1018_v58, %v844_v61  ;;  %v1019_v6 = vadd.f32 %v1015_v0, %v844_v61  ;;  %v1021_v11 = vadd.f32 %v1017_v1, %v844_v61 }
 0x24b   :  { %v851_v26 = vmax.f32 %v847_v8, 0.0  ;;  %v853_v12 = vmax.f32 %v849_v4, 0.0  ;;  %v850_v27 = vmax.f32 %v846_v9, 0.0  ;;  %v852_v13 = vmax.f32 %v848_v7, 0.0 }
 0x24c   :  { %v1193_v44 = vadd.f32 %v1189_v2, %v844_v61  ;;  %v1195_v45 = vadd.f32 %v1191_v3, %v844_v61  ;;  %v1024_v15 = vmax.f32 %v1020_v5, 0.0  ;;  %v1026_v16 = vmax.f32 %v1022_v10, 0.0 }
 0x24d   :  { %859 = vmatprep.subr.mxu0 %v851_v26  ;;  %930 = vmatprep.subr.mxu1 %v853_v12  ;;  %v1023_v19 = vmax.f32 %v1019_v6, 0.0  ;;  %v1025_v41 = vmax.f32 %v1021_v11, 0.0  ;;  %v1192_v20 = vadd.f32 %v1188_v24, %v844_v61  ;;  %v1194_v21 = vadd.f32 %v1190_v14, %v844_v61 }
 0x24e   :  { %860 = vmatpush1.msra.mxu0 %v850_v27  ;;  %931 = vmatpush1.msra.mxu1 %v852_v13  ;;  %v1197_v22 = vmax.f32 %v1193_v44, 0.0  ;;  %v1199_v42 = vmax.f32 %v1195_v45, 0.0  ;;  %v1366_v25 = vadd.f32 %v1362_v17, %v844_v61  ;;  %v1368_v28 = vadd.f32 %v1364_v18, %v844_v61 }
 0x24f   :  { %1661 = vmatmul.mubr.msk.f32.vlgmr.msra.gmra.mrb[16].mxu0 %vm855_vm1, %v854_v23  ;;  %1662 = vmatmul.mubr.msk.f32.vlgmr.msra.gmra.mrb[16].mxu1 %vm855_vm1, %v854_v23  ;;  %v1196_v30 = vmax.f32 %v1192_v20, 0.0  ;;  %v1198_v31 = vmax.f32 %v1194_v21, 0.0  ;;  %v1365_v32 = vadd.f32 %v1361_v63, %v844_v61  ;;  %v1367_v33 = vadd.f32 %v1363_v29, %v844_v61 }
 0x250   :  { %1031 = vmatprep.subr.mxu0 %v1024_v15  ;;  %1102 = vmatprep.subr.mxu1 %v1026_v16  ;;  %v1370_v34 = vmax.f32 %v1366_v25, 0.0  ;;  %v1372_v35 = vmax.f32 %v1368_v28, 0.0 }
 0x251   :  { %1032 = vmatpush1.msra.mxu0 %v1023_v19  ;;  %1103 = vmatpush1.msra.mxu1 %v1025_v41  ;;  %v1369_v60 = vmax.f32 %v1365_v32, 0.0  ;;  %v1371_v36 = vmax.f32 %v1367_v33, 0.0 }
 0x252   :  { %1204 = vmatprep.subr.mxu0 %v1197_v22  ;;  %1275 = vmatprep.subr.mxu1 %v1199_v42 }
 0x253   :  { %1095 = vmatprep.mubr.f32.mxu0 %v1810_v51  ;;  %1166 = vmatprep.mubr.f32.mxu1 %v1810_v51 }
 0x254   :  { %1663 = vmatmul.mubr.msk.f32.vlgmr.msra.gmra.mrb[18].mxu0 %vm855_vm1, %v1027_v62  ;;  %1664 = vmatmul.mubr.msk.f32.vlgmr.msra.gmra.mrb[18].mxu1 %vm855_vm1, %v1027_v62 }
 0x255   :  { %1205 = vmatpush1.msra.mxu0 %v1196_v30  ;;  %1276 = vmatpush1.msra.mxu1 %v1198_v31 }
 0x256   :  { %1377 = vmatprep.subr.mxu0 %v1370_v34  ;;  %1448 = vmatprep.subr.mxu1 %v1372_v35 }
 0x257   :  { %1268 = vmatprep.mubr.f32.mxu0 %v1810_v51  ;;  %1339 = vmatprep.mubr.f32.mxu1 %v1810_v51 }
 0x258   :  { %1667 = vmatmul.mubr.msk.f32.vlgmr.msra.gmra.mrb[20].mxu0 %vm855_vm1, %v1200_v59  ;;  %1668 = vmatmul.mubr.msk.f32.vlgmr.msra.gmra.mrb[20].mxu1 %vm855_vm1, %v1200_v59 }
 0x259   :  { %1378 = vmatpush1.msra.mxu0 %v1369_v60  ;;  %1449 = vmatpush1.msra.mxu1 %v1371_v36 }
 0x25a   :  { %1441 = vmatprep.mubr.f32.mxu0 %v1810_v51  ;;  %1512 = vmatprep.mubr.f32.mxu1 %v1810_v51 }
 0x25c   :  { %1671 = vmatmul.mubr.msk.f32.vlgmr.msra.gmra.mrb[22].mxu0 %vm855_vm1, %v1373_v37  ;;  %1672 = vmatmul.mubr.msk.f32.vlgmr.msra.gmra.mrb[22].mxu1 %vm855_vm1, %v1373_v37 }
 0x322   :  { %v925_v38 = vpop.f32.mrb[16].mxu0  ;;  %v996_v39 = vpop.f32.mrb[16].mxu1 }
 0x323   :  { %1777 = vtanh.f32 %v925_v38  ;;  %v927_v40 = vpop.f32.mrb[17].mxu0  ;;  %v998_v43 = vpop.f32.mrb[17].mxu1 }
 0x324   :  { %1779 = vtanh.f32 %v996_v39 }
 0x325   :  { %1781 = vtanh.f32 %v927_v40 }
 0x326   :  { %1783 = vtanh.f32 %v998_v43 }
 0x327   :  { %v1097_v46 = vpop.f32.mrb[18].mxu0  ;;  %v1168_v47 = vpop.f32.mrb[18].mxu1 }
 0x328   :  { %1785 = vtanh.f32 %v1097_v46  ;;  %v1099_v48 = vpop.f32.mrb[19].mxu0  ;;  %v1170_v49 = vpop.f32.mrb[19].mxu1 }
 0x329   :  { %1787 = vtanh.f32 %v1168_v47 }
 0x32a   :  { %1789 = vtanh.f32 %v1099_v48 }
 0x32b   :  { %1791 = vtanh.f32 %v1170_v49  ;;  %v1270_v50 = vpop.f32.mrb[20].mxu0  ;;  %v1341_v51 = vpop.f32.mrb[20].mxu1 }
 0x32c   :  { %1793 = vtanh.f32 %v1270_v50  ;;  %v1272_v52 = vpop.f32.mrb[21].mxu0  ;;  %v1343_v53 = vpop.f32.mrb[21].mxu1 }
 0x32d   :  { %v1778_v54 = vpop.eup %1777  ;;  %1795 = vtanh.f32 %v1341_v51 }
 0x32e   :  { %v1780_v55 = vpop.eup %1779  ;;  %1797 = vtanh.f32 %v1272_v52 }
 0x32f   :  { %v1782_v56 = vpop.eup %1781  ;;  %1799 = vtanh.f32 %v1343_v53  ;;  %v1443_v57 = vpop.f32.mrb[22].mxu0 }
 0x330   :  { %v1514_v58 = vpop.f32.mrb[22].mxu1  ;;  %v1784_v61 = vpop.eup %1783  ;;  %v1009_v0 = vcombine.low %v1778_v54, %v1782_v56  ;;  %1801 = vtanh.f32 %v1443_v57 }
 0x331   :  { %v1445_v1 = vpop.f32.mrb[23].mxu0  ;;  %v1516_v2 = vpop.f32.mrb[23].mxu1  ;;  %v1010_v3 = vcombine.low %v1780_v55, %v1784_v61  ;;  %1803 = vtanh.f32 %v1514_v58 }
 0x332   :  { %v1786_v8 = vpop.eup %1785  ;;  %1013 = vst [vmem:[%s2222_s5] sm:$0x77] %v1009_v0  ;;  %1805 = vtanh.f32 %v1445_v1 }
 0x333   :  { %v1788_v4 = vpop.eup %1787  ;;  %1014 = vst [vmem:[%s2222_s5 + $0x8] sm:$0x77] %v1010_v3  ;;  %1807 = vtanh.f32 %v1516_v2 }
 0x334   :  { %v1790_v9 = vpop.eup %1789 }
 0x335   :  { %v1792_v7 = vpop.eup %1791  ;;  %v1181_v5 = vcombine.low %v1786_v8, %v1790_v9 }
 0x336   :  { %v1794_v10 = vpop.eup %1793  ;;  %v1182_v6 = vcombine.low %v1788_v4, %v1792_v7 }
 0x337   :  { %v1796_v11 = vpop.eup %1795  ;;  %1665 = vst [vmem:[%s2222_s5 + $0x10] sm:$0x77] %v1181_v5 }
 0x338   :  { %v1798_v26 = vpop.eup %1797  ;;  %1666 = vst [vmem:[%s2222_s5 + $0x18] sm:$0x77] %v1182_v6 }
 0x339   :  { %v1800_v12 = vpop.eup %1799  ;;  %v1354_v27 = vcombine.low %v1794_v10, %v1798_v26 }
 0x33a   :  { %v1802_v13 = vpop.eup %1801  ;;  %v1355_v23 = vcombine.low %v1796_v11, %v1800_v12 }
 0x33b   :  { %v1804_v24 = vpop.eup %1803  ;;  %1669 = vst [vmem:[%s2222_s5 + $0x20] sm:$0x77] %v1354_v27 }
 0x33c   :  { %v1806_v44 = vpop.eup %1805  ;;  %1670 = vst [vmem:[%s2222_s5 + $0x28] sm:$0x77] %v1355_v23 }
 0x33d   :  { %v1808_v45 = vpop.eup %1807  ;;  %v1527_v14 = vcombine.low %v1802_v13, %v1806_v44 }
 0x33e   :  { %v1528_v15 = vcombine.low %v1804_v24, %v1808_v45 }
 0x33f   :  { %1673 = vst [vmem:[%s2222_s5 + $0x30] sm:$0x77] %v1527_v14 }
 0x340   :  { %1674 = vst [vmem:[%s2222_s5 + $0x38] sm:$0x77] %v1528_v15 }

</bundles_post_ra>
